<compile_context>
chip_gen: v7x
topology: tpu7x:2x2x1
jax: 0.10.0
libtpu: 0.0.40
codegen_flags: <defaults>
</compile_context>

<pallas_src>
import functools
import math

import jax
import jax.numpy as jnp
from jax.experimental import pallas as pl
from jax.experimental.pallas import tpu as pltpu

DATASET = "cifar10"   # -> input_channels=3, 32x32, num_classes=10, num_features=64*8*8
BETA = 0.95
NUM_STEPS = 10
THRESHOLD = 1.0

_CONV_VMEM_BUDGET = 10 << 20          # block-selection budget (fits every chip's default)
_VMEM_LIMIT = 32 * 1024 * 1024        # explicit scoped-VMEM limit (safe on v5e/v6e/v7x)


def _round_up(x, m):
    return ((x + m - 1) // m) * m


# ----------------------------------------------------------------------------
# Fused Conv3x3(pad=1) + bias + ReLU + MaxPool2x2 kernel.
# One (batch block, row strip) per grid step; single K=9*Cin bf16 MXU contraction.
# ----------------------------------------------------------------------------
def _conv3x3_relu_pool_kernel(p_ref, w_ref, b_ref, o_ref):
    # p_ref: (bn, hs*W, K)  bf16 im2col patches (rows ordered b-major, h, w)
    # w_ref: (K, Cout)      bf16 weights
    # b_ref: (1, Cout)      f32 bias
    # o_ref: (bn, hs//2, Wo, Cout) bf16 pooled output
    bn, hso, Wo, Cout = o_ref.shape
    W = 2 * Wo
    K = p_ref.shape[2]
    rows = p_ref.shape[1]                                   # hs * W

    patches = p_ref[...].reshape(bn * rows, K)              # fold batch into M
    acc = jnp.dot(patches, w_ref[...], preferred_element_type=jnp.float32)
    acc = jnp.maximum(acc + b_ref[...], 0.0)                # bias + ReLU (f32)

    # h-pool first: rows h=2i and h=2i+1 are W apart in the flat (h,w) order,
    # so pair them via two full, 8-aligned sublane slabs (plain VPU max).
    a3 = acc.reshape(bn * hso, 2 * W, Cout)
    hmax = jnp.maximum(a3[:, :W, :], a3[:, W:, :])          # (bn*hso, W, Cout)

    # w-pool on the (already halved) data: pair adjacent w.
    h4 = hmax.reshape(bn * hso, Wo, 2, Cout)
    pooled = jnp.maximum(h4[:, :, 0, :], h4[:, :, 1, :])    # (bn*hso, Wo, Cout)

    o_ref[...] = pooled.reshape(bn, hso, Wo, Cout).astype(o_ref.dtype)


def _im2col_3x3(x_nhwc):
    # (N, H, W, C) -> (N, H*W, 9*C) in bf16; tap order dh-major/dw-minor, ch innermost.
    N, H, W, C = x_nhwc.shape
    xp = jnp.pad(x_nhwc.astype(jnp.bfloat16), ((0, 0), (1, 1), (1, 1), (0, 0)))
    taps = [xp[:, dh:dh + H, dw:dw + W, :] for dh in range(3) for dw in range(3)]
    patches = jnp.stack(taps, axis=3)                       # (N, H, W, 9, C)
    return patches.reshape(N, H * W, 9 * C)


def _pick_strip_height(H):
    # Largest even divisor of H that is <= 16 (bounds the pre-pool accumulator).
    for hs in range(min(H, 16), 1, -1):
        if H % hs == 0 and hs % 2 == 0:
            return hs
    return H


def _pick_block_batch(N, W, hs, K, Cout, budget_bytes):
    # Conservative per-image-per-strip VMEM estimate (lane/sublane padded).
    rows = hs * W
    lanes_k = _round_up(K, 128)
    lanes_c = _round_up(Cout, 128)
    patch = rows * lanes_k * 2                      # bf16 patch block
    acc = rows * lanes_c * 4                        # f32 pre-pool matmul result
    hpool = (rows // 2) * lanes_c * 4               # h-pooled temp
    out = (hs // 2) * _round_up(W // 2, 8) * lanes_c * 2
    per_img = 2 * patch + acc + hpool + 2 * out     # x2 = double buffering
    bn_cap = max(1, budget_bytes // per_img)
    if N >= 2:
        bn_cap = min(bn_cap, N // 2)                # keep >=2 grid steps (v7x megacore)
    for cand in range(min(bn_cap, N), 0, -1):
        if N % cand == 0:
            return cand
    return 1


def conv3x3_relu_pool(x_nhwc, w_mat, b):
    # x_nhwc: (N, H, W, Cin); w_mat: (9*Cin, Cout) bf16; b: (Cout,) f32
    N, H, W, Cin = x_nhwc.shape
    K, Cout = w_mat.shape
    Ho, Wo = H // 2, W // 2
    hs = _pick_strip_height(H)
    bn = _pick_block_batch(N, W, hs, K, Cout, _CONV_VMEM_BUDGET)
    grid = (N // bn, H // hs)

    patches = _im2col_3x3(x_nhwc)                   # (N, H*W, K) bf16

    return pl.pallas_call(
        _conv3x3_relu_pool_kernel,
        out_shape=jax.ShapeDtypeStruct((N, Ho, Wo, Cout), jnp.bfloat16),
        grid_spec=pltpu.PrefetchScalarGridSpec(
            num_scalar_prefetch=0,
            grid=grid,
            in_specs=[
                pl.BlockSpec((bn, hs * W, K), lambda n, s: (n, s, 0)),
                pl.BlockSpec((K, Cout), lambda n, s: (0, 0)),
                pl.BlockSpec((1, Cout), lambda n, s: (0, 0)),
            ],
            out_specs=pl.BlockSpec((bn, hs // 2, Wo, Cout),
                                   lambda n, s: (n, s, 0, 0)),
        ),
        compiler_params=pltpu.CompilerParams(
            dimension_semantics=("parallel", "parallel"),
            vmem_limit_bytes=_VMEM_LIMIT),
    )(patches, w_mat, b.reshape(1, Cout))


# ----------------------------------------------------------------------------
# fc1 (hoisted out of the time loop): K-tiled matmul accumulating directly
# into the resident f32 output block (bias added at the last K step).
# ----------------------------------------------------------------------------
def _fc1_kernel(x_ref, w_ref, b_ref, o_ref):
    k = pl.program_id(0)

    @pl.when(k == 0)
    def _():
        o_ref[...] = jnp.zeros_like(o_ref)

    o_ref[...] += jnp.dot(x_ref[...], w_ref[...],
                          preferred_element_type=jnp.float32)

    @pl.when(k == pl.num_programs(0) - 1)
    def _():
        o_ref[...] += b_ref[...]


def linear_fc1(x, w, b):
    # x: (N, F) bf16; w: (F, Hid) bf16; b: (Hid,) f32
    N, F = x.shape
    Hid = w.shape[1]
    tk = next((t for t in (2048, 1568, 1024, 784, 512, 448, 256, 128) if F % t == 0), F)
    return pl.pallas_call(
        _fc1_kernel,
        out_shape=jax.ShapeDtypeStruct((N, Hid), jnp.float32),
        grid_spec=pltpu.PrefetchScalarGridSpec(
            num_scalar_prefetch=0,
            grid=(F // tk,),
            in_specs=[
                pl.BlockSpec((N, tk), lambda k: (0, k)),
                pl.BlockSpec((tk, Hid), lambda k: (k, 0)),
                pl.BlockSpec((1, Hid), lambda k: (0, 0)),
            ],
            out_specs=pl.BlockSpec((N, Hid), lambda k: (0, 0)),
        ),
        compiler_params=pltpu.CompilerParams(
            dimension_semantics=("arbitrary",),
            vmem_limit_bytes=_VMEM_LIMIT),
    )(x, w, b.reshape(1, Hid))


# ----------------------------------------------------------------------------
# Temporal SNN read-out: Leaky(fc1-current) -> fc2 -> Leaky.
# num_steps is a sequential grid axis; membranes persist in f32 VMEM scratch;
# per-step (N, 128) records are lane-dense output blocks.
# ----------------------------------------------------------------------------
def _snn_step_kernel(cur1_ref, w2_ref, b2_ref, spk_ref, mem_ref,
                     mem1_ref, mem2_ref, *, beta, threshold):
    @pl.when(pl.program_id(0) == 0)
    def _():
        mem1_ref[...] = jnp.zeros_like(mem1_ref)   # lif1.init_leaky()
        mem2_ref[...] = jnp.zeros_like(mem2_ref)   # lif2.init_leaky()

    # lif1: subtract-reset uses the pre-update membrane, strict '>' threshold (f32).
    mem1 = mem1_ref[...]
    reset1 = (mem1 > threshold).astype(jnp.float32)
    mem1 = beta * mem1 + cur1_ref[...] - reset1 * threshold
    spk1 = (mem1 > threshold)
    mem1_ref[...] = mem1

    # fc2: spk1 is exactly 0/1 -> bf16 operand is exact; accumulate in f32.
    cur2 = jnp.dot(spk1.astype(jnp.bfloat16), w2_ref[...],
                   preferred_element_type=jnp.float32) + b2_ref[...]

    # lif2
    mem2 = mem2_ref[...]
    reset2 = (mem2 > threshold).astype(jnp.float32)
    mem2 = beta * mem2 + cur2 - reset2 * threshold
    spk2 = (mem2 > threshold).astype(jnp.float32)
    mem2_ref[...] = mem2

    spk_ref[...] = spk2
    mem_ref[...] = mem2


def snn_time_loop(cur1, w2, b2, *, num_steps, beta, threshold):
    # cur1: (N, Hid) f32; w2: (Hid, Cp) bf16; b2: (Cp,) f32
    N, Hid = cur1.shape
    Cp = w2.shape[1]
    kernel = functools.partial(_snn_step_kernel, beta=beta, threshold=threshold)
    return pl.pallas_call(
        kernel,
        out_shape=(jax.ShapeDtypeStruct((num_steps, N, Cp), jnp.float32),
                   jax.ShapeDtypeStruct((num_steps, N, Cp), jnp.float32)),
        grid_spec=pltpu.PrefetchScalarGridSpec(
            num_scalar_prefetch=0,
            grid=(num_steps,),
            in_specs=[
                pl.BlockSpec((N, Hid), lambda t: (0, 0)),
                pl.BlockSpec((Hid, Cp), lambda t: (0, 0)),
                pl.BlockSpec((1, Cp), lambda t: (0, 0)),
            ],
            out_specs=[pl.BlockSpec((None, N, Cp), lambda t: (t, 0, 0)),
                       pl.BlockSpec((None, N, Cp), lambda t: (t, 0, 0))],
            scratch_shapes=[pltpu.VMEM((N, Hid), jnp.float32),
                            pltpu.VMEM((N, Cp), jnp.float32)],
        ),
        compiler_params=pltpu.CompilerParams(dimension_semantics=("arbitrary",)),
    )(cur1, w2, b2.reshape(1, Cp))


# ----------------------------------------------------------------------------
# Parameter init (PyTorch-shaped) + one-time layout preparation + forward.
# ----------------------------------------------------------------------------
def init_params(key, dataset):
    if dataset in ("cifar10", "cifar100"):
        cin, hw = 3, 32
    else:
        cin, hw = 1, 28
    ncls = 100 if dataset == "cifar100" else 10
    nfeat = 64 * (hw // 4) * (hw // 4)

    ks = jax.random.split(key, 8)

    def u(k, shape, fan_in):
        bound = 1.0 / math.sqrt(fan_in)
        return jax.random.uniform(k, shape, jnp.float32, -bound, bound)

    return {
        "conv1_w": u(ks[0], (32, cin, 3, 3), cin * 9),
        "conv1_b": u(ks[1], (32,), cin * 9),
        "conv2_w": u(ks[2], (64, 32, 3, 3), 32 * 9),
        "conv2_b": u(ks[3], (64,), 32 * 9),
        "fc1_w": u(ks[4], (1000, nfeat), nfeat),
        "fc1_b": u(ks[5], (1000,), nfeat),
        "fc2_w": u(ks[6], (10 if ncls == 10 else ncls, 1000), 1000),
        "fc2_b": u(ks[7], (10 if ncls == 10 else ncls,), 1000),
    }


def prepare_params(tp, dataset):
    """One-time conversion of PyTorch-layout tensors to kernel-friendly layout."""
    if dataset in ("cifar10", "cifar100"):
        cin, hw = 3, 32
    else:
        cin, hw = 1, 28
    hp = hw // 4                                    # spatial size after two pools
    hid = tp["fc1_w"].shape[0]                      # 1000
    ncls = tp["fc2_w"].shape[0]
    hid_p = _round_up(hid, 128)                     # 1024 (lane-dense fc1 output)
    ncls_p = _round_up(ncls, 128)                   # 128  (lane-dense fc2 output)

    # Conv weights: (Cout, Cin, 3, 3) -> (9*Cin, Cout), tap-major / channel-minor
    # (matches _im2col_3x3 patch layout); bf16 MXU operands.
    c1 = jnp.transpose(tp["conv1_w"], (2, 3, 1, 0)).reshape(9 * cin, -1).astype(jnp.bfloat16)
    c2 = jnp.transpose(tp["conv2_w"], (2, 3, 1, 0)).reshape(9 * 32, -1).astype(jnp.bfloat16)

    # fc1: permute input-feature rows from NCHW flatten (torch x.view(N,-1)) to
    # NHWC flatten order; pad Hid to 1024 with zero columns (inert); bf16.
    f1 = tp["fc1_w"].reshape(hid, 64, hp, hp)
    f1 = jnp.transpose(f1, (0, 2, 3, 1)).reshape(hid, -1).T            # (F, hid)
    f1 = jnp.pad(f1, ((0, 0), (0, hid_p - hid))).astype(jnp.bfloat16)  # (F, 1024)
    b1 = jnp.pad(tp["fc1_b"], (0, hid_p - hid))                        # f32 (1024,)

    # fc2: pad rows (zero spk1 padding) and cols (zero classes) -> lane-dense; bf16.
    f2 = jnp.pad(tp["fc2_w"].T,
                 ((0, hid_p - hid), (0, ncls_p - ncls))).astype(jnp.bfloat16)
    b2 = jnp.pad(tp["fc2_b"], (0, ncls_p - ncls))                      # f32 (128,)

    return {"conv1_w": c1, "conv1_b": tp["conv1_b"],
            "conv2_w": c2, "conv2_b": tp["conv2_b"],
            "fc1_w": f1, "fc1_b": b1,
            "fc2_w": f2, "fc2_b": b2}


def forward(prep, x_nchw, *, num_classes):
    # x_nchw: (N, Cin, H, W) -- PyTorch convention; transpose once at boundary.
    x = jnp.transpose(x_nchw, (0, 2, 3, 1))                           # NHWC
    x = conv3x3_relu_pool(x, prep["conv1_w"], prep["conv1_b"])        # (N,16,16,32) bf16
    x = conv3x3_relu_pool(x, prep["conv2_w"], prep["conv2_b"])        # (N, 8, 8,64) bf16
    feats = x.reshape(x.shape[0], -1)        # NHWC flatten (fc1_w rows pre-permuted)
    cur1 = linear_fc1(feats, prep["fc1_w"], prep["fc1_b"])            # (N, 1024) f32
    spk2_rec, mem2_rec = snn_time_loop(cur1, prep["fc2_w"], prep["fc2_b"],
                                       num_steps=NUM_STEPS, beta=BETA,
                                       threshold=THRESHOLD)
    # Drop the lane-padding of the class dimension outside the kernel.
    return spk2_rec[..., :num_classes], mem2_rec[..., :num_classes]


if __name__ == "__main__":
    key = jax.random.PRNGKey(0)
    k_param, k_x = jax.random.split(key)

    params = init_params(k_param, DATASET)
    prep = prepare_params(params, DATASET)          # one-time layout prep

    # Small smoke-test shapes (kernels pick larger batch blocks automatically at
    # realistic batch sizes): cifar10 -> (batch=2, C=3, 32, 32).
    x = jax.random.normal(k_x, (2, 3, 32, 32), dtype=jnp.float32)

    fwd = jax.jit(functools.partial(forward, num_classes=10))
    spk2_rec, mem2_rec = fwd(prep, x)
    jax.block_until_ready((spk2_rec, mem2_rec))

    assert spk2_rec.shape == (NUM_STEPS, 2, 10), spk2_rec.shape
    assert mem2_rec.shape == (NUM_STEPS, 2, 10), mem2_rec.shape
    assert bool(jnp.all(jnp.isfinite(mem2_rec)))
    assert bool(jnp.all((spk2_rec == 0.0) | (spk2_rec == 1.0)))
    print("KERNEL_OK")
</pallas_src>

<mosaic_0001>
module attributes {stable_mosaic.version = 11 : i64} {
  func.func @_conv3x3_relu_pool_kernel(%arg0: i32, %arg1: i32, %arg2: memref<1x512x27xbf16, #tpu.memory_space<vmem>>, %arg3: memref<27x32xbf16, #tpu.memory_space<vmem>>, %arg4: memref<1x32xf32, #tpu.memory_space<vmem>>, %arg5: memref<1x8x16x32xbf16, #tpu.memory_space<vmem>>) attributes {dimension_semantics = [#tpu.dimension_semantics<parallel>, #tpu.dimension_semantics<parallel>], iteration_bounds = array<i64: 2, 2>, scalar_prefetch = 0 : i64, scratch_operands = 0 : i64, tpu.core_type = #tpu.core_type<tc>, window_params = [{transform_indices = @transform_0, window_bounds = array<i64: 1, 512, 27>}, {pipeline_mode = #tpu.pipeline_mode<synchronous>, transform_indices = @transform_1, window_bounds = array<i64: 27, 32>}, {pipeline_mode = #tpu.pipeline_mode<synchronous>, transform_indices = @transform_2, window_bounds = array<i64: 1, 32>}, {transform_indices = @transform_3, window_bounds = array<i64: 1, 8, 16, 32>}]} {
    %c0 = arith.constant 0 : index
    %c0_0 = arith.constant 0 : index
    %c0_1 = arith.constant 0 : index
    %0 = vector.load %arg2[%c0, %c0_0, %c0_1] : memref<1x512x27xbf16, #tpu.memory_space<vmem>>, vector<1x512x27xbf16>
    %1 = vector.shape_cast %0 : vector<1x512x27xbf16> to vector<512x27xbf16>
    %c0_2 = arith.constant 0 : index
    %c0_3 = arith.constant 0 : index
    %2 = vector.load %arg3[%c0_2, %c0_3] : memref<27x32xbf16, #tpu.memory_space<vmem>>, vector<27x32xbf16>
    %cst = arith.constant dense<0.000000e+00> : vector<512x32xf32>
    %3 = tpu.matmul %1, %2, %cst {dimension_numbers = #tpu.dot_dimension_numbers<[1], [0], [0], [1], [0, 0, 1, 1], [], []>} : vector<512x27xbf16>, vector<27x32xbf16>, vector<512x32xf32> -> vector<512x32xf32>
    %c0_4 = arith.constant 0 : index
    %c0_5 = arith.constant 0 : index
    %4 = vector.load %arg4[%c0_4, %c0_5] : memref<1x32xf32, #tpu.memory_space<vmem>>, vector<1x32xf32>
    %5 = vector.broadcast %4 : vector<1x32xf32> to vector<512x32xf32>
    %6 = arith.addf %3, %5 : vector<512x32xf32>
    %cst_6 = arith.constant 0.000000e+00 : f32
    %7 = vector.broadcast %cst_6 : f32 to vector<512x32xf32>
    %8 = arith.maximumf %6, %7 : vector<512x32xf32>
    %9 = vector.shape_cast %8 : vector<512x32xf32> to vector<8x64x32xf32>
    %10 = vector.extract_strided_slice %9 {offsets = [0, 0, 0], sizes = [8, 32, 32], strides = [1, 1, 1]} : vector<8x64x32xf32> to vector<8x32x32xf32>
    %11 = vector.extract_strided_slice %9 {offsets = [0, 32, 0], sizes = [8, 32, 32], strides = [1, 1, 1]} : vector<8x64x32xf32> to vector<8x32x32xf32>
    %12 = arith.maximumf %10, %11 : vector<8x32x32xf32>
    %13 = vector.shape_cast %12 : vector<8x32x32xf32> to vector<8x16x2x32xf32>
    %14 = vector.extract_strided_slice %13 {offsets = [0, 0, 0, 0], sizes = [8, 16, 1, 32], strides = [1, 1, 1, 1]} : vector<8x16x2x32xf32> to vector<8x16x1x32xf32>
    %15 = vector.shape_cast %14 : vector<8x16x1x32xf32> to vector<8x16x32xf32>
    %16 = vector.extract_strided_slice %13 {offsets = [0, 0, 1, 0], sizes = [8, 16, 1, 32], strides = [1, 1, 1, 1]} : vector<8x16x2x32xf32> to vector<8x16x1x32xf32>
    %17 = vector.shape_cast %16 : vector<8x16x1x32xf32> to vector<8x16x32xf32>
    %18 = arith.maximumf %15, %17 : vector<8x16x32xf32>
    %19 = vector.shape_cast %18 : vector<8x16x32xf32> to vector<1x8x16x32xf32>
    %20 = arith.truncf %19 : vector<1x8x16x32xf32> to vector<1x8x16x32xbf16>
    %c0_7 = arith.constant 0 : index
    %c0_8 = arith.constant 0 : index
    %c0_9 = arith.constant 0 : index
    %c0_10 = arith.constant 0 : index
    %21 = vector.load %arg5[%c0_7, %c0_8, %c0_9, %c0_10] : memref<1x8x16x32xbf16, #tpu.memory_space<vmem>>, vector<1x8x16x32xbf16>
    tpu.vector_store %arg5[%c0_7, %c0_8, %c0_9, %c0_10], %20 {strides = array<i32>} : memref<1x8x16x32xbf16, #tpu.memory_space<vmem>>, vector<1x8x16x32xbf16>,
    return
  }
  func.func @transform_0(%arg0: i32, %arg1: i32) -> (i32, i32, i32) {
    %c0_i32 = arith.constant 0 : i32
    %c0_i32_0 = arith.constant 0 : i32
    return %arg0, %arg1, %c0_i32 : i32, i32, i32
  }
  func.func @transform_1(%arg0: i32, %arg1: i32) -> (i32, i32) {
    %c0_i32 = arith.constant 0 : i32
    %c0_i32_0 = arith.constant 0 : i32
    %c0_i32_1 = arith.constant 0 : i32
    return %c0_i32, %c0_i32_0 : i32, i32
  }
  func.func @transform_2(%arg0: i32, %arg1: i32) -> (i32, i32) {
    %c0_i32 = arith.constant 0 : i32
    %c0_i32_0 = arith.constant 0 : i32
    %c0_i32_1 = arith.constant 0 : i32
    return %c0_i32, %c0_i32_0 : i32, i32
  }
  func.func @transform_3(%arg0: i32, %arg1: i32) -> (i32, i32, i32, i32) {
    %c0_i32 = arith.constant 0 : i32
    %c0_i32_0 = arith.constant 0 : i32
    %c0_i32_1 = arith.constant 0 : i32
    return %arg0, %arg1, %c0_i32, %c0_i32_0 : i32, i32, i32, i32
  }
}

module attributes {stable_mosaic.version = 11 : i64} {
  func.func @_conv3x3_relu_pool_kernel(%arg0: i32, %arg1: i32, %arg2: memref<1x256x288xbf16, #tpu.memory_space<vmem>>, %arg3: memref<288x64xbf16, #tpu.memory_space<vmem>>, %arg4: memref<1x64xf32, #tpu.memory_space<vmem>>, %arg5: memref<1x8x8x64xbf16, #tpu.memory_space<vmem>>) attributes {dimension_semantics = [#tpu.dimension_semantics<parallel>, #tpu.dimension_semantics<parallel>], iteration_bounds = array<i64: 2, 1>, scalar_prefetch = 0 : i64, scratch_operands = 0 : i64, tpu.core_type = #tpu.core_type<tc>, window_params = [{transform_indices = @transform_0, window_bounds = array<i64: 1, 256, 288>}, {pipeline_mode = #tpu.pipeline_mode<synchronous>, transform_indices = @transform_1, window_bounds = array<i64: 288, 64>}, {pipeline_mode = #tpu.pipeline_mode<synchronous>, transform_indices = @transform_2, window_bounds = array<i64: 1, 64>}, {transform_indices = @transform_3, window_bounds = array<i64: 1, 8, 8, 64>}]} {
    %c0 = arith.constant 0 : index
    %c0_0 = arith.constant 0 : index
    %c0_1 = arith.constant 0 : index
    %0 = vector.load %arg2[%c0, %c0_0, %c0_1] : memref<1x256x288xbf16, #tpu.memory_space<vmem>>, vector<1x256x288xbf16>
    %1 = vector.shape_cast %0 : vector<1x256x288xbf16> to vector<256x288xbf16>
    %c0_2 = arith.constant 0 : index
    %c0_3 = arith.constant 0 : index
    %2 = vector.load %arg3[%c0_2, %c0_3] : memref<288x64xbf16, #tpu.memory_space<vmem>>, vector<288x64xbf16>
    %cst = arith.constant dense<0.000000e+00> : vector<256x64xf32>
    %3 = tpu.matmul %1, %2, %cst {dimension_numbers = #tpu.dot_dimension_numbers<[1], [0], [0], [1], [0, 0, 1, 1], [], []>} : vector<256x288xbf16>, vector<288x64xbf16>, vector<256x64xf32> -> vector<256x64xf32>
    %c0_4 = arith.constant 0 : index
    %c0_5 = arith.constant 0 : index
    %4 = vector.load %arg4[%c0_4, %c0_5] : memref<1x64xf32, #tpu.memory_space<vmem>>, vector<1x64xf32>
    %5 = vector.broadcast %4 : vector<1x64xf32> to vector<256x64xf32>
    %6 = arith.addf %3, %5 : vector<256x64xf32>
    %cst_6 = arith.constant 0.000000e+00 : f32
    %7 = vector.broadcast %cst_6 : f32 to vector<256x64xf32>
    %8 = arith.maximumf %6, %7 : vector<256x64xf32>
    %9 = vector.shape_cast %8 : vector<256x64xf32> to vector<8x32x64xf32>
    %10 = vector.extract_strided_slice %9 {offsets = [0, 0, 0], sizes = [8, 16, 64], strides = [1, 1, 1]} : vector<8x32x64xf32> to vector<8x16x64xf32>
    %11 = vector.extract_strided_slice %9 {offsets = [0, 16, 0], sizes = [8, 16, 64], strides = [1, 1, 1]} : vector<8x32x64xf32> to vector<8x16x64xf32>
    %12 = arith.maximumf %10, %11 : vector<8x16x64xf32>
    %13 = vector.shape_cast %12 : vector<8x16x64xf32> to vector<8x8x2x64xf32>
    %14 = vector.extract_strided_slice %13 {offsets = [0, 0, 0, 0], sizes = [8, 8, 1, 64], strides = [1, 1, 1, 1]} : vector<8x8x2x64xf32> to vector<8x8x1x64xf32>
    %15 = vector.shape_cast %14 : vector<8x8x1x64xf32> to vector<8x8x64xf32>
    %16 = vector.extract_strided_slice %13 {offsets = [0, 0, 1, 0], sizes = [8, 8, 1, 64], strides = [1, 1, 1, 1]} : vector<8x8x2x64xf32> to vector<8x8x1x64xf32>
    %17 = vector.shape_cast %16 : vector<8x8x1x64xf32> to vector<8x8x64xf32>
    %18 = arith.maximumf %15, %17 : vector<8x8x64xf32>
    %19 = vector.shape_cast %18 : vector<8x8x64xf32> to vector<1x8x8x64xf32>
    %20 = arith.truncf %19 : vector<1x8x8x64xf32> to vector<1x8x8x64xbf16>
    %c0_7 = arith.constant 0 : index
    %c0_8 = arith.constant 0 : index
    %c0_9 = arith.constant 0 : index
    %c0_10 = arith.constant 0 : index
    %21 = vector.load %arg5[%c0_7, %c0_8, %c0_9, %c0_10] : memref<1x8x8x64xbf16, #tpu.memory_space<vmem>>, vector<1x8x8x64xbf16>
    tpu.vector_store %arg5[%c0_7, %c0_8, %c0_9, %c0_10], %20 {strides = array<i32>} : memref<1x8x8x64xbf16, #tpu.memory_space<vmem>>, vector<1x8x8x64xbf16>,
    return
  }
  func.func @transform_0(%arg0: i32, %arg1: i32) -> (i32, i32, i32) {
    %c0_i32 = arith.constant 0 : i32
    %c0_i32_0 = arith.constant 0 : i32
    return %arg0, %arg1, %c0_i32 : i32, i32, i32
  }
  func.func @transform_1(%arg0: i32, %arg1: i32) -> (i32, i32) {
    %c0_i32 = arith.constant 0 : i32
    %c0_i32_0 = arith.constant 0 : i32
    %c0_i32_1 = arith.constant 0 : i32
    return %c0_i32, %c0_i32_0 : i32, i32
  }
  func.func @transform_2(%arg0: i32, %arg1: i32) -> (i32, i32) {
    %c0_i32 = arith.constant 0 : i32
    %c0_i32_0 = arith.constant 0 : i32
    %c0_i32_1 = arith.constant 0 : i32
    return %c0_i32, %c0_i32_0 : i32, i32
  }
  func.func @transform_3(%arg0: i32, %arg1: i32) -> (i32, i32, i32, i32) {
    %c0_i32 = arith.constant 0 : i32
    %c0_i32_0 = arith.constant 0 : i32
    %c0_i32_1 = arith.constant 0 : i32
    return %arg0, %arg1, %c0_i32, %c0_i32_0 : i32, i32, i32, i32
  }
}

module attributes {stable_mosaic.version = 11 : i64} {
  func.func @_fc1_kernel(%arg0: i32, %arg1: memref<2x2048xbf16, #tpu.memory_space<vmem>>, %arg2: memref<2048x1024xbf16, #tpu.memory_space<vmem>>, %arg3: memref<1x1024xf32, #tpu.memory_space<vmem>>, %arg4: memref<2x1024xf32, #tpu.memory_space<vmem>>) attributes {dimension_semantics = [#tpu.dimension_semantics<arbitrary>], iteration_bounds = array<i64: 2>, scalar_prefetch = 0 : i64, scratch_operands = 0 : i64, tpu.core_type = #tpu.core_type<tc>, window_params = [{transform_indices = @transform_0, window_bounds = array<i64: 2, 2048>}, {transform_indices = @transform_1, window_bounds = array<i64: 2048, 1024>}, {pipeline_mode = #tpu.pipeline_mode<synchronous>, transform_indices = @transform_2, window_bounds = array<i64: 1, 1024>}, {pipeline_mode = #tpu.pipeline_mode<synchronous>, transform_indices = @transform_3, window_bounds = array<i64: 2, 1024>}]} {
    %c0_i32 = arith.constant 0 : i32
    %0 = arith.cmpi eq, %arg0, %c0_i32 : i32
    %1 = arith.extui %0 : i1 to i32
    %c0_i32_0 = arith.constant 0 : i32
    %2 = arith.cmpi ne, %1, %c0_i32_0 : i32
    scf.if %2 {
      %cst_9 = arith.constant 0.000000e+00 : f32
      %12 = vector.broadcast %cst_9 : f32 to vector<2x1024xf32>
      %c0_10 = arith.constant 0 : index
      %c0_11 = arith.constant 0 : index
      %13 = vector.load %arg4[%c0_10, %c0_11] : memref<2x1024xf32, #tpu.memory_space<vmem>>, vector<2x1024xf32>
      tpu.vector_store %arg4[%c0_10, %c0_11], %12 {strides = array<i32>} : memref<2x1024xf32, #tpu.memory_space<vmem>>, vector<2x1024xf32>,
    } else {
    }
    %c0 = arith.constant 0 : index
    %c0_1 = arith.constant 0 : index
    %3 = vector.load %arg4[%c0, %c0_1] : memref<2x1024xf32, #tpu.memory_space<vmem>>, vector<2x1024xf32>
    %c0_2 = arith.constant 0 : index
    %c0_3 = arith.constant 0 : index
    %4 = vector.load %arg1[%c0_2, %c0_3] : memref<2x2048xbf16, #tpu.memory_space<vmem>>, vector<2x2048xbf16>
    %c0_4 = arith.constant 0 : index
    %c0_5 = arith.constant 0 : index
    %5 = vector.load %arg2[%c0_4, %c0_5] : memref<2048x1024xbf16, #tpu.memory_space<vmem>>, vector<2048x1024xbf16>
    %cst = arith.constant dense<0.000000e+00> : vector<2x1024xf32>
    %6 = tpu.matmul %4, %5, %cst {dimension_numbers = #tpu.dot_dimension_numbers<[1], [0], [0], [1], [0, 0, 1, 1], [], []>} : vector<2x2048xbf16>, vector<2048x1024xbf16>, vector<2x1024xf32> -> vector<2x1024xf32>
    %7 = arith.addf %3, %6 : vector<2x1024xf32>
    %c0_6 = arith.constant 0 : index
    %c0_7 = arith.constant 0 : index
    %8 = vector.load %arg4[%c0_6, %c0_7] : memref<2x1024xf32, #tpu.memory_space<vmem>>, vector<2x1024xf32>
    tpu.vector_store %arg4[%c0_6, %c0_7], %7 {strides = array<i32>} : memref<2x1024xf32, #tpu.memory_space<vmem>>, vector<2x1024xf32>,
    %c1_i32 = arith.constant 1 : i32
    %9 = arith.cmpi eq, %arg0, %c1_i32 : i32
    %10 = arith.extui %9 : i1 to i32
    %c0_i32_8 = arith.constant 0 : i32
    %11 = arith.cmpi ne, %10, %c0_i32_8 : i32
    scf.if %11 {
      %c0_9 = arith.constant 0 : index
      %c0_10 = arith.constant 0 : index
      %12 = vector.load %arg4[%c0_9, %c0_10] : memref<2x1024xf32, #tpu.memory_space<vmem>>, vector<2x1024xf32>
      %c0_11 = arith.constant 0 : index
      %c0_12 = arith.constant 0 : index
      %13 = vector.load %arg3[%c0_11, %c0_12] : memref<1x1024xf32, #tpu.memory_space<vmem>>, vector<1x1024xf32>
      %14 = vector.broadcast %13 : vector<1x1024xf32> to vector<2x1024xf32>
      %15 = arith.addf %12, %14 : vector<2x1024xf32>
      %c0_13 = arith.constant 0 : index
      %c0_14 = arith.constant 0 : index
      %16 = vector.load %arg4[%c0_13, %c0_14] : memref<2x1024xf32, #tpu.memory_space<vmem>>, vector<2x1024xf32>
      tpu.vector_store %arg4[%c0_13, %c0_14], %15 {strides = array<i32>} : memref<2x1024xf32, #tpu.memory_space<vmem>>, vector<2x1024xf32>,
    } else {
    }
    return
  }
  func.func @transform_0(%arg0: i32) -> (i32, i32) {
    %c0_i32 = arith.constant 0 : i32
    %c0_i32_0 = arith.constant 0 : i32
    return %c0_i32, %arg0 : i32, i32
  }
  func.func @transform_1(%arg0: i32) -> (i32, i32) {
    %c0_i32 = arith.constant 0 : i32
    %c0_i32_0 = arith.constant 0 : i32
    return %arg0, %c0_i32 : i32, i32
  }
  func.func @transform_2(%arg0: i32) -> (i32, i32) {
    %c0_i32 = arith.constant 0 : i32
    %c0_i32_0 = arith.constant 0 : i32
    %c0_i32_1 = arith.constant 0 : i32
    return %c0_i32, %c0_i32_0 : i32, i32
  }
  func.func @transform_3(%arg0: i32) -> (i32, i32) {
    %c0_i32 = arith.constant 0 : i32
    %c0_i32_0 = arith.constant 0 : i32
    %c0_i32_1 = arith.constant 0 : i32
    return %c0_i32, %c0_i32_0 : i32, i32
  }
}

module attributes {stable_mosaic.version = 11 : i64} {
  func.func @_snn_step_kernel(%arg0: i32, %arg1: memref<2x1024xf32, #tpu.memory_space<vmem>>, %arg2: memref<1024x128xbf16, #tpu.memory_space<vmem>>, %arg3: memref<1x128xf32, #tpu.memory_space<vmem>>, %arg4: memref<1x2x128xf32, #tpu.memory_space<vmem>>, %arg5: memref<1x2x128xf32, #tpu.memory_space<vmem>>, %arg6: memref<2x1024xf32, #tpu.memory_space<vmem>>, %arg7: memref<2x128xf32, #tpu.memory_space<vmem>>) attributes {dimension_semantics = [#tpu.dimension_semantics<arbitrary>], iteration_bounds = array<i64: 10>, scalar_prefetch = 0 : i64, scratch_operands = 2 : i64, tpu.core_type = #tpu.core_type<tc>, window_params = [{pipeline_mode = #tpu.pipeline_mode<synchronous>, transform_indices = @transform_0, window_bounds = array<i64: 2, 1024>}, {pipeline_mode = #tpu.pipeline_mode<synchronous>, transform_indices = @transform_1, window_bounds = array<i64: 1024, 128>}, {pipeline_mode = #tpu.pipeline_mode<synchronous>, transform_indices = @transform_2, window_bounds = array<i64: 1, 128>}, {transform_indices = @transform_3, window_bounds = array<i64: 1, 2, 128>}, {transform_indices = @transform_4, window_bounds = array<i64: 1, 2, 128>}]} {
    %c0_i32 = arith.constant 0 : i32
    %0 = arith.cmpi eq, %arg0, %c0_i32 : i32
    %1 = arith.extui %0 : i1 to i32
    %c0_i32_0 = arith.constant 0 : i32
    %2 = arith.cmpi ne, %1, %c0_i32_0 : i32
    scf.if %2 {
      %cst_28 = arith.constant 0.000000e+00 : f32
      %48 = vector.broadcast %cst_28 : f32 to vector<2x1024xf32>
      %c0_29 = arith.constant 0 : index
      %c0_30 = arith.constant 0 : index
      %49 = vector.load %arg6[%c0_29, %c0_30] : memref<2x1024xf32, #tpu.memory_space<vmem>>, vector<2x1024xf32>
      tpu.vector_store %arg6[%c0_29, %c0_30], %48 {strides = array<i32>} : memref<2x1024xf32, #tpu.memory_space<vmem>>, vector<2x1024xf32>,
      %cst_31 = arith.constant 0.000000e+00 : f32
      %50 = vector.broadcast %cst_31 : f32 to vector<2x128xf32>
      %c0_32 = arith.constant 0 : index
      %c0_33 = arith.constant 0 : index
      %51 = vector.load %arg7[%c0_32, %c0_33] : memref<2x128xf32, #tpu.memory_space<vmem>>, vector<2x128xf32>
      tpu.vector_store %arg7[%c0_32, %c0_33], %50 {strides = array<i32>} : memref<2x128xf32, #tpu.memory_space<vmem>>, vector<2x128xf32>,
    } else {
    }
    %c0 = arith.constant 0 : index
    %c0_1 = arith.constant 0 : index
    %3 = vector.load %arg6[%c0, %c0_1] : memref<2x1024xf32, #tpu.memory_space<vmem>>, vector<2x1024xf32>
    %cst = arith.constant 1.000000e+00 : f32
    %4 = vector.broadcast %cst : f32 to vector<2x1024xf32>
    %5 = arith.cmpf ogt, %3, %4 : vector<2x1024xf32>
    %6 = arith.extui %5 : vector<2x1024xi1> to vector<2x1024xi32>
    %7 = arith.sitofp %6 : vector<2x1024xi32> to vector<2x1024xf32>
    %cst_2 = arith.constant 0.949999988 : f32
    %8 = vector.broadcast %cst_2 : f32 to vector<2x1024xf32>
    %9 = arith.mulf %8, %3 : vector<2x1024xf32>
    %c0_3 = arith.constant 0 : index
    %c0_4 = arith.constant 0 : index
    %10 = vector.load %arg1[%c0_3, %c0_4] : memref<2x1024xf32, #tpu.memory_space<vmem>>, vector<2x1024xf32>
    %11 = arith.addf %9, %10 : vector<2x1024xf32>
    %cst_5 = arith.constant 1.000000e+00 : f32
    %12 = vector.broadcast %cst_5 : f32 to vector<2x1024xf32>
    %13 = arith.mulf %7, %12 : vector<2x1024xf32>
    %14 = arith.subf %11, %13 : vector<2x1024xf32>
    %cst_6 = arith.constant 1.000000e+00 : f32
    %15 = vector.broadcast %cst_6 : f32 to vector<2x1024xf32>
    %16 = arith.cmpf ogt, %14, %15 : vector<2x1024xf32>
    %c0_7 = arith.constant 0 : index
    %c0_8 = arith.constant 0 : index
    %17 = vector.load %arg6[%c0_7, %c0_8] : memref<2x1024xf32, #tpu.memory_space<vmem>>, vector<2x1024xf32>
    tpu.vector_store %arg6[%c0_7, %c0_8], %14 {strides = array<i32>} : memref<2x1024xf32, #tpu.memory_space<vmem>>, vector<2x1024xf32>,
    %18 = arith.extui %16 : vector<2x1024xi1> to vector<2x1024xi32>
    %19 = arith.sitofp %18 : vector<2x1024xi32> to vector<2x1024xf32>
    %20 = arith.truncf %19 : vector<2x1024xf32> to vector<2x1024xbf16>
    %c0_9 = arith.constant 0 : index
    %c0_10 = arith.constant 0 : index
    %21 = vector.load %arg2[%c0_9, %c0_10] : memref<1024x128xbf16, #tpu.memory_space<vmem>>, vector<1024x128xbf16>
    %cst_11 = arith.constant dense<0.000000e+00> : vector<2x128xf32>
    %22 = tpu.matmul %20, %21, %cst_11 {dimension_numbers = #tpu.dot_dimension_numbers<[1], [0], [0], [1], [0, 0, 1, 1], [], []>} : vector<2x1024xbf16>, vector<1024x128xbf16>, vector<2x128xf32> -> vector<2x128xf32>
    %c0_12 = arith.constant 0 : index
    %c0_13 = arith.constant 0 : index
    %23 = vector.load %arg3[%c0_12, %c0_13] : memref<1x128xf32, #tpu.memory_space<vmem>>, vector<1x128xf32>
    %24 = vector.broadcast %23 : vector<1x128xf32> to vector<2x128xf32>
    %25 = arith.addf %22, %24 : vector<2x128xf32>
    %c0_14 = arith.constant 0 : index
    %c0_15 = arith.constant 0 : index
    %26 = vector.load %arg7[%c0_14, %c0_15] : memref<2x128xf32, #tpu.memory_space<vmem>>, vector<2x128xf32>
    %cst_16 = arith.constant 1.000000e+00 : f32
    %27 = vector.broadcast %cst_16 : f32 to vector<2x128xf32>
    %28 = arith.cmpf ogt, %26, %27 : vector<2x128xf32>
    %29 = arith.extui %28 : vector<2x128xi1> to vector<2x128xi32>
    %30 = arith.sitofp %29 : vector<2x128xi32> to vector<2x128xf32>
    %cst_17 = arith.constant 0.949999988 : f32
    %31 = vector.broadcast %cst_17 : f32 to vector<2x128xf32>
    %32 = arith.mulf %31, %26 : vector<2x128xf32>
    %33 = arith.addf %32, %25 : vector<2x128xf32>
    %cst_18 = arith.constant 1.000000e+00 : f32
    %34 = vector.broadcast %cst_18 : f32 to vector<2x128xf32>
    %35 = arith.mulf %30, %34 : vector<2x128xf32>
    %36 = arith.subf %33, %35 : vector<2x128xf32>
    %cst_19 = arith.constant 1.000000e+00 : f32
    %37 = vector.broadcast %cst_19 : f32 to vector<2x128xf32>
    %38 = arith.cmpf ogt, %36, %37 : vector<2x128xf32>
    %39 = arith.extui %38 : vector<2x128xi1> to vector<2x128xi32>
    %40 = arith.sitofp %39 : vector<2x128xi32> to vector<2x128xf32>
    %c0_20 = arith.constant 0 : index
    %c0_21 = arith.constant 0 : index
    %41 = vector.load %arg7[%c0_20, %c0_21] : memref<2x128xf32, #tpu.memory_space<vmem>>, vector<2x128xf32>
    tpu.vector_store %arg7[%c0_20, %c0_21], %36 {strides = array<i32>} : memref<2x128xf32, #tpu.memory_space<vmem>>, vector<2x128xf32>,
    %c0_22 = arith.constant 0 : index
    %c0_23 = arith.constant 0 : index
    %c0_24 = arith.constant 0 : index
    %42 = vector.load %arg4[%c0_22, %c0_23, %c0_24] : memref<1x2x128xf32, #tpu.memory_space<vmem>>, vector<1x2x128xf32>
    %43 = vector.shape_cast %42 : vector<1x2x128xf32> to vector<2x128xf32>
    %44 = vector.shape_cast %40 : vector<2x128xf32> to vector<1x2x128xf32>
    tpu.vector_store %arg4[%c0_22, %c0_23, %c0_24], %44 {strides = array<i32>} : memref<1x2x128xf32, #tpu.memory_space<vmem>>, vector<1x2x128xf32>,
    %c0_25 = arith.constant 0 : index
    %c0_26 = arith.constant 0 : index
    %c0_27 = arith.constant 0 : index
    %45 = vector.load %arg5[%c0_25, %c0_26, %c0_27] : memref<1x2x128xf32, #tpu.memory_space<vmem>>, vector<1x2x128xf32>
    %46 = vector.shape_cast %45 : vector<1x2x128xf32> to vector<2x128xf32>
    %47 = vector.shape_cast %36 : vector<2x128xf32> to vector<1x2x128xf32>
    tpu.vector_store %arg5[%c0_25, %c0_26, %c0_27], %47 {strides = array<i32>} : memref<1x2x128xf32, #tpu.memory_space<vmem>>, vector<1x2x128xf32>,
    return
  }
  func.func @transform_0(%arg0: i32) -> (i32, i32) {
    %c0_i32 = arith.constant 0 : i32
    %c0_i32_0 = arith.constant 0 : i32
    %c0_i32_1 = arith.constant 0 : i32
    return %c0_i32, %c0_i32_0 : i32, i32
  }
  func.func @transform_1(%arg0: i32) -> (i32, i32) {
    %c0_i32 = arith.constant 0 : i32
    %c0_i32_0 = arith.constant 0 : i32
    %c0_i32_1 = arith.constant 0 : i32
    return %c0_i32, %c0_i32_0 : i32, i32
  }
  func.func @transform_2(%arg0: i32) -> (i32, i32) {
    %c0_i32 = arith.constant 0 : i32
    %c0_i32_0 = arith.constant 0 : i32
    %c0_i32_1 = arith.constant 0 : i32
    return %c0_i32, %c0_i32_0 : i32, i32
  }
  func.func @transform_3(%arg0: i32) -> (i32, i32, i32) {
    %c0_i32 = arith.constant 0 : i32
    %c0_i32_0 = arith.constant 0 : i32
    %c0_i32_1 = arith.constant 0 : i32
    return %arg0, %c0_i32, %c0_i32_0 : i32, i32, i32
  }
  func.func @transform_4(%arg0: i32) -> (i32, i32, i32) {
    %c0_i32 = arith.constant 0 : i32
    %c0_i32_0 = arith.constant 0 : i32
    %c0_i32_1 = arith.constant 0 : i32
    return %arg0, %c0_i32, %c0_i32_0 : i32, i32, i32
  }
}

</mosaic_0001>

<bundles_post_ra>
// kernel: forward.4
= control target key start
LH: loop header
LB: loop body
LE: loop exit
PB: predicated region body
PF: predicated region fallthrough
CT: control target
= control target key end

     0   :  { %s3891_s12 = smov 0   ;;  %s3893_s13 = smov 0   ;;  %s4755_s0 = inlined_call_operand.vmem [shape: bf16[2,1024,27], index: 0, kind: input, shape index: {}]   ;;  %s4756_s1 = inlined_call_operand.vmem [shape: bf16[27,32], index: 1, kind: input, shape index: {}]   ;;  %s4757_s2 = inlined_call_operand.vmem [shape: f32[1,32], index: 2, kind: input, shape index: {}]   ;;  %s4758_s3 = inlined_call_operand.vmem [shape: bf16[2,16,16,32], index: 3, kind: output, shape index: {}]  }
   0x1   :  { %s3895_s14 = smov 0   ;;  %s3897_s15 = smov 0  }
   0x2   :  { %s3899_s16 = smov 0  }
   0x3 LB: > { %s22_s17 = sadd.s32 1, %s3859_s14  ;;  %s25_s18 = sadd.s32 1, %s3863_s15  ;;  %s3867_s16 = sphi %s3899_s16, %s13_s16   ;;  %s3863_s15 = sphi %s3897_s15, %s4800_s15   ;;  %s3859_s14 = sphi %s3895_s14, %s4799_s14   ;;  %s3855_s13 = sphi %s3893_s13, %s4798_s13   ;;  %s3851_s12 = sphi %s3891_s12, %s4797_s12  }
   0x4   : > { %p23_p0 = scmp.ge.s32.totalorder %s22_s17, 2  ;;  %p3184_p1 = scmp.ge.s32.totalorder %s3867_s16, 1 }
   0x5   : > { %p158_p2 = scmp.lt.s32.totalorder %s3867_s16, 5 }
   0x6   : > { %s4802_s17 = smov (%p23_p0, %s22_s17), 0  ;;  %s4804_s18 = smov (!%p23_p0, %s25_s18), %s3863_s15 }
   0x7   : > { %p159_p3 = pnand %p3184_p1, %p158_p2  ;;  %p27_p4 = scmp.ge.s32.totalorder %s4804_s18, 2 }
   0x9   : > { %s4806_s18 = smov (%p27_p4, %s4804_s18), 0  ;;  %162 = sbr.rel (%p159_p3) target bundleno = 522 (0x20a), region = 32 }
  0x10   : > { %v3793_v0 = vld [vmem:[%s4756_s1] sm:$0xff]   ;;  %vm556_vm0 = vcmask 1044480   ;;  %v3794_v1 = vld [vmem:[%s4756_s1 + $0x8] sm:$0x3f]   ;;  %vm557_vm1 = vcmask 1045504   ;;  %s3185_s23 = sshll.u32 %s3851_s12, 6  ;;  %v984_v41 = vlaneseq }
  0x11   : > { %3679 = vmatprep.subr.bf16.mxu0 %v3793_v0  ;;  %3747 = vmatprep.subr.bf16.mxu1 %v3793_v0  ;;  %p192_p5 = scmp.lt.s32.totalorder %s3855_s13, 1  ;;  %v3869_v2 = vmov 65535   ;;  %p194_p6 = scmp.lt.s32.totalorder %s3185_s23, 127  ;;  %vm459_vm2 = vcmask 220160   ;;  %v3870_v39 = vmov 1983009808  }
  0x12   : > { %3680 = vmatpush3.bf16.msra.mxu0 %v3793_v0  ;;  %3749 = vmatpush3.bf16.msra.mxu1 %v3793_v0  ;;  %v558_v3 = vsel %vm556_vm0, 4294967295, %v3869_v2  ;;  %v982_v40 = vunpack.c.l.s4 %v3870_v39  ;;  %v4005_v42 = vld [vmem:[%s4757_s2] ss:$0 sm:$0xff]  ;;  %v985_v52 = vshrl.u32 %v984_v41, 7  ;;  %vm2805_vm3 = vcmask 1041409   ;;  %s3188_s5 = sshll.u32 %s3851_s12, 3 }
  0x13   : > { %v559_v4 = vsel %vm557_vm1, %v558_v3, 0  ;;  %s4808_s13 = smov (!%p192_p5, %s3855_s13), 1  ;;  %s4810_s23 = smov (!%p194_p6, %s3185_s23), 127  ;;  %vm2808_vm4 = vcmask 1042434   ;;  %vm2811_vm5 = vcmask 1043459   ;;  %vm2814_vm6 = vcmask 1044484  }
  0x14   : > { %v561_v5 = vand.u32 %v3794_v1, %v559_v4  ;;  %s3186_s24 = sshll.u32 %s4808_s13, 7  ;;  %v983_v51 = vunpack.c.0.s8 %v982_v40  ;;  %p4141_p7 = scmp.lt.s32.totalorder %s3188_s5, 15  ;;  %vm2817_vm7 = vcmask 1045509   ;;  %vm2820_vm8 = vcmask 1046534  }
  0x15   : > { %s197_s25 = sadd.s32 %s3186_s24, %s4810_s23  ;;  %vm2823_vm9 = vcmask 1047559   ;;  %s3190_s8 = sshll.u32 %s4808_s13, 5  ;;  %vm3067_vm10 = vcmask 257024  }
  0x16   : > { %3681 = vmatprep.subr.bf16.mxu0 %v561_v5  ;;  %3748 = vmatprep.subr.bf16.mxu1 %v561_v5  ;;  %s3187_s26 = sshll.u32 %s197_s25, 2  ;;  %v4021_v62 = vsub.s32 %v983_v51, %v985_v52  ;;  %s4812_s5 = smov (!%p4141_p7, %s3188_s5), 15 }
  0x17   : > { %3682 = vmatpush3.bf16.msra.mxu0 %v561_v5  ;;  %3750 = vmatpush3.bf16.msra.mxu1 %v561_v5  ;;  %s3936_s29 = scalar_lea.vmem %s4755_s0, %s3187_s26  ;;  %s3189_s7 = sshll.u32 %s4812_s5, 1 }
  0x18   : > { %v3795_v6 = vld [vmem:[%s3936_s29] sm:$0xff]   ;;  %v3797_v8 = vld [vmem:[%s3936_s29 + $0x8] sm:$0xff]   ;;  %v3799_v10 = vld [vmem:[%s3936_s29 + $0x10] sm:$0xff]   ;;  %s208_s9 = sadd.s32 %s3190_s8, %s3189_s7 }
  0x19   : > { %v3796_v7 = vld [vmem:[%s3936_s29 + $0x80] sm:$0xff]   ;;  %3683 = vmatprep.mubr.msk.bf16.mxu0 %vm459_vm2, %v3795_v6  ;;  %v3798_v9 = vld [vmem:[%s3936_s29 + $0x88] sm:$0xff]   ;;  %v3800_v11 = vld [vmem:[%s3936_s29 + $0x90] sm:$0xff]   ;;  %s3191_s10 = sshll.u32 %s208_s9, 2 }
  0x1a   : > { %3715 = vmatprep.mubr.msk.bf16.mxu1 %vm459_vm2, %v3796_v7  ;;  %3684 = vmatmul.mubr.msk.bf16.vlgmr.msra.gmra.mrb[0].mxu0 %vm459_vm2, %v3797_v8  ;;  %v3801_v12 = vld [vmem:[%s3936_s29 + $0x18] sm:$0xff]   ;;  %v3803_v14 = vld [vmem:[%s3936_s29 + $0x20] sm:$0xff]   ;;  %v3805_v16 = vld [vmem:[%s3936_s29 + $0x28] sm:$0xff]   ;;  %s4209_s13 = scalar_lea.vmem %s4758_s3, %s3191_s10 }
  0x1b   : > { %3716 = vmatmul.mubr.msk.bf16.vlgmr.msra.gmra.mrb[0].mxu1 %vm459_vm2, %v3798_v9  ;;  %3687 = vmatprep.mubr.msk.bf16.mxu0 %vm459_vm2, %v3799_v10  ;;  %v3802_v13 = vld [vmem:[%s3936_s29 + $0x98] sm:$0xff]   ;;  %v3804_v15 = vld [vmem:[%s3936_s29 + $0xa0] sm:$0xff]   ;;  %v3806_v17 = vld [vmem:[%s3936_s29 + $0xa8] sm:$0xff]  }
  0x1c   : > { %3719 = vmatprep.mubr.msk.bf16.mxu1 %vm459_vm2, %v3800_v11  ;;  %v3807_v18 = vld [vmem:[%s3936_s29 + $0x30] sm:$0xff]   ;;  %v3809_v20 = vld [vmem:[%s3936_s29 + $0x38] sm:$0xff]   ;;  %v3811_v22 = vld [vmem:[%s3936_s29 + $0x40] sm:$0xff]  }
  0x1d   : > { %v3808_v19 = vld [vmem:[%s3936_s29 + $0xb0] sm:$0xff]   ;;  %v3810_v21 = vld [vmem:[%s3936_s29 + $0xb8] sm:$0xff]   ;;  %v3812_v23 = vld [vmem:[%s3936_s29 + $0xc0] sm:$0xff]  }
  0x1e   : > { %v3813_v24 = vld [vmem:[%s3936_s29 + $0x48] sm:$0xff]   ;;  %v3815_v26 = vld [vmem:[%s3936_s29 + $0x50] sm:$0xff]   ;;  %v3817_v28 = vld [vmem:[%s3936_s29 + $0x58] sm:$0xff]  }
  0x1f   : > { %v3814_v25 = vld [vmem:[%s3936_s29 + $0xc8] sm:$0xff]   ;;  %v3816_v27 = vld [vmem:[%s3936_s29 + $0xd0] sm:$0xff]   ;;  %v3818_v29 = vld [vmem:[%s3936_s29 + $0xd8] sm:$0xff]  }
  0x20   : > { %v3819_v30 = vld [vmem:[%s3936_s29 + $0x60] sm:$0xff]   ;;  %v3821_v32 = vld [vmem:[%s3936_s29 + $0x68] sm:$0xff]   ;;  %v3823_v34 = vld [vmem:[%s3936_s29 + $0x70] sm:$0xff]  }
  0x21   : > { %v3820_v31 = vld [vmem:[%s3936_s29 + $0xe0] sm:$0xff]   ;;  %v3822_v33 = vld [vmem:[%s3936_s29 + $0xe8] sm:$0xff]   ;;  %v3824_v35 = vld [vmem:[%s3936_s29 + $0xf0] sm:$0xff]  }
  0x22   : > { %3688 = vmatmul.mubr.msk.bf16.gmra.mrb[4].mxu0 %vm459_vm2, %v3801_v12  ;;  %v3825_v36 = vld [vmem:[%s3936_s29 + $0x78] sm:$0xff]  }
  0x23   : > { %3720 = vmatmul.mubr.msk.bf16.gmra.mrb[4].mxu1 %vm459_vm2, %v3802_v13  ;;  %3691 = vmatprep.mubr.msk.bf16.mxu0 %vm459_vm2, %v3803_v14  ;;  %v3826_v37 = vld [vmem:[%s3936_s29 + $0xf8] sm:$0xff]  }
  0x24   : > { %3723 = vmatprep.mubr.msk.bf16.mxu1 %vm459_vm2, %v3804_v15 }
  0x2a   : > { %3692 = vmatmul.mubr.msk.bf16.gmra.mrb[8].mxu0 %vm459_vm2, %v3805_v16 }
  0x2b   : > { %3724 = vmatmul.mubr.msk.bf16.gmra.mrb[8].mxu1 %vm459_vm2, %v3806_v17  ;;  %3695 = vmatprep.mubr.msk.bf16.mxu0 %vm459_vm2, %v3807_v18 }
  0x2c   : > { %3727 = vmatprep.mubr.msk.bf16.mxu1 %vm459_vm2, %v3808_v19 }
  0x32   : > { %3696 = vmatmul.mubr.msk.bf16.gmra.mrb[12].mxu0 %vm459_vm2, %v3809_v20 }
  0x33   : > { %3728 = vmatmul.mubr.msk.bf16.gmra.mrb[12].mxu1 %vm459_vm2, %v3810_v21  ;;  %3699 = vmatprep.mubr.msk.bf16.mxu0 %vm459_vm2, %v3811_v22 }
  0x34   : > { %3731 = vmatprep.mubr.msk.bf16.mxu1 %vm459_vm2, %v3812_v23 }
  0x3a   : > { %3700 = vmatmul.mubr.msk.bf16.gmra.mrb[16].mxu0 %vm459_vm2, %v3813_v24 }
  0x3b   : > { %3732 = vmatmul.mubr.msk.bf16.gmra.mrb[16].mxu1 %vm459_vm2, %v3814_v25  ;;  %3703 = vmatprep.mubr.msk.bf16.mxu0 %vm459_vm2, %v3815_v26 }
  0x3c   : > { %3735 = vmatprep.mubr.msk.bf16.mxu1 %vm459_vm2, %v3816_v27 }
  0x42   : > { %3704 = vmatmul.mubr.msk.bf16.gmra.mrb[20].mxu0 %vm459_vm2, %v3817_v28 }
  0x43   : > { %3736 = vmatmul.mubr.msk.bf16.gmra.mrb[20].mxu1 %vm459_vm2, %v3818_v29  ;;  %3707 = vmatprep.mubr.msk.bf16.mxu0 %vm459_vm2, %v3819_v30 }
  0x44   : > { %3739 = vmatprep.mubr.msk.bf16.mxu1 %vm459_vm2, %v3820_v31 }
  0x4a   : > { %3708 = vmatmul.mubr.msk.bf16.gmra.mrb[24].mxu0 %vm459_vm2, %v3821_v32 }
  0x4b   : > { %3740 = vmatmul.mubr.msk.bf16.gmra.mrb[24].mxu1 %vm459_vm2, %v3822_v33  ;;  %3711 = vmatprep.mubr.msk.bf16.mxu0 %vm459_vm2, %v3823_v34 }
  0x4c   : > { %3743 = vmatprep.mubr.msk.bf16.mxu1 %vm459_vm2, %v3824_v35 }
  0x52   : > { %3712 = vmatmul.mubr.msk.bf16.gmra.mrb[28].mxu0 %vm459_vm2, %v3825_v36 }
  0x53   : > { %3744 = vmatmul.mubr.msk.bf16.gmra.mrb[28].mxu1 %vm459_vm2, %v3826_v37 }
  0xed   : > { %v3685_v38 = vpop.f32.mrb[0].mxu0 }
  0xee   : > { %v3717_v43 = vpop.f32.mrb[0].mxu1  ;;  %v597_v44 = vpop.f32.mrb[1].mxu0  ;;  %v606_v49 = vadd.f32 %v3685_v38, %v4005_v42 }
  0xef   : > { %v725_v45 = vpop.f32.mrb[1].mxu1  ;;  %v3686_v46 = vpop.f32.mrb[2].mxu0  ;;  %v734_v53 = vadd.f32 %v3717_v43, %v4005_v42  ;;  %v598_v54 = vadd.f32 %v4005_v42, %v597_v44 }
  0xf0   : > { %v3718_v47 = vpop.f32.mrb[2].mxu1  ;;  %v600_v48 = vpop.f32.mrb[3].mxu0  ;;  %v726_v55 = vadd.f32 %v4005_v42, %v725_v45  ;;  %v609_v56 = vadd.f32 %v3686_v46, %v4005_v42  ;;  %v854_v59 = vmax.f32 %v606_v49, 0.0 }
  0xf1   : > { %v728_v50 = vpop.f32.mrb[3].mxu1  ;;  %v4013_v57 = vadd.f32 %v3718_v47, %v4005_v42  ;;  %v4016_v58 = vadd.f32 %v4005_v42, %v600_v48  ;;  %v886_v63 = vmax.f32 %v734_v53, 0.0  ;;  %v852_v0 = vmax.f32 %v598_v54, 0.0 }
  0xf2   : > { %v4019_v60 = vadd.f32 %v4005_v42, %v728_v50  ;;  %v884_v1 = vmax.f32 %v726_v55, 0.0  ;;  %v855_v5 = vmax.f32 %v609_v56, 0.0 }
  0xf5   : > { %v3689_v61 = vpop.f32.mrb[4].mxu0 }
  0xf6   : > { %v622_v2 = vadd.f32 %v3689_v61, %v4005_v42  ;;  %v3721_v3 = vpop.f32.mrb[4].mxu1  ;;  %v613_v4 = vpop.f32.mrb[5].mxu0 }
  0xf7   : > { %v750_v7 = vadd.f32 %v3721_v3, %v4005_v42  ;;  %v614_v8 = vadd.f32 %v4005_v42, %v613_v4  ;;  %v741_v9 = vpop.f32.mrb[5].mxu1  ;;  %v3690_v10 = vpop.f32.mrb[6].mxu0 }
  0xf8   : > { %v858_v12 = vmax.f32 %v622_v2, 0.0  ;;  %v742_v13 = vadd.f32 %v4005_v42, %v741_v9  ;;  %v625_v14 = vadd.f32 %v3690_v10, %v4005_v42  ;;  %v3722_v15 = vpop.f32.mrb[6].mxu1  ;;  %v616_v16 = vpop.f32.mrb[7].mxu0 }
  0xf9   : > { %v890_v18 = vmax.f32 %v750_v7, 0.0  ;;  %v856_v19 = vmax.f32 %v614_v8, 0.0  ;;  %v4032_v20 = vadd.f32 %v3722_v15, %v4005_v42  ;;  %v744_v21 = vpop.f32.mrb[7].mxu1  ;;  %v4035_v25 = vadd.f32 %v4005_v42, %v616_v16 }
  0xfa   : > { %v918_v22 = vmax.f32 %v854_v59, %v858_v12  ;;  %v888_v23 = vmax.f32 %v742_v13, 0.0  ;;  %v859_v24 = vmax.f32 %v625_v14, 0.0  ;;  %v4039_v29 = vadd.f32 %v4005_v42, %v744_v21 }
  0xfb   : > { %v934_v26 = vmax.f32 %v886_v63, %v890_v18  ;;  %v916_v27 = vmax.f32 %v852_v0, %v856_v19 }
  0xfc   : > { %v1014_v30 = vcombine.high %v918_v22, %v918_v22  ;;  %v1021_v31 = vrot.slane %v918_v22, %v4021_v62  ;;  %v4042_v32 = vmax.f32 %v884_v1, %v888_v23  ;;  %v4044_v33 = vmax.f32 %v855_v5, %v859_v24 }
  0xfd   : > { %v1286_v34 = vcombine.high %v934_v26, %v934_v26  ;;  %v1293_v35 = vrot.slane %v934_v26, %v4021_v62  ;;  %v980_v36 = vcombine.high %v916_v27, %v916_v27  ;;  %v4048_v37 = vrot.slane %v916_v27, %v4021_v62  ;;  %v4050_v38 = vpop.f32.mrb[8].mxu0 }
  0xfe   : > { %v1028_v39 = vrot.slane %v1014_v30, %v4021_v62  ;;  %v1029_v40 = vcombine.high %v1021_v31, %v1021_v31  ;;  %v3267_v41 = vrot.slane %v1021_v31, 9  ;;  %v1252_v43 = vcombine.high %v4042_v32, %v4042_v32  ;;  %v4055_v44 = vpop.f32.mrb[8].mxu1  ;;  %v4057_v45 = vpop.f32.mrb[9].mxu0 }
  0xff   : > { %v1300_v46 = vrot.slane %v1286_v34, %v4021_v62  ;;  %v1301_v47 = vcombine.high %v1293_v35, %v1293_v35  ;;  %v3331_v48 = vrot.slane %v1293_v35, 9  ;;  %v4061_v49 = vrot.slane %v980_v36, %v4021_v62  ;;  %v4063_v50 = vpop.f32.mrb[9].mxu1  ;;  %v4065_v51 = vpop.f32.mrb[10].mxu0 }
 0x100   : > { %v1030_v52 = vcombine.high %v1028_v39, %v1028_v39  ;;  %v3268_v53 = vrot.slane %v1029_v40, 9  ;;  %v3269_v54 = vrot.slane %v1028_v39, 9  ;;  %v2044_v55 = vmax.f32 %v1021_v31, %v3267_v41  ;;  %v4067_v56 = vpop.f32.mrb[10].mxu1  ;;  %v4069_v59 = vpop.f32.mrb[11].mxu0 }
 0x101   : > { %v1302_v61 = vcombine.high %v1300_v46, %v1300_v46  ;;  %v3332_v63 = vrot.slane %v1301_v47, 9  ;;  %v3333_v0 = vrot.slane %v1300_v46, 9  ;;  %v2108_v1 = vmax.f32 %v1293_v35, %v3331_v48  ;;  %v4071_v2 = vpop.f32.mrb[11].mxu1 }
 0x102   : > { %v3270_v3 = vrot.slane %v1030_v52, 9  ;;  %v2045_v4 = vmax.f32 %v1029_v40, %v3268_v53  ;;  %v2046_v5 = vmax.f32 %v1028_v39, %v3269_v54  ;;  %v3525_v7 = vpack.c.bf16 %v2044_v55, %v2044_v55 }
 0x103   : > { %v3334_v8 = vrot.slane %v1302_v61, 9  ;;  %v2109_v9 = vmax.f32 %v1301_v47, %v3332_v63  ;;  %v2110_v10 = vmax.f32 %v1300_v46, %v3333_v0  ;;  %v3589_v12 = vpack.c.bf16 %v2108_v1, %v2108_v1 }
 0x104   : > { %v2047_v13 = vmax.f32 %v1030_v52, %v3270_v3  ;;  %v3526_v14 = vpack.c.bf16 %v2045_v4, %v2045_v4  ;;  %v3527_v15 = vpack.c.bf16 %v2046_v5, %v2046_v5  ;;  %v2684_v16 = vunpack.c.l.b16 %v3525_v7 }
 0x105   : > { %v2111_v18 = vmax.f32 %v1302_v61, %v3334_v8  ;;  %v3590_v19 = vpack.c.bf16 %v2109_v9, %v2109_v9  ;;  %v3591_v21 = vpack.c.bf16 %v2110_v10, %v2110_v10  ;;  %v2748_v22 = vunpack.c.l.b16 %v3589_v12  ;;  %v4073_v23 = vpop.f32.mrb[12].mxu0 }
 0x106   : > { %v3528_v24 = vpack.c.bf16 %v2047_v13, %v2047_v13  ;;  %v2685_v26 = vunpack.c.l.b16 %v3526_v14  ;;  %v2686_v27 = vunpack.c.l.b16 %v3527_v15  ;;  %v995_v30 = vcombine.high %v4048_v37, %v4048_v37  ;;  %v4077_v31 = vpop.f32.mrb[12].mxu1  ;;  %v4079_v34 = vpop.f32.mrb[13].mxu0 }
 0x107   : > { %v3592_v35 = vpack.c.bf16 %v2111_v18, %v2111_v18  ;;  %v2749_v36 = vunpack.c.l.b16 %v3590_v19  ;;  %v2750_v39 = vunpack.c.l.b16 %v3591_v21  ;;  %v996_v40 = vcombine.high %v4061_v49, %v4061_v49  ;;  %v4083_v41 = vpop.f32.mrb[13].mxu1  ;;  %v4085_v46 = vpop.f32.mrb[14].mxu0 }
 0x108   : > { %v4087_v47 = vunpack.c.l.b16 %v3528_v24  ;;  %v2825_v48 = vrot.slane %v2685_v26, 7  ;;  %v2827_v52 = vrot.slane %v2686_v27, 6  ;;  %v3259_v53 = vrot.slane %v4048_v37, 9  ;;  %v4090_v54 = vpop.f32.mrb[14].mxu1  ;;  %v4092_v55 = vpop.f32.mrb[15].mxu0 }
 0x109   : > { %v4094_v61 = vunpack.c.l.b16 %v3592_v35  ;;  %v2937_v63 = vrot.slane %v2749_v36, 7  ;;  %v2939_v0 = vrot.slane %v2750_v39, 6  ;;  %v3260_v1 = vrot.slane %v995_v30, 9  ;;  %v4096_v3 = vpop.f32.mrb[15].mxu1 }
 0x10a   : > { %v2826_v4 = vsel %vm2805_vm3, %v2825_v48, %v2684_v16  ;;  %v3261_v5 = vrot.slane %v4061_v49, 9  ;;  %v3262_v7 = vrot.slane %v996_v40, 9  ;;  %v2829_v10 = vrot.slane %v4087_v47, 5 }
 0x10b   : > { %v4102_v9 = vsel %vm2808_vm4, %v2827_v52, %v2826_v4  ;;  %v2938_v12 = vsel %vm2805_vm3, %v2937_v63, %v2748_v22  ;;  %v2036_v13 = vmax.f32 %v4048_v37, %v3259_v53  ;;  %v2037_v15 = vmax.f32 %v995_v30, %v3260_v1 }
 0x10c   : > { %v2038_v16 = vmax.f32 %v4061_v49, %v3261_v5  ;;  %v2039_v18 = vmax.f32 %v996_v40, %v3262_v7  ;;  %v4110_v19 = vsel %vm2808_vm4, %v2939_v0, %v2938_v12  ;;  %v1259_v21 = vrot.slane %v4042_v32, %v4021_v62 }
 0x10d   : > { %v1266_v22 = vrot.slane %v1252_v43, %v4021_v62  ;;  %v1031_v37 = vcombine.high %v4044_v33, %v4044_v33  ;;  %v4120_v24 = vpop.f32.mrb[16].mxu0  ;;  %v3517_v26 = vpack.c.bf16 %v2036_v13, %v2036_v13  ;;  %v3518_v49 = vpack.c.bf16 %v2037_v15, %v2037_v15 }
 0x10e   : > { %v3519_v27 = vpack.c.bf16 %v2038_v16, %v2038_v16  ;;  %v3520_v30 = vpack.c.bf16 %v2039_v18, %v2039_v18  ;;  %v4123_v35 = vpop.f32.mrb[16].mxu1  ;;  %v4125_v36 = vpop.f32.mrb[17].mxu0  ;;  %v1267_v39 = vcombine.high %v1259_v21, %v1259_v21  ;;  %v3323_v32 = vrot.slane %v1259_v21, 9 }
 0x10f   : > { %v1268_v40 = vcombine.high %v1266_v22, %v1266_v22  ;;  %v1038_v43 = vrot.slane %v4044_v33, %v4021_v62  ;;  %v4129_v48 = vpop.f32.mrb[17].mxu1  ;;  %v4131_v52 = vpop.f32.mrb[18].mxu0  ;;  %v2677_v53 = vunpack.c.l.b16 %v3518_v49  ;;  %v3325_v1 = vrot.slane %v1266_v22, 9 }
 0x110   : > { %v2678_v63 = vunpack.c.l.b16 %v3519_v27  ;;  %v4133_v0 = vunpack.c.l.b16 %v3520_v30  ;;  %v4135_v4 = vpop.f32.mrb[18].mxu1  ;;  %v4137_v5 = vpop.f32.mrb[19].mxu0  ;;  %v3324_v7 = vrot.slane %v1267_v39, 9  ;;  %v2100_v13 = vmax.f32 %v1259_v21, %v3323_v32 }
 0x111   : > { %v3326_v12 = vrot.slane %v1268_v40, 9  ;;  %v1045_v33 = vrot.slane %v1031_v37, %v4021_v62  ;;  %v4146_v15 = vpop.f32.mrb[19].mxu1  ;;  %v2676_v16 = vunpack.c.l.b16 %v3517_v26  ;;  %v2804_v18 = vrot.slane %v2677_v53, 7 }
 0x112   : > { %v2807_v49 = vrot.slane %v2678_v63, 6  ;;  %v2102_v27 = vmax.f32 %v1266_v22, %v3325_v1  ;;  %v2101_v30 = vmax.f32 %v1267_v39, %v3324_v7  ;;  %v3581_v11 = vpack.c.bf16 %v2100_v13, %v2100_v13 }
 0x113   : > { %v2103_v17 = vmax.f32 %v1268_v40, %v3326_v12  ;;  %v1046_v8 = vcombine.high %v1038_v43, %v1038_v43  ;;  %v2806_v21 = vsel %vm2805_vm3, %v2804_v18, %v2676_v16  ;;  %v1047_v14 = vcombine.high %v1045_v33, %v1045_v33 }
 0x114   : > { %v3583_v32 = vpack.c.bf16 %v2102_v27, %v2102_v27  ;;  %v3271_v6 = vrot.slane %v1038_v43, 9  ;;  %v4150_v37 = vsel %vm2808_vm4, %v2807_v49, %v2806_v21  ;;  %v3582_v53 = vpack.c.bf16 %v2101_v30, %v2101_v30 }
 0x115   : > { %v3584_v28 = vpack.c.bf16 %v2103_v17, %v2103_v17  ;;  %v4159_v22 = vpop.f32.mrb[20].mxu0  ;;  %v3272_v40 = vrot.slane %v1046_v8, 9  ;;  %v3273_v63 = vrot.slane %v1045_v33, 9  ;;  %v3274_v1 = vrot.slane %v1047_v14, 9 }
 0x116   : > { %v4161_v39 = vunpack.c.l.b16 %v3583_v32  ;;  %v4163_v7 = vpop.f32.mrb[20].mxu1  ;;  %v4165_v12 = vpop.f32.mrb[21].mxu0  ;;  %v2740_v17 = vunpack.c.l.b16 %v3581_v11  ;;  %v2741_v13 = vunpack.c.l.b16 %v3582_v53  ;;  %v2048_v18 = vmax.f32 %v1038_v43, %v3271_v6 }
 0x117   : > { %4760 = vst [vmem:[#allocation2_spill] sm:$0xff] %v4165_v12  ;;  %v4167_v16 = vunpack.c.l.b16 %v3584_v28  ;;  %v4169_v49 = vpop.f32.mrb[21].mxu1  ;;  %v4171_v27 = vpop.f32.mrb[22].mxu0  ;;  %v2049_v30 = vmax.f32 %v1046_v8, %v3272_v40  ;;  %v2050_v21 = vmax.f32 %v1045_v33, %v3273_v63  ;;  %v2051_v32 = vmax.f32 %v1047_v14, %v3274_v1 }
 0x118   : > { %4761 = vst [vmem:[#allocation3_spill] sm:$0xff] %v4169_v49  ;;  %4762 = vst [vmem:[#allocation4_spill] sm:$0xff] %v4171_v27  ;;  %v2830_v26 = vsel %vm2811_vm5, %v2829_v10, %v4102_v9  ;;  %v4177_v12 = vpop.f32.mrb[22].mxu1  ;;  %v2923_v11 = vrot.slane %v2741_v13, 7  ;;  %v3529_v6 = vpack.c.bf16 %v2048_v18, %v2048_v18  ;;  %v4764_v43 = vmax.f32 %v4032_v20, 0.0 }
 0x119   : > { %4763 = vst [vmem:[#allocation5_spill] sm:$0xff] %v4177_v12  ;;  %v4765_v53 = vmax.f32 %v4013_v57, 0.0  ;;  %v3530_v33 = vpack.c.bf16 %v2049_v30, %v2049_v30  ;;  %v3531_v40 = vpack.c.bf16 %v2050_v21, %v2050_v21  ;;  %v3532_v47 = vpack.c.bf16 %v2051_v32, %v2051_v32  ;;  %v4204_v12 = vpop.f32.mrb[23].mxu1 }
 0x11a   : > { %v2688_v9 = vunpack.c.l.b16 %v3529_v6  ;;  %v4766_v1 = vrot.slane %v4094_v61, 5  ;;  %v2924_v20 = vsel %vm2805_vm3, %v2923_v11, %v2740_v17  ;;  %v4768_v61 = vmax.f32 %v4035_v25, 0.0  ;;  %4770 = vst [vmem:[#allocation7_spill] sm:$0xff] %v4204_v12 }
 0x11b   : > { %v935_v8 = vmax.f32 %v4765_v53, %v4764_v43  ;;  %v2689_v57 = vunpack.c.l.b16 %v3530_v33  ;;  %v2690_v18 = vunpack.c.l.b16 %v3531_v40  ;;  %v2691_v43 = vunpack.c.l.b16 %v3532_v47  ;;  %v4193_v53 = vpop.f32.mrb[23].mxu0 }
 0x11c   : > { %v2942_v13 = vsel %vm2811_vm5, %v4766_v1, %v4110_v19  ;;  %4767 = vst [vmem:[#allocation6_spill] sm:$0xff] %v4193_v53  ;;  %v2831_v30 = vrot.slane %v2688_v9, 4  ;;  %v4769_v19 = vmax.f32 %v4016_v58, 0.0  ;;  %v4771_v49 = vrot.slane %v4161_v39, 6 }
 0x11d   : > { %v1303_v10 = vcombine.high %v935_v8, %v935_v8  ;;  %v1310_v63 = vrot.slane %v935_v8, %v4021_v62  ;;  %v2833_v14 = vrot.slane %v2689_v57, 3  ;;  %v2835_v8 = vrot.slane %v2690_v18, 2 }
 0x11e   : > { %v2837_v28 = vrot.slane %v2691_v43, 1  ;;  %v917_v1 = vmax.f32 %v4769_v19, %v4768_v61  ;;  %v2832_v17 = vsel %vm2814_vm6, %v2831_v30, %v2830_v26 }
 0x11f   : > { %v1317_v21 = vrot.slane %v1303_v10, %v4021_v62  ;;  %v1318_v32 = vcombine.high %v1310_v63, %v1310_v63  ;;  %v3335_v6 = vrot.slane %v1310_v63, 9  ;;  %v2834_v47 = vsel %vm2817_vm7, %v2833_v14, %v2832_v17 }
 0x120   : > { %v997_v10 = vcombine.high %v917_v1, %v917_v1  ;;  %v1004_v53 = vrot.slane %v917_v1, %v4021_v62  ;;  %v2836_v57 = vsel %vm2820_vm8, %v2835_v8, %v2834_v47 }
 0x121   : > { %v1319_v11 = vcombine.high %v1317_v21, %v1317_v21  ;;  %v3336_v33 = vrot.slane %v1318_v32, 9  ;;  %v3337_v40 = vrot.slane %v1317_v21, 9  ;;  %v2112_v9 = vmax.f32 %v1310_v63, %v3335_v6 }
 0x122   : > { %v2838_v58 = vsel %vm2823_vm9, %v2837_v28, %v2836_v57  ;;  %v1011_v14 = vrot.slane %v997_v10, %v4021_v62  ;;  %v1012_v63 = vcombine.high %v1004_v53, %v1004_v53  ;;  %v3263_v19 = vrot.slane %v1004_v53, 9 }
 0x123   : > { %v3338_v18 = vrot.slane %v1319_v11, 9  ;;  %v2113_v43 = vmax.f32 %v1318_v32, %v3336_v33  ;;  %v2114_v25 = vmax.f32 %v1317_v21, %v3337_v40  ;;  %v3593_v26 = vpack.c.bf16 %v2112_v9, %v2112_v9 }
 0x124   : > { %v3036_v30 = vpack.c.b16 %v2838_v58, %v2838_v58  ;;  %v1013_v21 = vcombine.high %v1011_v14, %v1011_v14  ;;  %v3264_v1 = vrot.slane %v1012_v63, 9  ;;  %v3265_v47 = vrot.slane %v1011_v14, 9 }
 0x125   : > { %v2115_v6 = vmax.f32 %v1319_v11, %v3338_v18  ;;  %v3594_v8 = vpack.c.bf16 %v2113_v43, %v2113_v43  ;;  %v3595_v61 = vpack.c.bf16 %v2114_v25, %v2114_v25  ;;  %v2752_v32 = vunpack.c.l.b16 %v3593_v26 }
 0x126   : > { %3069 = vst.msk [vmem:[%s4209_s13 + $0x4] sm:$0xf] %vm3067_vm10, %v3036_v30  ;;  %v3266_v28 = vrot.slane %v1013_v21, 9  ;;  %v2040_v9 = vmax.f32 %v1004_v53, %v3263_v19  ;;  %v2041_v57 = vmax.f32 %v1012_v63, %v3264_v1  ;;  %v2042_v11 = vmax.f32 %v1011_v14, %v3265_v47 }
 0x127   : > { %v3596_v17 = vpack.c.bf16 %v2115_v6, %v2115_v6  ;;  %v2753_v33 = vunpack.c.l.b16 %v3594_v8  ;;  %v2754_v40 = vunpack.c.l.b16 %v3595_v61  ;;  %v2943_v12 = vrot.slane %v2752_v32, 4 }
 0x128   : > { %v2043_v43 = vmax.f32 %v1013_v21, %v3266_v28  ;;  %v3521_v25 = vpack.c.bf16 %v2040_v9, %v2040_v9  ;;  %v3522_v26 = vpack.c.bf16 %v2041_v57, %v2041_v57  ;;  %v2926_v30 = vsel %vm2808_vm4, %v4771_v49, %v2924_v20 }
 0x129   : > { %v2755_v10 = vunpack.c.l.b16 %v3596_v17  ;;  %v2945_v27 = vrot.slane %v2753_v33, 3  ;;  %v2947_v58 = vrot.slane %v2754_v40, 2  ;;  %v2944_v18 = vsel %vm2814_vm6, %v2943_v12, %v2942_v13 }
 0x12a   : > { %v3523_v61 = vpack.c.bf16 %v2042_v11, %v2042_v11  ;;  %v3524_v63 = vpack.c.bf16 %v2043_v43, %v2043_v43  ;;  %v2680_v32 = vunpack.c.l.b16 %v3521_v25  ;;  %v2681_v19 = vunpack.c.l.b16 %v3522_v26 }
 0x12b   : > { %v2946_v6 = vsel %vm2817_vm7, %v2945_v27, %v2944_v18  ;;  %v2949_v8 = vrot.slane %v2755_v10, 1  ;;  %v4772_v13 = vrot.slane %v4133_v0, 5  ;;  %v889_v49 = vmax.f32 %v4039_v29, 0.0 }
 0x12c   : > { %v2948_v53 = vsel %vm2820_vm8, %v2947_v58, %v2946_v6  ;;  %v2682_v12 = vunpack.c.l.b16 %v3523_v61  ;;  %v2683_v27 = vunpack.c.l.b16 %v3524_v63  ;;  %v2813_v21 = vrot.slane %v2680_v32, 4  ;;  %v4264_v61 = vpop.f32.mrb[24].mxu0 }
 0x12d   : > { %v2950_v14 = vsel %vm2823_vm9, %v2949_v8, %v2948_v53  ;;  %v2812_v39 = vsel %vm2811_vm5, %v4772_v13, %v4150_v37  ;;  %v4773_v1 = vrot.slane %v4167_v16, 5  ;;  %v2816_v33 = vrot.slane %v2681_v19, 3  ;;  %v4266_v53 = vpop.f32.mrb[24].mxu1 }
 0x12e   : > { %v3044_v20 = vpack.c.b16 %v2950_v14, %v2950_v14  ;;  %v4774_v40 = vmax.f32 %v4019_v60, 0.0  ;;  %v638_v28 = vadd.f32 %v4050_v38, %v4005_v42  ;;  %v766_v0 = vadd.f32 %v4055_v44, %v4005_v42 }
 0x12f   : > { %v4230_v17 = vsel %vm2811_vm5, %v4773_v1, %v2926_v30  ;;  %v2815_v29 = vsel %vm2814_vm6, %v2813_v21, %v2812_v39  ;;  %v2819_v37 = vrot.slane %v2682_v12, 2  ;;  %v2822_v9 = vrot.slane %v2683_v27, 1  ;;  %v4276_v21 = vpop.f32.mrb[25].mxu1 }
 0x130   : > { %v933_v47 = vmax.f32 %v4774_v40, %v889_v49  ;;  %3077 = vst.msk [vmem:[%s4209_s13 + $0x24] sm:$0xf] %vm3067_vm10, %v3044_v20  ;;  %v630_v16 = vadd.f32 %v4005_v42, %v4057_v45  ;;  %v2818_v57 = vsel %vm2817_vm7, %v2816_v33, %v2815_v29  ;;  %v4247_v38 = vadd.f32 %v4005_v42, %v4063_v50 }
 0x131   : > { %v2821_v44 = vsel %vm2820_vm8, %v2819_v37, %v2818_v57  ;;  %v862_v58 = vmax.f32 %v638_v28, 0.0  ;;  %v894_v11 = vmax.f32 %v766_v0, 0.0  ;;  %v4254_v6 = vadd.f32 %v4065_v51, %v4005_v42 }
 0x132   : > { %v1269_v10 = vcombine.high %v933_v47, %v933_v47  ;;  %v1276_v60 = vrot.slane %v933_v47, %v4021_v62  ;;  %v860_v18 = vmax.f32 %v630_v16, 0.0  ;;  %v2824_v43 = vsel %vm2823_vm9, %v2822_v9, %v2821_v44 }
 0x133   : > { %v3035_v30 = vpack.c.b16 %v2824_v43, %v2824_v43  ;;  %v4258_v50 = vadd.f32 %v4067_v56, %v4005_v42  ;;  %v4262_v8 = vadd.f32 %v4005_v42, %v4069_v59  ;;  %v4274_v59 = vpop.f32.mrb[25].mxu0  ;;  %v4280_v1 = vadd.f32 %v4005_v42, %v4071_v2  ;;  %v4294_v43 = vpop.f32.mrb[26].mxu1 }
 0x134   : > { %v1283_v25 = vrot.slane %v1269_v10, %v4021_v62  ;;  %v1284_v45 = vcombine.high %v1276_v60, %v1276_v60  ;;  %v3327_v26 = vrot.slane %v1276_v60, 9  ;;  %v654_v33 = vadd.f32 %v4073_v23, %v4005_v42  ;;  %v4288_v28 = vpop.f32.mrb[26].mxu0 }
 0x135   : > { %3068 = vst.msk [vmem:[%s4209_s13] sm:$0xf] %vm3067_vm10, %v3035_v30  ;;  %v782_v40 = vadd.f32 %v4077_v31, %v4005_v42  ;;  %v646_v47 = vadd.f32 %v4005_v42, %v4079_v34  ;;  %v4292_v2 = vadd.f32 %v4005_v42, %v4083_v41  ;;  %v4297_v30 = vpop.f32.mrb[27].mxu0 }
 0x136   : > { %v1285_v63 = vcombine.high %v1283_v25, %v1283_v25  ;;  %v3328_v32 = vrot.slane %v1284_v45, 9  ;;  %v3329_v19 = vrot.slane %v1283_v25, 9  ;;  %v2104_v14 = vmax.f32 %v1276_v60, %v3327_v26  ;;  %4775 = vst [vmem:[#allocation8_spill] sm:$0xff] %v4297_v30 }
 0x137   : > { %v866_v16 = vmax.f32 %v654_v33, 0.0  ;;  %v898_v57 = vmax.f32 %v782_v40, 0.0  ;;  %v864_v10 = vmax.f32 %v646_v47, 0.0 }
 0x138   : > { %v3330_v39 = vrot.slane %v1285_v63, 9  ;;  %v2105_v49 = vmax.f32 %v1284_v45, %v3328_v32  ;;  %v2106_v20 = vmax.f32 %v1283_v25, %v3329_v19  ;;  %v3585_v27 = vpack.c.bf16 %v2104_v14, %v2104_v14 }
 0x139   : > { %v922_v34 = vmax.f32 %v862_v58, %v866_v16  ;;  %v938_v25 = vmax.f32 %v894_v11, %v898_v57  ;;  %v920_v45 = vmax.f32 %v860_v18, %v864_v10  ;;  %v4313_v57 = vpop.f32.mrb[28].mxu0 }
 0x13a   : > { %v2107_v0 = vmax.f32 %v1285_v63, %v3330_v39  ;;  %v3586_v29 = vpack.c.bf16 %v2105_v49, %v2105_v49  ;;  %v3587_v37 = vpack.c.bf16 %v2106_v20, %v2106_v20  ;;  %v2744_v9 = vunpack.c.l.b16 %v3585_v27  ;;  %v4299_v63 = vpop.f32.mrb[27].mxu1  ;;  %4777 = vst [vmem:[#allocation10_spill] sm:$0xff] %v4313_v57 }
 0x13b   : > { %4776 = vst [vmem:[#allocation9_spill] sm:$0xff] %v4299_v63  ;;  %v1082_v39 = vcombine.high %v922_v34, %v922_v34  ;;  %v1089_v49 = vrot.slane %v922_v34, %v4021_v62  ;;  %v1354_v20 = vcombine.high %v938_v25, %v938_v25  ;;  %v1361_v58 = vrot.slane %v938_v25, %v4021_v62  ;;  %v4315_v10 = vpop.f32.mrb[28].mxu1  ;;  %v4317_v34 = vpop.f32.mrb[29].mxu0 }
 0x13c   : > { %v3588_v23 = vpack.c.bf16 %v2107_v0, %v2107_v0  ;;  %v2745_v60 = vunpack.c.l.b16 %v3586_v29  ;;  %v2746_v44 = vunpack.c.l.b16 %v3587_v37  ;;  %v2929_v31 = vrot.slane %v2744_v9, 4  ;;  %4778 = vst [vmem:[#allocation11_spill] sm:$0xff] %v4315_v10  ;;  %4779 = vst [vmem:[#allocation12_spill] sm:$0xff] %v4317_v34 }
 0x13d   : > { %v1048_v27 = vcombine.high %v920_v45, %v920_v45  ;;  %v4307_v33 = vrot.slane %v920_v45, %v4021_v62  ;;  %v1096_v47 = vrot.slane %v1082_v39, %v4021_v62  ;;  %v3283_v0 = vrot.slane %v1089_v49, 9 }
 0x13e   : > { %v2747_v32 = vunpack.c.l.b16 %v3588_v23  ;;  %v2930_v41 = vsel %vm2814_vm6, %v2929_v31, %v4230_v17  ;;  %v2931_v19 = vrot.slane %v2745_v60, 3  ;;  %v2933_v14 = vrot.slane %v2746_v44, 2 }
 0x13f   : > { %v1097_v17 = vcombine.high %v1089_v49, %v1089_v49  ;;  %v1368_v37 = vrot.slane %v1354_v20, %v4021_v62  ;;  %v1369_v9 = vcombine.high %v1361_v58, %v1361_v58  ;;  %v3347_v16 = vrot.slane %v1361_v58, 9 }
 0x140   : > { %v2932_v11 = vsel %vm2817_vm7, %v2931_v19, %v2930_v41  ;;  %v2935_v18 = vrot.slane %v2747_v32, 1  ;;  %v1098_v60 = vcombine.high %v1096_v47, %v1096_v47  ;;  %v3285_v31 = vrot.slane %v1096_v47, 9 }
 0x141   : > { %v2934_v40 = vsel %vm2820_vm8, %v2933_v14, %v2932_v11  ;;  %v3284_v44 = vrot.slane %v1097_v17, 9  ;;  %v2060_v25 = vmax.f32 %v1089_v49, %v3283_v0  ;;  %v1370_v45 = vcombine.high %v1368_v37, %v1368_v37 }
 0x142   : > { %v2936_v29 = vsel %vm2823_vm9, %v2935_v18, %v2934_v40  ;;  %v3348_v32 = vrot.slane %v1369_v9, 9  ;;  %v3349_v41 = vrot.slane %v1368_v37, 9  ;;  %v3286_v19 = vrot.slane %v1098_v60, 9 }
 0x143   : > { %v3043_v23 = vpack.c.b16 %v2936_v29, %v2936_v29  ;;  %v2061_v14 = vmax.f32 %v1097_v17, %v3284_v44  ;;  %v2062_v39 = vmax.f32 %v1096_v47, %v3285_v31  ;;  %v2124_v20 = vmax.f32 %v1361_v58, %v3347_v16  ;;  %v4322_v16 = vpop.f32.mrb[29].mxu1 }
 0x144   : > { %v3541_v11 = vpack.c.bf16 %v2060_v25, %v2060_v25  ;;  %v3350_v18 = vrot.slane %v1370_v45, 9  ;;  %v2125_v40 = vmax.f32 %v1369_v9, %v3348_v32  ;;  %v2126_v13 = vmax.f32 %v1368_v37, %v3349_v41 }
 0x145   : > { %3076 = vst.msk [vmem:[%s4209_s13 + $0x20] sm:$0xf] %vm3067_vm10, %v3043_v23  ;;  %v2063_v29 = vmax.f32 %v1098_v60, %v3286_v19  ;;  %v3542_v56 = vpack.c.bf16 %v2061_v14, %v2061_v14  ;;  %v3543_v12 = vpack.c.bf16 %v2062_v39, %v2062_v39  ;;  %v3605_v51 = vpack.c.bf16 %v2124_v20, %v2124_v20 }
 0x146   : > { %v2700_v26 = vunpack.c.l.b16 %v3541_v11  ;;  %v2127_v34 = vmax.f32 %v1370_v45, %v3350_v18  ;;  %v3606_v49 = vpack.c.bf16 %v2125_v40, %v2125_v40  ;;  %v3607_v0 = vpack.c.bf16 %v2126_v13, %v2126_v13 }
 0x147   : > { %v3544_v10 = vpack.c.bf16 %v2063_v29, %v2063_v29  ;;  %v2701_v57 = vunpack.c.l.b16 %v3542_v56  ;;  %v2702_v63 = vunpack.c.l.b16 %v3543_v12  ;;  %v2764_v23 = vunpack.c.l.b16 %v3605_v51 }
 0x148   : > { %v3608_v30 = vpack.c.bf16 %v2127_v34, %v2127_v34  ;;  %v2765_v17 = vunpack.c.l.b16 %v3606_v49  ;;  %v2766_v47 = vunpack.c.l.b16 %v3607_v0  ;;  %v1062_v58 = vrot.slane %v1048_v27, %v4021_v62 }
 0x149   : > { %v2703_v37 = vunpack.c.l.b16 %v3544_v10  ;;  %v2853_v9 = vrot.slane %v2701_v57, 7  ;;  %v2855_v60 = vrot.slane %v2702_v63, 6  ;;  %v1063_v44 = vcombine.high %v4307_v33, %v4307_v33 }
 0x14a   : > { %v4326_v31 = vunpack.c.l.b16 %v3608_v30  ;;  %v2965_v13 = vrot.slane %v2765_v17, 7  ;;  %v2967_v25 = vrot.slane %v2766_v47, 6  ;;  %v1064_v56 = vcombine.high %v1062_v58, %v1062_v58 }
 0x14b   : > { %v893_v51 = vmax.f32 %v4280_v1, 0.0  ;;  %v2854_v12 = vsel %vm2805_vm3, %v2853_v9, %v2700_v26  ;;  %v3275_v34 = vrot.slane %v4307_v33, 9  ;;  %v3276_v27 = vrot.slane %v1063_v44, 9 }
 0x14c   : > { %v2856_v45 = vsel %vm2808_vm4, %v2855_v60, %v2854_v12  ;;  %v2857_v10 = vrot.slane %v2703_v37, 5  ;;  %v2966_v63 = vsel %vm2805_vm3, %v2965_v13, %v2764_v23  ;;  %v3277_v57 = vrot.slane %v1062_v58, 9 }
 0x14d   : > { %v2969_v32 = vrot.slane %v4326_v31, 5  ;;  %v3278_v30 = vrot.slane %v1064_v56, 9  ;;  %v2052_v41 = vmax.f32 %v4307_v33, %v3275_v34  ;;  %v2053_v19 = vmax.f32 %v1063_v44, %v3276_v27 }
 0x14e   : > { %v4336_v14 = vsel %vm2808_vm4, %v2967_v25, %v2966_v63  ;;  %v2054_v39 = vmax.f32 %v1062_v58, %v3277_v57  ;;  %v4780_v26 = vmax.f32 %v4292_v2, 0.0  ;;  %v4781_v20 = vmax.f32 %v4247_v38, 0.0  ;;  %v4347_v58 = vpop.f32.mrb[30].mxu0 }
 0x14f   : > { %v657_v18 = vadd.f32 %v4085_v46, %v4005_v42  ;;  %v2055_v40 = vmax.f32 %v1064_v56, %v3278_v30  ;;  %v3533_v29 = vpack.c.bf16 %v2052_v41, %v2052_v41  ;;  %v3534_v49 = vpack.c.bf16 %v2053_v19, %v2053_v19 }
 0x150   : > { %v936_v11 = vmax.f32 %v4781_v20, %v4780_v26  ;;  %v785_v0 = vadd.f32 %v4090_v54, %v4005_v42  ;;  %v3535_v33 = vpack.c.bf16 %v2054_v39, %v2054_v39  ;;  %v4782_v42 = vmax.f32 %v4254_v6, 0.0  ;;  %v4358_v20 = vpop.f32.mrb[30].mxu1 }
 0x151   : > { %v867_v47 = vmax.f32 %v657_v18, 0.0  ;;  %v3536_v2 = vpack.c.bf16 %v2055_v40, %v2055_v40  ;;  %v2692_v37 = vunpack.c.l.b16 %v3533_v29  ;;  %v2693_v38 = vunpack.c.l.b16 %v3534_v49 }
 0x152   : > { %v1320_v23 = vcombine.high %v936_v11, %v936_v11  ;;  %v1327_v17 = vrot.slane %v936_v11, %v4021_v62  ;;  %v899_v9 = vmax.f32 %v785_v0, 0.0  ;;  %v2694_v60 = vunpack.c.l.b16 %v3535_v33 }
 0x153   : > { %v4350_v25 = vunpack.c.l.b16 %v3536_v2  ;;  %v2839_v56 = vrot.slane %v2693_v38, 7  ;;  %v923_v54 = vmax.f32 %v4782_v42, %v867_v47  ;;  %v4783_v12 = vmax.f32 %v4258_v50, 0.0 }
 0x154   : > { %v1334_v46 = vrot.slane %v1320_v23, %v4021_v62  ;;  %v1335_v44 = vcombine.high %v1327_v17, %v1327_v17  ;;  %v3339_v13 = vrot.slane %v1327_v17, 9  ;;  %v2841_v27 = vrot.slane %v2694_v60, 6 }
 0x155   : > { %v939_v34 = vmax.f32 %v4783_v12, %v899_v9  ;;  %v2840_v41 = vsel %vm2805_vm3, %v2839_v56, %v2692_v37  ;;  %v1099_v39 = vcombine.high %v923_v54, %v923_v54  ;;  %v2858_v26 = vsel %vm2811_vm5, %v2857_v10, %v2856_v45 }
 0x156   : > { %v1336_v63 = vcombine.high %v1334_v46, %v1334_v46  ;;  %v3340_v57 = vrot.slane %v1335_v44, 9  ;;  %v3341_v30 = vrot.slane %v1334_v46, 9  ;;  %v2116_v19 = vmax.f32 %v1327_v17, %v3339_v13 }
 0x157   : > { %v2843_v11 = vrot.slane %v4350_v25, 5  ;;  %v4362_v50 = vsel %vm2808_vm4, %v2841_v27, %v2840_v41  ;;  %v1106_v29 = vrot.slane %v923_v54, %v4021_v62  ;;  %v1113_v49 = vrot.slane %v1099_v39, %v4021_v62 }
 0x158   : > { %v3342_v18 = vrot.slane %v1336_v63, 9  ;;  %v2117_v6 = vmax.f32 %v1335_v44, %v3340_v57  ;;  %v2118_v40 = vmax.f32 %v1334_v46, %v3341_v30  ;;  %v1371_v0 = vcombine.high %v939_v34, %v939_v34 }
 0x159   : > { %v3597_v23 = vpack.c.bf16 %v2116_v19, %v2116_v19  ;;  %v1114_v45 = vcombine.high %v1106_v29, %v1106_v29  ;;  %v1115_v10 = vcombine.high %v1113_v49, %v1113_v49  ;;  %v3287_v2 = vrot.slane %v1106_v29, 9 }
 0x15a   : > { %v2119_v33 = vmax.f32 %v1336_v63, %v3342_v18  ;;  %v3598_v17 = vpack.c.bf16 %v2117_v6, %v2117_v6  ;;  %v3599_v47 = vpack.c.bf16 %v2118_v40, %v2118_v40  ;;  %v1378_v37 = vrot.slane %v939_v34, %v4021_v62 }
 0x15b   : > { %v3289_v46 = vrot.slane %v1113_v49, 9  ;;  %v3288_v44 = vrot.slane %v1114_v45, 9  ;;  %v3290_v13 = vrot.slane %v1115_v10, 9  ;;  %v2064_v56 = vmax.f32 %v1106_v29, %v3287_v2 }
 0x15c   : > { %v3600_v38 = vpack.c.bf16 %v2119_v33, %v2119_v33  ;;  %v2757_v9 = vunpack.c.l.b16 %v3598_v17  ;;  %v2758_v60 = vunpack.c.l.b16 %v3599_v47  ;;  %v1385_v42 = vrot.slane %v1371_v0, %v4021_v62  ;;  %v4372_v0 = vpop.f32.mrb[31].mxu0 }
 0x15d   : > { %v2756_v54 = vunpack.c.l.b16 %v3597_v23  ;;  %v2066_v63 = vmax.f32 %v1113_v49, %v3289_v46  ;;  %v2065_v57 = vmax.f32 %v1114_v45, %v3288_v44  ;;  %v2067_v30 = vmax.f32 %v1115_v10, %v3290_v13 }
 0x15e   : > { %v4368_v12 = vunpack.c.l.b16 %v3600_v38  ;;  %v2951_v27 = vrot.slane %v2757_v9, 7  ;;  %v3545_v41 = vpack.c.bf16 %v2064_v56, %v2064_v56  ;;  %v1386_v19 = vcombine.high %v1378_v37, %v1378_v37 }
 0x15f   : > { %v2953_v39 = vrot.slane %v2758_v60, 6  ;;  %v3547_v18 = vpack.c.bf16 %v2066_v63, %v2066_v63  ;;  %v1387_v6 = vcombine.high %v1385_v42, %v1385_v42  ;;  %v3546_v33 = vpack.c.bf16 %v2065_v57, %v2065_v57 }
 0x160   : > { %v2952_v34 = vsel %vm2805_vm3, %v2951_v27, %v2756_v54  ;;  %v2955_v40 = vrot.slane %v4368_v12, 5  ;;  %v3548_v29 = vpack.c.bf16 %v2067_v30, %v2067_v30  ;;  %v2704_v17 = vunpack.c.l.b16 %v3545_v41 }
 0x161   : > { %v2706_v23 = vunpack.c.l.b16 %v3547_v18  ;;  %v3351_v47 = vrot.slane %v1378_v37, 9  ;;  %v3352_v2 = vrot.slane %v1386_v19, 9  ;;  %v3353_v49 = vrot.slane %v1385_v42, 9 }
 0x162   : > { %v2705_v45 = vunpack.c.l.b16 %v3546_v33  ;;  %v2707_v10 = vunpack.c.l.b16 %v3548_v29  ;;  %v2859_v38 = vrot.slane %v2704_v17, 4  ;;  %v3354_v9 = vrot.slane %v1387_v6, 9 }
 0x163   : > { %v2954_v46 = vsel %vm2808_vm4, %v2953_v39, %v2952_v34  ;;  %v2128_v60 = vmax.f32 %v1378_v37, %v3351_v47  ;;  %v2129_v44 = vmax.f32 %v1386_v19, %v3352_v2  ;;  %v2130_v13 = vmax.f32 %v1385_v42, %v3353_v49  ;;  %v4384_v37 = vld [vmem:[%s4757_s2] ss:$0 sm:$0xff] }
 0x164   : > { %v2860_v56 = vsel %vm2814_vm6, %v2859_v38, %v2858_v26  ;;  %v2861_v54 = vrot.slane %v2705_v45, 3  ;;  %v2863_v12 = vrot.slane %v2706_v23, 2  ;;  %v2131_v27 = vmax.f32 %v1387_v6, %v3354_v9 }
 0x165   : > { %v2865_v63 = vrot.slane %v2707_v10, 1  ;;  %v3609_v57 = vpack.c.bf16 %v2128_v60, %v2128_v60  ;;  %v3610_v30 = vpack.c.bf16 %v2129_v44, %v2129_v44  ;;  %v3611_v41 = vpack.c.bf16 %v2130_v13, %v2130_v13 }
 0x166   : > { %v2862_v18 = vsel %vm2817_vm7, %v2861_v54, %v2860_v56  ;;  %v3612_v33 = vpack.c.bf16 %v2131_v27, %v2131_v27  ;;  %v2970_v34 = vsel %vm2811_vm5, %v2969_v32, %v4336_v14  ;;  %v649_v26 = vadd.f32 %v4384_v37, %v4092_v55  ;;  %v4392_v14 = vpop.f32.mrb[31].mxu1 }
 0x167   : > { %v2864_v42 = vsel %vm2820_vm8, %v2863_v12, %v2862_v18  ;;  %v2768_v19 = vunpack.c.l.b16 %v3609_v57  ;;  %v2769_v39 = vunpack.c.l.b16 %v3610_v30  ;;  %v2770_v6 = vunpack.c.l.b16 %v3611_v41 }
 0x168   : > { %v2866_v29 = vsel %vm2823_vm9, %v2865_v63, %v2864_v42  ;;  %v2771_v17 = vunpack.c.l.b16 %v3612_v33  ;;  %v865_v31 = vmax.f32 %v649_v26, 0.0  ;;  %v777_v32 = vadd.f32 %v4384_v37, %v4096_v3 }
 0x169   : > { %v3038_v23 = vpack.c.b16 %v2866_v29, %v2866_v29  ;;  %v2971_v47 = vrot.slane %v2768_v19, 4  ;;  %v2973_v2 = vrot.slane %v2769_v39, 3  ;;  %v2844_v55 = vsel %vm2811_vm5, %v2843_v11, %v4362_v50 }
 0x16a   : > { %v2975_v49 = vrot.slane %v2770_v6, 2  ;;  %v2977_v45 = vrot.slane %v2771_v17, 1  ;;  %v4784_v10 = vmax.f32 %v4262_v8, 0.0  ;;  %v897_v9 = vmax.f32 %v777_v32, 0.0 }
 0x16b   : > { %3071 = vst.msk [vmem:[%s4209_s13 + $0xc] sm:$0xf] %vm3067_vm10, %v3038_v23  ;;  %v2972_v3 = vsel %vm2814_vm6, %v2971_v47, %v2970_v34  ;;  %v4405_v60 = vadd.f32 %v4384_v37, %v4120_v24  ;;  %v4409_v44 = vadd.f32 %v4384_v37, %v4123_v35  ;;  %v4413_v25 = vadd.f32 %v4384_v37, %v4125_v36 }
 0x16c   : > { %v921_v38 = vmax.f32 %v4784_v10, %v865_v31  ;;  %v2974_v8 = vsel %vm2817_vm7, %v2973_v2, %v2972_v3  ;;  %v937_v13 = vmax.f32 %v893_v51, %v897_v9  ;;  %v2956_v24 = vsel %vm2811_vm5, %v2955_v40, %v2954_v46 }
 0x16d   : > { %v2976_v56 = vsel %vm2820_vm8, %v2975_v49, %v2974_v8  ;;  %v870_v35 = vmax.f32 %v4405_v60, 0.0  ;;  %v902_v54 = vmax.f32 %v4409_v44, 0.0  ;;  %v868_v51 = vmax.f32 %v4413_v25, 0.0 }
 0x16e   : > { %v1065_v11 = vcombine.high %v921_v38, %v921_v38  ;;  %v1072_v50 = vrot.slane %v921_v38, %v4021_v62  ;;  %v2978_v36 = vsel %vm2823_vm9, %v2977_v45, %v2976_v56  ;;  %v1337_v30 = vcombine.high %v937_v13, %v937_v13 }
 0x16f   : > { %v3046_v57 = vpack.c.b16 %v2978_v36, %v2978_v36  ;;  %v1344_v1 = vrot.slane %v937_v13, %v4021_v62  ;;  %v4432_v42 = vadd.f32 %v4384_v37, %v4129_v48 }
 0x170   : > { %v1079_v12 = vrot.slane %v1065_v11, %v4021_v62  ;;  %v1080_v27 = vcombine.high %v1072_v50, %v1072_v50  ;;  %v3279_v63 = vrot.slane %v1072_v50, 9  ;;  %v1351_v46 = vrot.slane %v1337_v30, %v4021_v62 }
 0x171   : > { %3079 = vst.msk [vmem:[%s4209_s13 + $0x2c] sm:$0xf] %vm3067_vm10, %v3046_v57  ;;  %v1352_v34 = vcombine.high %v1344_v1, %v1344_v1  ;;  %v3343_v26 = vrot.slane %v1344_v1, 9 }
 0x172   : > { %v1081_v41 = vcombine.high %v1079_v12, %v1079_v12  ;;  %v3280_v18 = vrot.slane %v1080_v27, 9  ;;  %v3281_v33 = vrot.slane %v1079_v12, 9  ;;  %v2056_v40 = vmax.f32 %v1072_v50, %v3279_v63 }
 0x173   : > { %v1353_v17 = vcombine.high %v1351_v46, %v1351_v46  ;;  %v3344_v31 = vrot.slane %v1352_v34, 9  ;;  %v3345_v32 = vrot.slane %v1351_v46, 9  ;;  %v2120_v23 = vmax.f32 %v1344_v1, %v3343_v26 }
 0x174   : > { %v3282_v19 = vrot.slane %v1081_v41, 9  ;;  %v2057_v39 = vmax.f32 %v1080_v27, %v3280_v18  ;;  %v2058_v6 = vmax.f32 %v1079_v12, %v3281_v33  ;;  %v3537_v29 = vpack.c.bf16 %v2056_v40, %v2056_v40 }
 0x175   : > { %v3346_v10 = vrot.slane %v1353_v17, 9  ;;  %v2121_v38 = vmax.f32 %v1352_v34, %v3344_v31  ;;  %v2122_v9 = vmax.f32 %v1351_v46, %v3345_v32  ;;  %v3601_v3 = vpack.c.bf16 %v2120_v23, %v2120_v23 }
 0x176   : > { %v2059_v47 = vmax.f32 %v1081_v41, %v3282_v19  ;;  %v3538_v2 = vpack.c.bf16 %v2057_v39, %v2057_v39  ;;  %v3539_v49 = vpack.c.bf16 %v2058_v6, %v2058_v6  ;;  %v2696_v45 = vunpack.c.l.b16 %v3537_v29 }
 0x177   : > { %v2123_v13 = vmax.f32 %v1353_v17, %v3346_v10  ;;  %v3602_v56 = vpack.c.bf16 %v2121_v38, %v2121_v38  ;;  %v3603_v36 = vpack.c.bf16 %v2122_v9, %v2122_v9  ;;  %v2760_v12 = vunpack.c.l.b16 %v3601_v3  ;;  %v4785_v10 = vld [vmem:[#allocation2_spill] sm:$0xff]  ;;  %v4786_v9 = vld [vmem:[#allocation3_spill] sm:$0xff] }
 0x178   : > { %v3540_v8 = vpack.c.bf16 %v2059_v47, %v2059_v47  ;;  %v2697_v11 = vunpack.c.l.b16 %v3538_v2  ;;  %v2698_v48 = vunpack.c.l.b16 %v3539_v49  ;;  %v2845_v50 = vrot.slane %v2696_v45, 4 }
 0x179   : > { %v3604_v1 = vpack.c.bf16 %v2123_v13, %v2123_v13  ;;  %v2761_v41 = vunpack.c.l.b16 %v3602_v56  ;;  %v2762_v18 = vunpack.c.l.b16 %v3603_v36  ;;  %v2957_v33 = vrot.slane %v2760_v12, 4  ;;  %v4788_v56 = vld [vmem:[#allocation5_spill] sm:$0xff] }
 0x17a   : > { %v2699_v27 = vunpack.c.l.b16 %v3540_v8  ;;  %v2846_v63 = vsel %vm2814_vm6, %v2845_v50, %v2844_v55  ;;  %v2847_v57 = vrot.slane %v2697_v11, 3  ;;  %v2849_v30 = vrot.slane %v2698_v48, 2 }
 0x17b   : > { %v4438_v34 = vadd.f32 %v4384_v37, %v4131_v52  ;;  %v4442_v26 = vadd.f32 %v4384_v37, %v4135_v4  ;;  %v2763_v55 = vunpack.c.l.b16 %v3604_v1  ;;  %v2958_v39 = vsel %vm2814_vm6, %v2957_v33, %v2956_v24  ;;  %v4790_v33 = vld [vmem:[#allocation7_spill] sm:$0xff] }
 0x17c   : > { %v2848_v40 = vsel %vm2817_vm7, %v2847_v57, %v2846_v63  ;;  %v2851_v46 = vrot.slane %v2699_v27, 1  ;;  %v2959_v6 = vrot.slane %v2761_v41, 3  ;;  %v2961_v17 = vrot.slane %v2762_v18, 2  ;;  %v4789_v57 = vld [vmem:[#allocation6_spill] sm:$0xff] }
 0x17d   : > { %v2850_v19 = vsel %vm2820_vm8, %v2849_v30, %v2848_v40  ;;  %v900_v31 = vmax.f32 %v4432_v42, 0.0  ;;  %v871_v32 = vmax.f32 %v4438_v34, 0.0  ;;  %v2963_v47 = vrot.slane %v2763_v55, 1 }
 0x17e   : > { %v2852_v29 = vsel %vm2823_vm9, %v2851_v46, %v2850_v19  ;;  %v2960_v23 = vsel %vm2817_vm7, %v2959_v6, %v2958_v39  ;;  %v4452_v4 = vadd.f32 %v4384_v37, %v4137_v5  ;;  %v4457_v24 = vadd.f32 %v4384_v37, %v4146_v15 }
 0x17f   : > { %v3037_v52 = vpack.c.b16 %v2852_v29, %v2852_v29  ;;  %v2962_v2 = vsel %vm2820_vm8, %v2961_v17, %v2960_v23  ;;  %v686_v42 = vadd.f32 %v4384_v37, %v4159_v22  ;;  %v814_v49 = vadd.f32 %v4384_v37, %v4163_v7  ;;  %v4787_v7 = vld [vmem:[#allocation4_spill] sm:$0xff] }
 0x180   : > { %v2964_v45 = vsel %vm2823_vm9, %v2963_v47, %v2962_v2  ;;  %v903_v5 = vmax.f32 %v4442_v26, 0.0  ;;  %v678_v38 = vadd.f32 %v4384_v37, %v4785_v10  ;;  %v806_v15 = vadd.f32 %v4384_v37, %v4786_v9 }
 0x181   : > { %3070 = vst.msk [vmem:[%s4209_s13 + $0x8] sm:$0xf] %vm3067_vm10, %v3037_v52  ;;  %v3045_v3 = vpack.c.b16 %v2964_v45, %v2964_v45  ;;  %v869_v8 = vmax.f32 %v4452_v4, 0.0  ;;  %v874_v11 = vmax.f32 %v686_v42, 0.0  ;;  %v906_v22 = vmax.f32 %v814_v49, 0.0 }
 0x182   : > { %v872_v48 = vmax.f32 %v678_v38, 0.0  ;;  %v904_v50 = vmax.f32 %v806_v15, 0.0  ;;  %v4474_v13 = vadd.f32 %v4384_v37, %v4787_v7  ;;  %v4478_v36 = vadd.f32 %v4384_v37, %v4788_v56 }
 0x183   : > { %3078 = vst.msk [vmem:[%s4209_s13 + $0x28] sm:$0xf] %vm3067_vm10, %v3045_v3  ;;  %v926_v27 = vmax.f32 %v870_v35, %v874_v11  ;;  %v942_v63 = vmax.f32 %v902_v54, %v906_v22  ;;  %v4489_v30 = vadd.f32 %v4384_v37, %v4789_v57  ;;  %v4498_v40 = vadd.f32 %v4384_v37, %v4790_v33 }
 0x184   : > { %v924_v1 = vmax.f32 %v868_v51, %v872_v48  ;;  %v4493_v41 = vmax.f32 %v900_v31, %v904_v50  ;;  %v875_v18 = vmax.f32 %v4474_v13, 0.0  ;;  %v907_v51 = vmax.f32 %v4478_v36, 0.0 }
 0x185   : > { %v1150_v60 = vcombine.high %v926_v27, %v926_v27  ;;  %v1157_v35 = vrot.slane %v926_v27, %v4021_v62  ;;  %v1422_v44 = vcombine.high %v942_v63, %v942_v63  ;;  %v1429_v54 = vrot.slane %v942_v63, %v4021_v62 }
 0x186   : > { %v1116_v46 = vcombine.high %v924_v1, %v924_v1  ;;  %v1123_v19 = vrot.slane %v924_v1, %v4021_v62  ;;  %v1388_v25 = vcombine.high %v4493_v41, %v4493_v41  ;;  %v4511_v23 = vrot.slane %v4493_v41, %v4021_v62 }
 0x187   : > { %v1164_v55 = vrot.slane %v1150_v60, %v4021_v62  ;;  %v1165_v39 = vcombine.high %v1157_v35, %v1157_v35  ;;  %v3299_v6 = vrot.slane %v1157_v35, 9  ;;  %v1436_v29 = vrot.slane %v1422_v44, %v4021_v62 }
 0x188   : > { %v1437_v17 = vcombine.high %v1429_v54, %v1429_v54  ;;  %v3363_v31 = vrot.slane %v1429_v54, 9  ;;  %v1130_v52 = vrot.slane %v1116_v46, %v4021_v62  ;;  %v1131_v56 = vcombine.high %v1123_v19, %v1123_v19 }
 0x189   : > { %v1166_v47 = vcombine.high %v1164_v55, %v1164_v55  ;;  %v3300_v2 = vrot.slane %v1165_v39, 9  ;;  %v3301_v42 = vrot.slane %v1164_v55, 9  ;;  %v2076_v49 = vmax.f32 %v1157_v35, %v3299_v6 }
 0x18a   : > { %v1438_v45 = vcombine.high %v1436_v29, %v1436_v29  ;;  %v3364_v10 = vrot.slane %v1437_v17, 9  ;;  %v3365_v38 = vrot.slane %v1436_v29, 9  ;;  %v2140_v9 = vmax.f32 %v1429_v54, %v3363_v31 }
 0x18b   : > { %v3302_v15 = vrot.slane %v1166_v47, 9  ;;  %v2077_v3 = vmax.f32 %v1165_v39, %v3300_v2  ;;  %v2078_v11 = vmax.f32 %v1164_v55, %v3301_v42  ;;  %v3557_v22 = vpack.c.bf16 %v2076_v49, %v2076_v49 }
 0x18c   : > { %v3366_v48 = vrot.slane %v1438_v45, 9  ;;  %v2141_v50 = vmax.f32 %v1437_v17, %v3364_v10  ;;  %v2142_v7 = vmax.f32 %v1436_v29, %v3365_v38  ;;  %v3621_v1 = vpack.c.bf16 %v2140_v9, %v2140_v9 }
 0x18d   : > { %v2079_v27 = vmax.f32 %v1166_v47, %v3302_v15  ;;  %v3558_v63 = vpack.c.bf16 %v2077_v3, %v2077_v3  ;;  %v3559_v57 = vpack.c.bf16 %v2078_v11, %v2078_v11  ;;  %v2716_v33 = vunpack.c.l.b16 %v3557_v22 }
 0x18e   : > { %v2143_v60 = vmax.f32 %v1438_v45, %v3366_v48  ;;  %v3622_v44 = vpack.c.bf16 %v2141_v50, %v2141_v50  ;;  %v3623_v35 = vpack.c.bf16 %v2142_v7, %v2142_v7  ;;  %v1132_v54 = vcombine.high %v1130_v52, %v1130_v52 }
 0x18f   : > { %v3560_v46 = vpack.c.bf16 %v2079_v27, %v2079_v27  ;;  %v2717_v6 = vunpack.c.l.b16 %v3558_v63  ;;  %v2718_v12 = vunpack.c.l.b16 %v3559_v57  ;;  %v3291_v2 = vrot.slane %v1123_v19, 9 }
 0x190   : > { %v3624_v31 = vpack.c.bf16 %v2143_v60, %v2143_v60  ;;  %v2781_v39 = vunpack.c.l.b16 %v3622_v44  ;;  %v2782_v55 = vunpack.c.l.b16 %v3623_v35  ;;  %v3292_v47 = vrot.slane %v1131_v56, 9 }
 0x191   : > { %v4513_v42 = vunpack.c.l.b16 %v3560_v46  ;;  %v2881_v29 = vrot.slane %v2717_v6, 7  ;;  %v2883_v17 = vrot.slane %v2718_v12, 6  ;;  %v2780_v49 = vunpack.c.l.b16 %v3621_v1 }
 0x192   : > { %v4515_v10 = vunpack.c.l.b16 %v3624_v31  ;;  %v2993_v38 = vrot.slane %v2781_v39, 7  ;;  %v3293_v45 = vrot.slane %v1130_v52, 9  ;;  %v2995_v15 = vrot.slane %v2782_v55, 6 }
 0x193   : > { %v2882_v9 = vsel %vm2805_vm3, %v2881_v29, %v2716_v33  ;;  %v3294_v3 = vrot.slane %v1132_v54, 9  ;;  %v2068_v11 = vmax.f32 %v1123_v19, %v3291_v2  ;;  %v2885_v48 = vrot.slane %v4513_v42, 5 }
 0x194   : > { %v2884_v22 = vsel %vm2808_vm4, %v2883_v17, %v2882_v9  ;;  %v2994_v50 = vsel %vm2805_vm3, %v2993_v38, %v2780_v49  ;;  %v2069_v7 = vmax.f32 %v1131_v56, %v3292_v47  ;;  %v2997_v12 = vrot.slane %v4515_v10, 5 }
 0x195   : > { %v2070_v27 = vmax.f32 %v1130_v52, %v3293_v45  ;;  %v2071_v63 = vmax.f32 %v1132_v54, %v3294_v3  ;;  %v3549_v57 = vpack.c.bf16 %v2068_v11, %v2068_v11  ;;  %v1402_v33 = vrot.slane %v1388_v25, %v4021_v62 }
 0x196   : > { %v3550_v1 = vpack.c.bf16 %v2069_v7, %v2069_v7  ;;  %v1403_v19 = vcombine.high %v4511_v23, %v4511_v23  ;;  %v3355_v60 = vrot.slane %v4511_v23, 9  ;;  %v927_v52 = vmax.f32 %v871_v32, %v875_v18 }
 0x197   : > { %v3551_v44 = vpack.c.bf16 %v2070_v27, %v2070_v27  ;;  %v3552_v35 = vpack.c.bf16 %v2071_v63, %v2071_v63  ;;  %v2708_v46 = vunpack.c.l.b16 %v3549_v57  ;;  %v1404_v6 = vcombine.high %v1402_v33, %v1402_v33 }
 0x198   : > { %v2709_v56 = vunpack.c.l.b16 %v3550_v1  ;;  %v3356_v54 = vrot.slane %v1403_v19, 9  ;;  %v3357_v31 = vrot.slane %v1402_v33, 9  ;;  %v2132_v25 = vmax.f32 %v4511_v23, %v3355_v60 }
 0x199   : > { %v2710_v39 = vunpack.c.l.b16 %v3551_v44  ;;  %v4533_v41 = vunpack.c.l.b16 %v3552_v35  ;;  %v1167_v55 = vcombine.high %v927_v52, %v927_v52  ;;  %v3358_v42 = vrot.slane %v1404_v6, 9 }
 0x19a   : > { %v2867_v2 = vrot.slane %v2709_v56, 7  ;;  %v2133_v29 = vmax.f32 %v1403_v19, %v3356_v54  ;;  %v2134_v17 = vmax.f32 %v1402_v33, %v3357_v31  ;;  %v2996_v47 = vsel %vm2808_vm4, %v2995_v15, %v2994_v50 }
 0x19b   : > { %v2869_v13 = vrot.slane %v2710_v39, 6  ;;  %v3613_v49 = vpack.c.bf16 %v2132_v25, %v2132_v25  ;;  %v1174_v34 = vrot.slane %v927_v52, %v4021_v62  ;;  %v2135_v18 = vmax.f32 %v1404_v6, %v3358_v42 }
 0x19c   : > { %v2868_v32 = vsel %vm2805_vm3, %v2867_v2, %v2708_v46  ;;  %v3614_v10 = vpack.c.bf16 %v2133_v29, %v2133_v29  ;;  %v3615_v38 = vpack.c.bf16 %v2134_v17, %v2134_v17  ;;  %v2871_v23 = vrot.slane %v4533_v41, 5 }
 0x19d   : > { %v4540_v45 = vsel %vm2808_vm4, %v2869_v13, %v2868_v32  ;;  %v1181_v9 = vrot.slane %v1167_v55, %v4021_v62  ;;  %v1182_v3 = vcombine.high %v1174_v34, %v1174_v34  ;;  %v3616_v11 = vpack.c.bf16 %v2135_v18, %v2135_v18 }
 0x19e   : > { %v2773_v7 = vunpack.c.l.b16 %v3614_v10  ;;  %v2774_v15 = vunpack.c.l.b16 %v3615_v38  ;;  %v3303_v50 = vrot.slane %v1174_v34, 9  ;;  %v2772_v27 = vunpack.c.l.b16 %v3613_v49 }
 0x19f   : > { %v1183_v63 = vcombine.high %v1181_v9, %v1181_v9  ;;  %v3304_v57 = vrot.slane %v1182_v3, 9  ;;  %v3305_v1 = vrot.slane %v1181_v9, 9  ;;  %v4544_v33 = vunpack.c.l.b16 %v3616_v11 }
 0x1a0   : > { %v2979_v19 = vrot.slane %v2773_v7, 7  ;;  %v2981_v60 = vrot.slane %v2774_v15, 6  ;;  %v2080_v44 = vmax.f32 %v1174_v34, %v3303_v50  ;;  %v943_v56 = vmax.f32 %v903_v5, %v907_v51 }
 0x1a1   : > { %v3306_v35 = vrot.slane %v1183_v63, 9  ;;  %v2081_v46 = vmax.f32 %v1182_v3, %v3304_v57  ;;  %v2082_v52 = vmax.f32 %v1181_v9, %v3305_v1  ;;  %v2983_v54 = vrot.slane %v4544_v33, 5 }
 0x1a2   : > { %v2980_v6 = vsel %vm2805_vm3, %v2979_v19, %v2772_v27  ;;  %v3561_v31 = vpack.c.bf16 %v2080_v44, %v2080_v44  ;;  %v2886_v39 = vsel %vm2811_vm5, %v2885_v48, %v2884_v22  ;;  %v2998_v42 = vsel %vm2811_vm5, %v2997_v12, %v2996_v47 }
 0x1a3   : > { %v2083_v25 = vmax.f32 %v1183_v63, %v3306_v35  ;;  %v3562_v55 = vpack.c.bf16 %v2081_v46, %v2081_v46  ;;  %v3563_v2 = vpack.c.bf16 %v2082_v52, %v2082_v52  ;;  %v1439_v17 = vcombine.high %v943_v56, %v943_v56 }
 0x1a4   : > { %v2720_v29 = vunpack.c.l.b16 %v3561_v31  ;;  %v1446_v13 = vrot.slane %v943_v56, %v4021_v62  ;;  %v873_v36 = vmax.f32 %v4489_v30, 0.0  ;;  %v4557_v26 = vsel %vm2808_vm4, %v2981_v60, %v2980_v6 }
 0x1a5   : > { %v3564_v5 = vpack.c.bf16 %v2083_v25, %v2083_v25  ;;  %v2721_v51 = vunpack.c.l.b16 %v3562_v55  ;;  %v2722_v49 = vunpack.c.l.b16 %v3563_v2  ;;  %v1453_v22 = vrot.slane %v1439_v17, %v4021_v62 }
 0x1a6   : > { %v2887_v34 = vrot.slane %v2720_v29, 4  ;;  %v1454_v48 = vcombine.high %v1446_v13, %v1446_v13  ;;  %v3367_v32 = vrot.slane %v1446_v13, 9  ;;  %v925_v47 = vmax.f32 %v869_v8, %v873_v36 }
 0x1a7   : > { %v2723_v18 = vunpack.c.l.b16 %v3564_v5  ;;  %v2889_v10 = vrot.slane %v2721_v51, 3  ;;  %v2891_v12 = vrot.slane %v2722_v49, 2  ;;  %v1455_v30 = vcombine.high %v1453_v22, %v1453_v22 }
 0x1a8   : > { %v2888_v38 = vsel %vm2814_vm6, %v2887_v34, %v2886_v39  ;;  %v3368_v9 = vrot.slane %v1454_v48, 9  ;;  %v3369_v3 = vrot.slane %v1453_v22, 9  ;;  %v2144_v15 = vmax.f32 %v1446_v13, %v3367_v32 }
 0x1a9   : > { %v2890_v11 = vsel %vm2817_vm7, %v2889_v10, %v2888_v38  ;;  %v2893_v7 = vrot.slane %v2723_v18, 1  ;;  %v1133_v50 = vcombine.high %v925_v47, %v925_v47  ;;  %v3370_v63 = vrot.slane %v1455_v30, 9 }
 0x1aa   : > { %v2892_v27 = vsel %vm2820_vm8, %v2891_v12, %v2890_v11  ;;  %v2145_v57 = vmax.f32 %v1454_v48, %v3368_v9  ;;  %v2146_v1 = vmax.f32 %v1453_v22, %v3369_v3  ;;  %v3625_v4 = vpack.c.bf16 %v2144_v15, %v2144_v15 }
 0x1ab   : > { %v2894_v19 = vsel %vm2823_vm9, %v2893_v7, %v2892_v27  ;;  %v1140_v8 = vrot.slane %v925_v47, %v4021_v62  ;;  %v1147_v60 = vrot.slane %v1133_v50, %v4021_v62  ;;  %v2147_v35 = vmax.f32 %v1455_v30, %v3370_v63 }
 0x1ac   : > { %v3040_v44 = vpack.c.b16 %v2894_v19, %v2894_v19  ;;  %v3626_v46 = vpack.c.bf16 %v2145_v57, %v2145_v57  ;;  %v3627_v52 = vpack.c.bf16 %v2146_v1, %v2146_v1  ;;  %v2784_v56 = vunpack.c.l.b16 %v3625_v4 }
 0x1ad   : > { %v1148_v6 = vcombine.high %v1140_v8, %v1140_v8  ;;  %v1149_v31 = vcombine.high %v1147_v60, %v1147_v60  ;;  %v3295_v39 = vrot.slane %v1140_v8, 9  ;;  %v3628_v25 = vpack.c.bf16 %v2147_v35, %v2147_v35 }
 0x1ae   : > { %3073 = vst.msk [vmem:[%s4209_s13 + $0x14] sm:$0xf] %vm3067_vm10, %v3040_v44  ;;  %v2785_v55 = vunpack.c.l.b16 %v3626_v46  ;;  %v2786_v2 = vunpack.c.l.b16 %v3627_v52  ;;  %v3297_v29 = vrot.slane %v1147_v60, 9  ;;  %v2999_v17 = vrot.slane %v2784_v56, 4 }
 0x1af   : > { %v3296_v13 = vrot.slane %v1148_v6, 9  ;;  %v3298_v36 = vrot.slane %v1149_v31, 9  ;;  %v2072_v5 = vmax.f32 %v1140_v8, %v3295_v39  ;;  %v2787_v51 = vunpack.c.l.b16 %v3628_v25 }
 0x1b0   : > { %v3001_v49 = vrot.slane %v2785_v55, 3  ;;  %v3003_v34 = vrot.slane %v2786_v2, 2  ;;  %v2074_v22 = vmax.f32 %v1147_v60, %v3297_v29  ;;  %v3000_v48 = vsel %vm2814_vm6, %v2999_v17, %v2998_v42 }
 0x1b1   : > { %v2073_v32 = vmax.f32 %v1148_v6, %v3296_v13  ;;  %v2075_v18 = vmax.f32 %v1149_v31, %v3298_v36  ;;  %v3553_v10 = vpack.c.bf16 %v2072_v5, %v2072_v5  ;;  %v3005_v47 = vrot.slane %v2787_v51, 1 }
 0x1b2   : > { %v3002_v12 = vsel %vm2817_vm7, %v3001_v49, %v3000_v48  ;;  %v3555_v38 = vpack.c.bf16 %v2074_v22, %v2074_v22  ;;  %v905_v30 = vmax.f32 %v4498_v40, 0.0  ;;  %v2872_v42 = vsel %vm2811_vm5, %v2871_v23, %v4540_v45 }
 0x1b3   : > { %v3004_v9 = vsel %vm2820_vm8, %v3003_v34, %v3002_v12  ;;  %v3554_v3 = vpack.c.bf16 %v2073_v32, %v2073_v32  ;;  %v3556_v11 = vpack.c.bf16 %v2075_v18, %v2075_v18  ;;  %v2712_v7 = vunpack.c.l.b16 %v3553_v10  ;;  %v4792_v10 = vld [vmem:[#allocation8_spill] sm:$0xff] }
 0x1b4   : > { %v3006_v15 = vsel %vm2823_vm9, %v3005_v47, %v3004_v9  ;;  %v2714_v50 = vunpack.c.l.b16 %v3555_v38  ;;  %v4791_v27 = vmax.f32 %v4457_v24, 0.0  ;;  %v2984_v60 = vsel %vm2811_vm5, %v2983_v54, %v4557_v26  ;;  %v4793_v47 = vld [vmem:[#allocation9_spill] sm:$0xff] }
 0x1b5   : > { %v3048_v57 = vpack.c.b16 %v3006_v15, %v3006_v15  ;;  %v2713_v1 = vunpack.c.l.b16 %v3554_v3  ;;  %v2715_v40 = vunpack.c.l.b16 %v3556_v11  ;;  %v2873_v19 = vrot.slane %v2712_v7, 4  ;;  %v4794_v11 = vld [vmem:[#allocation10_spill] sm:$0xff]  ;;  %v4795_v15 = vld [vmem:[#allocation11_spill] sm:$0xff] }
 0x1b6   : > { %v941_v63 = vmax.f32 %v4791_v27, %v905_v30  ;;  %v702_v24 = vadd.f32 %v4384_v37, %v4264_v61  ;;  %v830_v23 = vadd.f32 %v4384_v37, %v4266_v53  ;;  %v2877_v44 = vrot.slane %v2714_v50, 2 }
 0x1b7   : > { %3081 = vst.msk [vmem:[%s4209_s13 + $0x34] sm:$0xf] %vm3067_vm10, %v3048_v57  ;;  %v2874_v41 = vsel %vm2814_vm6, %v2873_v19, %v2872_v42  ;;  %v2875_v45 = vrot.slane %v2713_v1, 3  ;;  %v2879_v56 = vrot.slane %v2715_v40, 1  ;;  %v694_v54 = vadd.f32 %v4384_v37, %v4274_v59  ;;  %v4796_v42 = vld [vmem:[#allocation12_spill] sm:$0xff] }
 0x1b8   : > { %v1405_v4 = vcombine.high %v941_v63, %v941_v63  ;;  %v1412_v8 = vrot.slane %v941_v63, %v4021_v62  ;;  %v822_v26 = vadd.f32 %v4384_v37, %v4276_v21  ;;  %v878_v55 = vmax.f32 %v702_v24, 0.0 }
 0x1b9   : > { %v2876_v33 = vsel %vm2817_vm7, %v2875_v45, %v2874_v41  ;;  %v910_v2 = vmax.f32 %v830_v23, 0.0  ;;  %v876_v59 = vmax.f32 %v694_v54, 0.0  ;;  %v4603_v21 = vadd.f32 %v4384_v37, %v4288_v28 }
 0x1ba   : > { %v1419_v35 = vrot.slane %v1405_v4, %v4021_v62  ;;  %v1420_v46 = vcombine.high %v1412_v8, %v1412_v8  ;;  %v3359_v52 = vrot.slane %v1412_v8, 9  ;;  %v2878_v6 = vsel %vm2820_vm8, %v2877_v44, %v2876_v33 }
 0x1bb   : > { %v2880_v39 = vsel %vm2823_vm9, %v2879_v56, %v2878_v6  ;;  %v4607_v51 = vadd.f32 %v4384_v37, %v4294_v43  ;;  %v908_v48 = vmax.f32 %v822_v26, 0.0  ;;  %v879_v18 = vmax.f32 %v4603_v21, 0.0 }
 0x1bc   : > { %v1421_v61 = vcombine.high %v1419_v35, %v1419_v35  ;;  %v3360_v31 = vrot.slane %v1420_v46, 9  ;;  %v3361_v53 = vrot.slane %v1419_v35, 9  ;;  %v2136_v25 = vmax.f32 %v1412_v8, %v3359_v52 }
 0x1bd   : > { %v3039_v29 = vpack.c.b16 %v2880_v39, %v2880_v39  ;;  %v4614_v12 = vadd.f32 %v4384_v37, %v4792_v10  ;;  %v4618_v28 = vadd.f32 %v4384_v37, %v4793_v47  ;;  %v911_v9 = vmax.f32 %v4607_v51, 0.0 }
 0x1be   : > { %v3362_v17 = vrot.slane %v1421_v61, 9  ;;  %v2137_v13 = vmax.f32 %v1420_v46, %v3360_v31  ;;  %v2138_v36 = vmax.f32 %v1419_v35, %v3361_v53  ;;  %v3617_v5 = vpack.c.bf16 %v2136_v25, %v2136_v25 }
 0x1bf   : > { %3072 = vst.msk [vmem:[%s4209_s13 + $0x10] sm:$0xf] %vm3067_vm10, %v3039_v29  ;;  %v718_v7 = vadd.f32 %v4384_v37, %v4794_v11  ;;  %v846_v50 = vadd.f32 %v4384_v37, %v4795_v15  ;;  %v710_v27 = vadd.f32 %v4384_v37, %v4796_v42  ;;  %v838_v40 = vadd.f32 %v4384_v37, %v4322_v16 }
 0x1c0   : > { %v2139_v49 = vmax.f32 %v1421_v61, %v3362_v17  ;;  %v3618_v34 = vpack.c.bf16 %v2137_v13, %v2137_v13  ;;  %v3619_v22 = vpack.c.bf16 %v2138_v36, %v2138_v36  ;;  %v2776_v32 = vunpack.c.l.b16 %v3617_v5 }
 0x1c1   : > { %v882_v4 = vmax.f32 %v718_v7, 0.0  ;;  %v914_v8 = vmax.f32 %v846_v50, 0.0  ;;  %v880_v41 = vmax.f32 %v710_v27, 0.0  ;;  %v912_v23 = vmax.f32 %v838_v40, 0.0 }
 0x1c2   : > { %v3620_v38 = vpack.c.bf16 %v2139_v49, %v2139_v49  ;;  %v2777_v43 = vunpack.c.l.b16 %v3618_v34  ;;  %v2778_v30 = vunpack.c.l.b16 %v3619_v22  ;;  %v2985_v3 = vrot.slane %v2776_v32, 4 }
 0x1c3   : > { %v4633_v44 = vadd.f32 %v4384_v37, %v4347_v58  ;;  %v930_v46 = vmax.f32 %v878_v55, %v882_v4  ;;  %v946_v52 = vmax.f32 %v910_v2, %v914_v8  ;;  %v928_v33 = vmax.f32 %v876_v59, %v880_v41 }
 0x1c4   : > { %v2779_v63 = vunpack.c.l.b16 %v3620_v38  ;;  %v2987_v57 = vrot.slane %v2777_v43, 3  ;;  %v2989_v1 = vrot.slane %v2778_v30, 2  ;;  %v2986_v19 = vsel %vm2814_vm6, %v2985_v3, %v2984_v60 }
 0x1c5   : > { %v877_v60 = vmax.f32 %v4614_v12, 0.0  ;;  %v909_v56 = vmax.f32 %v4618_v28, 0.0  ;;  %v4639_v54 = vmax.f32 %v908_v48, %v912_v23  ;;  %v1218_v6 = vcombine.high %v930_v46, %v930_v46 }
 0x1c6   : > { %v2988_v45 = vsel %vm2817_vm7, %v2987_v57, %v2986_v19  ;;  %v2991_v24 = vrot.slane %v2779_v63, 1  ;;  %v1225_v61 = vrot.slane %v930_v46, %v4021_v62  ;;  %v1490_v58 = vcombine.high %v946_v52, %v946_v52 }
 0x1c7   : > { %v2990_v35 = vsel %vm2820_vm8, %v2989_v1, %v2988_v45  ;;  %v1497_v31 = vrot.slane %v946_v52, %v4021_v62  ;;  %v1184_v53 = vcombine.high %v928_v33, %v928_v33  ;;  %v1191_v39 = vrot.slane %v928_v33, %v4021_v62 }
 0x1c8   : > { %v2992_v16 = vsel %vm2823_vm9, %v2991_v24, %v2990_v35  ;;  %v883_v25 = vmax.f32 %v4633_v44, 0.0  ;;  %v1232_v55 = vrot.slane %v1218_v6, %v4021_v62  ;;  %v1233_v2 = vcombine.high %v1225_v61, %v1225_v61 }
 0x1c9   : > { %v3047_v26 = vpack.c.b16 %v2992_v16, %v2992_v16  ;;  %v3315_v29 = vrot.slane %v1225_v61, 9  ;;  %v1504_v17 = vrot.slane %v1490_v58, %v4021_v62  ;;  %v1505_v13 = vcombine.high %v1497_v31, %v1497_v31 }
 0x1ca   : > { %v3379_v36 = vrot.slane %v1497_v31, 9  ;;  %v1198_v5 = vrot.slane %v1184_v53, %v4021_v62  ;;  %v1456_v59 = vcombine.high %v4639_v54, %v4639_v54  ;;  %v1234_v49 = vcombine.high %v1232_v55, %v1232_v55 }
 0x1cb   : > { %3080 = vst.msk [vmem:[%s4209_s13 + $0x30] sm:$0xf] %vm3067_vm10, %v3047_v26  ;;  %v3316_v34 = vrot.slane %v1233_v2, 9  ;;  %v3317_v22 = vrot.slane %v1232_v55, 9  ;;  %v2092_v48 = vmax.f32 %v1225_v61, %v3315_v29  ;;  %v1506_v32 = vcombine.high %v1504_v17, %v1504_v17 }
 0x1cc   : > { %v3380_v10 = vrot.slane %v1505_v13, 9  ;;  %v3381_v47 = vrot.slane %v1504_v17, 9  ;;  %v2156_v38 = vmax.f32 %v1497_v31, %v3379_v36  ;;  %v3318_v43 = vrot.slane %v1234_v49, 9 }
 0x1cd   : > { %v2093_v30 = vmax.f32 %v1233_v2, %v3316_v34  ;;  %v2094_v3 = vmax.f32 %v1232_v55, %v3317_v22  ;;  %v3573_v11 = vpack.c.bf16 %v2092_v48, %v2092_v48  ;;  %v3382_v7 = vrot.slane %v1506_v32, 9 }
 0x1ce   : > { %v2157_v15 = vmax.f32 %v1505_v13, %v3380_v10  ;;  %v2158_v50 = vmax.f32 %v1504_v17, %v3381_v47  ;;  %v1199_v42 = vcombine.high %v1191_v39, %v1191_v39  ;;  %v2095_v27 = vmax.f32 %v1234_v49, %v3318_v43 }
 0x1cf   : > { %v3574_v63 = vpack.c.bf16 %v2093_v30, %v2093_v30  ;;  %v3575_v57 = vpack.c.bf16 %v2094_v3, %v2094_v3  ;;  %v3637_v1 = vpack.c.bf16 %v2156_v38, %v2156_v38  ;;  %v2732_v40 = vunpack.c.l.b16 %v3573_v11 }
 0x1d0   : > { %v2159_v19 = vmax.f32 %v1506_v32, %v3382_v7  ;;  %v3638_v4 = vpack.c.bf16 %v2157_v15, %v2157_v15  ;;  %v3639_v8 = vpack.c.bf16 %v2158_v50, %v2158_v50  ;;  %v3576_v41 = vpack.c.bf16 %v2095_v27, %v2095_v27 }
 0x1d1   : > { %v2733_v45 = vunpack.c.l.b16 %v3574_v63  ;;  %v2734_v24 = vunpack.c.l.b16 %v3575_v57  ;;  %v1200_v23 = vcombine.high %v1198_v5, %v1198_v5  ;;  %v3307_v33 = vrot.slane %v1191_v39, 9 }
 0x1d2   : > { %v3640_v35 = vpack.c.bf16 %v2159_v19, %v2159_v19  ;;  %v2797_v46 = vunpack.c.l.b16 %v3638_v4  ;;  %v2798_v52 = vunpack.c.l.b16 %v3639_v8  ;;  %v2735_v16 = vunpack.c.l.b16 %v3576_v41 }
 0x1d3   : > { %v2909_v26 = vrot.slane %v2733_v45, 7  ;;  %v2911_v6 = vrot.slane %v2734_v24, 6  ;;  %v3308_v61 = vrot.slane %v1199_v42, 9  ;;  %v2796_v58 = vunpack.c.l.b16 %v3637_v1 }
 0x1d4   : > { %v4652_v31 = vunpack.c.l.b16 %v3640_v35  ;;  %v3021_v53 = vrot.slane %v2797_v46, 7  ;;  %v3309_v55 = vrot.slane %v1198_v5, 9  ;;  %v3023_v29 = vrot.slane %v2798_v52, 6 }
 0x1d5   : > { %v2910_v2 = vsel %vm2805_vm3, %v2909_v26, %v2732_v40  ;;  %v3310_v17 = vrot.slane %v1200_v23, 9  ;;  %v2084_v13 = vmax.f32 %v1191_v39, %v3307_v33  ;;  %v2913_v36 = vrot.slane %v2735_v16, 5 }
 0x1d6   : > { %v3022_v49 = vsel %vm2805_vm3, %v3021_v53, %v2796_v58  ;;  %v2085_v34 = vmax.f32 %v1199_v42, %v3308_v61  ;;  %v849_v22 = vadd.f32 %v4384_v37, %v4358_v20  ;;  %v2912_v48 = vsel %vm2808_vm4, %v2911_v6, %v2910_v2 }
 0x1d7   : > { %v3025_v32 = vrot.slane %v4652_v31, 5  ;;  %v2086_v10 = vmax.f32 %v1198_v5, %v3309_v55  ;;  %v2087_v47 = vmax.f32 %v1200_v23, %v3310_v17  ;;  %v1463_v43 = vrot.slane %v4639_v54, %v4021_v62 }
 0x1d8   : > { %v3566_v38 = vpack.c.bf16 %v2085_v34, %v2085_v34  ;;  %v1470_v30 = vrot.slane %v1456_v59, %v4021_v62  ;;  %v931_v39 = vmax.f32 %v879_v18, %v883_v25  ;;  %v3024_v3 = vsel %vm2808_vm4, %v3023_v29, %v3022_v49 }
 0x1d9   : > { %v3565_v20 = vpack.c.bf16 %v2084_v13, %v2084_v13  ;;  %v3567_v37 = vpack.c.bf16 %v2086_v10, %v2086_v10  ;;  %v3568_v11 = vpack.c.bf16 %v2087_v47, %v2087_v47  ;;  %v1471_v15 = vcombine.high %v1463_v43, %v1463_v43 }
 0x1da   : > { %v2725_v7 = vunpack.c.l.b16 %v3566_v38  ;;  %v1472_v5 = vcombine.high %v1470_v30, %v1470_v30  ;;  %v3371_v50 = vrot.slane %v1463_v43, 9  ;;  %v3373_v54 = vrot.slane %v1470_v30, 9 }
 0x1db   : > { %v2726_v42 = vunpack.c.l.b16 %v3567_v37  ;;  %v4668_v27 = vunpack.c.l.b16 %v3568_v11  ;;  %v1235_v63 = vcombine.high %v931_v39, %v931_v39  ;;  %v3372_v57 = vrot.slane %v1471_v15, 9 }
 0x1dc   : > { %v2895_v59 = vrot.slane %v2725_v7, 7  ;;  %v3374_v44 = vrot.slane %v1472_v5, 9  ;;  %v2148_v1 = vmax.f32 %v1463_v43, %v3371_v50  ;;  %v2724_v21 = vunpack.c.l.b16 %v3565_v20 }
 0x1dd   : > { %v2150_v18 = vmax.f32 %v1470_v30, %v3373_v54  ;;  %v1242_v25 = vrot.slane %v931_v39, %v4021_v62  ;;  %v2914_v40 = vsel %vm2811_vm5, %v2913_v36, %v2912_v48  ;;  %v2897_v19 = vrot.slane %v2726_v42, 6 }
 0x1de   : > { %v2899_v4 = vrot.slane %v4668_v27, 5  ;;  %v2149_v8 = vmax.f32 %v1471_v15, %v3372_v57  ;;  %v2151_v41 = vmax.f32 %v1472_v5, %v3374_v44  ;;  %v2896_v45 = vsel %vm2805_vm3, %v2895_v59, %v2724_v21  ;;  %v3828_v44 = vld [vmem:[%s4757_s2] ss:$0 sm:$0xff] }
 0x1df   : > { %v3631_v24 = vpack.c.bf16 %v2150_v18, %v2150_v18  ;;  %v1249_v23 = vrot.slane %v1235_v63, %v4021_v62  ;;  %v1250_v35 = vcombine.high %v1242_v25, %v1242_v25  ;;  %v3629_v46 = vpack.c.bf16 %v2148_v1, %v2148_v1 }
 0x1e0   : > { %v3630_v52 = vpack.c.bf16 %v2149_v8, %v2149_v8  ;;  %v3632_v33 = vpack.c.bf16 %v2151_v41, %v2151_v41  ;;  %v3319_v16 = vrot.slane %v1242_v25, 9  ;;  %v915_v29 = vmax.f32 %v849_v22, 0.0 }
 0x1e1   : > { %v4675_v26 = vunpack.c.l.b16 %v3631_v24  ;;  %v1251_v6 = vcombine.high %v1249_v23, %v1249_v23  ;;  %v3320_v61 = vrot.slane %v1250_v35, 9  ;;  %v3321_v58 = vrot.slane %v1249_v23, 9 }
 0x1e2   : > { %v2789_v53 = vunpack.c.l.b16 %v3630_v52  ;;  %v4677_v55 = vunpack.c.l.b16 %v3632_v33  ;;  %v2096_v2 = vmax.f32 %v1242_v25, %v3319_v16  ;;  %v4680_v17 = vsel %vm2808_vm4, %v2897_v19, %v2896_v45 }
 0x1e3   : > { %v3322_v13 = vrot.slane %v1251_v6, 9  ;;  %v2097_v36 = vmax.f32 %v1250_v35, %v3320_v61  ;;  %v2098_v49 = vmax.f32 %v1249_v23, %v3321_v58  ;;  %v2788_v34 = vunpack.c.l.b16 %v3629_v46 }
 0x1e4   : > { %v3009_v48 = vrot.slane %v4675_v26, 6  ;;  %v3577_v10 = vpack.c.bf16 %v2096_v2, %v2096_v2  ;;  %v947_v47 = vmax.f32 %v911_v9, %v915_v29  ;;  %v3007_v38 = vrot.slane %v2789_v53, 7 }
 0x1e5   : > { %v2099_v43 = vmax.f32 %v1251_v6, %v3322_v13  ;;  %v3578_v30 = vpack.c.bf16 %v2097_v36, %v2097_v36  ;;  %v3579_v39 = vpack.c.bf16 %v2098_v49, %v2098_v49  ;;  %v3011_v20 = vrot.slane %v4677_v55, 5 }
 0x1e6   : > { %v2736_v22 = vunpack.c.l.b16 %v3577_v10  ;;  %v1507_v37 = vcombine.high %v947_v47, %v947_v47  ;;  %v1514_v11 = vrot.slane %v947_v47, %v4021_v62  ;;  %v3026_v50 = vsel %vm2811_vm5, %v3025_v32, %v3024_v3 }
 0x1e7   : > { %v3580_v7 = vpack.c.bf16 %v2099_v43, %v2099_v43  ;;  %v2737_v15 = vunpack.c.l.b16 %v3578_v30  ;;  %v2738_v5 = vunpack.c.l.b16 %v3579_v39  ;;  %v713_v1 = vadd.f32 %v3828_v44, %v4372_v0 }
 0x1e8   : > { %v2915_v42 = vrot.slane %v2736_v22, 4  ;;  %v1521_v51 = vrot.slane %v1507_v37, %v4021_v62  ;;  %v1522_v9 = vcombine.high %v1514_v11, %v1514_v11  ;;  %v3383_v54 = vrot.slane %v1514_v11, 9 }
 0x1e9   : > { %v2739_v63 = vunpack.c.l.b16 %v3580_v7  ;;  %v2917_v59 = vrot.slane %v2737_v15, 3  ;;  %v2919_v57 = vrot.slane %v2738_v5, 2  ;;  %v881_v8 = vmax.f32 %v713_v1, 0.0 }
 0x1ea   : > { %v2916_v21 = vsel %vm2814_vm6, %v2915_v42, %v2914_v40  ;;  %v1523_v18 = vcombine.high %v1521_v51, %v1521_v51  ;;  %v3384_v31 = vrot.slane %v1522_v9, 9  ;;  %v3385_v25 = vrot.slane %v1521_v51, 9 }
 0x1eb   : > { %v2918_v32 = vsel %vm2817_vm7, %v2917_v59, %v2916_v21  ;;  %v2921_v3 = vrot.slane %v2739_v63, 1  ;;  %v2160_v19 = vmax.f32 %v1514_v11, %v3383_v54  ;;  %v3008_v35 = vsel %vm2805_vm3, %v3007_v38, %v2788_v34 }
 0x1ec   : > { %v2920_v41 = vsel %vm2820_vm8, %v2919_v57, %v2918_v32  ;;  %v3386_v45 = vrot.slane %v1523_v18, 9  ;;  %v2161_v24 = vmax.f32 %v1522_v9, %v3384_v31  ;;  %v2162_v23 = vmax.f32 %v1521_v51, %v3385_v25 }
 0x1ed   : > { %v2922_v0 = vsel %vm2823_vm9, %v2921_v3, %v2920_v41  ;;  %v3641_v46 = vpack.c.bf16 %v2160_v19, %v2160_v19  ;;  %v929_v40 = vmax.f32 %v877_v60, %v881_v8  ;;  %v841_v53 = vadd.f32 %v3828_v44, %v4392_v14 }
 0x1ee   : > { %v3042_v52 = vpack.c.b16 %v2922_v0, %v2922_v0  ;;  %v2163_v33 = vmax.f32 %v1523_v18, %v3386_v45  ;;  %v3642_v16 = vpack.c.bf16 %v2161_v24, %v2161_v24  ;;  %v3643_v26 = vpack.c.bf16 %v2162_v23, %v2162_v23 }
 0x1ef   : > { %v2800_v6 = vunpack.c.l.b16 %v3641_v46  ;;  %v1201_v61 = vcombine.high %v929_v40, %v929_v40  ;;  %v1208_v58 = vrot.slane %v929_v40, %v4021_v62  ;;  %v4705_v2 = vsel %vm2808_vm4, %v3009_v48, %v3008_v35 }
 0x1f0   : > { %3075 = vst.msk [vmem:[%s4209_s13 + $0x1c] sm:$0xf] %vm3067_vm10, %v3042_v52  ;;  %v3644_v29 = vpack.c.bf16 %v2163_v33, %v2163_v33  ;;  %v2801_v13 = vunpack.c.l.b16 %v3642_v16  ;;  %v2802_v36 = vunpack.c.l.b16 %v3643_v26  ;;  %v913_v43 = vmax.f32 %v841_v53, 0.0 }
 0x1f1   : > { %v3027_v12 = vrot.slane %v2800_v6, 4  ;;  %v1215_v60 = vrot.slane %v1201_v61, %v4021_v62  ;;  %v1216_v49 = vcombine.high %v1208_v58, %v1208_v58  ;;  %v3311_v34 = vrot.slane %v1208_v58, 9 }
 0x1f2   : > { %v2803_v10 = vunpack.c.l.b16 %v3644_v29  ;;  %v3029_v47 = vrot.slane %v2801_v13, 3  ;;  %v3031_v38 = vrot.slane %v2802_v36, 2  ;;  %v945_v7 = vmax.f32 %v909_v56, %v913_v43 }
 0x1f3   : > { %v3028_v30 = vsel %vm2814_vm6, %v3027_v12, %v3026_v50  ;;  %v1217_v14 = vcombine.high %v1215_v60, %v1215_v60  ;;  %v3312_v39 = vrot.slane %v1216_v49, 9  ;;  %v3313_v48 = vrot.slane %v1215_v60, 9 }
 0x1f4   : > { %v3030_v22 = vsel %vm2817_vm7, %v3029_v47, %v3028_v30  ;;  %v3033_v37 = vrot.slane %v2803_v10, 1  ;;  %v2088_v11 = vmax.f32 %v1208_v58, %v3311_v34  ;;  %v1473_v50 = vcombine.high %v945_v7, %v945_v7 }
 0x1f5   : > { %v3032_v15 = vsel %vm2820_vm8, %v3031_v38, %v3030_v22  ;;  %v3314_v5 = vrot.slane %v1217_v14, 9  ;;  %v2089_v42 = vmax.f32 %v1216_v49, %v3312_v39  ;;  %v2090_v51 = vmax.f32 %v1215_v60, %v3313_v48 }
 0x1f6   : > { %v3034_v9 = vsel %vm2823_vm9, %v3033_v37, %v3032_v15  ;;  %v3569_v54 = vpack.c.bf16 %v2088_v11, %v2088_v11  ;;  %v1480_v63 = vrot.slane %v945_v7, %v4021_v62  ;;  %v1487_v28 = vrot.slane %v1473_v50, %v4021_v62 }
 0x1f7   : > { %v3050_v59 = vpack.c.b16 %v3034_v9, %v3034_v9  ;;  %v2091_v57 = vmax.f32 %v1217_v14, %v3314_v5  ;;  %v3570_v44 = vpack.c.bf16 %v2089_v42, %v2089_v42  ;;  %v3571_v1 = vpack.c.bf16 %v2090_v51, %v2090_v51 }
 0x1f8   : > { %v2728_v21 = vunpack.c.l.b16 %v3569_v54  ;;  %v1488_v56 = vcombine.high %v1480_v63, %v1480_v63  ;;  %v3375_v18 = vrot.slane %v1480_v63, 9  ;;  %v2900_v3 = vsel %vm2811_vm5, %v2899_v4, %v4680_v17 }
 0x1f9   : > { %3083 = vst.msk [vmem:[%s4209_s13 + $0x3c] sm:$0xf] %vm3067_vm10, %v3050_v59  ;;  %v3572_v31 = vpack.c.bf16 %v2091_v57, %v2091_v57  ;;  %v2729_v25 = vunpack.c.l.b16 %v3570_v44  ;;  %v2730_v32 = vunpack.c.l.b16 %v3571_v1  ;;  %v1489_v8 = vcombine.high %v1487_v28, %v1487_v28 }
 0x1fa   : > { %v2901_v19 = vrot.slane %v2728_v21, 4  ;;  %v3376_v41 = vrot.slane %v1488_v56, 9  ;;  %v3377_v45 = vrot.slane %v1487_v28, 9  ;;  %v2152_v62 = vmax.f32 %v1480_v63, %v3375_v18 }
 0x1fb   : > { %v2731_v24 = vunpack.c.l.b16 %v3572_v31  ;;  %v2903_v23 = vrot.slane %v2729_v25, 3  ;;  %v2905_v35 = vrot.slane %v2730_v32, 2  ;;  %v3378_v46 = vrot.slane %v1489_v8, 9 }
 0x1fc   : > { %v2902_v0 = vsel %vm2814_vm6, %v2901_v19, %v2900_v3  ;;  %v2153_v40 = vmax.f32 %v1488_v56, %v3376_v41  ;;  %v2154_v52 = vmax.f32 %v1487_v28, %v3377_v45  ;;  %v3633_v27 = vpack.c.bf16 %v2152_v62, %v2152_v62 }
 0x1fd   : > { %v2904_v33 = vsel %vm2817_vm7, %v2903_v23, %v2902_v0  ;;  %v2907_v16 = vrot.slane %v2731_v24, 1  ;;  %v2155_v17 = vmax.f32 %v1489_v8, %v3378_v46  ;;  %v3012_v53 = vsel %vm2811_vm5, %v3011_v20, %v4705_v2 }
 0x1fe   : > { %v2906_v4 = vsel %vm2820_vm8, %v2905_v35, %v2904_v33  ;;  %v3634_v26 = vpack.c.bf16 %v2153_v40, %v2153_v40  ;;  %v3635_v6 = vpack.c.bf16 %v2154_v52, %v2154_v52  ;;  %v2792_v58 = vunpack.c.l.b16 %v3633_v27 }
 0x1ff   : > { %v2908_v61 = vsel %vm2823_vm9, %v2907_v16, %v2906_v4  ;;  %v3636_v13 = vpack.c.bf16 %v2155_v17, %v2155_v17 }
 0x200   : > { %v3041_v29 = vpack.c.b16 %v2908_v61, %v2908_v61  ;;  %v2793_v36 = vunpack.c.l.b16 %v3634_v26  ;;  %v2794_v12 = vunpack.c.l.b16 %v3635_v6  ;;  %v3013_v60 = vrot.slane %v2792_v58, 4 }
 0x201   : > { %v2795_v49 = vunpack.c.l.b16 %v3636_v13 }
 0x202   : > { %3074 = vst.msk [vmem:[%s4209_s13 + $0x18] sm:$0xf] %vm3067_vm10, %v3041_v29  ;;  %v3015_v34 = vrot.slane %v2793_v36, 3  ;;  %v3014_v10 = vsel %vm2814_vm6, %v3013_v60, %v3012_v53  ;;  %v3017_v47 = vrot.slane %v2794_v12, 2 }
 0x203   : > { %v3019_v43 = vrot.slane %v2795_v49, 1 }
 0x204   : > { %v3016_v38 = vsel %vm2817_vm7, %v3015_v34, %v3014_v10 }
 0x205   : > { %v3018_v55 = vsel %vm2820_vm8, %v3017_v47, %v3016_v38 }
 0x206   : > { %v3020_v20 = vsel %vm2823_vm9, %v3019_v43, %v3018_v55 }
 0x207   : > { %v3049_v2 = vpack.c.b16 %v3020_v20, %v3020_v20 }
 0x209   : > { %3082 = vst.msk [vmem:[%s4209_s13 + $0x38] sm:$0xf] %vm3067_vm10, %v3049_v2 }
 0x20a PF: > { %s13_s16 = sadd.s32 1, %s3867_s16   ;;  %s4797_s12 = smov %s3859_s14 }
 0x20b   : > { %p10_p8 = scmp.ge.s32.totalorder %s13_s16, 6   ;;  %s4798_s13 = smov %s3863_s15 }
 0x20c   : > { %s4799_s14 = smov %s4802_s17  ;;  %s4800_s15 = smov %s4806_s18 }
 0x20d   :  { %12 = sbr.rel (!%p10_p8) target bundleno = 3 (0x3), region = 62 }

// kernel: forward.5
= control target key start
LH: loop header
LB: loop body
LE: loop exit
PB: predicated region body
PF: predicated region fallthrough
CT: control target
= control target key end

     0   :  { %s2872_s12 = smov 0   ;;  %s2874_s13 = smov 0   ;;  %s3408_s0 = inlined_call_operand.vmem [shape: bf16[2,256,288], index: 0, kind: input, shape index: {}]   ;;  %s3409_s1 = inlined_call_operand.vmem [shape: bf16[288,64], index: 1, kind: input, shape index: {}]   ;;  %s3410_s2 = inlined_call_operand.vmem [shape: f32[1,64], index: 2, kind: input, shape index: {}]   ;;  %s3411_s3 = inlined_call_operand.vmem [shape: bf16[2,8,8,64], index: 3, kind: output, shape index: {}]  }
   0x1   :  { %s2876_s14 = smov 0  }
   0x2 LB: > { %s25_s15 = sadd.s32 1, %s2845_s13  ;;  %p2254_p0 = scmp.ge.s32.totalorder %s2849_s14, 1  ;;  %s2849_s14 = sphi %s2876_s14, %s13_s14   ;;  %s2845_s13 = sphi %s2874_s13, %s3419_s13   ;;  %s2841_s12 = sphi %s2872_s12, %s3418_s12  }
   0x3   : > { %p27_p1 = scmp.ge.s32.totalorder %s25_s15, 2  ;;  %p159_p2 = scmp.lt.s32.totalorder %s2849_s14, 3 }
   0x5   : > { %s3421_s15 = smov (%p27_p1, %s25_s15), 0  ;;  %p160_p3 = pnand %p2254_p0, %p159_p2 }
   0x7   : > { %163 = sbr.rel (%p160_p3) target bundleno = 444 (0x1bc), region = 32 }
   0xe   : > { %v2744_v0 = vld [vmem:[%s3409_s1 + $0x40] sm:$0xff]   ;;  %v2746_v2 = vld [vmem:[%s3409_s1 + $0x48] sm:$0xff]   ;;  %p193_p4 = scmp.lt.s32.totalorder %s2841_s12, 1  ;;  %v2748_v4 = vld [vmem:[%s3409_s1 + $0x50] sm:$0xff]   ;;  %vm669_vm0 = vcmask 261120   ;;  %vm2017_vm1 = vcmask 1041409  }
   0xf   : > { %v2745_v1 = vld [vmem:[%s3409_s1] sm:$0xff]   ;;  %2536 = vmatprep.subr.bf16.mxu0 %v2744_v0  ;;  %2702 = vmatprep.subr.bf16.mxu1 %v2744_v0  ;;  %v2747_v3 = vld [vmem:[%s3409_s1 + $0x8] sm:$0xff]   ;;  %v2749_v5 = vld [vmem:[%s3409_s1 + $0x10] sm:$0xff]   ;;  %vm2020_vm2 = vcmask 1042434   ;;  %vm2023_vm3 = vcmask 1043459   ;;  %vm2026_vm4 = vcmask 1044484  }
  0x10   : > { %2537 = vmatpush3.bf16.msra.mxu0 %v2745_v1  ;;  %2710 = vmatpush3.bf16.msra.mxu1 %v2745_v1  ;;  %s3423_s12 = smov (!%p193_p4, %s2841_s12), 1  ;;  %v2750_v6 = vld [vmem:[%s3409_s1 + $0x58] sm:$0xff]   ;;  %v2752_v8 = vld [vmem:[%s3409_s1 + $0x60] sm:$0xff]   ;;  %v2754_v10 = vld [vmem:[%s3409_s1 + $0x68] sm:$0xff]   ;;  %vm2029_vm5 = vcmask 1045509   ;;  %vm2032_vm6 = vcmask 1046534  }
  0x11   : > { %2538 = vmatprep.subr.bf16.mxu0 %v2746_v2  ;;  %2703 = vmatprep.subr.bf16.mxu1 %v2746_v2  ;;  %s2718_s30 = smul.u32 384, %s3423_s12  ;;  %v2751_v7 = vld [vmem:[%s3409_s1 + $0x18] sm:$0xff]   ;;  %v2753_v9 = vld [vmem:[%s3409_s1 + $0x20] sm:$0xff]   ;;  %v2755_v13 = vld [vmem:[%s3409_s1 + $0x28] sm:$0xff]   ;;  %vm2035_vm7 = vcmask 1047559   ;;  %vm2151_vm8 = vcmask 519168  }
  0x12   : > { %v2756_v14 = vld [vmem:[%s3409_s1 + $0x70] sm:$0xff]   ;;  %v2758_v16 = vld [vmem:[%s3409_s1 + $0x78] sm:$0xff]   ;;  %v2766_v18 = vld [vmem:[%s3409_s1 + $0x80] sm:$0xff]   ;;  %s2471_s8 = sshll.u32 %s3423_s12, 5 }
  0x13   : > { %s2923_s10 = scalar_lea.vmem %s3408_s0, %s2718_s30  ;;  %v2757_v15 = vld [vmem:[%s3409_s1 + $0x30] sm:$0xff]   ;;  %v2759_v17 = vld [vmem:[%s3409_s1 + $0x38] sm:$0xff]   ;;  %v2779_v23 = vld [vmem:[%s3409_s1 + $0x88] sm:$0xff]  }
  0x14   : > { %2539 = vmatpush3.bf16.msra.mxu0 %v2747_v3  ;;  %2711 = vmatpush3.bf16.msra.mxu1 %v2747_v3  ;;  %v2762_v11 = vld [vmem:[%s2923_s10 + $0x4] ss:$12 sps:$4 sm:$0xff]   ;;  %v2760_v19 = vld [vmem:[%s2923_s10] ss:$12 sps:$4 sm:$0xff]   ;;  %v2767_v21 = vld [vmem:[%s2923_s10 + $0x1c] ss:$12 sps:$4 sm:$0xff]  }
  0x15   : > { %2540 = vmatprep.subr.bf16.mxu0 %v2748_v4  ;;  %2704 = vmatprep.subr.bf16.mxu1 %v2748_v4  ;;  %v2765_v12 = vld [vmem:[%s2923_s10 + $0x124] ss:$12 sps:$4 sm:$0xff]   ;;  %v2763_v20 = vld [vmem:[%s2923_s10 + $0x120] ss:$12 sps:$4 sm:$0xff]   ;;  %v2769_v22 = vld [vmem:[%s2923_s10 + $0x13c] ss:$12 sps:$4 sm:$0xff]  }
  0x16   : > { %750 = vmatprep.mubr.bf16.mxu0 %v2762_v11  ;;  %846 = vmatprep.mubr.bf16.mxu1 %v2765_v12  ;;  %v2771_v24 = vld [vmem:[%s2923_s10 + $0x18] ss:$12 sps:$4 sm:$0xff]   ;;  %v2773_v26 = vld [vmem:[%s2923_s10 + $0x34] ss:$12 sps:$4 sm:$0xff]   ;;  %v2777_v28 = vld [vmem:[%s2923_s10 + $0x30] ss:$12 sps:$4 sm:$0xff]  }
  0x17   : > { %v2772_v25 = vld [vmem:[%s2923_s10 + $0x138] ss:$12 sps:$4 sm:$0xff]   ;;  %v2775_v27 = vld [vmem:[%s2923_s10 + $0x154] ss:$12 sps:$4 sm:$0xff]   ;;  %v2778_v29 = vld [vmem:[%s2923_s10 + $0x150] ss:$12 sps:$4 sm:$0xff]  }
  0x18   : > { %2541 = vmatpush3.bf16.msra.mxu0 %v2749_v5  ;;  %2712 = vmatpush3.bf16.msra.mxu1 %v2749_v5  ;;  %v2780_v30 = vld [vmem:[%s2923_s10 + $0x4c] ss:$12 sps:$4 sm:$0xff]   ;;  %v2784_v32 = vld [vmem:[%s2923_s10 + $0x48] ss:$12 sps:$4 sm:$0xff]   ;;  %v2786_v34 = vld [vmem:[%s2923_s10 + $0x64] ss:$12 sps:$4 sm:$0xff]  }
  0x19   : > { %2542 = vmatprep.subr.bf16.mxu0 %v2750_v6  ;;  %2705 = vmatprep.subr.bf16.mxu1 %v2750_v6  ;;  %v2782_v31 = vld [vmem:[%s2923_s10 + $0x16c] ss:$12 sps:$4 sm:$0xff]   ;;  %v2785_v33 = vld [vmem:[%s2923_s10 + $0x168] ss:$12 sps:$4 sm:$0xff]   ;;  %v2795_v41 = vld [vmem:[%s2923_s10 + $0x50] ss:$12 sps:$4 sm:$0xff]  }
  0x1a   : > { %v2788_v35 = vld [vmem:[%s2923_s10 + $0x8] ss:$12 sps:$4 sm:$0xff]   ;;  %v2789_v36 = vld [vmem:[%s2923_s10 + $0x60] ss:$12 sps:$4 sm:$0xff]   ;;  %v2793_v39 = vld [vmem:[%s2923_s10 + $0x38] ss:$12 sps:$4 sm:$0xff]  }
  0x1b   : > { %v2790_v37 = vld [vmem:[%s2923_s10 + $0x20] ss:$12 sps:$4 sm:$0xff]   ;;  %v2791_v38 = vld [vmem:[%s2923_s10 + $0x7c] ss:$12 sps:$4 sm:$0xff]   ;;  %v2794_v40 = vld [vmem:[%s2923_s10 + $0x78] ss:$12 sps:$4 sm:$0xff]  }
  0x1c   : > { %2543 = vmatpush3.bf16.msra.mxu0 %v2751_v7  ;;  %2713 = vmatpush3.bf16.msra.mxu1 %v2751_v7  ;;  %v2796_v42 = vld [vmem:[%s2923_s10 + $0x94] ss:$12 sps:$4 sm:$0xff]   ;;  %v2799_v44 = vld [vmem:[%s2923_s10 + $0x90] ss:$12 sps:$4 sm:$0xff]   ;;  %v2801_v46 = vld [vmem:[%s2923_s10 + $0xac] ss:$12 sps:$4 sm:$0xff]  }
  0x1d   : > { %2544 = vmatprep.subr.bf16.mxu0 %v2752_v8  ;;  %2706 = vmatprep.subr.bf16.mxu1 %v2752_v8  ;;  %v2798_v43 = vld [vmem:[%s2923_s10 + $0x68] ss:$12 sps:$4 sm:$0xff]   ;;  %v2800_v45 = vld [vmem:[%s2923_s10 + $0x80] ss:$12 sps:$4 sm:$0xff]   ;;  %v2803_v47 = vld [vmem:[%s2923_s10 + $0x98] ss:$12 sps:$4 sm:$0xff]  }
  0x1e   : > { %v2804_v48 = vld [vmem:[%s2923_s10 + $0xa8] ss:$12 sps:$4 sm:$0xff]   ;;  %v2805_v49 = vld [vmem:[%s2923_s10 + $0xb0] ss:$12 sps:$4 sm:$0xff]   ;;  %v2809_v52 = vld [vmem:[%s2923_s10 + $0xc0] ss:$12 sps:$4 sm:$0xff]  }
  0x1f   : > { %v2806_v50 = vld [vmem:[%s2923_s10 + $0xc4] ss:$12 sps:$4 sm:$0xff]   ;;  %v2808_v51 = vld [vmem:[%s2923_s10 + $0xc8] ss:$12 sps:$4 sm:$0xff]   ;;  %v2810_v53 = vld [vmem:[%s2923_s10 + $0xe0] ss:$12 sps:$4 sm:$0xff]  }
  0x20   : > { %2545 = vmatpush3.bf16.msra.mxu0 %v2753_v9  ;;  %2714 = vmatpush3.bf16.msra.mxu1 %v2753_v9  ;;  %v2811_v54 = vld [vmem:[%s2923_s10 + $0xdc] ss:$12 sps:$4 sm:$0xff]   ;;  %v2813_v55 = vld [vmem:[%s2923_s10 + $0xf8] ss:$12 sps:$4 sm:$0xff]   ;;  %v2816_v58 = vld [vmem:[%s2923_s10 + $0xf4] ss:$12 sps:$4 sm:$0xff]  }
  0x21   : > { %2546 = vmatprep.subr.bf16.mxu0 %v2754_v10  ;;  %2707 = vmatprep.subr.bf16.mxu1 %v2754_v10  ;;  %v2814_v56 = vld [vmem:[%s2923_s10 + $0xd8] ss:$12 sps:$4 sm:$0xff]   ;;  %v2815_v57 = vld [vmem:[%s2923_s10 + $0x110] ss:$12 sps:$4 sm:$0xff]   ;;  %v2818_v59 = vld [vmem:[%s2923_s10 + $0x128] ss:$12 sps:$4 sm:$0xff]  }
  0x22   : > { %v2819_v60 = vld [vmem:[%s2923_s10 + $0xf0] ss:$12 sps:$4 sm:$0xff]   ;;  %v2820_v61 = vld [vmem:[%s2923_s10 + $0x140] ss:$12 sps:$4 sm:$0xff]   ;;  %v2823_v63 = vld [vmem:[%s2923_s10 + $0x158] ss:$12 sps:$4 sm:$0xff]  }
  0x23   : > { %v2821_v62 = vld [vmem:[%s2923_s10 + $0x10c] ss:$12 sps:$4 sm:$0xff]   ;;  %v2824_v0 = vld [vmem:[%s2923_s10 + $0x108] ss:$12 sps:$4 sm:$0xff]   ;;  %v2825_v1 = vld [vmem:[%s2923_s10 + $0x170] ss:$12 sps:$4 sm:$0xff]   ;;  %s3128_s10 = scalar_lea.vmem %s3411_s3, %s2471_s8 }
  0x24   : > { %2547 = vmatpush3.bf16.msra.mxu0 %v2755_v13  ;;  %2715 = vmatpush3.bf16.msra.mxu1 %v2755_v13 }
  0x25   : > { %2548 = vmatprep.subr.bf16.mxu0 %v2756_v14  ;;  %2708 = vmatprep.subr.bf16.mxu1 %v2756_v14 }
  0x28   : > { %2549 = vmatpush3.bf16.msra.mxu0 %v2757_v15  ;;  %2716 = vmatpush3.bf16.msra.mxu1 %v2757_v15 }
  0x29   : > { %2550 = vmatprep.subr.bf16.mxu0 %v2758_v16  ;;  %2709 = vmatprep.subr.bf16.mxu1 %v2758_v16 }
  0x2c   : > { %2551 = vmatpush3.bf16.msra.mxu0 %v2759_v17  ;;  %2717 = vmatpush3.bf16.msra.mxu1 %v2759_v17 }
  0x2d   : > { %2666 = vmatprep.subr.bf16.mxu1 %v2766_v18 }
  0x2f   : > { %751 = vmatmul.mubr.bf16.vlgmr.msra.gmra.mrb[0].mxu0 %v2760_v19  ;;  %847 = vmatmul.mubr.bf16.vlgmr.msra.gmra.mrb[0].mxu1 %v2763_v20 }
  0x30   : > { %2667 = vmatpush3.bf16.msra.mxu1 %v2766_v18  ;;  %758 = vmatprep.mubr.bf16.mxu0 %v2767_v21 }
  0x31   : > { %854 = vmatprep.mubr.bf16.mxu1 %v2769_v22  ;;  %2668 = vmatprep.subr.bf16.mxu1 %v2779_v23 }
  0x34   : > { %2669 = vmatpush3.bf16.msra.mxu1 %v2779_v23 }
  0x37   : > { %759 = vmatmul.mubr.bf16.gmra.mrb[4].mxu0 %v2771_v24  ;;  %855 = vmatmul.mubr.bf16.gmra.mrb[4].mxu1 %v2772_v25 }
  0x38   : > { %766 = vmatprep.mubr.bf16.mxu0 %v2773_v26  ;;  %862 = vmatprep.mubr.bf16.mxu1 %v2775_v27 }
  0x3f   : > { %767 = vmatmul.mubr.bf16.gmra.mrb[8].mxu0 %v2777_v28  ;;  %863 = vmatmul.mubr.bf16.gmra.mrb[8].mxu1 %v2778_v29 }
  0x40   : > { %774 = vmatprep.mubr.bf16.mxu0 %v2780_v30  ;;  %870 = vmatprep.mubr.bf16.mxu1 %v2782_v31 }
  0x47   : > { %775 = vmatmul.mubr.bf16.gmra.mrb[12].mxu0 %v2784_v32  ;;  %871 = vmatmul.mubr.bf16.gmra.mrb[12].mxu1 %v2785_v33 }
  0x48   : > { %782 = vmatprep.mubr.bf16.mxu0 %v2786_v34  ;;  %2670 = vmatprep.mubr.msk.bf16.mxu1 %vm669_vm0, %v2788_v35 }
  0x4f   : > { %783 = vmatmul.mubr.bf16.gmra.mrb[16].mxu0 %v2789_v36  ;;  %2671 = vmatmul.mubr.msk.bf16.vlgmr.msra.gmra.mrb[16].mxu1 %vm669_vm0, %v2790_v37 }
  0x50   : > { %790 = vmatprep.mubr.bf16.mxu0 %v2791_v38  ;;  %2674 = vmatprep.mubr.msk.bf16.mxu1 %vm669_vm0, %v2793_v39 }
  0x57   : > { %791 = vmatmul.mubr.bf16.gmra.mrb[20].mxu0 %v2794_v40  ;;  %2675 = vmatmul.mubr.msk.bf16.gmra.mrb[20].mxu1 %vm669_vm0, %v2795_v41 }
  0x58   : > { %798 = vmatprep.mubr.bf16.mxu0 %v2796_v42  ;;  %2678 = vmatprep.mubr.msk.bf16.mxu1 %vm669_vm0, %v2798_v43 }
  0x5f   : > { %799 = vmatmul.mubr.bf16.gmra.mrb[24].mxu0 %v2799_v44  ;;  %2679 = vmatmul.mubr.msk.bf16.gmra.mrb[24].mxu1 %vm669_vm0, %v2800_v45 }
  0x60   : > { %806 = vmatprep.mubr.bf16.mxu0 %v2801_v46  ;;  %2682 = vmatprep.mubr.msk.bf16.mxu1 %vm669_vm0, %v2803_v47 }
  0x67   : > { %807 = vmatmul.mubr.bf16.gmra.mrb[28].mxu0 %v2804_v48  ;;  %2683 = vmatmul.mubr.msk.bf16.gmra.mrb[28].mxu1 %vm669_vm0, %v2805_v49 }
  0x68   : > { %814 = vmatprep.mubr.bf16.mxu0 %v2806_v50  ;;  %2686 = vmatprep.mubr.msk.bf16.mxu1 %vm669_vm0, %v2808_v51  ;;  %v2851_v50 = vmov 1983009808  }
  0x69   : > { %v1106_v51 = vunpack.c.l.s4 %v2851_v50 }
  0x6f   : > { %815 = vmatmul.mubr.bf16.gmra.mrb[32].mxu0 %v2809_v52  ;;  %2687 = vmatmul.mubr.msk.bf16.gmra.mrb[32].mxu1 %vm669_vm0, %v2810_v53  ;;  %v1108_v52 = vlaneseq  ;;  %v3033_v53 = vld [vmem:[%s3410_s2] ss:$0 sm:$0xff] }
  0x70   : > { %822 = vmatprep.mubr.bf16.mxu0 %v2811_v54  ;;  %2690 = vmatprep.mubr.msk.bf16.mxu1 %vm669_vm0, %v2813_v55 }
  0x77   : > { %823 = vmatmul.mubr.bf16.gmra.mrb[36].mxu0 %v2814_v56  ;;  %2691 = vmatmul.mubr.msk.bf16.gmra.mrb[36].mxu1 %vm669_vm0, %v2815_v57 }
  0x78   : > { %830 = vmatprep.mubr.bf16.mxu0 %v2816_v58  ;;  %2694 = vmatprep.mubr.msk.bf16.mxu1 %vm669_vm0, %v2818_v59  ;;  %v1107_v58 = vunpack.c.0.s8 %v1106_v51  ;;  %v1109_v59 = vshrl.u32 %v1108_v52, 7 }
  0x7f   : > { %831 = vmatmul.mubr.bf16.gmra.mrb[40].mxu0 %v2819_v60  ;;  %2695 = vmatmul.mubr.msk.bf16.gmra.mrb[40].mxu1 %vm669_vm0, %v2820_v61 }
  0x80   : > { %838 = vmatprep.mubr.bf16.mxu0 %v2821_v62  ;;  %2698 = vmatprep.mubr.msk.bf16.mxu1 %vm669_vm0, %v2823_v63 }
  0x87   : > { %839 = vmatmul.mubr.bf16.gmra.mrb[44].mxu0 %v2824_v0  ;;  %2699 = vmatmul.mubr.msk.bf16.gmra.mrb[44].mxu1 %vm669_vm0, %v2825_v1 }
 0x102   : > { %v2552_v2 = vpop.f32.mrb[0].mxu0  ;;  %v2624_v3 = vpop.f32.mrb[0].mxu1 }
 0x103   : > { %v2553_v4 = vpop.f32.mrb[1].mxu0  ;;  %v2625_v5 = vpop.f32.mrb[1].mxu1 }
 0x104   : > { %v2554_v6 = vadd.f32 %v2553_v4, %v2552_v2  ;;  %v2555_v7 = vpop.f32.mrb[2].mxu0  ;;  %v3016_v8 = vadd.f32 %v2625_v5, %v2624_v3  ;;  %v2627_v9 = vpop.f32.mrb[2].mxu1 }
 0x105   : > { %v2556_v10 = vpop.f32.mrb[3].mxu0  ;;  %v2628_v11 = vpop.f32.mrb[3].mxu1 }
 0x106   : > { %v2557_v12 = vadd.f32 %v2556_v10, %v2555_v7  ;;  %v3018_v13 = vadd.f32 %v2628_v11, %v2627_v9  ;;  %v753_v57 = vadd.f32 %v2554_v6, %v3033_v53 }
 0x108   : > { %v756_v4 = vadd.f32 %v2557_v12, %v3033_v53 }
 0x10a   : > { %v2558_v14 = vpop.f32.mrb[4].mxu0  ;;  %v2630_v15 = vpop.f32.mrb[4].mxu1 }
 0x10b   : > { %v2559_v16 = vpop.f32.mrb[5].mxu0  ;;  %v2631_v17 = vpop.f32.mrb[5].mxu1 }
 0x10c   : > { %v2560_v18 = vadd.f32 %v2559_v16, %v2558_v14  ;;  %v2561_v19 = vpop.f32.mrb[6].mxu0  ;;  %v3020_v20 = vadd.f32 %v2631_v17, %v2630_v15  ;;  %v2633_v21 = vpop.f32.mrb[6].mxu1  ;;  %v3039_v14 = vsub.s32 %v1107_v58, %v1109_v59 }
 0x10d   : > { %v2562_v22 = vpop.f32.mrb[7].mxu0  ;;  %v2634_v23 = vpop.f32.mrb[7].mxu1 }
 0x10e   : > { %v2563_v24 = vadd.f32 %v2562_v22, %v2561_v19  ;;  %v2635_v25 = vadd.f32 %v2634_v23, %v2633_v21  ;;  %v761_v54 = vadd.f32 %v2560_v18, %v3033_v53  ;;  %v3043_v19 = vadd.f32 %v3016_v8, %v3033_v53 }
 0x10f   : > { %v3047_v21 = vadd.f32 %v3018_v13, %v3033_v53  ;;  %v3053_v23 = vadd.f32 %v3020_v20, %v3033_v53 }
 0x110   : > { %v764_v63 = vadd.f32 %v2563_v24, %v3033_v53  ;;  %v3056_v24 = vadd.f32 %v2635_v25, %v3033_v53 }
 0x112   : > { %v2564_v26 = vpop.f32.mrb[8].mxu0  ;;  %v2636_v27 = vpop.f32.mrb[8].mxu1 }
 0x113   : > { %v2565_v28 = vpop.f32.mrb[9].mxu0  ;;  %v2637_v29 = vpop.f32.mrb[9].mxu1 }
 0x114   : > { %v2566_v30 = vadd.f32 %v2565_v28, %v2564_v26  ;;  %v2567_v31 = vpop.f32.mrb[10].mxu0  ;;  %v3022_v32 = vadd.f32 %v2637_v29, %v2636_v27  ;;  %v2639_v33 = vpop.f32.mrb[10].mxu1 }
 0x115   : > { %v2568_v34 = vpop.f32.mrb[11].mxu0  ;;  %v2640_v35 = vpop.f32.mrb[11].mxu1 }
 0x116   : > { %v2569_v36 = vadd.f32 %v2568_v34, %v2567_v31  ;;  %v3024_v37 = vadd.f32 %v2640_v35, %v2639_v33  ;;  %v769_v22 = vadd.f32 %v2566_v30, %v3033_v53 }
 0x118   : > { %3412 = vst [vmem:[#allocation2_spill] sm:$0xff] %v3024_v37  ;;  %v3060_v13 = vadd.f32 %v2569_v36, %v3033_v53 }
 0x11a   : > { %v2570_v38 = vpop.f32.mrb[12].mxu0  ;;  %v2642_v39 = vpop.f32.mrb[12].mxu1 }
 0x11b   : > { %v2571_v40 = vpop.f32.mrb[13].mxu0  ;;  %v2643_v41 = vpop.f32.mrb[13].mxu1 }
 0x11c   : > { %v2572_v42 = vadd.f32 %v2571_v40, %v2570_v38  ;;  %v2573_v43 = vpop.f32.mrb[14].mxu0  ;;  %v3026_v44 = vadd.f32 %v2643_v41, %v2642_v39  ;;  %v2645_v45 = vpop.f32.mrb[14].mxu1 }
 0x11d   : > { %v2574_v46 = vpop.f32.mrb[15].mxu0  ;;  %v2646_v47 = vpop.f32.mrb[15].mxu1 }
 0x11e   : > { %v2575_v48 = vadd.f32 %v2574_v46, %v2573_v43  ;;  %v3028_v49 = vadd.f32 %v2646_v47, %v2645_v45  ;;  %v777_v12 = vadd.f32 %v2572_v42, %v3033_v53 }
 0x120   : > { %v3063_v30 = vadd.f32 %v2575_v48, %v3033_v53 }
 0x122   : > { %v2576_v55 = vpop.f32.mrb[16].mxu0  ;;  %v2672_v56 = vpop.f32.mrb[16].mxu1 }
 0x123   : > { %v922_v60 = vadd.f32 %v2672_v56, %v761_v54  ;;  %v2577_v61 = vpop.f32.mrb[17].mxu0  ;;  %v913_v62 = vpop.f32.mrb[17].mxu1 }
 0x124   : > { %v2578_v0 = vadd.f32 %v2577_v61, %v2576_v55  ;;  %v914_v1 = vadd.f32 %v913_v62, %v753_v57  ;;  %v2579_v2 = vpop.f32.mrb[18].mxu0  ;;  %v2673_v3 = vpop.f32.mrb[18].mxu1 }
 0x125   : > { %v1042_v5 = vmax.f32 %v922_v60, 0.0  ;;  %v925_v7 = vadd.f32 %v2673_v3, %v764_v63  ;;  %v2580_v9 = vpop.f32.mrb[19].mxu0  ;;  %v916_v10 = vpop.f32.mrb[19].mxu1 }
 0x126   : > { %v1040_v11 = vmax.f32 %v914_v1, 0.0  ;;  %v2581_v6 = vadd.f32 %v2580_v9, %v2579_v2  ;;  %v917_v15 = vadd.f32 %v916_v10, %v756_v4  ;;  %v3066_v20 = vadd.f32 %v2578_v0, %v3033_v53 }
 0x127   : > { %v1043_v16 = vmax.f32 %v925_v7, 0.0 }
 0x128   : > { %v1072_v17 = vmax.f32 %v1040_v11, %v1042_v5  ;;  %v1041_v18 = vmax.f32 %v917_v15, 0.0  ;;  %v3069_v25 = vadd.f32 %v2581_v6, %v3033_v53 }
 0x12a   : > { %v1104_v26 = vcombine.high %v1072_v17, %v1072_v17  ;;  %v1111_v27 = vrot.slane %v1072_v17, %v3039_v14  ;;  %v1073_v8 = vmax.f32 %v1041_v18, %v1043_v16  ;;  %v2582_v28 = vpop.f32.mrb[20].mxu0  ;;  %v2676_v29 = vpop.f32.mrb[20].mxu1 }
 0x12b   : > { %v938_v31 = vadd.f32 %v2676_v29, %v777_v12  ;;  %v2583_v33 = vpop.f32.mrb[21].mxu0  ;;  %v929_v34 = vpop.f32.mrb[21].mxu1 }
 0x12c   : > { %v1118_v35 = vrot.slane %v1104_v26, %v3039_v14  ;;  %v1119_v38 = vcombine.high %v1111_v27, %v1111_v27  ;;  %v2341_v39 = vrot.slane %v1111_v27, 9  ;;  %v1121_v40 = vcombine.high %v1073_v8, %v1073_v8  ;;  %v3072_v41 = vpop.f32.mrb[22].mxu0  ;;  %v3074_v36 = vpop.f32.mrb[22].mxu1 }
 0x12d   : > { %v1128_v42 = vrot.slane %v1073_v8, %v3039_v14  ;;  %v1046_v43 = vmax.f32 %v938_v31, 0.0  ;;  %v3077_v45 = vadd.f32 %v2583_v33, %v2582_v28  ;;  %v930_v46 = vadd.f32 %v929_v34, %v769_v22  ;;  %v3079_v47 = vpop.f32.mrb[23].mxu0  ;;  %v3081_v48 = vpop.f32.mrb[23].mxu1 }
 0x12e   : > { %v1120_v50 = vcombine.high %v1118_v35, %v1118_v35  ;;  %v2342_v51 = vrot.slane %v1119_v38, 9  ;;  %v2343_v52 = vrot.slane %v1118_v35, 9  ;;  %v1632_v54 = vmax.f32 %v1111_v27, %v2341_v39 }
 0x12f   : > { %v1135_v55 = vrot.slane %v1121_v40, %v3039_v14  ;;  %v1136_v56 = vcombine.high %v1128_v42, %v1128_v42  ;;  %v2345_v57 = vrot.slane %v1128_v42, 9  ;;  %v1044_v58 = vmax.f32 %v930_v46, 0.0 }
 0x130   : > { %v2344_v59 = vrot.slane %v1120_v50, 9  ;;  %v1633_v60 = vmax.f32 %v1119_v38, %v2342_v51  ;;  %v1634_v61 = vmax.f32 %v1118_v35, %v2343_v52  ;;  %v2472_v62 = vpack.c.bf16 %v1632_v54, %v1632_v54 }
 0x131   : > { %v1137_v63 = vcombine.high %v1135_v55, %v1135_v55  ;;  %v2346_v0 = vrot.slane %v1136_v56, 9  ;;  %v2347_v1 = vrot.slane %v1135_v55, 9  ;;  %v1636_v2 = vmax.f32 %v1128_v42, %v2345_v57 }
 0x132   : > { %v1635_v3 = vmax.f32 %v1120_v50, %v2344_v59  ;;  %v2473_v4 = vpack.c.bf16 %v1633_v60, %v1633_v60  ;;  %v2474_v5 = vpack.c.bf16 %v1634_v61, %v1634_v61  ;;  %v1952_v7 = vunpack.c.l.b16 %v2472_v62  ;;  %v3084_v9 = vpop.f32.mrb[24].mxu0  ;;  %v3086_v10 = vpop.f32.mrb[24].mxu1 }
 0x133   : > { %v2348_v11 = vrot.slane %v1137_v63, 9  ;;  %v1637_v6 = vmax.f32 %v1136_v56, %v2346_v0  ;;  %v1638_v15 = vmax.f32 %v1135_v55, %v2347_v1  ;;  %v2476_v16 = vpack.c.bf16 %v1636_v2, %v1636_v2  ;;  %v3088_v17 = vpop.f32.mrb[25].mxu0  ;;  %v3090_v18 = vpop.f32.mrb[25].mxu1 }
 0x134   : > { %v2475_v12 = vpack.c.bf16 %v1635_v3, %v1635_v3  ;;  %v1953_v22 = vunpack.c.l.b16 %v2473_v4  ;;  %v1954_v26 = vunpack.c.l.b16 %v2474_v5  ;;  %v1074_v27 = vmax.f32 %v1044_v58, %v1046_v43  ;;  %v3092_v8 = vpop.f32.mrb[26].mxu0  ;;  %v3094_v28 = vpop.f32.mrb[26].mxu1 }
 0x135   : > { %v1639_v29 = vmax.f32 %v1137_v63, %v2348_v11  ;;  %v2477_v31 = vpack.c.bf16 %v1637_v6, %v1637_v6  ;;  %v2478_v33 = vpack.c.bf16 %v1638_v15, %v1638_v15  ;;  %v1956_v34 = vunpack.c.l.b16 %v2476_v16  ;;  %v3096_v35 = vpop.f32.mrb[27].mxu0  ;;  %v3098_v38 = vpop.f32.mrb[27].mxu1 }
 0x136   : > { %v1955_v39 = vunpack.c.l.b16 %v2475_v12  ;;  %v2016_v40 = vrot.slane %v1953_v22, 7  ;;  %v2019_v42 = vrot.slane %v1954_v26, 6  ;;  %v1138_v46 = vcombine.high %v1074_v27, %v1074_v27 }
 0x137   : > { %v2479_v50 = vpack.c.bf16 %v1639_v29, %v1639_v29  ;;  %v1957_v51 = vunpack.c.l.b16 %v2477_v31  ;;  %v1958_v43 = vunpack.c.l.b16 %v2478_v33  ;;  %v2025_v52 = vrot.slane %v1956_v34, 4 }
 0x138   : > { %v2018_v54 = vsel %vm2017_vm1, %v2016_v40, %v1952_v7  ;;  %v2022_v55 = vrot.slane %v1955_v39, 5  ;;  %v1145_v56 = vrot.slane %v1074_v27, %v3039_v14  ;;  %v1152_v57 = vrot.slane %v1138_v46, %v3039_v14 }
 0x139   : > { %v2021_v58 = vsel %vm2020_vm2, %v2019_v42, %v2018_v54  ;;  %v1959_v59 = vunpack.c.l.b16 %v2479_v50  ;;  %v2028_v60 = vrot.slane %v1957_v51, 3  ;;  %v2031_v61 = vrot.slane %v1958_v43, 2 }
 0x13a   : > { %v2024_v62 = vsel %vm2023_vm3, %v2022_v55, %v2021_v58  ;;  %v1153_v63 = vcombine.high %v1145_v56, %v1145_v56  ;;  %v1154_v0 = vcombine.high %v1152_v57, %v1152_v57  ;;  %v2349_v1 = vrot.slane %v1145_v56, 9  ;;  %v2594_v2 = vpop.f32.mrb[28].mxu0  ;;  %v3105_v3 = vpop.f32.mrb[28].mxu1 }
 0x13b   : > { %v2027_v4 = vsel %vm2026_vm4, %v2025_v52, %v2024_v62  ;;  %v2034_v5 = vrot.slane %v1959_v59, 1  ;;  %v2351_v7 = vrot.slane %v1152_v57, 9  ;;  %v941_v11 = vadd.f32 %v3074_v36, %v3063_v30  ;;  %v2595_v6 = vpop.f32.mrb[29].mxu0  ;;  %v3111_v15 = vpop.f32.mrb[29].mxu1 }
 0x13c   : > { %v2030_v16 = vsel %vm2029_vm5, %v2028_v60, %v2027_v4  ;;  %v2350_v12 = vrot.slane %v1153_v63, 9  ;;  %v2352_v22 = vrot.slane %v1154_v0, 9  ;;  %v1640_v26 = vmax.f32 %v1145_v56, %v2349_v1  ;;  %v3114_v27 = vpop.f32.mrb[30].mxu0  ;;  %v3116_v29 = vpop.f32.mrb[30].mxu1 }
 0x13d   : > { %v2033_v31 = vsel %vm2032_vm6, %v2031_v61, %v2030_v16  ;;  %v1642_v33 = vmax.f32 %v1152_v57, %v2351_v7  ;;  %v1047_v34 = vmax.f32 %v941_v11, 0.0  ;;  %v2587_v39 = vadd.f32 %v3079_v47, %v3072_v41  ;;  %v3121_v30 = vpop.f32.mrb[31].mxu0  ;;  %v3123_v36 = vpop.f32.mrb[31].mxu1 }
 0x13e   : > { %v2036_v40 = vsel %vm2035_vm7, %v2034_v5, %v2033_v31  ;;  %v1641_v42 = vmax.f32 %v1153_v63, %v2350_v12  ;;  %v1643_v46 = vmax.f32 %v1154_v0, %v2352_v22  ;;  %v2480_v50 = vpack.c.bf16 %v1640_v26, %v1640_v26 }
 0x13f   : > { %v2135_v51 = vpack.c.b16 %v2036_v40, %v2036_v40  ;;  %v2482_v43 = vpack.c.bf16 %v1642_v33, %v1642_v33  ;;  %v933_v41 = vadd.f32 %v3081_v48, %v3060_v13  ;;  %v793_v47 = vadd.f32 %v3077_v45, %v3033_v53 }
 0x140   : > { %v2481_v52 = vpack.c.bf16 %v1641_v42, %v1641_v42  ;;  %v2483_v54 = vpack.c.bf16 %v1643_v46, %v1643_v46  ;;  %v1960_v55 = vunpack.c.l.b16 %v2480_v50  ;;  %v2590_v56 = vadd.f32 %v3088_v17, %v3084_v9 }
 0x141   : > { %2152 = vst.msk [vmem:[%s3128_s10] sm:$0xf] %vm2151_vm8, %v2135_v51  ;;  %v1962_v57 = vunpack.c.l.b16 %v2482_v43  ;;  %v1045_v58 = vmax.f32 %v933_v41, 0.0  ;;  %v954_v59 = vadd.f32 %v3086_v10, %v793_v47  ;;  %v946_v60 = vadd.f32 %v3090_v18, %v3066_v20 }
 0x142   : > { %v1961_v61 = vunpack.c.l.b16 %v2481_v52  ;;  %v1963_v13 = vunpack.c.l.b16 %v2483_v54  ;;  %v796_v48 = vadd.f32 %v2587_v39, %v3033_v53  ;;  %v3145_v45 = vadd.f32 %v3096_v35, %v3092_v8  ;;  %v3147_v62 = vpop.f32.mrb[32].mxu0  ;;  %v3149_v9 = vpop.f32.mrb[32].mxu1 }
 0x143   : > { %v2039_v17 = vrot.slane %v1962_v57, 6  ;;  %v1075_v63 = vmax.f32 %v1045_v58, %v1047_v34  ;;  %v1050_v0 = vmax.f32 %v954_v59, 0.0  ;;  %v1048_v1 = vmax.f32 %v946_v60, 0.0  ;;  %v3151_v10 = vpop.f32.mrb[33].mxu0  ;;  %v3153_v4 = vpop.f32.mrb[33].mxu1 }
 0x144   : > { %v2037_v20 = vrot.slane %v1961_v61, 7  ;;  %v2041_v18 = vrot.slane %v1963_v13, 5  ;;  %v957_v5 = vadd.f32 %v3094_v28, %v796_v48  ;;  %v949_v8 = vadd.f32 %v3098_v38, %v3069_v25  ;;  %v3158_v35 = vpop.f32.mrb[34].mxu0  ;;  %v3160_v7 = vpop.f32.mrb[34].mxu1 }
 0x145   : > { %v1155_v11 = vcombine.high %v1075_v63, %v1075_v63  ;;  %v1162_v16 = vrot.slane %v1075_v63, %v3039_v14  ;;  %v1076_v12 = vmax.f32 %v1048_v1, %v1050_v0  ;;  %v3163_v22 = vadd.f32 %v2595_v6, %v2594_v2  ;;  %v3165_v26 = vpop.f32.mrb[35].mxu0  ;;  %v3167_v31 = vpop.f32.mrb[35].mxu1 }
 0x146   : > { %v2038_v33 = vsel %vm2017_vm1, %v2037_v20, %v1960_v55  ;;  %v1051_v28 = vmax.f32 %v957_v5, 0.0  ;;  %v1049_v34 = vmax.f32 %v949_v8, 0.0  ;;  %v3171_v25 = vadd.f32 %v2590_v56, %v3033_v53 }
 0x147   : > { %v2040_v38 = vsel %vm2020_vm2, %v2039_v17, %v2038_v33  ;;  %v1169_v39 = vrot.slane %v1155_v11, %v3039_v14  ;;  %v1170_v40 = vcombine.high %v1162_v16, %v1162_v16  ;;  %v2353_v42 = vrot.slane %v1162_v16, 9 }
 0x148   : > { %v2042_v2 = vsel %vm2023_vm3, %v2041_v18, %v2040_v38  ;;  %v1172_v6 = vcombine.high %v1076_v12, %v1076_v12  ;;  %v1179_v46 = vrot.slane %v1076_v12, %v3039_v14  ;;  %v1077_v50 = vmax.f32 %v1049_v34, %v1051_v28 }
 0x149   : > { %v1171_v51 = vcombine.high %v1169_v39, %v1169_v39  ;;  %v2354_v43 = vrot.slane %v1170_v40, 9  ;;  %v2355_v41 = vrot.slane %v1169_v39, 9  ;;  %v1644_v47 = vmax.f32 %v1162_v16, %v2353_v42 }
 0x14a   : > { %v1186_v52 = vrot.slane %v1172_v6, %v3039_v14  ;;  %v1187_v54 = vcombine.high %v1179_v46, %v1179_v46  ;;  %v2357_v55 = vrot.slane %v1179_v46, 9  ;;  %v1189_v56 = vcombine.high %v1077_v50, %v1077_v50  ;;  %v3178_v57 = vpop.f32.mrb[36].mxu0  ;;  %v3180_v58 = vpop.f32.mrb[36].mxu1 }
 0x14b   : > { %3413 = vst [vmem:[#allocation3_spill] sm:$0xff] %v3180_v58  ;;  %v2356_v59 = vrot.slane %v1171_v51, 9  ;;  %v1645_v60 = vmax.f32 %v1170_v40, %v2354_v43  ;;  %v1646_v61 = vmax.f32 %v1169_v39, %v2355_v41  ;;  %v2484_v13 = vpack.c.bf16 %v1644_v47, %v1644_v47  ;;  %v3182_v48 = vpop.f32.mrb[37].mxu0  ;;  %v3184_v17 = vpop.f32.mrb[37].mxu1 }
 0x14c   : > { %v1188_v63 = vcombine.high %v1186_v52, %v1186_v52  ;;  %v2358_v0 = vrot.slane %v1187_v54, 9  ;;  %v2359_v1 = vrot.slane %v1186_v52, 9  ;;  %v1648_v20 = vmax.f32 %v1179_v46, %v2357_v55  ;;  %v3186_v18 = vpop.f32.mrb[38].mxu0  ;;  %v3188_v5 = vpop.f32.mrb[38].mxu1 }
 0x14d   : > { %3414 = vst [vmem:[#allocation4_spill] sm:$0xff] %v3188_v5  ;;  %v1647_v8 = vmax.f32 %v1171_v51, %v2356_v59  ;;  %v2485_v11 = vpack.c.bf16 %v1645_v60, %v1645_v60  ;;  %v2486_v16 = vpack.c.bf16 %v1646_v61, %v1646_v61  ;;  %v1964_v12 = vunpack.c.l.b16 %v2484_v13  ;;  %v3190_v33 = vpop.f32.mrb[39].mxu0  ;;  %v3192_v28 = vpop.f32.mrb[39].mxu1 }
 0x14e   : > { %v2360_v34 = vrot.slane %v1188_v63, 9  ;;  %v1649_v38 = vmax.f32 %v1187_v54, %v2358_v0  ;;  %v1650_v39 = vmax.f32 %v1186_v52, %v2359_v1  ;;  %v2488_v40 = vpack.c.bf16 %v1648_v20, %v1648_v20 }
 0x14f   : > { %v2487_v42 = vpack.c.bf16 %v1647_v8, %v1647_v8  ;;  %v1965_v6 = vunpack.c.l.b16 %v2485_v11  ;;  %v1966_v43 = vunpack.c.l.b16 %v2486_v16  ;;  %v2043_v46 = vrot.slane %v1964_v12, 4 }
 0x150   : > { %v1651_v41 = vmax.f32 %v1188_v63, %v2360_v34  ;;  %v2489_v47 = vpack.c.bf16 %v1649_v38, %v1649_v38  ;;  %v2490_v55 = vpack.c.bf16 %v1650_v39, %v1650_v39  ;;  %v1968_v37 = vunpack.c.l.b16 %v2488_v40 }
 0x151   : > { %v1967_v51 = vunpack.c.l.b16 %v2487_v42  ;;  %v2044_v59 = vsel %vm2026_vm4, %v2043_v46, %v2042_v2  ;;  %v2045_v60 = vrot.slane %v1965_v6, 3  ;;  %v2047_v61 = vrot.slane %v1966_v43, 2 }
 0x152   : > { %v2491_v13 = vpack.c.bf16 %v1651_v41, %v1651_v41  ;;  %v1969_v5 = vunpack.c.l.b16 %v2489_v47  ;;  %v1970_v58 = vunpack.c.l.b16 %v2490_v55  ;;  %v1196_v54 = vrot.slane %v1077_v50, %v3039_v14  ;;  %v3196_v52 = vpop.f32.mrb[40].mxu0  ;;  %v3198_v0 = vpop.f32.mrb[40].mxu1 }
 0x153   : > { %v2046_v1 = vsel %vm2029_vm5, %v2045_v60, %v2044_v59  ;;  %v2049_v63 = vrot.slane %v1967_v51, 1  ;;  %v1203_v20 = vrot.slane %v1189_v56, %v3039_v14  ;;  %v809_v8 = vadd.f32 %v3163_v22, %v3033_v53  ;;  %v3204_v2 = vpop.f32.mrb[41].mxu0  ;;  %v3206_v11 = vpop.f32.mrb[41].mxu1 }
 0x154   : > { %v2048_v16 = vsel %vm2032_vm6, %v2047_v61, %v2046_v1  ;;  %v1971_v12 = vunpack.c.l.b16 %v2491_v13  ;;  %v2051_v50 = vrot.slane %v1969_v5, 7  ;;  %v2053_v34 = vrot.slane %v1970_v58, 6  ;;  %v3209_v38 = vpop.f32.mrb[42].mxu0  ;;  %v3211_v39 = vpop.f32.mrb[42].mxu1 }
 0x155   : > { %v2050_v40 = vsel %vm2035_vm7, %v2049_v63, %v2048_v16  ;;  %v1204_v56 = vcombine.high %v1196_v54, %v1196_v54  ;;  %v1205_v42 = vcombine.high %v1203_v20, %v1203_v20  ;;  %v2361_v6 = vrot.slane %v1196_v54, 9  ;;  %v3214_v22 = vpop.f32.mrb[43].mxu0  ;;  %v3216_v43 = vpop.f32.mrb[43].mxu1 }
 0x156   : > { %v2136_v46 = vpack.c.b16 %v2050_v40, %v2050_v40  ;;  %v2052_v41 = vsel %vm2017_vm1, %v2051_v50, %v1968_v37  ;;  %v2055_v47 = vrot.slane %v1971_v12, 5  ;;  %v2363_v5 = vrot.slane %v1203_v20, 9 }
 0x157   : > { %v2054_v58 = vsel %vm2020_vm2, %v2053_v34, %v2052_v41  ;;  %v2362_v55 = vrot.slane %v1204_v56, 9  ;;  %v2364_v51 = vrot.slane %v1205_v42, 9  ;;  %v1652_v59 = vmax.f32 %v1196_v54, %v2361_v6 }
 0x158   : > { %2153 = vst.msk [vmem:[%s3128_s10 + $0x4] sm:$0xf] %vm2151_vm8, %v2136_v46  ;;  %v1654_v60 = vmax.f32 %v1203_v20, %v2363_v5  ;;  %v2056_v61 = vsel %vm2023_vm3, %v2055_v47, %v2054_v58  ;;  %v970_v13 = vadd.f32 %v3105_v3, %v809_v8  ;;  %v962_v1 = vadd.f32 %v3111_v15, %v3171_v25 }
 0x159   : > { %v1653_v63 = vmax.f32 %v1204_v56, %v2362_v55  ;;  %v1655_v16 = vmax.f32 %v1205_v42, %v2364_v51  ;;  %v2492_v37 = vpack.c.bf16 %v1652_v59, %v1652_v59  ;;  %v2599_v12 = vadd.f32 %v3121_v30, %v3114_v27 }
 0x15a   : > { %v2494_v50 = vpack.c.bf16 %v1654_v60, %v1654_v60  ;;  %v1052_v34 = vmax.f32 %v962_v1, 0.0  ;;  %v1054_v40 = vmax.f32 %v970_v13, 0.0  ;;  %v804_v54 = vadd.f32 %v3145_v45, %v3033_v53  ;;  %v3230_v20 = vpop.f32.mrb[44].mxu0  ;;  %v3232_v6 = vpop.f32.mrb[44].mxu1 }
 0x15b   : > { %v2493_v3 = vpack.c.bf16 %v1653_v63, %v1653_v63  ;;  %v2495_v8 = vpack.c.bf16 %v1655_v16, %v1655_v16  ;;  %v1972_v46 = vunpack.c.l.b16 %v2492_v37  ;;  %v812_v15 = vadd.f32 %v2599_v12, %v3033_v53  ;;  %v3235_v25 = vpop.f32.mrb[45].mxu0  ;;  %v3237_v56 = vpop.f32.mrb[45].mxu1 }
 0x15c   : > { %v1974_v27 = vunpack.c.l.b16 %v2494_v50  ;;  %v1078_v30 = vmax.f32 %v1052_v34, %v1054_v40  ;;  %v965_v42 = vadd.f32 %v3123_v36, %v804_v54  ;;  %v2602_v45 = vadd.f32 %v3151_v10, %v3147_v62  ;;  %v3242_v41 = vpop.f32.mrb[46].mxu0  ;;  %v3244_v47 = vpop.f32.mrb[46].mxu1 }
 0x15d   : > { %v1973_v5 = vunpack.c.l.b16 %v2493_v3  ;;  %v1975_v58 = vunpack.c.l.b16 %v2495_v8  ;;  %v2057_v55 = vrot.slane %v1972_v46, 4  ;;  %v973_v51 = vadd.f32 %v3116_v29, %v812_v15  ;;  %v3247_v59 = vpop.f32.mrb[47].mxu0  ;;  %v3249_v60 = vpop.f32.mrb[47].mxu1 }
 0x15e   : > { %v2061_v13 = vrot.slane %v1974_v27, 2  ;;  %v1206_v1 = vcombine.high %v1078_v30, %v1078_v30  ;;  %v1213_v36 = vrot.slane %v1078_v30, %v3039_v14  ;;  %v1053_v63 = vmax.f32 %v965_v42, 0.0 }
 0x15f   : > { %v2058_v62 = vsel %vm2026_vm4, %v2057_v55, %v2056_v61  ;;  %v2059_v10 = vrot.slane %v1973_v5, 3  ;;  %v2063_v16 = vrot.slane %v1975_v58, 1  ;;  %v1055_v37 = vmax.f32 %v973_v51, 0.0 }
 0x160   : > { %v1220_v12 = vrot.slane %v1206_v1, %v3039_v14  ;;  %v1221_v50 = vcombine.high %v1213_v36, %v1213_v36  ;;  %v2365_v34 = vrot.slane %v1213_v36, 9  ;;  %v817_v29 = vadd.f32 %v2602_v45, %v3033_v53 }
 0x161   : > { %v2060_v40 = vsel %vm2029_vm5, %v2059_v10, %v2058_v62  ;;  %v1079_v54 = vmax.f32 %v1053_v63, %v1055_v37  ;;  %v2605_v3 = vadd.f32 %v3165_v26, %v3158_v35  ;;  %v2608_v8 = vadd.f32 %v3182_v48, %v3178_v57 }
 0x162   : > { %v2062_v61 = vsel %vm2032_vm6, %v2061_v13, %v2060_v40  ;;  %v1222_v46 = vcombine.high %v1220_v12, %v1220_v12  ;;  %v2366_v15 = vrot.slane %v1221_v50, 9  ;;  %v2367_v27 = vrot.slane %v1220_v12, 9 }
 0x163   : > { %v2064_v30 = vsel %vm2035_vm7, %v2063_v16, %v2062_v61  ;;  %v1656_v42 = vmax.f32 %v1213_v36, %v2365_v34  ;;  %v1223_v5 = vcombine.high %v1079_v54, %v1079_v54  ;;  %v1230_v45 = vrot.slane %v1079_v54, %v3039_v14 }
 0x164   : > { %v2137_v58 = vpack.c.b16 %v2064_v30, %v2064_v30  ;;  %v2368_v55 = vrot.slane %v1222_v46, 9  ;;  %v1657_v51 = vmax.f32 %v1221_v50, %v2366_v15  ;;  %v1658_v1 = vmax.f32 %v1220_v12, %v2367_v27 }
 0x165   : > { %v2496_v35 = vpack.c.bf16 %v1656_v42, %v1656_v42  ;;  %v1237_v26 = vrot.slane %v1223_v5, %v3039_v14  ;;  %v1238_v57 = vcombine.high %v1230_v45, %v1230_v45  ;;  %v2369_v48 = vrot.slane %v1230_v45, 9 }
 0x166   : > { %2154 = vst.msk [vmem:[%s3128_s10 + $0x8] sm:$0xf] %vm2151_vm8, %v2137_v58  ;;  %v1659_v13 = vmax.f32 %v1222_v46, %v2368_v55  ;;  %v2497_v63 = vpack.c.bf16 %v1657_v51, %v1657_v51  ;;  %v2498_v62 = vpack.c.bf16 %v1658_v1, %v1658_v1  ;;  %v978_v10 = vadd.f32 %v3153_v4, %v817_v29 }
 0x167   : > { %v1239_v36 = vcombine.high %v1237_v26, %v1237_v26  ;;  %v2370_v16 = vrot.slane %v1238_v57, 9  ;;  %v2371_v37 = vrot.slane %v1237_v26, 9  ;;  %v3269_v34 = vadd.f32 %v3022_v32, %v3033_v53 }
 0x168   : > { %v2499_v12 = vpack.c.bf16 %v1659_v13, %v1659_v13  ;;  %v1977_v50 = vunpack.c.l.b16 %v2497_v63  ;;  %v1978_v40 = vunpack.c.l.b16 %v2498_v62  ;;  %v1660_v54 = vmax.f32 %v1230_v45, %v2369_v48 }
 0x169   : > { %v1976_v61 = vunpack.c.l.b16 %v2496_v35  ;;  %v2372_v15 = vrot.slane %v1239_v36, 9  ;;  %v1661_v27 = vmax.f32 %v1238_v57, %v2370_v16  ;;  %v1662_v30 = vmax.f32 %v1237_v26, %v2371_v37 }
 0x16a   : > { %v1979_v46 = vunpack.c.l.b16 %v2499_v12  ;;  %v2065_v42 = vrot.slane %v1977_v50, 7  ;;  %v2067_v5 = vrot.slane %v1978_v40, 6  ;;  %v2500_v58 = vpack.c.bf16 %v1660_v54, %v1660_v54 }
 0x16b   : > { %v1663_v4 = vmax.f32 %v1239_v36, %v2372_v15  ;;  %v2501_v29 = vpack.c.bf16 %v1661_v27, %v1661_v27  ;;  %v2502_v55 = vpack.c.bf16 %v1662_v30, %v1662_v30  ;;  %v820_v51 = vadd.f32 %v2605_v3, %v3033_v53 }
 0x16c   : > { %v2066_v32 = vsel %vm2017_vm1, %v2065_v42, %v1976_v61  ;;  %v2069_v1 = vrot.slane %v1979_v46, 5  ;;  %v1980_v13 = vunpack.c.l.b16 %v2500_v58  ;;  %v825_v63 = vadd.f32 %v2608_v8, %v3033_v53 }
 0x16d   : > { %v2068_v45 = vsel %vm2020_vm2, %v2067_v5, %v2066_v32  ;;  %v2503_v35 = vpack.c.bf16 %v1663_v4, %v1663_v4  ;;  %v1981_v57 = vunpack.c.l.b16 %v2501_v29  ;;  %v1982_v26 = vunpack.c.l.b16 %v2502_v55 }
 0x16e   : > { %v2070_v48 = vsel %vm2023_vm3, %v2069_v1, %v2068_v45  ;;  %v2071_v62 = vrot.slane %v1980_v13, 4  ;;  %v981_v36 = vadd.f32 %v3167_v31, %v820_v51  ;;  %v986_v16 = vadd.f32 %v3149_v9, %v825_v63 }
 0x16f   : > { %v1983_v37 = vunpack.c.l.b16 %v2503_v35  ;;  %v2073_v3 = vrot.slane %v1981_v57, 3  ;;  %v1056_v12 = vmax.f32 %v978_v10, 0.0  ;;  %v2611_v50 = vadd.f32 %v3190_v33, %v3186_v18 }
 0x170   : > { %v2072_v8 = vsel %vm2026_vm4, %v2071_v62, %v2070_v48  ;;  %v2075_v40 = vrot.slane %v1982_v26, 2  ;;  %v1058_v54 = vmax.f32 %v986_v16, 0.0  ;;  %v1018_v61 = vadd.f32 %v3198_v0, %v3053_v23 }
 0x171   : > { %v2074_v15 = vsel %vm2029_vm5, %v2073_v3, %v2072_v8  ;;  %v2077_v27 = vrot.slane %v1983_v37, 1  ;;  %v828_v31 = vadd.f32 %v2611_v50, %v3033_v53  ;;  %v2614_v9 = vadd.f32 %v3204_v2, %v3196_v52 }
 0x172   : > { %v2076_v10 = vsel %vm2032_vm6, %v2075_v40, %v2074_v15  ;;  %v1080_v30 = vmax.f32 %v1056_v12, %v1058_v54  ;;  %v1066_v18 = vmax.f32 %v1018_v61, 0.0  ;;  %v1010_v33 = vadd.f32 %v3206_v11, %v3043_v19 }
 0x173   : > { %v2078_v46 = vsel %vm2035_vm7, %v2077_v27, %v2076_v10  ;;  %v989_v23 = vadd.f32 %v3160_v7, %v828_v31  ;;  %v833_v0 = vadd.f32 %v2614_v9, %v3033_v53  ;;  %v3295_v42 = vadd.f32 %v3211_v39, %v3056_v24 }
 0x174   : > { %v2138_v5 = vpack.c.b16 %v2078_v46, %v2078_v46  ;;  %v1240_v52 = vcombine.high %v1080_v30, %v1080_v30  ;;  %v1247_v2 = vrot.slane %v1080_v30, %v3039_v14  ;;  %v1064_v58 = vmax.f32 %v1010_v33, 0.0 }
 0x175   : > { %v1057_v4 = vmax.f32 %v981_v36, 0.0  ;;  %v1059_v29 = vmax.f32 %v989_v23, 0.0  ;;  %v3299_v55 = vadd.f32 %v3184_v17, %v833_v0  ;;  %v2617_v19 = vadd.f32 %v3214_v22, %v3209_v38 }
 0x176   : > { %2155 = vst.msk [vmem:[%s3128_s10 + $0xc] sm:$0xf] %vm2151_vm8, %v2138_v5  ;;  %v1254_v7 = vrot.slane %v1240_v52, %v3039_v14  ;;  %v1255_v11 = vcombine.high %v1247_v2, %v1247_v2  ;;  %v2373_v24 = vrot.slane %v1247_v2, 9  ;;  %v1084_v39 = vmax.f32 %v1064_v58, %v1066_v18 }
 0x177   : > { %v1081_v51 = vmax.f32 %v1057_v4, %v1059_v29  ;;  %v1067_v32 = vmax.f32 %v3295_v42, 0.0  ;;  %v3308_v1 = vadd.f32 %v2617_v19, %v3033_v53  ;;  %v3312_v17 = vadd.f32 %v3216_v43, %v3047_v21 }
 0x178   : > { %v1256_v13 = vcombine.high %v1254_v7, %v1254_v7  ;;  %v2374_v63 = vrot.slane %v1255_v11, 9  ;;  %v2375_v38 = vrot.slane %v1254_v7, 9  ;;  %v1664_v22 = vmax.f32 %v1247_v2, %v2373_v24 }
 0x179   : > { %v1257_v45 = vcombine.high %v1081_v51, %v1081_v51  ;;  %v1264_v35 = vrot.slane %v1081_v51, %v3039_v14  ;;  %v1308_v57 = vcombine.high %v1084_v39, %v1084_v39  ;;  %v1315_v26 = vrot.slane %v1084_v39, %v3039_v14 }
 0x17a   : > { %v2376_v48 = vrot.slane %v1256_v13, 9  ;;  %v1665_v62 = vmax.f32 %v1255_v11, %v2374_v63  ;;  %v1666_v36 = vmax.f32 %v1254_v7, %v2375_v38  ;;  %v2504_v16 = vpack.c.bf16 %v1664_v22, %v1664_v22 }
 0x17b   : > { %v1271_v37 = vrot.slane %v1257_v45, %v3039_v14  ;;  %v1272_v3 = vcombine.high %v1264_v35, %v1264_v35  ;;  %v2377_v12 = vrot.slane %v1264_v35, 9  ;;  %v1322_v21 = vrot.slane %v1308_v57, %v3039_v14 }
 0x17c   : > { %v1667_v43 = vmax.f32 %v1256_v13, %v2376_v48  ;;  %v2505_v50 = vpack.c.bf16 %v1665_v62, %v1665_v62  ;;  %v2506_v8 = vpack.c.bf16 %v1666_v36, %v1666_v36  ;;  %v1984_v40 = vunpack.c.l.b16 %v2504_v16 }
 0x17d   : > { %v1273_v54 = vcombine.high %v1271_v37, %v1271_v37  ;;  %v2378_v61 = vrot.slane %v1272_v3, 9  ;;  %v2379_v15 = vrot.slane %v1271_v37, 9  ;;  %v1668_v27 = vmax.f32 %v1264_v35, %v2377_v12 }
 0x17e   : > { %v2507_v31 = vpack.c.bf16 %v1667_v43, %v1667_v43  ;;  %v1985_v9 = vunpack.c.l.b16 %v2505_v50  ;;  %v1986_v10 = vunpack.c.l.b16 %v2506_v8  ;;  %v1323_v30 = vcombine.high %v1315_v26, %v1315_v26 }
 0x17f   : > { %v2380_v18 = vrot.slane %v1273_v54, 9  ;;  %v1669_v33 = vmax.f32 %v1272_v3, %v2378_v61  ;;  %v1670_v46 = vmax.f32 %v1271_v37, %v2379_v15  ;;  %v2508_v23 = vpack.c.bf16 %v1668_v27, %v1668_v27 }
 0x180   : > { %v1987_v0 = vunpack.c.l.b16 %v2507_v31  ;;  %v2079_v5 = vrot.slane %v1985_v9, 7  ;;  %v2081_v52 = vrot.slane %v1986_v10, 6  ;;  %v1324_v2 = vcombine.high %v1322_v21, %v1322_v21 }
 0x181   : > { %v1671_v58 = vmax.f32 %v1273_v54, %v2380_v18  ;;  %v2509_v4 = vpack.c.bf16 %v1669_v33, %v1669_v33  ;;  %v2510_v29 = vpack.c.bf16 %v1670_v46, %v1670_v46  ;;  %v1988_v19 = vunpack.c.l.b16 %v2508_v23 }
 0x182   : > { %v2080_v7 = vsel %vm2017_vm1, %v2079_v5, %v1984_v40  ;;  %v2083_v11 = vrot.slane %v1987_v0, 5  ;;  %v2389_v24 = vrot.slane %v1315_v26, 9  ;;  %v2390_v39 = vrot.slane %v1323_v30, 9 }
 0x183   : > { %v2082_v51 = vsel %vm2020_vm2, %v2081_v52, %v2080_v7  ;;  %v2511_v13 = vpack.c.bf16 %v1671_v58, %v1671_v58  ;;  %v1989_v63 = vunpack.c.l.b16 %v2509_v4  ;;  %v1990_v38 = vunpack.c.l.b16 %v2510_v29 }
 0x184   : > { %v2084_v22 = vsel %vm2023_vm3, %v2083_v11, %v2082_v51  ;;  %v2085_v45 = vrot.slane %v1988_v19, 4  ;;  %v2391_v35 = vrot.slane %v1322_v21, 9  ;;  %v2392_v57 = vrot.slane %v1324_v2, 9  ;;  %v3415_v19 = vld [vmem:[#allocation3_spill] sm:$0xff] }
 0x185   : > { %v1991_v48 = vunpack.c.l.b16 %v2511_v13  ;;  %v2087_v62 = vrot.slane %v1989_v63, 3  ;;  %v2089_v36 = vrot.slane %v1990_v38, 2  ;;  %v1680_v16 = vmax.f32 %v1315_v26, %v2389_v24  ;;  %v3416_v38 = vld [vmem:[#allocation4_spill] sm:$0xff] }
 0x186   : > { %v2086_v37 = vsel %vm2026_vm4, %v2085_v45, %v2084_v22  ;;  %v1681_v3 = vmax.f32 %v1323_v30, %v2390_v39  ;;  %v1682_v12 = vmax.f32 %v1322_v21, %v2391_v35  ;;  %v1683_v43 = vmax.f32 %v1324_v2, %v2392_v57 }
 0x187   : > { %v2088_v50 = vsel %vm2029_vm5, %v2087_v62, %v2086_v37  ;;  %v2091_v8 = vrot.slane %v1991_v48, 1  ;;  %v2520_v40 = vpack.c.bf16 %v1680_v16, %v1680_v16  ;;  %v3325_v54 = vadd.f32 %v3192_v28, %v3308_v1 }
 0x188   : > { %v2090_v61 = vsel %vm2032_vm6, %v2089_v36, %v2088_v50  ;;  %v2521_v15 = vpack.c.bf16 %v1681_v3, %v1681_v3  ;;  %v2522_v27 = vpack.c.bf16 %v1682_v12, %v1682_v12  ;;  %v2523_v31 = vpack.c.bf16 %v1683_v43, %v1683_v43 }
 0x189   : > { %v2092_v26 = vsel %vm2035_vm7, %v2091_v8, %v2090_v61  ;;  %v1065_v9 = vmax.f32 %v3312_v17, 0.0  ;;  %v873_v21 = vadd.f32 %v3026_v44, %v3033_v53  ;;  %v876_v10 = vadd.f32 %v3028_v49, %v3033_v53 }
 0x18a   : > { %v2139_v30 = vpack.c.b16 %v2092_v26, %v2092_v26  ;;  %v2001_v18 = vunpack.c.l.b16 %v2521_v15  ;;  %v2002_v28 = vunpack.c.l.b16 %v2522_v27  ;;  %v2003_v1 = vunpack.c.l.b16 %v2523_v31 }
 0x18b   : > { %v1085_v33 = vmax.f32 %v1065_v9, %v1067_v32  ;;  %v1034_v46 = vadd.f32 %v3232_v6, %v873_v21  ;;  %v2620_v23 = vadd.f32 %v3235_v25, %v3230_v20  ;;  %v1026_v17 = vadd.f32 %v3237_v56, %v3269_v34 }
 0x18c   : > { %2156 = vst.msk [vmem:[%s3128_s10 + $0x10] sm:$0xf] %vm2151_vm8, %v2139_v30  ;;  %v2000_v44 = vunpack.c.l.b16 %v2520_v40  ;;  %v2107_v0 = vrot.slane %v2001_v18, 7  ;;  %v2109_v49 = vrot.slane %v2002_v28, 6  ;;  %v3344_v5 = vadd.f32 %v3244_v47, %v876_v10 }
 0x18d   : > { %v1325_v52 = vcombine.high %v1085_v33, %v1085_v33  ;;  %v1332_v42 = vrot.slane %v1085_v33, %v3039_v14  ;;  %v1070_v32 = vmax.f32 %v1034_v46, 0.0  ;;  %v841_v6 = vadd.f32 %v2620_v23, %v3033_v53  ;;  %v2826_v53 = vld [vmem:[%s3410_s2] ss:$0 sm:$0xff] }
 0x18e   : > { %v1060_v2 = vmax.f32 %v3299_v55, 0.0  ;;  %v2108_v20 = vsel %vm2017_vm1, %v2107_v0, %v2000_v44  ;;  %v1068_v25 = vmax.f32 %v1026_v17, 0.0  ;;  %v2623_v56 = vadd.f32 %v3247_v59, %v3242_v41 }
 0x18f   : > { %v2111_v34 = vrot.slane %v2003_v1, 5  ;;  %v1339_v58 = vrot.slane %v1325_v52, %v3039_v14  ;;  %v1340_v4 = vcombine.high %v1332_v42, %v1332_v42  ;;  %v2393_v47 = vrot.slane %v1332_v42, 9 }
 0x190   : > { %v2110_v29 = vsel %vm2020_vm2, %v2109_v49, %v2108_v20  ;;  %v1002_v7 = vadd.f32 %v3415_v19, %v841_v6  ;;  %v1086_v11 = vmax.f32 %v1068_v25, %v1070_v32  ;;  %v844_v55 = vadd.f32 %v2826_v53, %v2623_v56 }
 0x191   : > { %v1341_v24 = vcombine.high %v1339_v58, %v1339_v58  ;;  %v2394_v39 = vrot.slane %v1340_v4, 9  ;;  %v2395_v51 = vrot.slane %v1339_v58, 9  ;;  %v1684_v13 = vmax.f32 %v1332_v42, %v2393_v47 }
 0x192   : > { %v1062_v41 = vmax.f32 %v1002_v7, 0.0  ;;  %v1342_v59 = vcombine.high %v1086_v11, %v1086_v11  ;;  %v1349_v63 = vrot.slane %v1086_v11, %v3039_v14  ;;  %v3360_v22 = vadd.f32 %v3416_v38, %v844_v55 }
 0x193   : > { %v2396_v45 = vrot.slane %v1341_v24, 9  ;;  %v1685_v35 = vmax.f32 %v1340_v4, %v2394_v39  ;;  %v1686_v57 = vmax.f32 %v1339_v58, %v2395_v51  ;;  %v2524_v48 = vpack.c.bf16 %v1684_v13, %v1684_v13 }
 0x194   : > { %v2112_v62 = vsel %vm2023_vm3, %v2111_v34, %v2110_v29  ;;  %v1082_v36 = vmax.f32 %v1060_v2, %v1062_v41  ;;  %v1356_v16 = vrot.slane %v1342_v59, %v3039_v14  ;;  %v1357_v37 = vcombine.high %v1349_v63, %v1349_v63 }
 0x195   : > { %v1687_v3 = vmax.f32 %v1341_v24, %v2396_v45  ;;  %v2525_v12 = vpack.c.bf16 %v1685_v35, %v1685_v35  ;;  %v2526_v43 = vpack.c.bf16 %v1686_v57, %v1686_v57  ;;  %v2004_v50 = vunpack.c.l.b16 %v2524_v48  ;;  %v3417_v24 = vld [vmem:[#allocation2_spill] sm:$0xff] }
 0x196   : > { %v1274_v8 = vcombine.high %v1082_v36, %v1082_v36  ;;  %v1281_v40 = vrot.slane %v1082_v36, %v3039_v14  ;;  %v1358_v61 = vcombine.high %v1356_v16, %v1356_v16  ;;  %v2397_v15 = vrot.slane %v1349_v63, 9 }
 0x197   : > { %v2527_v27 = vpack.c.bf16 %v1687_v3, %v1687_v3  ;;  %v2005_v31 = vunpack.c.l.b16 %v2525_v12  ;;  %v2006_v26 = vunpack.c.l.b16 %v2526_v43  ;;  %v2113_v9 = vrot.slane %v2004_v50, 4 }
 0x198   : > { %v1288_v21 = vrot.slane %v1274_v8, %v3039_v14  ;;  %v1289_v10 = vcombine.high %v1281_v40, %v1281_v40  ;;  %v2381_v30 = vrot.slane %v1281_v40, 9  ;;  %v2398_v18 = vrot.slane %v1357_v37, 9 }
 0x199   : > { %v2007_v28 = vunpack.c.l.b16 %v2527_v27  ;;  %v2114_v1 = vsel %vm2026_vm4, %v2113_v9, %v2112_v62  ;;  %v2115_v33 = vrot.slane %v2005_v31, 3  ;;  %v2399_v46 = vrot.slane %v1356_v16, 9 }
 0x19a   : > { %v2117_v23 = vrot.slane %v2006_v26, 2  ;;  %v1290_v17 = vcombine.high %v1288_v21, %v1288_v21  ;;  %v2382_v44 = vrot.slane %v1289_v10, 9  ;;  %v2383_v0 = vrot.slane %v1288_v21, 9 }
 0x19b   : > { %v2116_v49 = vsel %vm2029_vm5, %v2115_v33, %v2114_v1  ;;  %v2119_v52 = vrot.slane %v2007_v28, 1  ;;  %v1672_v42 = vmax.f32 %v1281_v40, %v2381_v30  ;;  %v2400_v32 = vrot.slane %v1358_v61, 9 }
 0x19c   : > { %v2118_v6 = vsel %vm2032_vm6, %v2117_v23, %v2116_v49  ;;  %v2384_v2 = vrot.slane %v1290_v17, 9  ;;  %v1673_v20 = vmax.f32 %v1289_v10, %v2382_v44  ;;  %v1674_v25 = vmax.f32 %v1288_v21, %v2383_v0 }
 0x19d   : > { %v2120_v56 = vsel %vm2035_vm7, %v2119_v52, %v2118_v6  ;;  %v1688_v34 = vmax.f32 %v1349_v63, %v2397_v15  ;;  %v1689_v58 = vmax.f32 %v1357_v37, %v2398_v18  ;;  %v1690_v4 = vmax.f32 %v1356_v16, %v2399_v46 }
 0x19e   : > { %v2141_v47 = vpack.c.b16 %v2120_v56, %v2120_v56  ;;  %v1675_v29 = vmax.f32 %v1290_v17, %v2384_v2  ;;  %v2513_v19 = vpack.c.bf16 %v1673_v20, %v1673_v20  ;;  %v2514_v7 = vpack.c.bf16 %v1674_v25, %v1674_v25 }
 0x19f   : > { %v1691_v11 = vmax.f32 %v1358_v61, %v2400_v32  ;;  %v2529_v55 = vpack.c.bf16 %v1689_v58, %v1689_v58  ;;  %v868_v39 = vadd.f32 %v2826_v53, %v3417_v24  ;;  %v1061_v51 = vmax.f32 %v3325_v54, 0.0 }
 0x1a0   : > { %2158 = vst.msk [vmem:[%s3128_s10 + $0x18] sm:$0xf] %vm2151_vm8, %v2141_v47  ;;  %v2512_v13 = vpack.c.bf16 %v1672_v42, %v1672_v42  ;;  %v1993_v41 = vunpack.c.l.b16 %v2513_v19  ;;  %v2530_v59 = vpack.c.bf16 %v1690_v4, %v1690_v4  ;;  %v2515_v38 = vpack.c.bf16 %v1675_v29, %v1675_v29 }
 0x1a1   : > { %v1994_v45 = vunpack.c.l.b16 %v2514_v7  ;;  %v2009_v63 = vunpack.c.l.b16 %v2529_v55  ;;  %v1063_v35 = vmax.f32 %v3360_v22, 0.0  ;;  %v2528_v48 = vpack.c.bf16 %v1688_v34, %v1688_v34 }
 0x1a2   : > { %v2093_v57 = vrot.slane %v1993_v41, 7  ;;  %v2531_v62 = vpack.c.bf16 %v1691_v11, %v1691_v11  ;;  %v2010_v36 = vunpack.c.l.b16 %v2530_v59  ;;  %v1029_v37 = vadd.f32 %v3249_v60, %v868_v39 }
 0x1a3   : > { %v1083_v16 = vmax.f32 %v1061_v51, %v1063_v35  ;;  %v1992_v53 = vunpack.c.l.b16 %v2512_v13  ;;  %v2121_v3 = vrot.slane %v2009_v63, 7  ;;  %v1071_v54 = vmax.f32 %v3344_v5, 0.0 }
 0x1a4   : > { %v1995_v12 = vunpack.c.l.b16 %v2515_v38  ;;  %v2095_v43 = vrot.slane %v1994_v45, 6  ;;  %v2008_v40 = vunpack.c.l.b16 %v2528_v48  ;;  %v1069_v22 = vmax.f32 %v1029_v37, 0.0 }
 0x1a5   : > { %v1291_v50 = vcombine.high %v1083_v16, %v1083_v16  ;;  %v2094_v8 = vsel %vm2017_vm1, %v2093_v57, %v1992_v53  ;;  %v1298_v61 = vrot.slane %v1083_v16, %v3039_v14  ;;  %v2011_v15 = vunpack.c.l.b16 %v2531_v62 }
 0x1a6   : > { %v2123_v27 = vrot.slane %v2010_v36, 6  ;;  %v2122_v26 = vsel %vm2017_vm1, %v2121_v3, %v2008_v40  ;;  %v1087_v21 = vmax.f32 %v1069_v22, %v1071_v54  ;;  %v2096_v5 = vsel %vm2020_vm2, %v2095_v43, %v2094_v8 }
 0x1a7   : > { %v1305_v31 = vrot.slane %v1291_v50, %v3039_v14  ;;  %v1306_v60 = vcombine.high %v1298_v61, %v1298_v61  ;;  %v2385_v9 = vrot.slane %v1298_v61, 9  ;;  %v2097_v10 = vrot.slane %v1995_v12, 5 }
 0x1a8   : > { %v1359_v33 = vcombine.high %v1087_v21, %v1087_v21  ;;  %v1366_v46 = vrot.slane %v1087_v21, %v3039_v14  ;;  %v2124_v23 = vsel %vm2020_vm2, %v2123_v27, %v2122_v26  ;;  %v2125_v17 = vrot.slane %v2011_v15, 5 }
 0x1a9   : > { %v1307_v30 = vcombine.high %v1305_v31, %v1305_v31  ;;  %v2387_v18 = vrot.slane %v1305_v31, 9  ;;  %v2386_v28 = vrot.slane %v1306_v60, 9  ;;  %v1676_v1 = vmax.f32 %v1298_v61, %v2385_v9 }
 0x1aa   : > { %v1373_v42 = vrot.slane %v1359_v33, %v3039_v14  ;;  %v1374_v32 = vcombine.high %v1366_v46, %v1366_v46  ;;  %v2098_v20 = vsel %vm2023_vm3, %v2097_v10, %v2096_v5  ;;  %v2401_v25 = vrot.slane %v1366_v46, 9 }
 0x1ab   : > { %v2388_v44 = vrot.slane %v1307_v30, 9  ;;  %v1678_v0 = vmax.f32 %v1305_v31, %v2387_v18  ;;  %v1677_v49 = vmax.f32 %v1306_v60, %v2386_v28  ;;  %v2516_v52 = vpack.c.bf16 %v1676_v1, %v1676_v1 }
 0x1ac   : > { %v1375_v58 = vcombine.high %v1373_v42, %v1373_v42  ;;  %v2402_v4 = vrot.slane %v1374_v32, 9  ;;  %v2403_v19 = vrot.slane %v1373_v42, 9  ;;  %v1692_v7 = vmax.f32 %v1366_v46, %v2401_v25 }
 0x1ad   : > { %v1679_v6 = vmax.f32 %v1307_v30, %v2388_v44  ;;  %v2518_v2 = vpack.c.bf16 %v1678_v0, %v1678_v0  ;;  %v2517_v56 = vpack.c.bf16 %v1677_v49, %v1677_v49  ;;  %v1996_v34 = vunpack.c.l.b16 %v2516_v52 }
 0x1ae   : > { %v2404_v24 = vrot.slane %v1375_v58, 9  ;;  %v1693_v39 = vmax.f32 %v1374_v32, %v2402_v4  ;;  %v1694_v14 = vmax.f32 %v1373_v42, %v2403_v19  ;;  %v2532_v13 = vpack.c.bf16 %v1692_v7, %v1692_v7 }
 0x1af   : > { %v2519_v47 = vpack.c.bf16 %v1679_v6, %v1679_v6  ;;  %v1998_v29 = vunpack.c.l.b16 %v2518_v2  ;;  %v1997_v11 = vunpack.c.l.b16 %v2517_v56  ;;  %v2099_v55 = vrot.slane %v1996_v34, 4 }
 0x1b0   : > { %v1695_v38 = vmax.f32 %v1375_v58, %v2404_v24  ;;  %v2533_v45 = vpack.c.bf16 %v1693_v39, %v1693_v39  ;;  %v2534_v35 = vpack.c.bf16 %v1694_v14, %v1694_v14  ;;  %v2012_v57 = vunpack.c.l.b16 %v2532_v13 }
 0x1b1   : > { %v1999_v51 = vunpack.c.l.b16 %v2519_v47  ;;  %v2100_v41 = vsel %vm2026_vm4, %v2099_v55, %v2098_v20  ;;  %v2101_v59 = vrot.slane %v1997_v11, 3  ;;  %v2103_v63 = vrot.slane %v1998_v29, 2 }
 0x1b2   : > { %v2126_v48 = vsel %vm2023_vm3, %v2125_v17, %v2124_v23  ;;  %v2535_v16 = vpack.c.bf16 %v1695_v38, %v1695_v38  ;;  %v2013_v37 = vunpack.c.l.b16 %v2533_v45  ;;  %v2014_v3 = vunpack.c.l.b16 %v2534_v35 }
 0x1b3   : > { %v2102_v62 = vsel %vm2029_vm5, %v2101_v59, %v2100_v41  ;;  %v2105_v36 = vrot.slane %v1999_v51, 1  ;;  %v2127_v54 = vrot.slane %v2012_v57, 4 }
 0x1b4   : > { %v2104_v53 = vsel %vm2032_vm6, %v2103_v63, %v2102_v62  ;;  %v2015_v43 = vunpack.c.l.b16 %v2535_v16  ;;  %v2129_v50 = vrot.slane %v2013_v37, 3  ;;  %v2131_v61 = vrot.slane %v2014_v3, 2 }
 0x1b5   : > { %v2106_v12 = vsel %vm2035_vm7, %v2105_v36, %v2104_v53  ;;  %v2128_v40 = vsel %vm2026_vm4, %v2127_v54, %v2126_v48 }
 0x1b6   : > { %v2140_v8 = vpack.c.b16 %v2106_v12, %v2106_v12  ;;  %v2130_v22 = vsel %vm2029_vm5, %v2129_v50, %v2128_v40  ;;  %v2133_v15 = vrot.slane %v2015_v43, 1 }
 0x1b7   : > { %v2132_v27 = vsel %vm2032_vm6, %v2131_v61, %v2130_v22 }
 0x1b8   : > { %2157 = vst.msk [vmem:[%s3128_s10 + $0x14] sm:$0xf] %vm2151_vm8, %v2140_v8  ;;  %v2134_v31 = vsel %vm2035_vm7, %v2133_v15, %v2132_v27 }
 0x1b9   : > { %v2142_v26 = vpack.c.b16 %v2134_v31, %v2134_v31 }
 0x1bb   : > { %2159 = vst.msk [vmem:[%s3128_s10 + $0x1c] sm:$0xf] %vm2151_vm8, %v2142_v26 }
 0x1bc PF: > { %s13_s14 = sadd.s32 1, %s2849_s14   ;;  %s3418_s12 = smov %s2845_s13 }
 0x1bd   : > { %p10_p5 = scmp.ge.s32.totalorder %s13_s14, 4   ;;  %s3419_s13 = smov %s3421_s15 }
 0x1bf   :  { %12 = sbr.rel (!%p10_p5) target bundleno = 2 (0x2), region = 62 }

// kernel: forward.7
= control target key start
LH: loop header
LB: loop body
LE: loop exit
PB: predicated region body
PF: predicated region fallthrough
CT: control target
= control target key end

     0   :  { %10 = vsyncpa [#allocation5], 0  ;;  %s1832_s0 = inlined_call_operand.vmem [shape: f32[2,1024], index: 0, kind: input, shape index: {}]   ;;  %s1833_s1 = inlined_call_operand.vmem [shape: bf16[1024,128], index: 1, kind: input, shape index: {}]   ;;  %s1834_s2 = inlined_call_operand.vmem [shape: f32[1,128], index: 2, kind: input, shape index: {}]   ;;  %s1835_s3 = inlined_call_operand.hbm [shape: f32[10,2,128], index: 3, kind: output, shape index: {0}]   ;;  %s1836_s4 = inlined_call_operand.hbm [shape: f32[10,2,128], index: 4, kind: output, shape index: {1}]  }
   0x1   :  { %12 = vsyncpa [#allocation5 + $0x1], 0 }
   0x2   :  { %13 = vsyncpa [#allocation7], 0 }
   0x3   :  { %15 = vsyncpa [#allocation7 + $0x1], 0  ;;  %s1482_s15 = smov 0   ;;  %s1484_s16 = smov 0  }
   0x4   :  { %s1486_s17 = smov 0   ;;  %s1488_s18 = smov 0  }
   0x5 LB: > { %s1503_s19 = sadd.s32 4294967295, %s1450_s18   ;;  %s1074_s20 = sadd.s32 4294967294, %s1450_s18   ;;  %s1450_s18 = sphi %s1488_s18, %s1842_s18   ;;  %s1446_s17 = sphi %s1486_s17, %s1841_s17   ;;  %s1442_s16 = sphi %s1484_s16, %s1840_s16   ;;  %s1438_s15 = sphi %s1482_s15, %s1839_s15  }
   0x6   : > { %s1507_s21 = sadd.s32 1, %s1450_s18   ;;  %s91_s22 = sadd.s32 1, %s1446_s17 }
   0x7   : > { %s88_s23 = ssub.s32 %s1450_s18, %s1507_s21  ;;  %p101_p0 = scmp.ne.s32.totalorder %s1446_s17, %s1442_s16 }
   0x8   : > { %p89_p1 = scmp.eq.s32.totalorder %s88_s23, 0  ;;  %p102_p2 = scmp.eq.s32.totalorder %s1503_s19, 9 }
   0x9   : > { %p107_p3 = scmp.ne.s32.totalorder %s1442_s16, %s1438_s15  ;;  %p108_p4 = scmp.eq.s32.totalorder %s1074_s20, 9 }
   0xa   : > { %s1518_s24 = scalar_select %p89_p1, %s1446_s17, %s91_s22  }
   0xb   : > { %p1520_p5 = por %p102_p2, %p101_p0  ;;  %p1524_p6 = por %p108_p4, %p107_p3 }
   0xc   : > { %p1076_p7 = scmp.ge.s32.totalorder %s1450_s18, 1  ;;  %p161_p8 = scmp.lt.s32.totalorder %s1450_s18, 11 }
   0xe   : > { %p162_p9 = pnand %p1076_p7, %p161_p8 }
   0xf   : > { %s1531_s27 = sand.u32 (!%p162_p9), 1, %s1442_s16   ;;  %p1079_p10 = scmp.ne.s32.totalorder (!%p162_p9), %s1503_s19, 0 }
  0x10   : > { %165 = sbr.rel (%p162_p9) target bundleno = 362 (0x16a), region = 32  ;;  %s1077_s28 = sshll.u32 (!%p162_p9), %s1531_s27, 1 }
  0x11   : > { %s1534_s29 = scalar_lea.vmem (!%p162_p9), [#allocation4], %s1077_s28  ;;  %s1536_s30 = scalar_lea.vmem (!%p162_p9), [#allocation6], %s1077_s28 }
  0x17   : > { %191 = sbr.rel (%p1079_p10) target bundleno = 30 (0x1e), region = 36  ;;  %v1452_v0 = vmov (!%p1079_p10), 0.0  }
  0x18   : > { %192 = vst [vmem:[#allocation2] sm:$0xff] (!%p1079_p10), %v1452_v0  ;;  %193 = vst [vmem:[#allocation2 + $0x8] sm:$0xff] (!%p1079_p10), %v1452_v0 }
  0x19   : > { %194 = vst [vmem:[#allocation3] sm:$0x3] (!%p1079_p10), %v1452_v0 }
  0x1e PF: > { %v1292_v1 = vld [vmem:[%s1833_s1 + $0x40] sm:$0xff]   ;;  %v1296_v5 = vld [vmem:[%s1833_s1 + $0x48] sm:$0xff]   ;;  %v1300_v9 = vld [vmem:[%s1833_s1 + $0x50] sm:$0xff]   ;;  %v225_v29 = vlaneseq  ;;  %v1453_v38 = vmov 1983009808   ;;  %v1454_v41 = vmov 0.0  }
  0x1f   : > { %v1293_v2 = vld [vmem:[%s1833_s1 + $0xc0] sm:$0xff]   ;;  %1157 = vmatprep.subr.bf16.mxu0 %v1292_v1  ;;  %v1297_v6 = vld [vmem:[%s1833_s1 + $0xc8] sm:$0xff]   ;;  %v1301_v10 = vld [vmem:[%s1833_s1 + $0xd0] sm:$0xff]   ;;  %v223_v39 = vunpack.c.l.s4 %v1453_v38  ;;  %s1153_s13 = sshll.u32 %s1503_s19, 5  ;;  %s995_s14 = sshll.u32 %s1536_s30, 4  ;;  %s1759_s14 = int_to_ptr.vmem [resolvable:$true] %s995_s14 }
  0x20   : > { %v1294_v3 = vld [vmem:[%s1833_s1] sm:$0xff]   ;;  %1179 = vmatprep.subr.bf16.mxu1 %v1293_v2  ;;  %v1298_v7 = vld [vmem:[%s1833_s1 + $0x8] sm:$0xff]   ;;  %v1302_v11 = vld [vmem:[%s1833_s1 + $0x10] sm:$0xff]   ;;  %v226_v34 = vshrl.u32 %v225_v29, 7  ;;  %s982_s20 = sshll.u32 %s1534_s29, 4  ;;  %s1757_s28 = scalar_lea.hbm %s1836_s4, %s1153_s13  ;;  %s1767_s20 = int_to_ptr.vmem [resolvable:$true] %s982_s20 }
  0x21   : > { %v1295_v4 = vld [vmem:[%s1833_s1 + $0x80] sm:$0xff]   ;;  %1158 = vmatpush3.bf16.msra.mxu0 %v1294_v3  ;;  %v1299_v8 = vld [vmem:[%s1833_s1 + $0x88] sm:$0xff]   ;;  %v1303_v12 = vld [vmem:[%s1833_s1 + $0x90] sm:$0xff]   ;;  %v224_v45 = vunpack.c.0.s8 %v223_v39  ;;  %s1765_s6 = scalar_lea.hbm %s1835_s3, %s1153_s13  ;;  %s969_s7 = scalar_lea.sflag [#allocation7], %s1531_s27 }
  0x22   : > { %1180 = vmatpush3.bf16.msra.mxu1 %v1295_v4  ;;  %1159 = vmatprep.subr.bf16.mxu0 %v1296_v5  ;;  %v1304_v13 = vld [vmem:[%s1833_s1 + $0x58] sm:$0xff]   ;;  %v1308_v17 = vld [vmem:[%s1833_s1 + $0x60] sm:$0xff]   ;;  %v1312_v21 = vld [vmem:[%s1833_s1 + $0x68] sm:$0xff]   ;;  %s1356_s8 = scalar_lea.vmem %s1759_s14, 32  ;;  %s1455_s9 = smov [#allocation6]  }
  0x23   : > { %1181 = vmatprep.subr.bf16.mxu1 %v1297_v6  ;;  %v1305_v14 = vld [vmem:[%s1833_s1 + $0xd8] sm:$0xff]   ;;  %v1309_v18 = vld [vmem:[%s1833_s1 + $0xe0] sm:$0xff]   ;;  %v1313_v22 = vld [vmem:[%s1833_s1 + $0xe8] sm:$0xff]   ;;  %v1645_v47 = vsub.s32 %v224_v45, %v226_v34  ;;  %p1357_p11 = scmp.ne.s32.totalorder %s1759_s14, %s1356_s8  ;;  %s1360_s10 = sshll.u32 %s1455_s9, 4  ;;  %s1361_s10 = int_to_ptr.vmem [resolvable:$false] %s1360_s10 }
  0x24   : > { %v1306_v15 = vld [vmem:[%s1833_s1 + $0x18] sm:$0xff]   ;;  %v1310_v19 = vld [vmem:[%s1833_s1 + $0x20] sm:$0xff]   ;;  %v1314_v23 = vld [vmem:[%s1833_s1 + $0x28] sm:$0xff]   ;;  %p1363_p0 = scmp.lt.s32.totalorder %s1759_s14, %s1361_s10 }
  0x25   : > { %1160 = vmatpush3.bf16.msra.mxu0 %v1298_v7  ;;  %v1307_v16 = vld [vmem:[%s1833_s1 + $0x98] sm:$0xff]   ;;  %v1311_v20 = vld [vmem:[%s1833_s1 + $0xa0] sm:$0xff]   ;;  %v1315_v24 = vld [vmem:[%s1833_s1 + $0xa8] sm:$0xff]   ;;  %p1358_p12 = pnand %p1357_p11, %p1520_p5 }
  0x26   : > { %1182 = vmatpush3.bf16.msra.mxu1 %v1299_v8  ;;  %1161 = vmatprep.subr.bf16.mxu0 %v1300_v9  ;;  %v1316_v25 = vld [vmem:[%s1833_s1 + $0x70] sm:$0xff]   ;;  %v1320_v30 = vld [vmem:[%s1833_s1 + $0x78] sm:$0xff]   ;;  %v195_v35 = vld [vmem:[#allocation2] sm:$0xff] }
  0x27   : > { %1183 = vmatprep.subr.bf16.mxu1 %v1301_v10  ;;  %v1317_v26 = vld [vmem:[%s1833_s1 + $0xf0] sm:$0xff]   ;;  %v1321_v31 = vld [vmem:[%s1833_s1 + $0xf8] sm:$0xff]   ;;  %v205_v36 = vld [vmem:[%s1832_s0] sm:$0xff]  ;;  %vm197_vm0 = vcmp.gt.f32.partialorder %v195_v35, 1.0  ;;  %v203_v37 = vmul.f32 0.95, %v195_v35  ;;  %p1359_p13 = pneg %p1358_p12 }
  0x28   : > { %v1318_v27 = vld [vmem:[%s1833_s1 + $0x30] sm:$0xff]   ;;  %v1322_v32 = vld [vmem:[%s1833_s1 + $0x38] sm:$0xff]   ;;  %v1324_v40 = vld [vmem:[%s1833_s1 + $0x140] sm:$0xff]   ;;  %v1080_v42 = vsel %vm197_vm0, 1.0, %v1454_v41 }
  0x29   : > { %1162 = vmatpush3.bf16.msra.mxu0 %v1302_v11  ;;  %v1319_v28 = vld [vmem:[%s1833_s1 + $0xb0] sm:$0xff]   ;;  %v1323_v33 = vld [vmem:[%s1833_s1 + $0xb8] sm:$0xff]   ;;  %v1325_v43 = vld [vmem:[%s1833_s1 + $0x1c0] sm:$0xff]   ;;  %v207_v44 = vadd.f32 %v205_v36, %v203_v37 }
  0x2a   : > { %1184 = vmatpush3.bf16.msra.mxu1 %v1303_v12  ;;  %1163 = vmatprep.subr.bf16.mxu0 %v1304_v13  ;;  %v1326_v56 = vld [vmem:[%s1833_s1 + $0x100] sm:$0xff]   ;;  %v1328_v58 = vld [vmem:[%s1833_s1 + $0x148] sm:$0xff]   ;;  %v1332_v63 = vld [vmem:[%s1833_s1 + $0x150] sm:$0xff]  }
  0x2b   : > { %1185 = vmatprep.subr.bf16.mxu1 %v1305_v14  ;;  %v209_v46 = vsub.f32 %v207_v44, %v1080_v42  ;;  %v1327_v60 = vld [vmem:[%s1833_s1 + $0x180] sm:$0xff]   ;;  %v1329_v61 = vld [vmem:[%s1833_s1 + $0x1c8] sm:$0xff]   ;;  %v1333_v1 = vld [vmem:[%s1833_s1 + $0x1d0] sm:$0xff]  }
  0x2c   : > { %v1330_v62 = vld [vmem:[%s1833_s1 + $0x108] sm:$0xff]   ;;  %v1334_v2 = vld [vmem:[%s1833_s1 + $0x110] sm:$0xff]   ;;  %v1336_v3 = vld [vmem:[%s1833_s1 + $0x158] sm:$0xff]  }
  0x2d   : > { %1164 = vmatpush3.bf16.msra.mxu0 %v1306_v15  ;;  %vm211_vm1 = vcmp.gt.f32.partialorder %v209_v46, 1.0  ;;  %213 = vst [vmem:[#allocation2] sm:$0xff] %v209_v46  ;;  %v1331_v0 = vld [vmem:[%s1833_s1 + $0x188] sm:$0xff]   ;;  %v1335_v4 = vld [vmem:[%s1833_s1 + $0x190] sm:$0xff]   ;;  %v1337_v5 = vld [vmem:[%s1833_s1 + $0x1d8] sm:$0xff]  }
  0x2e   : > { %1186 = vmatpush3.bf16.msra.mxu1 %v1307_v16  ;;  %1165 = vmatprep.subr.bf16.mxu0 %v1308_v17  ;;  %v1082_v48 = vsel %vm211_vm1, 1.0, %v1454_v41  ;;  %v1338_v6 = vld [vmem:[%s1833_s1 + $0x118] sm:$0xff]   ;;  %v1340_v7 = vld [vmem:[%s1833_s1 + $0x160] sm:$0xff]   ;;  %v1344_v11 = vld [vmem:[%s1833_s1 + $0x168] sm:$0xff]  }
  0x2f   : > { %1187 = vmatprep.subr.bf16.mxu1 %v1309_v18  ;;  %v228_v49 = vrot.slane %v1082_v48, %v1645_v47  ;;  %v221_v50 = vcombine.high %v1082_v48, %v1082_v48  ;;  %v1339_v8 = vld [vmem:[%s1833_s1 + $0x198] sm:$0xff]   ;;  %v1341_v9 = vld [vmem:[%s1833_s1 + $0x1e0] sm:$0xff]   ;;  %v1345_v13 = vld [vmem:[%s1833_s1 + $0x1e8] sm:$0xff]  }
  0x30   : > { %v1342_v10 = vld [vmem:[%s1833_s1 + $0x120] sm:$0xff]   ;;  %v1346_v14 = vld [vmem:[%s1833_s1 + $0x128] sm:$0xff]   ;;  %v1348_v17 = vld [vmem:[%s1833_s1 + $0x170] sm:$0xff]  }
  0x31   : > { %1166 = vmatpush3.bf16.msra.mxu0 %v1310_v19  ;;  %v236_v51 = vcombine.high %v228_v49, %v228_v49  ;;  %v235_v52 = vrot.slane %v221_v50, %v1645_v47  ;;  %v263_v53 = vpack.c.bf16 %v228_v49, %v228_v49  ;;  %v1343_v12 = vld [vmem:[%s1833_s1 + $0x1a0] sm:$0xff]   ;;  %v196_v15 = vld [vmem:[#allocation2 + $0x8] sm:$0xff] }
  0x32   : > { %1188 = vmatpush3.bf16.msra.mxu1 %v1311_v20  ;;  %1167 = vmatprep.subr.bf16.mxu0 %v1312_v21  ;;  %v206_v16 = vld [vmem:[%s1832_s0 + $0x8] sm:$0xff]  ;;  %vm198_vm2 = vcmp.gt.f32.partialorder %v196_v15, 1.0  ;;  %v204_v18 = vmul.f32 0.95, %v196_v15  ;;  %v1349_v21 = vld [vmem:[%s1833_s1 + $0x1f0] sm:$0xff]  }
  0x33   : > { %1189 = vmatprep.subr.bf16.mxu1 %v1313_v22  ;;  %v264_v54 = vpack.c.bf16 %v236_v51, %v236_v51  ;;  %v237_v55 = vcombine.high %v235_v52, %v235_v52  ;;  %v265_v57 = vpack.c.bf16 %v235_v52, %v235_v52  ;;  %v1347_v19 = vld [vmem:[%s1833_s1 + $0x1a8] sm:$0xff]   ;;  %v1081_v20 = vsel %vm198_vm2, 1.0, %v1454_v41  ;;  %v1084_v42 = vld [vmem:[%s1834_s2] ss:$0 sm:$0xff] }
  0x34   : > { %v208_v22 = vadd.f32 %v206_v16, %v204_v18 }
  0x35   : > { %1168 = vmatpush3.bf16.msra.mxu0 %v1314_v23  ;;  %822 = vmatprep.mubr.bf16.mxu0 %v264_v54  ;;  %v266_v59 = vpack.c.bf16 %v237_v55, %v237_v55  ;;  %v1350_v23 = vld [vmem:[%s1833_s1 + $0x130] sm:$0xff]  }
  0x36   : > { %1190 = vmatpush3.bf16.msra.mxu1 %v1315_v24  ;;  %1169 = vmatprep.subr.bf16.mxu0 %v1316_v25  ;;  %v1352_v24 = vld [vmem:[%s1833_s1 + $0x178] sm:$0xff]   ;;  %v210_v25 = vsub.f32 %v208_v22, %v1081_v20 }
  0x37   : > { %1191 = vmatprep.subr.bf16.mxu1 %v1317_v26  ;;  %862 = vmatprep.mubr.bf16.mxu1 %v266_v59  ;;  %v1351_v26 = vld [vmem:[%s1833_s1 + $0x1b0] sm:$0xff]  }
  0x38   : > { %vm212_vm3 = vcmp.gt.f32.partialorder %v210_v25, 1.0  ;;  %214 = vst [vmem:[#allocation2 + $0x8] sm:$0xff] %v210_v25 }
  0x39   : > { %1170 = vmatpush3.bf16.msra.mxu0 %v1318_v27  ;;  %v1353_v27 = vld [vmem:[%s1833_s1 + $0x1f8] sm:$0xff]   ;;  %v1083_v29 = vsel %vm212_vm3, 1.0, %v1454_v41 }
  0x3a   : > { %1192 = vmatpush3.bf16.msra.mxu1 %v1319_v28  ;;  %1171 = vmatprep.subr.bf16.mxu0 %v1320_v30  ;;  %v1354_v28 = vld [vmem:[%s1833_s1 + $0x138] sm:$0xff]   ;;  %v245_v30 = vrot.slane %v1083_v29, %v1645_v47 }
  0x3b   : > { %1193 = vmatprep.subr.bf16.mxu1 %v1321_v31  ;;  %v238_v31 = vcombine.high %v1083_v29, %v1083_v29 }
  0x3c   : > { %v267_v35 = vpack.c.bf16 %v245_v30, %v245_v30 }
  0x3d   : > { %1172 = vmatpush3.bf16.msra.mxu0 %v1322_v32  ;;  %v1355_v32 = vld [vmem:[%s1833_s1 + $0x1b8] sm:$0xff]   ;;  %v252_v34 = vrot.slane %v238_v31, %v1645_v47 }
  0x3e   : > { %1194 = vmatpush3.bf16.msra.mxu1 %v1323_v33  ;;  %1201 = vmatprep.subr.bf16.mxu0 %v1324_v40  ;;  %v253_v33 = vcombine.high %v245_v30, %v245_v30 }
  0x3f   : > { %1223 = vmatprep.subr.bf16.mxu1 %v1325_v43  ;;  %v254_v37 = vcombine.high %v252_v34, %v252_v34  ;;  %v269_v38 = vpack.c.bf16 %v252_v34, %v252_v34 }
  0x40   : > { %823 = vmatmul.mubr.bf16.vlgmr.msra.gmra.mrb[0].mxu0 %v263_v53  ;;  %v268_v36 = vpack.c.bf16 %v253_v33, %v253_v33 }
  0x41   : > { %1202 = vmatpush3.bf16.msra.mxu0 %v1326_v56  ;;  %863 = vmatmul.mubr.bf16.vlgmr.msra.gmra.mrb[0].mxu1 %v265_v57  ;;  %v270_v39 = vpack.c.bf16 %v254_v37, %v254_v37  ;;  %v950_v56 = vld [vmem:[#allocation3] sm:$0x3] }
  0x42   : > { %1203 = vmatprep.subr.bf16.mxu0 %v1328_v58  ;;  %1224 = vmatpush3.bf16.msra.mxu1 %v1327_v60  ;;  %vm951_vm4 = vcmp.gt.f32.partialorder %v950_v56, 1.0 }
  0x43   : > { %1225 = vmatprep.subr.bf16.mxu1 %v1329_v61  ;;  %902 = vmatprep.mubr.bf16.mxu0 %v268_v36 }
  0x44   : > { %942 = vmatprep.mubr.bf16.mxu1 %v270_v39 }
  0x45   : > { %1204 = vmatpush3.bf16.msra.mxu0 %v1330_v62 }
  0x46   : > { %1205 = vmatprep.subr.bf16.mxu0 %v1332_v63  ;;  %1226 = vmatpush3.bf16.msra.mxu1 %v1331_v0  ;;  %v954_v0 = vmul.f32 0.95, %v950_v56 }
  0x47   : > { %1227 = vmatprep.subr.bf16.mxu1 %v1333_v1 }
  0x49   : > { %1206 = vmatpush3.bf16.msra.mxu0 %v1334_v2 }
  0x4a   : > { %1207 = vmatprep.subr.bf16.mxu0 %v1336_v3  ;;  %1228 = vmatpush3.bf16.msra.mxu1 %v1335_v4  ;;  %v1149_v4 = vsel %vm951_vm4, 1.0, %v1454_v41 }
  0x4b   : > { %1229 = vmatprep.subr.bf16.mxu1 %v1337_v5 }
  0x4d   : > { %1208 = vmatpush3.bf16.msra.mxu0 %v1338_v6 }
  0x4e   : > { %1209 = vmatprep.subr.bf16.mxu0 %v1340_v7  ;;  %1230 = vmatpush3.bf16.msra.mxu1 %v1339_v8 }
  0x4f   : > { %1231 = vmatprep.subr.bf16.mxu1 %v1341_v9 }
  0x51   : > { %1210 = vmatpush3.bf16.msra.mxu0 %v1342_v10 }
  0x52   : > { %1211 = vmatprep.subr.bf16.mxu0 %v1344_v11  ;;  %1232 = vmatpush3.bf16.msra.mxu1 %v1343_v12 }
  0x53   : > { %1233 = vmatprep.subr.bf16.mxu1 %v1345_v13 }
  0x55   : > { %1212 = vmatpush3.bf16.msra.mxu0 %v1346_v14 }
  0x56   : > { %1213 = vmatprep.subr.bf16.mxu0 %v1348_v17  ;;  %1234 = vmatpush3.bf16.msra.mxu1 %v1347_v19 }
  0x57   : > { %1235 = vmatprep.subr.bf16.mxu1 %v1349_v21 }
  0x59   : > { %1214 = vmatpush3.bf16.msra.mxu0 %v1350_v23 }
  0x5a   : > { %1215 = vmatprep.subr.bf16.mxu0 %v1352_v24  ;;  %1236 = vmatpush3.bf16.msra.mxu1 %v1351_v26 }
  0x5b   : > { %1237 = vmatprep.subr.bf16.mxu1 %v1353_v27 }
  0x5d   : > { %1216 = vmatpush3.bf16.msra.mxu0 %v1354_v28 }
  0x5e   : > { %1238 = vmatpush3.bf16.msra.mxu1 %v1355_v32 }
  0x60   : > { %903 = vmatmul.mubr.bf16.vlgmr.msra.gmra.mrb[4].mxu0 %v267_v35 }
  0x61   : > { %943 = vmatmul.mubr.bf16.vlgmr.msra.gmra.mrb[4].mxu1 %v269_v38 }
 0x113   : > { %v1173_v40 = vpop.f32.mrb[0].mxu0 }
 0x114   : > { %v1174_v43 = vpop.f32.mrb[1].mxu0  ;;  %v1195_v44 = vpop.f32.mrb[0].mxu1 }
 0x115   : > { %v1175_v45 = vadd.f32 %v1174_v43, %v1173_v40  ;;  %v1176_v46 = vpop.f32.mrb[2].mxu0  ;;  %v1196_v47 = vpop.f32.mrb[1].mxu1 }
 0x116   : > { %v1177_v48 = vpop.f32.mrb[3].mxu0  ;;  %v1197_v50 = vadd.f32 %v1196_v47, %v1195_v44  ;;  %v1198_v51 = vpop.f32.mrb[2].mxu1 }
 0x117   : > { %v825_v49 = vadd.f32 %v1175_v45, %v1084_v42  ;;  %v1199_v52 = vpop.f32.mrb[3].mxu1 }
 0x119   : > { %v865_v53 = vadd.f32 %v1197_v50, %v825_v49 }
 0x133   : > { %v1217_v54 = vpop.f32.mrb[4].mxu0 }
 0x134   : > { %v1218_v55 = vpop.f32.mrb[5].mxu0  ;;  %v1239_v57 = vpop.f32.mrb[4].mxu1 }
 0x135   : > { %v1219_v58 = vadd.f32 %v1218_v55, %v1217_v54  ;;  %v1220_v59 = vpop.f32.mrb[6].mxu0  ;;  %v1240_v60 = vpop.f32.mrb[5].mxu1 }
 0x136   : > { %v1221_v61 = vpop.f32.mrb[7].mxu0  ;;  %v1241_v63 = vadd.f32 %v1240_v60, %v1239_v57  ;;  %v1242_v1 = vpop.f32.mrb[6].mxu1 }
 0x137   : > { %v905_v62 = vadd.f32 %v1219_v58, %v865_v53  ;;  %v1243_v2 = vpop.f32.mrb[7].mxu1 }
 0x139   : > { %v945_v3 = vadd.f32 %v1241_v63, %v905_v62 }
 0x13b   : > { %v955_v5 = vadd.f32 %v954_v0, %v945_v3 }
 0x13d   : > { %v956_v6 = vsub.f32 %v955_v5, %v1149_v4 }
 0x13f   : > { %960 = vst [vmem:[#allocation3] sm:$0x3] %v956_v6  ;;  %962 = vst [vmem:[%s1536_s30] sm:$0x3] %v956_v6  ;;  %vm957_vm5 = vcmp.gt.f32.partialorder %v956_v6, 1.0  ;;  %s1362_s30 = scalar_lea.vmem %s1361_s10, 64 }
 0x140   : > { %v1150_v7 = vsel %vm957_vm5, 1.0, %v1454_v41  ;;  %p1364_p1 = scmp.lt.s32.totalorder %s1362_s30, %s1356_s8 }
 0x142   : > { %p1365_p2 = por %p1364_p1, %p1363_p0 }
 0x144   : > { %p1366_p3 = pnand %p1365_p2, %p1359_p13 }
 0x146   : > { %1369 = shalt.err (!%p1366_p3)
}
 0x147   : > { %s1370_s11 = scalar_lea.hbm %s1757_s28, 32  ;;  %s1374_s22 = scalar_lea.hbm %s1836_s4, 320 }
 0x148   : > { %p1371_p4 = scmp.ne.s32.totalorder %s1757_s28, %s1370_s11  ;;  %p1375_p9 = scmp.lt.u32.totalorder %s1757_s28, %s1836_s4 }
 0x149   : > { %p1376_p10 = scmp.lt.u32.totalorder %s1374_s22, %s1370_s11  ;;  %p1378_p12 = scmp.lt.u32.totalorder %s1370_s11, %s1757_s28 }
 0x14a   : > { %p1372_p7 = pnand %p1371_p4, %p1520_p5 }
 0x14b   : > { %p1377_p11 = por %p1376_p10, %p1375_p9 }
 0x14c   : > { %p1373_p8 = pneg %p1372_p7 }
 0x14d   : > { %p1379_p13 = por %p1378_p12, %p1377_p11 }
 0x14f   : > { %p1380_p0 = pnand %p1379_p13, %p1373_p8 }
 0x151   : > { %1383 = shalt.err (!%p1380_p0)
}
 0x152   : > { %1246 = dma.vmem_to_hbm [thread:$0]  (%p1520_p5), %s1759_s14, 32, %s1757_s28, %s969_s7   ;;  %961 = vst [vmem:[%s1534_s29] sm:$0x3] %v1150_v7 }
 0x153   : > { %s964_s19 = scalar_lea.sflag [#allocation5], %s1531_s27  ;;  %s1384_s8 = scalar_lea.vmem %s1767_s20, 32 }
 0x154   : > { %p1385_p1 = scmp.ne.s32.totalorder %s1767_s20, %s1384_s8  ;;  %s1456_s9 = smov [#allocation4]  }
 0x155   : > { %s1388_s10 = sshll.u32 %s1456_s9, 4  ;;  %s1389_s10 = int_to_ptr.vmem [resolvable:$false] %s1388_s10 }
 0x156   : > { %p1386_p2 = pnand %p1385_p1, %p1520_p5  ;;  %s1390_s30 = scalar_lea.vmem %s1389_s10, 64 }
 0x157   : > { %p1391_p4 = scmp.lt.s32.totalorder %s1767_s20, %s1389_s10  ;;  %p1392_p7 = scmp.lt.s32.totalorder %s1390_s30, %s1384_s8 }
 0x158   : > { %p1387_p3 = pneg %p1386_p2 }
 0x159   : > { %p1393_p8 = por %p1392_p7, %p1391_p4 }
 0x15b   : > { %p1394_p9 = pnand %p1393_p8, %p1387_p3 }
 0x15d   : > { %1397 = shalt.err (!%p1394_p9)
}
 0x15e   : > { %s1398_s27 = scalar_lea.hbm %s1765_s6, 32  ;;  %s1402_s28 = scalar_lea.hbm %s1835_s3, 320 }
 0x15f   : > { %p1399_p10 = scmp.ne.s32.totalorder %s1765_s6, %s1398_s27  ;;  %p1403_p13 = scmp.lt.u32.totalorder %s1765_s6, %s1835_s3 }
 0x160   : > { %p1404_p0 = scmp.lt.u32.totalorder %s1402_s28, %s1398_s27  ;;  %p1406_p2 = scmp.lt.u32.totalorder %s1398_s27, %s1765_s6 }
 0x161   : > { %p1400_p11 = pnand %p1399_p10, %p1520_p5 }
 0x162   : > { %p1405_p1 = por %p1404_p0, %p1403_p13 }
 0x163   : > { %p1401_p12 = pneg %p1400_p11 }
 0x164   : > { %p1407_p3 = por %p1406_p2, %p1405_p1 }
 0x166   : > { %p1408_p4 = pnand %p1407_p3, %p1401_p12 }
 0x168   : > { %1411 = shalt.err (!%p1408_p4)
}
 0x169   : > { %1245 = dma.vmem_to_hbm [thread:$0]  (%p1520_p5), %s1767_s20, 32, %s1765_s6, %s964_s19  }
 0x16a PF: > { %p1256_p7 = scmp.ge.s32.totalorder %s1450_s18, 2  ;;  %s1007_s12 = sand.u32 1, %s1438_s15  }
 0x16b   : > { %s1008_s13 = scalar_lea.sflag [#allocation5], %s1007_s12 }
 0x16c   : > { %p1250_p8 = pnand %p1256_p7, %p1524_p6 }
 0x16e   : > { %1429 = dma.done.wait (!%p1250_p8), %s1008_s13, 32  }
 0x16f   : > { %1431 = vsyncadd (!%p1250_p8), %s1008_s13, 4294967264  ;;  %s1017_s22 = scalar_lea.sflag [#allocation7], %s1007_s12 }
 0x170   : > { %1433 = dma.done.wait (!%p1250_p8), %s1017_s22, 32  }
 0x171   : > { %1435 = vsyncadd (!%p1250_p8), %s1017_s22, 4294967264  ;;  %p18_p5 = scmp.ge.s32.totalorder %s1507_s21, 12   ;;  %s1839_s15 = smov %s1442_s16 }
 0x172   : > { %s1840_s16 = smov %s1446_s17  ;;  %s1841_s17 = smov %s1518_s24 }
 0x173   : > { %s1842_s18 = smov %s1507_s21  ;;  %20 = sbr.rel (!%p18_p5) target bundleno = 5 (0x5), region = 85 }
 0x17a   :  { %1022 = vsyncpa [#allocation5], 1 }
 0x17b   :  { %1024 = vsyncpa [#allocation5 + $0x1], 1 }
 0x17c   :  { %1025 = vsyncpa [#allocation7], 1 }
 0x17d   :  { %1027 = vsyncpa [#allocation7 + $0x1], 1 }

// kernel: forward.6
= control target key start
LH: loop header
LB: loop body
LE: loop exit
PB: predicated region body
PF: predicated region fallthrough
CT: control target
= control target key end

     0   :  { %s9120_s12 = smov 0   ;;  %s10384_s0 = inlined_call_operand.vmem [shape: bf16[2,4096], index: 0, kind: input, shape index: {}]   ;;  %s10385_s1 = inlined_call_operand.vmem [shape: bf16[4096,1024], index: 1, kind: input, shape index: {}]   ;;  %s10386_s2 = inlined_call_operand.vmem [shape: f32[1,1024], index: 2, kind: input, shape index: {}]   ;;  %s10387_s3 = inlined_call_operand.vmem [shape: f32[2,1024], index: 3, kind: output, shape index: {}]  }
   0x1 LB: > { %s9126_s13 = sadd.s32 4294967295, %s9095_s12   ;;  %p7930_p0 = scmp.ge.s32.totalorder %s9095_s12, 1  ;;  %s9095_s12 = sphi %s9120_s12, %s13_s12  }
   0x2   : > { %p144_p1 = scmp.lt.s32.totalorder %s9095_s12, 3 }
   0x4   : > { %p145_p2 = pnand %p7930_p0, %p144_p1 }
   0x5   : > { %s7931_s14 = sshll.u32 (!%p145_p2), %s9126_s13, 4  ;;  %s7932_s15 = sshll.u32 (!%p145_p2), %s9126_s13, 8 }
   0x6   : > { %148 = sbr.rel (%p145_p2) target bundleno = 1282 (0x502), region = 32  ;;  %p169_p3 = scmp.lt.s32.totalorder (!%p145_p2), %s7931_s14, 31 }
   0x7   : > { %p174_p4 = scmp.lt.s32.totalorder (!%p145_p2), %s7932_s15, 511  ;;  %p7935_p5 = scmp.ne.s32.totalorder (!%p145_p2), %s9126_s13, 0 }
   0xd   : > { %s10389_s14 = smov (!%p169_p3, %s7931_s14), 31  ;;  %s10391_s15 = smov (!%p174_p4, %s7932_s15), 511 }
   0xe   : > { %s9135_s18 = scalar_lea.vmem %s10384_s0, %s10389_s14  ;;  %s8963_s19 = sshll.u32 %s10391_s15, 5  ;;  %v9097_v0 = vmov (!%p7935_p5), 0.0  }
   0xf   : > { %s9140_s22 = scalar_lea.vmem %s10385_s1, %s8963_s19  ;;  %183 = sbr.rel (%p7935_p5) target bundleno = 22 (0x16), region = 36  ;;  %184 = vst [vmem:[%s10387_s3] sm:$0xff] (!%p7935_p5), %v9097_v0  ;;  %185 = vst [vmem:[%s10387_s3 + $0x8] sm:$0xff] (!%p7935_p5), %v9097_v0 }
  0x16 PF: > { %v190_v1 = vld [vmem:[%s9140_s22] sm:$0xff]  ;;  %v191_v3 = vld [vmem:[%s9140_s22 + $0x8] sm:$0xff]  ;;  %v9098_v33 = vmov 1966171168   ;;  %v1220_v35 = vlaneseq  ;;  %p8960_p6 = scmp.ne.s32.totalorder %s9126_s13, 1 }
  0x17   : > { %v194_v2 = vld [vmem:[%s9140_s22 + $0x20] sm:$0xff]  ;;  %v195_v5 = vld [vmem:[%s9140_s22 + $0x28] sm:$0xff]  ;;  %v1218_v34 = vunpack.c.l.s4 %v9098_v33 }
  0x18   : > { %v7937_v4 = vcombine.high %v190_v1, %v194_v2  ;;  %v7936_v6 = vcombine.low %v190_v1, %v194_v2  ;;  %v198_v7 = vld [vmem:[%s9140_s22 + $0x40] sm:$0xff]  ;;  %v7939_v9 = vcombine.high %v191_v3, %v195_v5  ;;  %v7938_v10 = vcombine.low %v191_v3, %v195_v5  ;;  %v199_v12 = vld [vmem:[%s9140_s22 + $0x48] sm:$0xff] }
  0x19   : > { %v202_v8 = vld [vmem:[%s9140_s22 + $0x60] sm:$0xff]  ;;  %v203_v13 = vld [vmem:[%s9140_s22 + $0x68] sm:$0xff]  ;;  %v1219_v44 = vunpack.c.0.s8 %v1218_v34  ;;  %v9171_v45 = vshrl.u32 %v1220_v35, 7 }
  0x1a   : > { %v7945_v11 = vcombine.high %v198_v7, %v202_v8  ;;  %v206_v14 = vld [vmem:[%s9140_s22 + $0x80] sm:$0xff]  ;;  %6450 = vmatprep.subr.bf16.mxu0 %v7937_v4  ;;  %v7947_v15 = vcombine.high %v199_v12, %v203_v13  ;;  %v207_v17 = vld [vmem:[%s9140_s22 + $0x88] sm:$0xff]  ;;  %6778 = vmatprep.subr.bf16.mxu1 %v7939_v9  ;;  %v7944_v19 = vcombine.low %v198_v7, %v202_v8 }
  0x1b   : > { %v210_v16 = vld [vmem:[%s9140_s22 + $0xa0] sm:$0xff]  ;;  %v211_v18 = vld [vmem:[%s9140_s22 + $0xa8] sm:$0xff]  ;;  %6451 = vmatpush1.bf16.msra.mxu0 %v7936_v6  ;;  %6779 = vmatpush1.bf16.msra.mxu1 %v7938_v10  ;;  %v7946_v20 = vcombine.low %v199_v12, %v203_v13  ;;  %v9178_v54 = vsub.s32 %v1219_v44, %v9171_v45 }
  0x1c   : > { %6452 = vmatprep.subr.bf16.mxu0 %v7945_v11  ;;  %v7953_v21 = vcombine.high %v206_v14, %v210_v16  ;;  %6780 = vmatprep.subr.bf16.mxu1 %v7947_v15  ;;  %v7955_v22 = vcombine.high %v207_v17, %v211_v18  ;;  %v214_v23 = vld [vmem:[%s9140_s22 + $0xc0] sm:$0xff]  ;;  %v215_v25 = vld [vmem:[%s9140_s22 + $0xc8] sm:$0xff]  ;;  %v7952_v27 = vcombine.low %v206_v14, %v210_v16 }
  0x1d   : > { %v218_v24 = vld [vmem:[%s9140_s22 + $0xe0] sm:$0xff]  ;;  %v219_v26 = vld [vmem:[%s9140_s22 + $0xe8] sm:$0xff]  ;;  %v7954_v28 = vcombine.low %v207_v17, %v211_v18 }
  0x1e   : > { %v7961_v29 = vcombine.high %v214_v23, %v218_v24  ;;  %v7963_v30 = vcombine.high %v215_v25, %v219_v26  ;;  %v222_v31 = vld [vmem:[%s9140_s22 + $0x100] sm:$0xff]  ;;  %v223_v36 = vld [vmem:[%s9140_s22 + $0x108] sm:$0xff]  ;;  %v7960_v38 = vcombine.low %v214_v23, %v218_v24  ;;  %v7962_v39 = vcombine.low %v215_v25, %v219_v26 }
  0x1f   : > { %6453 = vmatpush1.bf16.msra.mxu0 %v7944_v19  ;;  %6781 = vmatpush1.bf16.msra.mxu1 %v7946_v20  ;;  %v226_v32 = vld [vmem:[%s9140_s22 + $0x120] sm:$0xff]  ;;  %v227_v37 = vld [vmem:[%s9140_s22 + $0x128] sm:$0xff] }
  0x20   : > { %6454 = vmatprep.subr.bf16.mxu0 %v7953_v21  ;;  %6782 = vmatprep.subr.bf16.mxu1 %v7955_v22  ;;  %v7969_v40 = vcombine.high %v222_v31, %v226_v32  ;;  %v7971_v41 = vcombine.high %v223_v36, %v227_v37  ;;  %v230_v42 = vld [vmem:[%s9140_s22 + $0x140] sm:$0xff]  ;;  %v231_v46 = vld [vmem:[%s9140_s22 + $0x148] sm:$0xff]  ;;  %v7968_v48 = vcombine.low %v222_v31, %v226_v32 }
  0x21   : > { %v234_v43 = vld [vmem:[%s9140_s22 + $0x160] sm:$0xff]  ;;  %v235_v47 = vld [vmem:[%s9140_s22 + $0x168] sm:$0xff]  ;;  %v7970_v49 = vcombine.low %v223_v36, %v227_v37 }
  0x22   : > { %v7977_v50 = vcombine.high %v230_v42, %v234_v43  ;;  %v7979_v51 = vcombine.high %v231_v46, %v235_v47  ;;  %v238_v52 = vld [vmem:[%s9140_s22 + $0x180] sm:$0xff]  ;;  %v239_v55 = vld [vmem:[%s9140_s22 + $0x188] sm:$0xff]  ;;  %v7976_v57 = vcombine.low %v230_v42, %v234_v43  ;;  %v7978_v58 = vcombine.low %v231_v46, %v235_v47 }
  0x23   : > { %6455 = vmatpush1.bf16.msra.mxu0 %v7952_v27  ;;  %6783 = vmatpush1.bf16.msra.mxu1 %v7954_v28  ;;  %v242_v53 = vld [vmem:[%s9140_s22 + $0x1a0] sm:$0xff]  ;;  %v243_v56 = vld [vmem:[%s9140_s22 + $0x1a8] sm:$0xff] }
  0x24   : > { %6456 = vmatprep.subr.bf16.mxu0 %v7961_v29  ;;  %6784 = vmatprep.subr.bf16.mxu1 %v7963_v30  ;;  %v7985_v59 = vcombine.high %v238_v52, %v242_v53  ;;  %v9183_v60 = vld [vmem:[%s9135_s18] sm:$0xff]  ;;  %v7987_v61 = vcombine.high %v239_v55, %v243_v56  ;;  %v247_v1 = vld [vmem:[%s9140_s22 + $0x1c8] sm:$0xff]  ;;  %v7984_v3 = vcombine.low %v238_v52, %v242_v53 }
  0x25   : > { %v246_v62 = vld [vmem:[%s9140_s22 + $0x1c0] sm:$0xff]  ;;  %v9189_v0 = vrot.slane %v9183_v60, %v9178_v54  ;;  %v251_v2 = vld [vmem:[%s9140_s22 + $0x1e8] sm:$0xff]  ;;  %v7986_v5 = vcombine.low %v239_v55, %v243_v56 }
  0x26   : > { %v250_v63 = vld [vmem:[%s9140_s22 + $0x1e0] sm:$0xff]  ;;  %v7995_v7 = vcombine.high %v247_v1, %v251_v2  ;;  %v255_v11 = vld [vmem:[%s9140_s22 + $0x208] sm:$0xff]  ;;  %v7994_v14 = vcombine.low %v247_v1, %v251_v2 }
  0x27   : > { %6457 = vmatpush1.bf16.msra.mxu0 %v7960_v38  ;;  %6785 = vmatpush1.bf16.msra.mxu1 %v7962_v39  ;;  %v1231_v4 = vcombine.high %v9189_v0, %v9189_v0  ;;  %v7993_v6 = vcombine.high %v246_v62, %v250_v63  ;;  %v254_v8 = vld [vmem:[%s9140_s22 + $0x200] sm:$0xff]  ;;  %v259_v12 = vld [vmem:[%s9140_s22 + $0x228] sm:$0xff]  ;;  %v7992_v13 = vcombine.low %v246_v62, %v250_v63 }
  0x28   : > { %6458 = vmatprep.subr.bf16.mxu0 %v7969_v40  ;;  %6786 = vmatprep.subr.bf16.mxu1 %v7971_v41  ;;  %v258_v9 = vld [vmem:[%s9140_s22 + $0x220] sm:$0xff]  ;;  %v8003_v16 = vcombine.high %v255_v11, %v259_v12  ;;  %v263_v19 = vld [vmem:[%s9140_s22 + $0x248] sm:$0xff]  ;;  %v8002_v22 = vcombine.low %v255_v11, %v259_v12 }
  0x29   : > { %v9198_v10 = vrot.slane %v1231_v4, %v9178_v54  ;;  %v8001_v15 = vcombine.high %v254_v8, %v258_v9  ;;  %v262_v17 = vld [vmem:[%s9140_s22 + $0x240] sm:$0xff]  ;;  %v267_v20 = vld [vmem:[%s9140_s22 + $0x268] sm:$0xff]  ;;  %v8000_v21 = vcombine.low %v254_v8, %v258_v9 }
  0x2a   : > { %v266_v18 = vld [vmem:[%s9140_s22 + $0x260] sm:$0xff]  ;;  %v8011_v24 = vcombine.high %v263_v19, %v267_v20  ;;  %v271_v27 = vld [vmem:[%s9140_s22 + $0x288] sm:$0xff]  ;;  %v8010_v30 = vcombine.low %v263_v19, %v267_v20 }
  0x2b   : > { %6459 = vmatpush1.bf16.msra.mxu0 %v7968_v48  ;;  %6787 = vmatpush1.bf16.msra.mxu1 %v7970_v49  ;;  %v8009_v23 = vcombine.high %v262_v17, %v266_v18  ;;  %v270_v25 = vld [vmem:[%s9140_s22 + $0x280] sm:$0xff]  ;;  %v275_v28 = vld [vmem:[%s9140_s22 + $0x2a8] sm:$0xff]  ;;  %v8008_v29 = vcombine.low %v262_v17, %v266_v18 }
  0x2c   : > { %6460 = vmatprep.subr.bf16.mxu0 %v7977_v50  ;;  %6788 = vmatprep.subr.bf16.mxu1 %v7979_v51  ;;  %v274_v26 = vld [vmem:[%s9140_s22 + $0x2a0] sm:$0xff]  ;;  %v8019_v32 = vcombine.high %v271_v27, %v275_v28  ;;  %v279_v35 = vld [vmem:[%s9140_s22 + $0x2c8] sm:$0xff]  ;;  %v8018_v38 = vcombine.low %v271_v27, %v275_v28 }
  0x2d   : > { %6482 = vmatprep.mubr.bf16.mxu0 %v9198_v10  ;;  %6810 = vmatprep.mubr.bf16.mxu1 %v9198_v10  ;;  %v8017_v31 = vcombine.high %v270_v25, %v274_v26  ;;  %v278_v33 = vld [vmem:[%s9140_s22 + $0x2c0] sm:$0xff]  ;;  %v283_v36 = vld [vmem:[%s9140_s22 + $0x2e8] sm:$0xff]  ;;  %v8016_v37 = vcombine.low %v270_v25, %v274_v26 }
  0x2e   : > { %v282_v34 = vld [vmem:[%s9140_s22 + $0x2e0] sm:$0xff]  ;;  %v8027_v40 = vcombine.high %v279_v35, %v283_v36  ;;  %v287_v43 = vld [vmem:[%s9140_s22 + $0x308] sm:$0xff]  ;;  %v8026_v47 = vcombine.low %v279_v35, %v283_v36 }
  0x2f   : > { %6461 = vmatpush1.bf16.msra.mxu0 %v7976_v57  ;;  %6789 = vmatpush1.bf16.msra.mxu1 %v7978_v58  ;;  %v8025_v39 = vcombine.high %v278_v33, %v282_v34  ;;  %v286_v41 = vld [vmem:[%s9140_s22 + $0x300] sm:$0xff]  ;;  %v291_v44 = vld [vmem:[%s9140_s22 + $0x328] sm:$0xff]  ;;  %v8024_v46 = vcombine.low %v278_v33, %v282_v34  ;;  %v9248_v33 = vcombine.high %v9198_v10, %v9198_v10 }
  0x30   : > { %6462 = vmatprep.subr.bf16.mxu0 %v7985_v59  ;;  %6790 = vmatprep.subr.bf16.mxu1 %v7987_v61  ;;  %v290_v42 = vld [vmem:[%s9140_s22 + $0x320] sm:$0xff]  ;;  %v8035_v49 = vcombine.high %v287_v43, %v291_v44  ;;  %v295_v52 = vld [vmem:[%s9140_s22 + $0x348] sm:$0xff]  ;;  %v8034_v56 = vcombine.low %v287_v43, %v291_v44 }
  0x31   : > { %v8033_v48 = vcombine.high %v286_v41, %v290_v42  ;;  %v294_v50 = vld [vmem:[%s9140_s22 + $0x340] sm:$0xff]  ;;  %v299_v53 = vld [vmem:[%s9140_s22 + $0x368] sm:$0xff]  ;;  %v8032_v55 = vcombine.low %v286_v41, %v290_v42 }
  0x32   : > { %v298_v51 = vld [vmem:[%s9140_s22 + $0x360] sm:$0xff]  ;;  %v8043_v58 = vcombine.high %v295_v52, %v299_v53  ;;  %v303_v62 = vld [vmem:[%s9140_s22 + $0x388] sm:$0xff]  ;;  %v8042_v2 = vcombine.low %v295_v52, %v299_v53 }
  0x33   : > { %6463 = vmatpush1.bf16.msra.mxu0 %v7984_v3  ;;  %6791 = vmatpush1.bf16.msra.mxu1 %v7986_v5  ;;  %v8041_v57 = vcombine.high %v294_v50, %v298_v51  ;;  %v302_v59 = vld [vmem:[%s9140_s22 + $0x380] sm:$0xff]  ;;  %v307_v63 = vld [vmem:[%s9140_s22 + $0x3a8] sm:$0xff]  ;;  %v8040_v1 = vcombine.low %v294_v50, %v298_v51 }
  0x34   : > { %6464 = vmatprep.subr.bf16.mxu0 %v7993_v6  ;;  %6792 = vmatprep.subr.bf16.mxu1 %v7995_v7  ;;  %v306_v61 = vld [vmem:[%s9140_s22 + $0x3a0] sm:$0xff]  ;;  %v8051_v4 = vcombine.high %v303_v62, %v307_v63  ;;  %v311_v7 = vld [vmem:[%s9140_s22 + $0x3c8] sm:$0xff]  ;;  %v8050_v11 = vcombine.low %v303_v62, %v307_v63 }
  0x35   : > { %v8049_v3 = vcombine.high %v302_v59, %v306_v61  ;;  %v310_v5 = vld [vmem:[%s9140_s22 + $0x3c0] sm:$0xff]  ;;  %v315_v8 = vld [vmem:[%s9140_s22 + $0x3e8] sm:$0xff]  ;;  %v8048_v9 = vcombine.low %v302_v59, %v306_v61 }
  0x36   : > { %v314_v6 = vld [vmem:[%s9140_s22 + $0x3e0] sm:$0xff]  ;;  %v323_v17 = vld [vmem:[%s9140_s22 + $0x428] sm:$0xff]  ;;  %v8058_v19 = vcombine.low %v311_v7, %v315_v8 }
  0x37   : > { %6465 = vmatpush1.bf16.msra.mxu0 %v7992_v13  ;;  %6793 = vmatpush1.bf16.msra.mxu1 %v7994_v14  ;;  %v8057_v12 = vcombine.high %v310_v5, %v314_v6  ;;  %v8059_v13 = vcombine.high %v311_v7, %v315_v8  ;;  %v318_v14 = vld [vmem:[%s9140_s22 + $0x400] sm:$0xff]  ;;  %v8056_v18 = vcombine.low %v310_v5, %v314_v6  ;;  %v327_v25 = vld [vmem:[%s9140_s22 + $0x448] sm:$0xff] }
  0x38   : > { %6466 = vmatprep.subr.bf16.mxu0 %v8001_v15  ;;  %6794 = vmatprep.subr.bf16.mxu1 %v8003_v16  ;;  %v322_v15 = vld [vmem:[%s9140_s22 + $0x420] sm:$0xff]  ;;  %v319_v16 = vld [vmem:[%s9140_s22 + $0x408] sm:$0xff] }
  0x39   : > { %v8065_v20 = vcombine.high %v318_v14, %v322_v15  ;;  %v331_v26 = vld [vmem:[%s9140_s22 + $0x468] sm:$0xff]  ;;  %v8064_v27 = vcombine.low %v318_v14, %v322_v15  ;;  %v8066_v28 = vcombine.low %v319_v16, %v323_v17 }
  0x3a   : > { %v339_v34 = vld [vmem:[%s9140_s22 + $0x4a8] sm:$0xff]  ;;  %v8074_v36 = vcombine.low %v327_v25, %v331_v26 }
  0x3b   : > { %6467 = vmatpush1.bf16.msra.mxu0 %v8000_v21  ;;  %6795 = vmatpush1.bf16.msra.mxu1 %v8002_v22  ;;  %v8067_v21 = vcombine.high %v319_v16, %v323_v17  ;;  %v326_v22 = vld [vmem:[%s9140_s22 + $0x440] sm:$0xff]  ;;  %v343_v41 = vld [vmem:[%s9140_s22 + $0x4c8] sm:$0xff] }
  0x3c   : > { %6468 = vmatprep.subr.bf16.mxu0 %v8009_v23  ;;  %6796 = vmatprep.subr.bf16.mxu1 %v8011_v24  ;;  %v330_v23 = vld [vmem:[%s9140_s22 + $0x460] sm:$0xff]  ;;  %v9240_v24 = vrot.slane %v9189_v0, %v9178_v54  ;;  %v335_v0 = vld [vmem:[%s9140_s22 + $0x488] sm:$0xff] }
  0x3d   : > { %v8072_v35 = vcombine.low %v326_v22, %v330_v23  ;;  %v347_v42 = vld [vmem:[%s9140_s22 + $0x4e8] sm:$0xff]  ;;  %v8082_v44 = vcombine.low %v335_v0, %v339_v34 }
  0x3e   : > { %v351_v50 = vld [vmem:[%s9140_s22 + $0x508] sm:$0xff]  ;;  %v8090_v53 = vcombine.low %v343_v41, %v347_v42 }
  0x3f   : > { %6469 = vmatpush1.bf16.msra.mxu0 %v8008_v29  ;;  %6797 = vmatpush1.bf16.msra.mxu1 %v8010_v30  ;;  %v8073_v29 = vcombine.high %v326_v22, %v330_v23  ;;  %v8075_v30 = vcombine.high %v327_v25, %v331_v26  ;;  %v355_v51 = vld [vmem:[%s9140_s22 + $0x528] sm:$0xff] }
  0x40   : > { %6470 = vmatprep.subr.bf16.mxu0 %v8017_v31  ;;  %6798 = vmatprep.subr.bf16.mxu1 %v8019_v32  ;;  %v334_v31 = vld [vmem:[%s9140_s22 + $0x480] sm:$0xff]  ;;  %v359_v59 = vld [vmem:[%s9140_s22 + $0x548] sm:$0xff]  ;;  %v8098_v63 = vcombine.low %v351_v50, %v355_v51 }
  0x41   : > { %v338_v32 = vld [vmem:[%s9140_s22 + $0x4a0] sm:$0xff]  ;;  %v363_v61 = vld [vmem:[%s9140_s22 + $0x568] sm:$0xff] }
  0x42   : > { %v8080_v43 = vcombine.low %v334_v31, %v338_v32  ;;  %v367_v5 = vld [vmem:[%s9140_s22 + $0x588] sm:$0xff]  ;;  %v8106_v8 = vcombine.low %v359_v59, %v363_v61 }
  0x43   : > { %6471 = vmatpush1.bf16.msra.mxu0 %v8016_v37  ;;  %6799 = vmatpush1.bf16.msra.mxu1 %v8018_v38  ;;  %v8081_v37 = vcombine.high %v334_v31, %v338_v32  ;;  %v8083_v38 = vcombine.high %v335_v0, %v339_v34  ;;  %v371_v6 = vld [vmem:[%s9140_s22 + $0x5a8] sm:$0xff] }
  0x44   : > { %6472 = vmatprep.subr.bf16.mxu0 %v8025_v39  ;;  %6800 = vmatprep.subr.bf16.mxu1 %v8027_v40  ;;  %v342_v39 = vld [vmem:[%s9140_s22 + $0x4c0] sm:$0xff]  ;;  %v375_v14 = vld [vmem:[%s9140_s22 + $0x5c8] sm:$0xff]  ;;  %v8114_v17 = vcombine.low %v367_v5, %v371_v6 }
  0x45   : > { %v346_v40 = vld [vmem:[%s9140_s22 + $0x4e0] sm:$0xff]  ;;  %v379_v15 = vld [vmem:[%s9140_s22 + $0x5e8] sm:$0xff] }
  0x46   : > { %v8088_v52 = vcombine.low %v342_v39, %v346_v40  ;;  %v383_v22 = vld [vmem:[%s9140_s22 + $0x608] sm:$0xff]  ;;  %v8122_v26 = vcombine.low %v375_v14, %v379_v15 }
  0x47   : > { %6473 = vmatpush1.bf16.msra.mxu0 %v8024_v46  ;;  %6801 = vmatpush1.bf16.msra.mxu1 %v8026_v47  ;;  %v8089_v46 = vcombine.high %v342_v39, %v346_v40  ;;  %v8091_v47 = vcombine.high %v343_v41, %v347_v42  ;;  %v387_v23 = vld [vmem:[%s9140_s22 + $0x628] sm:$0xff] }
  0x48   : > { %6474 = vmatprep.subr.bf16.mxu0 %v8033_v48  ;;  %6802 = vmatprep.subr.bf16.mxu1 %v8035_v49  ;;  %v350_v48 = vld [vmem:[%s9140_s22 + $0x500] sm:$0xff]  ;;  %v391_v31 = vld [vmem:[%s9140_s22 + $0x648] sm:$0xff]  ;;  %v8130_v34 = vcombine.low %v383_v22, %v387_v23 }
  0x49   : > { %v354_v49 = vld [vmem:[%s9140_s22 + $0x520] sm:$0xff]  ;;  %v395_v32 = vld [vmem:[%s9140_s22 + $0x668] sm:$0xff] }
  0x4a   : > { %v8096_v62 = vcombine.low %v350_v48, %v354_v49  ;;  %v399_v39 = vld [vmem:[%s9140_s22 + $0x688] sm:$0xff]  ;;  %v8138_v42 = vcombine.low %v391_v31, %v395_v32 }
  0x4b   : > { %6475 = vmatpush1.bf16.msra.mxu0 %v8032_v55  ;;  %6803 = vmatpush1.bf16.msra.mxu1 %v8034_v56  ;;  %v8097_v55 = vcombine.high %v350_v48, %v354_v49  ;;  %v8099_v56 = vcombine.high %v351_v50, %v355_v51  ;;  %v403_v40 = vld [vmem:[%s9140_s22 + $0x6a8] sm:$0xff] }
  0x4c   : > { %6476 = vmatprep.subr.bf16.mxu0 %v8041_v57  ;;  %6804 = vmatprep.subr.bf16.mxu1 %v8043_v58  ;;  %v358_v57 = vld [vmem:[%s9140_s22 + $0x540] sm:$0xff]  ;;  %v407_v48 = vld [vmem:[%s9140_s22 + $0x6c8] sm:$0xff]  ;;  %v8146_v51 = vcombine.low %v399_v39, %v403_v40 }
  0x4d   : > { %v362_v58 = vld [vmem:[%s9140_s22 + $0x560] sm:$0xff]  ;;  %v411_v49 = vld [vmem:[%s9140_s22 + $0x6e8] sm:$0xff] }
  0x4e   : > { %v8104_v7 = vcombine.low %v358_v57, %v362_v58 }
  0x4f   : > { %6477 = vmatpush1.bf16.msra.mxu0 %v8040_v1  ;;  %6805 = vmatpush1.bf16.msra.mxu1 %v8042_v2  ;;  %v8105_v1 = vcombine.high %v358_v57, %v362_v58  ;;  %v8107_v2 = vcombine.high %v359_v59, %v363_v61  ;;  %v415_v57 = vld [vmem:[%s9140_s22 + $0x708] sm:$0xff]  ;;  %v8154_v61 = vcombine.low %v407_v48, %v411_v49 }
  0x50   : > { %6478 = vmatprep.subr.bf16.mxu0 %v8049_v3  ;;  %6806 = vmatprep.subr.bf16.mxu1 %v8051_v4  ;;  %v366_v3 = vld [vmem:[%s9140_s22 + $0x580] sm:$0xff]  ;;  %v419_v58 = vld [vmem:[%s9140_s22 + $0x728] sm:$0xff] }
  0x51   : > { %v370_v4 = vld [vmem:[%s9140_s22 + $0x5a0] sm:$0xff] }
  0x52   : > { %v8112_v16 = vcombine.low %v366_v3, %v370_v4 }
  0x53   : > { %6479 = vmatpush1.bf16.msra.mxu0 %v8048_v9  ;;  %6807 = vmatpush1.bf16.msra.mxu1 %v8050_v11  ;;  %v8113_v9 = vcombine.high %v366_v3, %v370_v4  ;;  %v8115_v11 = vcombine.high %v367_v5, %v371_v6  ;;  %v423_v3 = vld [vmem:[%s9140_s22 + $0x748] sm:$0xff]  ;;  %v8162_v6 = vcombine.low %v415_v57, %v419_v58 }
  0x54   : > { %6480 = vmatprep.subr.bf16.mxu0 %v8057_v12  ;;  %6808 = vmatprep.subr.bf16.mxu1 %v8059_v13  ;;  %v374_v12 = vld [vmem:[%s9140_s22 + $0x5c0] sm:$0xff]  ;;  %v427_v4 = vld [vmem:[%s9140_s22 + $0x768] sm:$0xff] }
  0x55   : > { %v378_v13 = vld [vmem:[%s9140_s22 + $0x5e0] sm:$0xff] }
  0x56   : > { %v8120_v25 = vcombine.low %v374_v12, %v378_v13 }
  0x57   : > { %6481 = vmatpush1.bf16.msra.mxu0 %v8056_v18  ;;  %6809 = vmatpush1.bf16.msra.mxu1 %v8058_v19  ;;  %v8121_v18 = vcombine.high %v374_v12, %v378_v13  ;;  %v8123_v19 = vcombine.high %v375_v14, %v379_v15  ;;  %v431_v12 = vld [vmem:[%s9140_s22 + $0x788] sm:$0xff]  ;;  %v8170_v15 = vcombine.low %v423_v3, %v427_v4 }
  0x58   : > { %6491 = vmatprep.subr.bf16.mxu0 %v8065_v20  ;;  %6819 = vmatprep.subr.bf16.mxu1 %v8067_v21  ;;  %v382_v20 = vld [vmem:[%s9140_s22 + $0x600] sm:$0xff]  ;;  %v435_v13 = vld [vmem:[%s9140_s22 + $0x7a8] sm:$0xff] }
  0x59   : > { %v386_v21 = vld [vmem:[%s9140_s22 + $0x620] sm:$0xff] }
  0x5a   : > { %6483 = vmatmul.mubr.bf16.vlgmr.msra.gmra.mrb[0].mxu0 %v9240_v24  ;;  %6811 = vmatmul.mubr.bf16.vlgmr.msra.gmra.mrb[0].mxu1 %v9240_v24  ;;  %v8128_v0 = vcombine.low %v382_v20, %v386_v21 }
  0x5b   : > { %6492 = vmatpush1.bf16.msra.mxu0 %v8064_v27  ;;  %6820 = vmatpush1.bf16.msra.mxu1 %v8066_v28  ;;  %v8129_v27 = vcombine.high %v382_v20, %v386_v21  ;;  %v8131_v28 = vcombine.high %v383_v22, %v387_v23  ;;  %v1216_v20 = vcombine.high %v9183_v60, %v9183_v60  ;;  %v439_v21 = vld [vmem:[%s9140_s22 + $0x7c8] sm:$0xff] }
  0x5c   : > { %6493 = vmatprep.subr.bf16.mxu0 %v8073_v29  ;;  %6821 = vmatprep.subr.bf16.mxu1 %v8075_v30  ;;  %v390_v29 = vld [vmem:[%s9140_s22 + $0x640] sm:$0xff]  ;;  %v443_v22 = vld [vmem:[%s9140_s22 + $0x7e8] sm:$0xff] }
  0x5d   : > { %6523 = vmatprep.mubr.bf16.mxu0 %v9248_v33  ;;  %6851 = vmatprep.mubr.bf16.mxu1 %v9248_v33  ;;  %v394_v30 = vld [vmem:[%s9140_s22 + $0x660] sm:$0xff]  ;;  %v447_v60 = vld [vmem:[%s9140_s22 + $0x808] sm:$0xff] }
  0x5e   : > { %v8136_v41 = vcombine.low %v390_v29, %v394_v30 }
  0x5f   : > { %6494 = vmatpush1.bf16.msra.mxu0 %v8072_v35  ;;  %6822 = vmatpush1.bf16.msra.mxu1 %v8074_v36  ;;  %v8137_v35 = vcombine.high %v390_v29, %v394_v30  ;;  %v8139_v36 = vcombine.high %v391_v31, %v395_v32  ;;  %v450_v29 = vld [vmem:[%s9140_s22 + $0x820] sm:$0xff]  ;;  %v9313_v30 = vrot.slane %v1216_v20, %v9178_v54  ;;  %v451_v31 = vld [vmem:[%s9140_s22 + $0x828] sm:$0xff] }
  0x60   : > { %6495 = vmatprep.subr.bf16.mxu0 %v8081_v37  ;;  %6823 = vmatprep.subr.bf16.mxu1 %v8083_v38  ;;  %v398_v37 = vld [vmem:[%s9140_s22 + $0x680] sm:$0xff] }
  0x61   : > { %v402_v38 = vld [vmem:[%s9140_s22 + $0x6a0] sm:$0xff] }
  0x62   : > { %v8144_v50 = vcombine.low %v398_v37, %v402_v38  ;;  %v494_v20 = vld [vmem:[%s9140_s22 + $0x980] sm:$0xff] }
  0x63   : > { %6496 = vmatpush1.bf16.msra.mxu0 %v8080_v43  ;;  %6824 = vmatpush1.bf16.msra.mxu1 %v8082_v44  ;;  %v8145_v43 = vcombine.high %v398_v37, %v402_v38  ;;  %v8147_v44 = vcombine.high %v399_v39, %v403_v40  ;;  %v458_v37 = vld [vmem:[%s9140_s22 + $0x860] sm:$0xff]  ;;  %v1232_v38 = vcombine.high %v9313_v30, %v9313_v30  ;;  %v455_v40 = vld [vmem:[%s9140_s22 + $0x848] sm:$0xff] }
  0x64   : > { %6497 = vmatprep.subr.bf16.mxu0 %v8089_v46  ;;  %6825 = vmatprep.subr.bf16.mxu1 %v8091_v47  ;;  %v406_v46 = vld [vmem:[%s9140_s22 + $0x6c0] sm:$0xff]  ;;  %v9323_v39 = vcombine.high %v9240_v24, %v9240_v24 }
  0x65   : > { %v410_v47 = vld [vmem:[%s9140_s22 + $0x6e0] sm:$0xff] }
  0x66   : > { %v8152_v59 = vcombine.low %v406_v46, %v410_v47 }
  0x67   : > { %6498 = vmatpush1.bf16.msra.mxu0 %v8088_v52  ;;  %6826 = vmatpush1.bf16.msra.mxu1 %v8090_v53  ;;  %v8153_v52 = vcombine.high %v406_v46, %v410_v47  ;;  %v8155_v53 = vcombine.high %v407_v48, %v411_v49  ;;  %v462_v47 = vld [vmem:[%s9140_s22 + $0x880] sm:$0xff]  ;;  %v9330_v49 = vrot.slane %v1232_v38, %v9178_v54 }
  0x68   : > { %6499 = vmatprep.subr.bf16.mxu0 %v8097_v55  ;;  %6827 = vmatprep.subr.bf16.mxu1 %v8099_v56  ;;  %v414_v55 = vld [vmem:[%s9140_s22 + $0x700] sm:$0xff] }
  0x69   : > { %v418_v56 = vld [vmem:[%s9140_s22 + $0x720] sm:$0xff] }
  0x6a   : > { %v8160_v5 = vcombine.low %v414_v55, %v418_v56  ;;  %v466_v48 = vld [vmem:[%s9140_s22 + $0x8a0] sm:$0xff] }
  0x6b   : > { %6500 = vmatpush1.bf16.msra.mxu0 %v8096_v62  ;;  %6828 = vmatpush1.bf16.msra.mxu1 %v8098_v63  ;;  %v8161_v62 = vcombine.high %v414_v55, %v418_v56  ;;  %v8163_v63 = vcombine.high %v415_v57, %v419_v58  ;;  %v8209_v55 = vcombine.high %v462_v47, %v466_v48  ;;  %v470_v57 = vld [vmem:[%s9140_s22 + $0x8c0] sm:$0xff] }
  0x6c   : > { %6501 = vmatprep.subr.bf16.mxu0 %v8105_v1  ;;  %6829 = vmatprep.subr.bf16.mxu1 %v8107_v2  ;;  %v422_v1 = vld [vmem:[%s9140_s22 + $0x740] sm:$0xff] }
  0x6d   : > { %v426_v2 = vld [vmem:[%s9140_s22 + $0x760] sm:$0xff] }
  0x6e   : > { %v8168_v14 = vcombine.low %v422_v1, %v426_v2  ;;  %v474_v58 = vld [vmem:[%s9140_s22 + $0x8e0] sm:$0xff] }
  0x6f   : > { %6502 = vmatpush1.bf16.msra.mxu0 %v8104_v7  ;;  %6830 = vmatpush1.bf16.msra.mxu1 %v8106_v8  ;;  %v8169_v7 = vcombine.high %v422_v1, %v426_v2  ;;  %v8171_v8 = vcombine.high %v423_v3, %v427_v4  ;;  %v8217_v1 = vcombine.high %v470_v57, %v474_v58  ;;  %v478_v3 = vld [vmem:[%s9140_s22 + $0x900] sm:$0xff] }
  0x70   : > { %6503 = vmatprep.subr.bf16.mxu0 %v8113_v9  ;;  %6831 = vmatprep.subr.bf16.mxu1 %v8115_v11  ;;  %v430_v9 = vld [vmem:[%s9140_s22 + $0x780] sm:$0xff] }
  0x71   : > { %v434_v11 = vld [vmem:[%s9140_s22 + $0x7a0] sm:$0xff] }
  0x72   : > { %v8176_v23 = vcombine.low %v430_v9, %v434_v11  ;;  %v482_v4 = vld [vmem:[%s9140_s22 + $0x920] sm:$0xff] }
  0x73   : > { %6504 = vmatpush1.bf16.msra.mxu0 %v8112_v16  ;;  %6832 = vmatpush1.bf16.msra.mxu1 %v8114_v17  ;;  %v8177_v16 = vcombine.high %v430_v9, %v434_v11  ;;  %v8179_v17 = vcombine.high %v431_v12, %v435_v13  ;;  %v8225_v9 = vcombine.high %v478_v3, %v482_v4  ;;  %v514_v38 = vld [vmem:[%s9140_s22 + $0xa20] sm:$0xff] }
  0x74   : > { %6505 = vmatprep.subr.bf16.mxu0 %v8121_v18  ;;  %6833 = vmatprep.subr.bf16.mxu1 %v8123_v19  ;;  %v438_v18 = vld [vmem:[%s9140_s22 + $0x7c0] sm:$0xff] }
  0x75   : > { %v442_v19 = vld [vmem:[%s9140_s22 + $0x7e0] sm:$0xff] }
  0x76   : > { %v8184_v32 = vcombine.low %v438_v18, %v442_v19 }
  0x77   : > { %6506 = vmatpush1.bf16.msra.mxu0 %v8120_v25  ;;  %6834 = vmatpush1.bf16.msra.mxu1 %v8122_v26  ;;  %v8178_v25 = vcombine.low %v431_v12, %v435_v13  ;;  %v8185_v26 = vcombine.high %v438_v18, %v442_v19  ;;  %v486_v12 = vld [vmem:[%s9140_s22 + $0x940] sm:$0xff] }
  0x78   : > { %6507 = vmatprep.subr.bf16.mxu0 %v8129_v27  ;;  %6835 = vmatprep.subr.bf16.mxu1 %v8131_v28  ;;  %v8187_v27 = vcombine.high %v439_v21, %v443_v22  ;;  %v446_v28 = vld [vmem:[%s9140_s22 + $0x800] sm:$0xff] }
  0x79   : > { %v490_v13 = vld [vmem:[%s9140_s22 + $0x960] sm:$0xff] }
  0x7a   : > { %v8233_v18 = vcombine.high %v486_v12, %v490_v13 }
  0x7b   : > { %6508 = vmatpush1.bf16.msra.mxu0 %v8128_v0  ;;  %6836 = vmatpush1.bf16.msra.mxu1 %v8130_v34  ;;  %v8186_v0 = vcombine.low %v439_v21, %v443_v22  ;;  %v8193_v34 = vcombine.high %v446_v28, %v450_v29  ;;  %v498_v21 = vld [vmem:[%s9140_s22 + $0x9a0] sm:$0xff]  ;;  %v495_v22 = vld [vmem:[%s9140_s22 + $0x988] sm:$0xff] }
  0x7c   : > { %6509 = vmatprep.subr.bf16.mxu0 %v8137_v35  ;;  %6837 = vmatprep.subr.bf16.mxu1 %v8139_v36  ;;  %v8195_v35 = vcombine.high %v447_v60, %v451_v31  ;;  %v454_v36 = vld [vmem:[%s9140_s22 + $0x840] sm:$0xff] }
  0x7f   : > { %6510 = vmatpush1.bf16.msra.mxu0 %v8136_v41  ;;  %6838 = vmatpush1.bf16.msra.mxu1 %v8138_v42  ;;  %v459_v41 = vld [vmem:[%s9140_s22 + $0x868] sm:$0xff]  ;;  %v8192_v42 = vcombine.low %v446_v28, %v450_v29  ;;  %v502_v29 = vld [vmem:[%s9140_s22 + $0x9c0] sm:$0xff] }
  0x80   : > { %6511 = vmatprep.subr.bf16.mxu0 %v8145_v43  ;;  %6839 = vmatprep.subr.bf16.mxu1 %v8147_v44  ;;  %v8194_v43 = vcombine.low %v447_v60, %v451_v31  ;;  %v8201_v44 = vcombine.high %v454_v36, %v458_v37  ;;  %v8203_v46 = vcombine.high %v455_v40, %v459_v41  ;;  %v506_v60 = vld [vmem:[%s9140_s22 + $0x9e0] sm:$0xff]  ;;  %v503_v31 = vld [vmem:[%s9140_s22 + $0x9c8] sm:$0xff] }
  0x83   : > { %6512 = vmatpush1.bf16.msra.mxu0 %v8144_v50  ;;  %6840 = vmatpush1.bf16.msra.mxu1 %v8146_v51  ;;  %v463_v50 = vld [vmem:[%s9140_s22 + $0x888] sm:$0xff] }
  0x84   : > { %6513 = vmatprep.subr.bf16.mxu0 %v8153_v52  ;;  %6841 = vmatprep.subr.bf16.mxu1 %v8155_v53  ;;  %v467_v51 = vld [vmem:[%s9140_s22 + $0x8a8] sm:$0xff]  ;;  %v8200_v52 = vcombine.low %v454_v36, %v458_v37  ;;  %v8202_v53 = vcombine.low %v455_v40, %v459_v41  ;;  %v510_v37 = vld [vmem:[%s9140_s22 + $0xa00] sm:$0xff] }
  0x85   : > { %v8211_v56 = vcombine.high %v463_v50, %v467_v51  ;;  %v511_v40 = vld [vmem:[%s9140_s22 + $0xa08] sm:$0xff] }
  0x86   : > { %v515_v41 = vld [vmem:[%s9140_s22 + $0xa28] sm:$0xff] }
  0x87   : > { %6514 = vmatpush1.bf16.msra.mxu0 %v8152_v59  ;;  %6842 = vmatpush1.bf16.msra.mxu1 %v8154_v61  ;;  %v471_v59 = vld [vmem:[%s9140_s22 + $0x8c8] sm:$0xff] }
  0x88   : > { %6515 = vmatprep.subr.bf16.mxu0 %v8161_v62  ;;  %6843 = vmatprep.subr.bf16.mxu1 %v8163_v63  ;;  %v475_v61 = vld [vmem:[%s9140_s22 + $0x8e8] sm:$0xff]  ;;  %v8208_v62 = vcombine.low %v462_v47, %v466_v48  ;;  %v8210_v63 = vcombine.low %v463_v50, %v467_v51  ;;  %v518_v47 = vld [vmem:[%s9140_s22 + $0xa40] sm:$0xff] }
  0x89   : > { %v8219_v2 = vcombine.high %v471_v59, %v475_v61  ;;  %v522_v48 = vld [vmem:[%s9140_s22 + $0xa60] sm:$0xff]  ;;  %v519_v50 = vld [vmem:[%s9140_s22 + $0xa48] sm:$0xff] }
  0x8a   : > { %v523_v51 = vld [vmem:[%s9140_s22 + $0xa68] sm:$0xff] }
  0x8b   : > { %6516 = vmatpush1.bf16.msra.mxu0 %v8160_v5  ;;  %6844 = vmatpush1.bf16.msra.mxu1 %v8162_v6  ;;  %v479_v5 = vld [vmem:[%s9140_s22 + $0x908] sm:$0xff] }
  0x8c   : > { %6517 = vmatprep.subr.bf16.mxu0 %v8169_v7  ;;  %6845 = vmatprep.subr.bf16.mxu1 %v8171_v8  ;;  %v483_v6 = vld [vmem:[%s9140_s22 + $0x928] sm:$0xff]  ;;  %v8216_v7 = vcombine.low %v470_v57, %v474_v58  ;;  %v8218_v8 = vcombine.low %v471_v59, %v475_v61  ;;  %v526_v57 = vld [vmem:[%s9140_s22 + $0xa80] sm:$0xff] }
  0x8d   : > { %v8227_v11 = vcombine.high %v479_v5, %v483_v6  ;;  %v530_v58 = vld [vmem:[%s9140_s22 + $0xaa0] sm:$0xff]  ;;  %v527_v59 = vld [vmem:[%s9140_s22 + $0xa88] sm:$0xff] }
  0x8e   : > { %v531_v61 = vld [vmem:[%s9140_s22 + $0xaa8] sm:$0xff] }
  0x8f   : > { %6518 = vmatpush1.bf16.msra.mxu0 %v8168_v14  ;;  %6846 = vmatpush1.bf16.msra.mxu1 %v8170_v15  ;;  %v487_v14 = vld [vmem:[%s9140_s22 + $0x948] sm:$0xff] }
  0x90   : > { %6519 = vmatprep.subr.bf16.mxu0 %v8177_v16  ;;  %6847 = vmatprep.subr.bf16.mxu1 %v8179_v17  ;;  %v491_v15 = vld [vmem:[%s9140_s22 + $0x968] sm:$0xff]  ;;  %v8224_v16 = vcombine.low %v478_v3, %v482_v4  ;;  %v8226_v17 = vcombine.low %v479_v5, %v483_v6  ;;  %v534_v3 = vld [vmem:[%s9140_s22 + $0xac0] sm:$0xff] }
  0x91   : > { %v8235_v19 = vcombine.high %v487_v14, %v491_v15  ;;  %v538_v4 = vld [vmem:[%s9140_s22 + $0xae0] sm:$0xff]  ;;  %v535_v5 = vld [vmem:[%s9140_s22 + $0xac8] sm:$0xff] }
  0x92   : > { %v539_v6 = vld [vmem:[%s9140_s22 + $0xae8] sm:$0xff] }
  0x93   : > { %6520 = vmatpush1.bf16.msra.mxu0 %v8176_v23  ;;  %6848 = vmatpush1.bf16.msra.mxu1 %v8178_v25  ;;  %v499_v23 = vld [vmem:[%s9140_s22 + $0x9a8] sm:$0xff]  ;;  %v8232_v25 = vcombine.low %v486_v12, %v490_v13  ;;  %v542_v12 = vld [vmem:[%s9140_s22 + $0xb00] sm:$0xff] }
  0x94   : > { %6521 = vmatprep.subr.bf16.mxu0 %v8185_v26  ;;  %6849 = vmatprep.subr.bf16.mxu1 %v8187_v27  ;;  %v8234_v26 = vcombine.low %v487_v14, %v491_v15  ;;  %v8241_v27 = vcombine.high %v494_v20, %v498_v21  ;;  %v8243_v28 = vcombine.high %v495_v22, %v499_v23  ;;  %v546_v13 = vld [vmem:[%s9140_s22 + $0xb20] sm:$0xff]  ;;  %v543_v14 = vld [vmem:[%s9140_s22 + $0xb08] sm:$0xff] }
  0x95   : > { %v547_v15 = vld [vmem:[%s9140_s22 + $0xb28] sm:$0xff] }
  0x97   : > { %6522 = vmatpush1.bf16.msra.mxu0 %v8184_v32  ;;  %6850 = vmatpush1.bf16.msra.mxu1 %v8186_v0  ;;  %v507_v32 = vld [vmem:[%s9140_s22 + $0x9e8] sm:$0xff]  ;;  %v8240_v0 = vcombine.low %v494_v20, %v498_v21  ;;  %v550_v20 = vld [vmem:[%s9140_s22 + $0xb40] sm:$0xff] }
  0x98   : > { %6532 = vmatprep.subr.bf16.mxu0 %v8193_v34  ;;  %6860 = vmatprep.subr.bf16.mxu1 %v8195_v35  ;;  %v8242_v34 = vcombine.low %v495_v22, %v499_v23  ;;  %v8249_v35 = vcombine.high %v502_v29, %v506_v60  ;;  %v8251_v36 = vcombine.high %v503_v31, %v507_v32  ;;  %v554_v21 = vld [vmem:[%s9140_s22 + $0xb60] sm:$0xff]  ;;  %v551_v22 = vld [vmem:[%s9140_s22 + $0xb48] sm:$0xff] }
  0x99   : > { %v555_v23 = vld [vmem:[%s9140_s22 + $0xb68] sm:$0xff] }
  0x9a   : > { %6524 = vmatmul.mubr.bf16.vlgmr.msra.gmra.mrb[0].mxu0 %v9323_v39  ;;  %6852 = vmatmul.mubr.bf16.vlgmr.msra.gmra.mrb[0].mxu1 %v9323_v39 }
  0x9b   : > { %6533 = vmatpush1.bf16.msra.mxu0 %v8192_v42  ;;  %6861 = vmatpush1.bf16.msra.mxu1 %v8194_v43  ;;  %v8248_v42 = vcombine.low %v502_v29, %v506_v60  ;;  %v8250_v43 = vcombine.low %v503_v31, %v507_v32  ;;  %v558_v29 = vld [vmem:[%s9140_s22 + $0xb80] sm:$0xff]  ;;  %v559_v31 = vld [vmem:[%s9140_s22 + $0xb88] sm:$0xff] }
  0x9c   : > { %6534 = vmatprep.subr.bf16.mxu0 %v8201_v44  ;;  %6862 = vmatprep.subr.bf16.mxu1 %v8203_v46  ;;  %v8257_v44 = vcombine.high %v510_v37, %v514_v38  ;;  %v8259_v46 = vcombine.high %v511_v40, %v515_v41  ;;  %v562_v60 = vld [vmem:[%s9140_s22 + $0xba0] sm:$0xff]  ;;  %v563_v32 = vld [vmem:[%s9140_s22 + $0xba8] sm:$0xff] }
  0x9d   : > { %6564 = vmatprep.mubr.bf16.mxu0 %v9330_v49  ;;  %6892 = vmatprep.mubr.bf16.mxu1 %v9330_v49 }
  0x9f   : > { %6535 = vmatpush1.bf16.msra.mxu0 %v8200_v52  ;;  %6863 = vmatpush1.bf16.msra.mxu1 %v8202_v53  ;;  %v8256_v52 = vcombine.low %v510_v37, %v514_v38  ;;  %v8258_v53 = vcombine.low %v511_v40, %v515_v41  ;;  %v566_v37 = vld [vmem:[%s9140_s22 + $0xbc0] sm:$0xff]  ;;  %v567_v40 = vld [vmem:[%s9140_s22 + $0xbc8] sm:$0xff] }
  0xa0   : > { %6536 = vmatprep.subr.bf16.mxu0 %v8209_v55  ;;  %6864 = vmatprep.subr.bf16.mxu1 %v8211_v56  ;;  %v8265_v55 = vcombine.high %v518_v47, %v522_v48  ;;  %v8267_v56 = vcombine.high %v519_v50, %v523_v51  ;;  %v570_v38 = vld [vmem:[%s9140_s22 + $0xbe0] sm:$0xff]  ;;  %v571_v41 = vld [vmem:[%s9140_s22 + $0xbe8] sm:$0xff] }
  0xa3   : > { %6537 = vmatpush1.bf16.msra.mxu0 %v8208_v62  ;;  %6865 = vmatpush1.bf16.msra.mxu1 %v8210_v63  ;;  %v8264_v62 = vcombine.low %v518_v47, %v522_v48  ;;  %v8266_v63 = vcombine.low %v519_v50, %v523_v51  ;;  %v574_v47 = vld [vmem:[%s9140_s22 + $0xc00] sm:$0xff]  ;;  %v575_v50 = vld [vmem:[%s9140_s22 + $0xc08] sm:$0xff] }
  0xa4   : > { %6538 = vmatprep.subr.bf16.mxu0 %v8217_v1  ;;  %6866 = vmatprep.subr.bf16.mxu1 %v8219_v2  ;;  %v8273_v1 = vcombine.high %v526_v57, %v530_v58  ;;  %v8275_v2 = vcombine.high %v527_v59, %v531_v61  ;;  %v578_v48 = vld [vmem:[%s9140_s22 + $0xc20] sm:$0xff]  ;;  %v579_v51 = vld [vmem:[%s9140_s22 + $0xc28] sm:$0xff] }
  0xa7   : > { %6539 = vmatpush1.bf16.msra.mxu0 %v8216_v7  ;;  %6867 = vmatpush1.bf16.msra.mxu1 %v8218_v8  ;;  %v8272_v7 = vcombine.low %v526_v57, %v530_v58  ;;  %v8274_v8 = vcombine.low %v527_v59, %v531_v61  ;;  %v582_v57 = vld [vmem:[%s9140_s22 + $0xc40] sm:$0xff]  ;;  %v9398_v59 = vrot.slane %v9313_v30, %v9178_v54  ;;  %v583_v61 = vld [vmem:[%s9140_s22 + $0xc48] sm:$0xff] }
  0xa8   : > { %6540 = vmatprep.subr.bf16.mxu0 %v8225_v9  ;;  %6868 = vmatprep.subr.bf16.mxu1 %v8227_v11  ;;  %v8281_v9 = vcombine.high %v534_v3, %v538_v4  ;;  %v8283_v11 = vcombine.high %v535_v5, %v539_v6  ;;  %v586_v58 = vld [vmem:[%s9140_s22 + $0xc60] sm:$0xff]  ;;  %v591_v30 = vld [vmem:[%s9140_s22 + $0xc88] sm:$0xff] }
  0xab   : > { %6541 = vmatpush1.bf16.msra.mxu0 %v8224_v16  ;;  %6869 = vmatpush1.bf16.msra.mxu1 %v8226_v17  ;;  %v8280_v16 = vcombine.low %v534_v3, %v538_v4  ;;  %v8282_v17 = vcombine.low %v535_v5, %v539_v6  ;;  %v590_v4 = vld [vmem:[%s9140_s22 + $0xc80] sm:$0xff]  ;;  %v9406_v6 = vcombine.high %v9330_v49, %v9330_v49 }
  0xac   : > { %6542 = vmatprep.subr.bf16.mxu0 %v8233_v18  ;;  %6870 = vmatprep.subr.bf16.mxu1 %v8235_v19  ;;  %v8289_v18 = vcombine.high %v542_v12, %v546_v13  ;;  %v8291_v19 = vcombine.high %v543_v14, %v547_v15  ;;  %v594_v5 = vld [vmem:[%s9140_s22 + $0xca0] sm:$0xff] }
  0xaf   : > { %6543 = vmatpush1.bf16.msra.mxu0 %v8232_v25  ;;  %6871 = vmatpush1.bf16.msra.mxu1 %v8234_v26  ;;  %v8288_v25 = vcombine.low %v542_v12, %v546_v13  ;;  %v8290_v26 = vcombine.low %v543_v14, %v547_v15  ;;  %v598_v13 = vld [vmem:[%s9140_s22 + $0xcc0] sm:$0xff]  ;;  %v599_v15 = vld [vmem:[%s9140_s22 + $0xcc8] sm:$0xff] }
  0xb0   : > { %6544 = vmatprep.subr.bf16.mxu0 %v8241_v27  ;;  %6872 = vmatprep.subr.bf16.mxu1 %v8243_v28  ;;  %v8297_v27 = vcombine.high %v550_v20, %v554_v21  ;;  %v8299_v28 = vcombine.high %v551_v22, %v555_v23  ;;  %v602_v14 = vld [vmem:[%s9140_s22 + $0xce0] sm:$0xff] }
  0xb3   : > { %6545 = vmatpush1.bf16.msra.mxu0 %v8240_v0  ;;  %6873 = vmatpush1.bf16.msra.mxu1 %v8242_v34  ;;  %v8296_v0 = vcombine.low %v550_v20, %v554_v21  ;;  %v8298_v34 = vcombine.low %v551_v22, %v555_v23  ;;  %v606_v21 = vld [vmem:[%s9140_s22 + $0xd00] sm:$0xff]  ;;  %v607_v23 = vld [vmem:[%s9140_s22 + $0xd08] sm:$0xff] }
  0xb4   : > { %6546 = vmatprep.subr.bf16.mxu0 %v8249_v35  ;;  %6874 = vmatprep.subr.bf16.mxu1 %v8251_v36  ;;  %v8305_v35 = vcombine.high %v558_v29, %v562_v60  ;;  %v8307_v36 = vcombine.high %v559_v31, %v563_v32  ;;  %v610_v22 = vld [vmem:[%s9140_s22 + $0xd20] sm:$0xff] }
  0xb7   : > { %6547 = vmatpush1.bf16.msra.mxu0 %v8248_v42  ;;  %6875 = vmatpush1.bf16.msra.mxu1 %v8250_v43  ;;  %v8304_v42 = vcombine.low %v558_v29, %v562_v60  ;;  %v8306_v43 = vcombine.low %v559_v31, %v563_v32  ;;  %v614_v60 = vld [vmem:[%s9140_s22 + $0xd40] sm:$0xff]  ;;  %v615_v32 = vld [vmem:[%s9140_s22 + $0xd48] sm:$0xff] }
  0xb8   : > { %6548 = vmatprep.subr.bf16.mxu0 %v8257_v44  ;;  %6876 = vmatprep.subr.bf16.mxu1 %v8259_v46  ;;  %v8313_v44 = vcombine.high %v566_v37, %v570_v38  ;;  %v8315_v46 = vcombine.high %v567_v40, %v571_v41  ;;  %v618_v31 = vld [vmem:[%s9140_s22 + $0xd60] sm:$0xff] }
  0xbb   : > { %6549 = vmatpush1.bf16.msra.mxu0 %v8256_v52  ;;  %6877 = vmatpush1.bf16.msra.mxu1 %v8258_v53  ;;  %v8312_v52 = vcombine.low %v566_v37, %v570_v38  ;;  %v8314_v53 = vcombine.low %v567_v40, %v571_v41  ;;  %v622_v38 = vld [vmem:[%s9140_s22 + $0xd80] sm:$0xff]  ;;  %v623_v41 = vld [vmem:[%s9140_s22 + $0xd88] sm:$0xff] }
  0xbc   : > { %6550 = vmatprep.subr.bf16.mxu0 %v8265_v55  ;;  %6878 = vmatprep.subr.bf16.mxu1 %v8267_v56  ;;  %v8321_v55 = vcombine.high %v574_v47, %v578_v48  ;;  %v8323_v56 = vcombine.high %v575_v50, %v579_v51  ;;  %v626_v40 = vld [vmem:[%s9140_s22 + $0xda0] sm:$0xff] }
  0xbf   : > { %6551 = vmatpush1.bf16.msra.mxu0 %v8264_v62  ;;  %6879 = vmatpush1.bf16.msra.mxu1 %v8266_v63  ;;  %v587_v62 = vld [vmem:[%s9140_s22 + $0xc68] sm:$0xff]  ;;  %v8320_v63 = vcombine.low %v574_v47, %v578_v48  ;;  %v630_v48 = vld [vmem:[%s9140_s22 + $0xdc0] sm:$0xff] }
  0xc0   : > { %6552 = vmatprep.subr.bf16.mxu0 %v8273_v1  ;;  %6880 = vmatprep.subr.bf16.mxu1 %v8275_v2  ;;  %v8322_v1 = vcombine.low %v575_v50, %v579_v51  ;;  %v8329_v2 = vcombine.high %v582_v57, %v586_v58  ;;  %v8331_v3 = vcombine.high %v583_v61, %v587_v62  ;;  %v634_v50 = vld [vmem:[%s9140_s22 + $0xde0] sm:$0xff]  ;;  %v631_v51 = vld [vmem:[%s9140_s22 + $0xdc8] sm:$0xff] }
  0xc3   : > { %6553 = vmatpush1.bf16.msra.mxu0 %v8272_v7  ;;  %6881 = vmatpush1.bf16.msra.mxu1 %v8274_v8  ;;  %v595_v7 = vld [vmem:[%s9140_s22 + $0xca8] sm:$0xff]  ;;  %v8328_v8 = vcombine.low %v582_v57, %v586_v58  ;;  %v638_v58 = vld [vmem:[%s9140_s22 + $0xe00] sm:$0xff] }
  0xc4   : > { %6554 = vmatprep.subr.bf16.mxu0 %v8281_v9  ;;  %6882 = vmatprep.subr.bf16.mxu1 %v8283_v11  ;;  %v8330_v9 = vcombine.low %v583_v61, %v587_v62  ;;  %v8337_v11 = vcombine.high %v590_v4, %v594_v5  ;;  %v8339_v12 = vcombine.high %v591_v30, %v595_v7  ;;  %v642_v61 = vld [vmem:[%s9140_s22 + $0xe20] sm:$0xff]  ;;  %v639_v62 = vld [vmem:[%s9140_s22 + $0xe08] sm:$0xff] }
  0xc7   : > { %6555 = vmatpush1.bf16.msra.mxu0 %v8280_v16  ;;  %6883 = vmatpush1.bf16.msra.mxu1 %v8282_v17  ;;  %v603_v16 = vld [vmem:[%s9140_s22 + $0xce8] sm:$0xff]  ;;  %v8336_v17 = vcombine.low %v590_v4, %v594_v5  ;;  %v646_v5 = vld [vmem:[%s9140_s22 + $0xe40] sm:$0xff] }
  0xc8   : > { %6556 = vmatprep.subr.bf16.mxu0 %v8289_v18  ;;  %6884 = vmatprep.subr.bf16.mxu1 %v8291_v19  ;;  %v8338_v18 = vcombine.low %v591_v30, %v595_v7  ;;  %v8345_v19 = vcombine.high %v598_v13, %v602_v14  ;;  %v8347_v20 = vcombine.high %v599_v15, %v603_v16  ;;  %v650_v30 = vld [vmem:[%s9140_s22 + $0xe60] sm:$0xff]  ;;  %v647_v7 = vld [vmem:[%s9140_s22 + $0xe48] sm:$0xff] }
  0xcb   : > { %6557 = vmatpush1.bf16.msra.mxu0 %v8288_v25  ;;  %6885 = vmatpush1.bf16.msra.mxu1 %v8290_v26  ;;  %v611_v25 = vld [vmem:[%s9140_s22 + $0xd28] sm:$0xff]  ;;  %v8344_v26 = vcombine.low %v598_v13, %v602_v14  ;;  %v654_v14 = vld [vmem:[%s9140_s22 + $0xe80] sm:$0xff] }
  0xcc   : > { %6558 = vmatprep.subr.bf16.mxu0 %v8297_v27  ;;  %6886 = vmatprep.subr.bf16.mxu1 %v8299_v28  ;;  %v8346_v27 = vcombine.low %v599_v15, %v603_v16  ;;  %v8353_v28 = vcombine.high %v606_v21, %v610_v22  ;;  %v8355_v29 = vcombine.high %v607_v23, %v611_v25  ;;  %v658_v15 = vld [vmem:[%s9140_s22 + $0xea0] sm:$0xff]  ;;  %v655_v16 = vld [vmem:[%s9140_s22 + $0xe88] sm:$0xff] }
  0xcf   : > { %6559 = vmatpush1.bf16.msra.mxu0 %v8296_v0  ;;  %6887 = vmatpush1.bf16.msra.mxu1 %v8298_v34  ;;  %v619_v0 = vld [vmem:[%s9140_s22 + $0xd68] sm:$0xff]  ;;  %v8352_v34 = vcombine.low %v606_v21, %v610_v22  ;;  %v662_v22 = vld [vmem:[%s9140_s22 + $0xec0] sm:$0xff] }
  0xd0   : > { %6560 = vmatprep.subr.bf16.mxu0 %v8305_v35  ;;  %6888 = vmatprep.subr.bf16.mxu1 %v8307_v36  ;;  %v8354_v35 = vcombine.low %v607_v23, %v611_v25  ;;  %v8361_v36 = vcombine.high %v614_v60, %v618_v31  ;;  %v8363_v37 = vcombine.high %v615_v32, %v619_v0  ;;  %v666_v23 = vld [vmem:[%s9140_s22 + $0xee0] sm:$0xff]  ;;  %v663_v25 = vld [vmem:[%s9140_s22 + $0xec8] sm:$0xff] }
  0xd3   : > { %6561 = vmatpush1.bf16.msra.mxu0 %v8304_v42  ;;  %6889 = vmatpush1.bf16.msra.mxu1 %v8306_v43  ;;  %v627_v42 = vld [vmem:[%s9140_s22 + $0xda8] sm:$0xff]  ;;  %v8360_v43 = vcombine.low %v614_v60, %v618_v31  ;;  %v670_v31 = vld [vmem:[%s9140_s22 + $0xf00] sm:$0xff] }
  0xd4   : > { %6562 = vmatprep.subr.bf16.mxu0 %v8313_v44  ;;  %6890 = vmatprep.subr.bf16.mxu1 %v8315_v46  ;;  %v8362_v44 = vcombine.low %v615_v32, %v619_v0  ;;  %v8369_v46 = vcombine.high %v622_v38, %v626_v40  ;;  %v8371_v47 = vcombine.high %v623_v41, %v627_v42  ;;  %v674_v32 = vld [vmem:[%s9140_s22 + $0xf20] sm:$0xff]  ;;  %v671_v0 = vld [vmem:[%s9140_s22 + $0xf08] sm:$0xff] }
  0xd7   : > { %6563 = vmatpush1.bf16.msra.mxu0 %v8312_v52  ;;  %6891 = vmatpush1.bf16.msra.mxu1 %v8314_v53  ;;  %v635_v52 = vld [vmem:[%s9140_s22 + $0xde8] sm:$0xff]  ;;  %v8368_v53 = vcombine.low %v622_v38, %v626_v40  ;;  %v678_v40 = vld [vmem:[%s9140_s22 + $0xf40] sm:$0xff] }
  0xd8   : > { %6573 = vmatprep.subr.bf16.mxu0 %v8321_v55  ;;  %6901 = vmatprep.subr.bf16.mxu1 %v8323_v56  ;;  %v8370_v55 = vcombine.low %v623_v41, %v627_v42  ;;  %v8377_v56 = vcombine.high %v630_v48, %v634_v50  ;;  %v8379_v57 = vcombine.high %v631_v51, %v635_v52  ;;  %v682_v41 = vld [vmem:[%s9140_s22 + $0xf60] sm:$0xff]  ;;  %v679_v42 = vld [vmem:[%s9140_s22 + $0xf48] sm:$0xff] }
  0xda   : > { %6565 = vmatmul.mubr.bf16.vlgmr.msra.gmra.mrb[0].mxu0 %v9398_v59  ;;  %6893 = vmatmul.mubr.bf16.vlgmr.msra.gmra.mrb[0].mxu1 %v9398_v59 }
  0xdb   : > { %6574 = vmatpush1.bf16.msra.mxu0 %v8320_v63  ;;  %6902 = vmatpush1.bf16.msra.mxu1 %v8322_v1  ;;  %v643_v63 = vld [vmem:[%s9140_s22 + $0xe28] sm:$0xff]  ;;  %v8376_v1 = vcombine.low %v630_v48, %v634_v50  ;;  %v686_v50 = vld [vmem:[%s9140_s22 + $0xf80] sm:$0xff] }
  0xdc   : > { %6575 = vmatprep.subr.bf16.mxu0 %v8329_v2  ;;  %6903 = vmatprep.subr.bf16.mxu1 %v8331_v3  ;;  %v8378_v2 = vcombine.low %v631_v51, %v635_v52  ;;  %v8385_v3 = vcombine.high %v638_v58, %v642_v61  ;;  %v8387_v4 = vcombine.high %v639_v62, %v643_v63  ;;  %v690_v51 = vld [vmem:[%s9140_s22 + $0xfa0] sm:$0xff]  ;;  %v687_v52 = vld [vmem:[%s9140_s22 + $0xf88] sm:$0xff] }
  0xdd   : > { %6605 = vmatprep.mubr.bf16.mxu0 %v9406_v6  ;;  %6933 = vmatprep.mubr.bf16.mxu1 %v9406_v6 }
  0xdf   : > { %6576 = vmatpush1.bf16.msra.mxu0 %v8328_v8  ;;  %6904 = vmatpush1.bf16.msra.mxu1 %v8330_v9  ;;  %v651_v8 = vld [vmem:[%s9140_s22 + $0xe68] sm:$0xff]  ;;  %v8384_v9 = vcombine.low %v638_v58, %v642_v61  ;;  %v694_v61 = vld [vmem:[%s9140_s22 + $0xfc0] sm:$0xff] }
  0xe0   : > { %6577 = vmatprep.subr.bf16.mxu0 %v8337_v11  ;;  %6905 = vmatprep.subr.bf16.mxu1 %v8339_v12  ;;  %v8386_v11 = vcombine.low %v639_v62, %v643_v63  ;;  %v8393_v12 = vcombine.high %v646_v5, %v650_v30  ;;  %v8395_v13 = vcombine.high %v647_v7, %v651_v8  ;;  %v698_v62 = vld [vmem:[%s9140_s22 + $0xfe0] sm:$0xff]  ;;  %v695_v63 = vld [vmem:[%s9140_s22 + $0xfc8] sm:$0xff] }
  0xe3   : > { %6578 = vmatpush1.bf16.msra.mxu0 %v8336_v17  ;;  %6906 = vmatpush1.bf16.msra.mxu1 %v8338_v18  ;;  %v659_v17 = vld [vmem:[%s9140_s22 + $0xea8] sm:$0xff]  ;;  %v8392_v18 = vcombine.low %v646_v5, %v650_v30  ;;  %v8441_v5 = vcombine.high %v694_v61, %v698_v62 }
  0xe4   : > { %6579 = vmatprep.subr.bf16.mxu0 %v8345_v19  ;;  %6907 = vmatprep.subr.bf16.mxu1 %v8347_v20  ;;  %v8394_v19 = vcombine.low %v647_v7, %v651_v8  ;;  %v8401_v20 = vcombine.high %v654_v14, %v658_v15  ;;  %v8403_v21 = vcombine.high %v655_v16, %v659_v17  ;;  %v702_v7 = vld [vmem:[%s9140_s22 + $0x1000] sm:$0xff] }
  0xe5   : > { %v706_v8 = vld [vmem:[%s9140_s22 + $0x1020] sm:$0xff] }
  0xe7   : > { %6580 = vmatpush1.bf16.msra.mxu0 %v8344_v26  ;;  %6908 = vmatpush1.bf16.msra.mxu1 %v8346_v27  ;;  %v667_v26 = vld [vmem:[%s9140_s22 + $0xee8] sm:$0xff]  ;;  %v8400_v27 = vcombine.low %v654_v14, %v658_v15  ;;  %v8449_v15 = vcombine.high %v702_v7, %v706_v8 }
  0xe8   : > { %6581 = vmatprep.subr.bf16.mxu0 %v8353_v28  ;;  %6909 = vmatprep.subr.bf16.mxu1 %v8355_v29  ;;  %v8402_v28 = vcombine.low %v655_v16, %v659_v17  ;;  %v8409_v29 = vcombine.high %v662_v22, %v666_v23  ;;  %v8411_v60 = vcombine.high %v663_v25, %v667_v26  ;;  %v710_v17 = vld [vmem:[%s9140_s22 + $0x1040] sm:$0xff] }
  0xeb   : > { %6582 = vmatpush1.bf16.msra.mxu0 %v8352_v34  ;;  %6910 = vmatpush1.bf16.msra.mxu1 %v8354_v35  ;;  %v675_v34 = vld [vmem:[%s9140_s22 + $0xf28] sm:$0xff]  ;;  %v8408_v35 = vcombine.low %v662_v22, %v666_v23  ;;  %v8448_v23 = vcombine.low %v702_v7, %v706_v8 }
  0xec   : > { %6583 = vmatprep.subr.bf16.mxu0 %v8361_v36  ;;  %6911 = vmatprep.subr.bf16.mxu1 %v8363_v37  ;;  %v8410_v36 = vcombine.low %v663_v25, %v667_v26  ;;  %v8417_v37 = vcombine.high %v670_v31, %v674_v32  ;;  %v8419_v38 = vcombine.high %v671_v0, %v675_v34  ;;  %v715_v22 = vld [vmem:[%s9140_s22 + $0x1068] sm:$0xff] }
  0xed   : > { %v751_v7 = vld [vmem:[%s9140_s22 + $0x1188] sm:$0xff] }
  0xee   : > { %v755_v8 = vld [vmem:[%s9140_s22 + $0x11a8] sm:$0xff] }
  0xef   : > { %6584 = vmatpush1.bf16.msra.mxu0 %v8360_v43  ;;  %6912 = vmatpush1.bf16.msra.mxu1 %v8362_v44  ;;  %v683_v43 = vld [vmem:[%s9140_s22 + $0xf68] sm:$0xff]  ;;  %v8416_v44 = vcombine.low %v670_v31, %v674_v32 }
  0xf0   : > { %6585 = vmatprep.subr.bf16.mxu0 %v8369_v46  ;;  %6913 = vmatprep.subr.bf16.mxu1 %v8371_v47  ;;  %v8418_v46 = vcombine.low %v671_v0, %v675_v34  ;;  %v8425_v47 = vcombine.high %v678_v40, %v682_v41  ;;  %v8427_v48 = vcombine.high %v679_v42, %v683_v43  ;;  %v719_v31 = vld [vmem:[%s9140_s22 + $0x1088] sm:$0xff] }
  0xf1   : > { %v723_v32 = vld [vmem:[%s9140_s22 + $0x10a8] sm:$0xff] }
  0xf3   : > { %6586 = vmatpush1.bf16.msra.mxu0 %v8368_v53  ;;  %6914 = vmatpush1.bf16.msra.mxu1 %v8370_v55  ;;  %v691_v53 = vld [vmem:[%s9140_s22 + $0xfa8] sm:$0xff]  ;;  %v8424_v55 = vcombine.low %v678_v40, %v682_v41 }
  0xf4   : > { %6587 = vmatprep.subr.bf16.mxu0 %v8377_v56  ;;  %6915 = vmatprep.subr.bf16.mxu1 %v8379_v57  ;;  %v8426_v56 = vcombine.low %v679_v42, %v683_v43  ;;  %v8433_v57 = vcombine.high %v686_v50, %v690_v51  ;;  %v8435_v58 = vcombine.high %v687_v52, %v691_v53  ;;  %v727_v40 = vld [vmem:[%s9140_s22 + $0x10c8] sm:$0xff] }
  0xf5   : > { %v731_v41 = vld [vmem:[%s9140_s22 + $0x10e8] sm:$0xff]  ;;  %v8466_v43 = vcombine.low %v719_v31, %v723_v32 }
  0xf7   : > { %6588 = vmatpush1.bf16.msra.mxu0 %v8376_v1  ;;  %6916 = vmatpush1.bf16.msra.mxu1 %v8378_v2  ;;  %v699_v1 = vld [vmem:[%s9140_s22 + $0xfe8] sm:$0xff] }
  0xf8   : > { %6589 = vmatprep.subr.bf16.mxu0 %v8385_v3  ;;  %6917 = vmatprep.subr.bf16.mxu1 %v8387_v4  ;;  %v9467_v2 = vld [vmem:[%s9135_s18 + $0x8] sm:$0xff]  ;;  %v8432_v3 = vcombine.low %v686_v50, %v690_v51  ;;  %v8434_v4 = vcombine.low %v687_v52, %v691_v53  ;;  %v8443_v30 = vcombine.high %v695_v63, %v699_v1 }
  0xf9   : > { %v8442_v14 = vcombine.low %v695_v63, %v699_v1  ;;  %v735_v50 = vld [vmem:[%s9140_s22 + $0x1108] sm:$0xff]  ;;  %v8474_v53 = vcombine.low %v727_v40, %v731_v41 }
  0xfa   : > { %v739_v51 = vld [vmem:[%s9140_s22 + $0x1128] sm:$0xff] }
  0xfb   : > { %6590 = vmatpush1.bf16.msra.mxu0 %v8384_v9  ;;  %6918 = vmatpush1.bf16.msra.mxu1 %v8386_v11  ;;  %v9473_v9 = vrot.slane %v9467_v2, %v9178_v54  ;;  %v703_v11 = vld [vmem:[%s9140_s22 + $0x1008] sm:$0xff]  ;;  %v8482_v1 = vcombine.low %v735_v50, %v739_v51 }
  0xfc   : > { %6591 = vmatprep.subr.bf16.mxu0 %v8393_v12  ;;  %6919 = vmatprep.subr.bf16.mxu1 %v8395_v13  ;;  %v707_v12 = vld [vmem:[%s9140_s22 + $0x1028] sm:$0xff]  ;;  %v8440_v13 = vcombine.low %v694_v61, %v698_v62 }
  0xfd   : > { %v8451_v16 = vcombine.high %v703_v11, %v707_v12  ;;  %v8450_v25 = vcombine.low %v703_v11, %v707_v12  ;;  %v743_v61 = vld [vmem:[%s9140_s22 + $0x1148] sm:$0xff] }
  0xfe   : > { %v747_v62 = vld [vmem:[%s9140_s22 + $0x1168] sm:$0xff] }
  0xff   : > { %6592 = vmatpush1.bf16.msra.mxu0 %v8392_v18  ;;  %6920 = vmatpush1.bf16.msra.mxu1 %v8394_v19  ;;  %v714_v18 = vld [vmem:[%s9140_s22 + $0x1060] sm:$0xff]  ;;  %v1280_v19 = vcombine.high %v9473_v9, %v9473_v9  ;;  %v8490_v12 = vcombine.low %v743_v61, %v747_v62 }
 0x100   : > { %6593 = vmatprep.subr.bf16.mxu0 %v8401_v20  ;;  %6921 = vmatprep.subr.bf16.mxu1 %v8403_v21  ;;  %v9483_v20 = vcombine.high %v9398_v59, %v9398_v59  ;;  %v711_v21 = vld [vmem:[%s9140_s22 + $0x1048] sm:$0xff]  ;;  %v8457_v26 = vcombine.high %v710_v17, %v714_v18  ;;  %v8456_v0 = vcombine.low %v710_v17, %v714_v18 }
 0x101   : > { %v8458_v34 = vcombine.low %v711_v21, %v715_v22  ;;  %v759_v17 = vld [vmem:[%s9140_s22 + $0x11c8] sm:$0xff] }
 0x102   : > { %v763_v18 = vld [vmem:[%s9140_s22 + $0x11e8] sm:$0xff] }
 0x103   : > { %6594 = vmatpush1.bf16.msra.mxu0 %v8400_v27  ;;  %6922 = vmatpush1.bf16.msra.mxu1 %v8402_v28  ;;  %v8459_v27 = vcombine.high %v711_v21, %v715_v22  ;;  %v718_v28 = vld [vmem:[%s9140_s22 + $0x1080] sm:$0xff]  ;;  %v8498_v21 = vcombine.low %v751_v7, %v755_v8 }
 0x104   : > { %6595 = vmatprep.subr.bf16.mxu0 %v8409_v29  ;;  %6923 = vmatprep.subr.bf16.mxu1 %v8411_v60  ;;  %v722_v29 = vld [vmem:[%s9140_s22 + $0x10a0] sm:$0xff]  ;;  %v9490_v60 = vrot.slane %v1280_v19, %v9178_v54 }
 0x105   : > { %v8464_v42 = vcombine.low %v718_v28, %v722_v29 }
 0x107   : > { %6596 = vmatpush1.bf16.msra.mxu0 %v8408_v35  ;;  %6924 = vmatpush1.bf16.msra.mxu1 %v8410_v36  ;;  %v8465_v35 = vcombine.high %v718_v28, %v722_v29  ;;  %v8467_v36 = vcombine.high %v719_v31, %v723_v32  ;;  %v771_v28 = vld [vmem:[%s9140_s22 + $0x1228] sm:$0xff]  ;;  %v8506_v31 = vcombine.low %v759_v17, %v763_v18 }
 0x108   : > { %6597 = vmatprep.subr.bf16.mxu0 %v8417_v37  ;;  %6925 = vmatprep.subr.bf16.mxu1 %v8419_v38  ;;  %v726_v37 = vld [vmem:[%s9140_s22 + $0x10c0] sm:$0xff] }
 0x109   : > { %v730_v38 = vld [vmem:[%s9140_s22 + $0x10e0] sm:$0xff] }
 0x10a   : > { %v8472_v52 = vcombine.low %v726_v37, %v730_v38 }
 0x10b   : > { %6598 = vmatpush1.bf16.msra.mxu0 %v8416_v44  ;;  %6926 = vmatpush1.bf16.msra.mxu1 %v8418_v46  ;;  %v8473_v44 = vcombine.high %v726_v37, %v730_v38  ;;  %v8475_v46 = vcombine.high %v727_v40, %v731_v41  ;;  %v779_v37 = vld [vmem:[%s9140_s22 + $0x1268] sm:$0xff] }
 0x10c   : > { %6599 = vmatprep.subr.bf16.mxu0 %v8425_v47  ;;  %6927 = vmatprep.subr.bf16.mxu1 %v8427_v48  ;;  %v734_v47 = vld [vmem:[%s9140_s22 + $0x1100] sm:$0xff] }
 0x10d   : > { %v738_v48 = vld [vmem:[%s9140_s22 + $0x1120] sm:$0xff] }
 0x10e   : > { %v8480_v63 = vcombine.low %v734_v47, %v738_v48 }
 0x10f   : > { %6600 = vmatpush1.bf16.msra.mxu0 %v8424_v55  ;;  %6928 = vmatpush1.bf16.msra.mxu1 %v8426_v56  ;;  %v8481_v55 = vcombine.high %v734_v47, %v738_v48  ;;  %v8483_v56 = vcombine.high %v735_v50, %v739_v51  ;;  %v787_v47 = vld [vmem:[%s9140_s22 + $0x12a8] sm:$0xff] }
 0x110   : > { %6601 = vmatprep.subr.bf16.mxu0 %v8433_v57  ;;  %6929 = vmatprep.subr.bf16.mxu1 %v8435_v58  ;;  %v742_v57 = vld [vmem:[%s9140_s22 + $0x1140] sm:$0xff] }
 0x111   : > { %v746_v58 = vld [vmem:[%s9140_s22 + $0x1160] sm:$0xff] }
 0x112   : > { %v8488_v11 = vcombine.low %v742_v57, %v746_v58 }
 0x113   : > { %6602 = vmatpush1.bf16.msra.mxu0 %v8432_v3  ;;  %6930 = vmatpush1.bf16.msra.mxu1 %v8434_v4  ;;  %v8489_v3 = vcombine.high %v742_v57, %v746_v58  ;;  %v8491_v4 = vcombine.high %v743_v61, %v747_v62  ;;  %v795_v57 = vld [vmem:[%s9140_s22 + $0x12e8] sm:$0xff] }
 0x114   : > { %6603 = vmatprep.subr.bf16.mxu0 %v8441_v5  ;;  %6931 = vmatprep.subr.bf16.mxu1 %v8443_v30  ;;  %v750_v5 = vld [vmem:[%s9140_s22 + $0x1180] sm:$0xff] }
 0x115   : > { %v754_v30 = vld [vmem:[%s9140_s22 + $0x11a0] sm:$0xff] }
 0x116   : > { %v8496_v19 = vcombine.low %v750_v5, %v754_v30 }
 0x117   : > { %6604 = vmatpush1.bf16.msra.mxu0 %v8440_v13  ;;  %6932 = vmatpush1.bf16.msra.mxu1 %v8442_v14  ;;  %v8497_v13 = vcombine.high %v750_v5, %v754_v30  ;;  %v8499_v14 = vcombine.high %v751_v7, %v755_v8  ;;  %v803_v5 = vld [vmem:[%s9140_s22 + $0x1328] sm:$0xff] }
 0x118   : > { %6614 = vmatprep.subr.bf16.mxu0 %v8449_v15  ;;  %6942 = vmatprep.subr.bf16.mxu1 %v8451_v16  ;;  %v758_v15 = vld [vmem:[%s9140_s22 + $0x11c0] sm:$0xff] }
 0x119   : > { %v762_v16 = vld [vmem:[%s9140_s22 + $0x11e0] sm:$0xff] }
 0x11a   : > { %6606 = vmatmul.mubr.bf16.vlgmr.msra.gmra.mrb[0].mxu0 %v9483_v20  ;;  %6934 = vmatmul.mubr.bf16.vlgmr.msra.gmra.mrb[0].mxu1 %v9483_v20  ;;  %v8505_v22 = vcombine.high %v758_v15, %v762_v16  ;;  %v8504_v29 = vcombine.low %v758_v15, %v762_v16  ;;  %v811_v15 = vld [vmem:[%s9140_s22 + $0x1368] sm:$0xff] }
 0x11b   : > { %6615 = vmatpush1.bf16.msra.mxu0 %v8448_v23  ;;  %6943 = vmatpush1.bf16.msra.mxu1 %v8450_v25  ;;  %v8507_v23 = vcombine.high %v759_v17, %v763_v18  ;;  %v766_v25 = vld [vmem:[%s9140_s22 + $0x1200] sm:$0xff] }
 0x11c   : > { %6616 = vmatprep.subr.bf16.mxu0 %v8457_v26  ;;  %6944 = vmatprep.subr.bf16.mxu1 %v8459_v27  ;;  %v770_v26 = vld [vmem:[%s9140_s22 + $0x1220] sm:$0xff]  ;;  %v767_v27 = vld [vmem:[%s9140_s22 + $0x1208] sm:$0xff] }
 0x11d   : > { %6646 = vmatprep.mubr.bf16.mxu0 %v9490_v60  ;;  %6974 = vmatprep.mubr.bf16.mxu1 %v9490_v60  ;;  %v8513_v32 = vcombine.high %v766_v25, %v770_v26  ;;  %v8512_v38 = vcombine.low %v766_v25, %v770_v26  ;;  %v8514_v40 = vcombine.low %v767_v27, %v771_v28  ;;  %v819_v25 = vld [vmem:[%s9140_s22 + $0x13a8] sm:$0xff] }
 0x11f   : > { %6617 = vmatpush1.bf16.msra.mxu0 %v8456_v0  ;;  %6945 = vmatpush1.bf16.msra.mxu1 %v8458_v34  ;;  %v8515_v0 = vcombine.high %v767_v27, %v771_v28  ;;  %v774_v34 = vld [vmem:[%s9140_s22 + $0x1240] sm:$0xff] }
 0x120   : > { %6618 = vmatprep.subr.bf16.mxu0 %v8465_v35  ;;  %6946 = vmatprep.subr.bf16.mxu1 %v8467_v36  ;;  %v778_v35 = vld [vmem:[%s9140_s22 + $0x1260] sm:$0xff]  ;;  %v775_v36 = vld [vmem:[%s9140_s22 + $0x1248] sm:$0xff] }
 0x121   : > { %v8521_v41 = vcombine.high %v774_v34, %v778_v35  ;;  %v8520_v48 = vcombine.low %v774_v34, %v778_v35  ;;  %v8522_v50 = vcombine.low %v775_v36, %v779_v37  ;;  %v827_v34 = vld [vmem:[%s9140_s22 + $0x13e8] sm:$0xff] }
 0x123   : > { %6619 = vmatpush1.bf16.msra.mxu0 %v8464_v42  ;;  %6947 = vmatpush1.bf16.msra.mxu1 %v8466_v43  ;;  %v8523_v42 = vcombine.high %v775_v36, %v779_v37  ;;  %v782_v43 = vld [vmem:[%s9140_s22 + $0x1280] sm:$0xff] }
 0x124   : > { %6620 = vmatprep.subr.bf16.mxu0 %v8473_v44  ;;  %6948 = vmatprep.subr.bf16.mxu1 %v8475_v46  ;;  %v786_v44 = vld [vmem:[%s9140_s22 + $0x12a0] sm:$0xff]  ;;  %v783_v46 = vld [vmem:[%s9140_s22 + $0x1288] sm:$0xff] }
 0x125   : > { %v8529_v51 = vcombine.high %v782_v43, %v786_v44  ;;  %v8528_v58 = vcombine.low %v782_v43, %v786_v44  ;;  %v8530_v61 = vcombine.low %v783_v46, %v787_v47  ;;  %v835_v43 = vld [vmem:[%s9140_s22 + $0x1428] sm:$0xff] }
 0x127   : > { %6621 = vmatpush1.bf16.msra.mxu0 %v8472_v52  ;;  %6949 = vmatpush1.bf16.msra.mxu1 %v8474_v53  ;;  %v8531_v52 = vcombine.high %v783_v46, %v787_v47  ;;  %v790_v53 = vld [vmem:[%s9140_s22 + $0x12c0] sm:$0xff] }
 0x128   : > { %6622 = vmatprep.subr.bf16.mxu0 %v8481_v55  ;;  %6950 = vmatprep.subr.bf16.mxu1 %v8483_v56  ;;  %v794_v55 = vld [vmem:[%s9140_s22 + $0x12e0] sm:$0xff]  ;;  %v791_v56 = vld [vmem:[%s9140_s22 + $0x12c8] sm:$0xff] }
 0x129   : > { %v8537_v62 = vcombine.high %v790_v53, %v794_v55  ;;  %v8536_v30 = vcombine.low %v790_v53, %v794_v55  ;;  %v8538_v7 = vcombine.low %v791_v56, %v795_v57  ;;  %v839_v53 = vld [vmem:[%s9140_s22 + $0x1448] sm:$0xff] }
 0x12a   : > { %v843_v55 = vld [vmem:[%s9140_s22 + $0x1468] sm:$0xff] }
 0x12b   : > { %6623 = vmatpush1.bf16.msra.mxu0 %v8480_v63  ;;  %6951 = vmatpush1.bf16.msra.mxu1 %v8482_v1  ;;  %v8539_v63 = vcombine.high %v791_v56, %v795_v57  ;;  %v798_v1 = vld [vmem:[%s9140_s22 + $0x1300] sm:$0xff] }
 0x12c   : > { %6624 = vmatprep.subr.bf16.mxu0 %v8489_v3  ;;  %6952 = vmatprep.subr.bf16.mxu1 %v8491_v4  ;;  %v802_v3 = vld [vmem:[%s9140_s22 + $0x1320] sm:$0xff]  ;;  %v799_v4 = vld [vmem:[%s9140_s22 + $0x1308] sm:$0xff] }
 0x12d   : > { %v8545_v8 = vcombine.high %v798_v1, %v802_v3  ;;  %v8544_v16 = vcombine.low %v798_v1, %v802_v3  ;;  %v8546_v17 = vcombine.low %v799_v4, %v803_v5  ;;  %v9566_v1 = vcombine.high %v9490_v60, %v9490_v60  ;;  %v851_v3 = vld [vmem:[%s9140_s22 + $0x14a8] sm:$0xff] }
 0x12f   : > { %6625 = vmatpush1.bf16.msra.mxu0 %v8488_v11  ;;  %6953 = vmatpush1.bf16.msra.mxu1 %v8490_v12  ;;  %v8547_v11 = vcombine.high %v799_v4, %v803_v5  ;;  %v806_v12 = vld [vmem:[%s9140_s22 + $0x1340] sm:$0xff]  ;;  %v8586_v5 = vcombine.low %v839_v53, %v843_v55 }
 0x130   : > { %6626 = vmatprep.subr.bf16.mxu0 %v8497_v13  ;;  %6954 = vmatprep.subr.bf16.mxu1 %v8499_v14  ;;  %v810_v13 = vld [vmem:[%s9140_s22 + $0x1360] sm:$0xff]  ;;  %v807_v14 = vld [vmem:[%s9140_s22 + $0x1348] sm:$0xff] }
 0x131   : > { %v8553_v18 = vcombine.high %v806_v12, %v810_v13  ;;  %v8552_v26 = vcombine.low %v806_v12, %v810_v13  ;;  %v8554_v27 = vcombine.low %v807_v14, %v811_v15  ;;  %v855_v12 = vld [vmem:[%s9140_s22 + $0x14c8] sm:$0xff] }
 0x132   : > { %v859_v13 = vld [vmem:[%s9140_s22 + $0x14e8] sm:$0xff] }
 0x133   : > { %6627 = vmatpush1.bf16.msra.mxu0 %v8496_v19  ;;  %6955 = vmatpush1.bf16.msra.mxu1 %v8498_v21  ;;  %v8555_v19 = vcombine.high %v807_v14, %v811_v15  ;;  %v814_v21 = vld [vmem:[%s9140_s22 + $0x1380] sm:$0xff] }
 0x134   : > { %6628 = vmatprep.subr.bf16.mxu0 %v8505_v22  ;;  %6956 = vmatprep.subr.bf16.mxu1 %v8507_v23  ;;  %v818_v22 = vld [vmem:[%s9140_s22 + $0x13a0] sm:$0xff]  ;;  %v815_v23 = vld [vmem:[%s9140_s22 + $0x1388] sm:$0xff] }
 0x135   : > { %v8561_v28 = vcombine.high %v814_v21, %v818_v22  ;;  %v8560_v35 = vcombine.low %v814_v21, %v818_v22  ;;  %v8562_v36 = vcombine.low %v815_v23, %v819_v25  ;;  %v863_v21 = vld [vmem:[%s9140_s22 + $0x1508] sm:$0xff] }
 0x136   : > { %v867_v22 = vld [vmem:[%s9140_s22 + $0x1528] sm:$0xff] }
 0x137   : > { %6629 = vmatpush1.bf16.msra.mxu0 %v8504_v29  ;;  %6957 = vmatpush1.bf16.msra.mxu1 %v8506_v31  ;;  %v8563_v29 = vcombine.high %v815_v23, %v819_v25  ;;  %v822_v31 = vld [vmem:[%s9140_s22 + $0x13c0] sm:$0xff]  ;;  %v8602_v25 = vcombine.low %v855_v12, %v859_v13 }
 0x138   : > { %6630 = vmatprep.subr.bf16.mxu0 %v8513_v32  ;;  %6958 = vmatprep.subr.bf16.mxu1 %v8515_v0  ;;  %v826_v32 = vld [vmem:[%s9140_s22 + $0x13e0] sm:$0xff]  ;;  %v823_v0 = vld [vmem:[%s9140_s22 + $0x13c8] sm:$0xff] }
 0x139   : > { %v8569_v37 = vcombine.high %v822_v31, %v826_v32  ;;  %v8568_v44 = vcombine.low %v822_v31, %v826_v32  ;;  %v8570_v46 = vcombine.low %v823_v0, %v827_v34  ;;  %v871_v31 = vld [vmem:[%s9140_s22 + $0x1548] sm:$0xff] }
 0x13a   : > { %v875_v32 = vld [vmem:[%s9140_s22 + $0x1568] sm:$0xff] }
 0x13b   : > { %6631 = vmatpush1.bf16.msra.mxu0 %v8512_v38  ;;  %6959 = vmatpush1.bf16.msra.mxu1 %v8514_v40  ;;  %v8571_v38 = vcombine.high %v823_v0, %v827_v34  ;;  %v830_v40 = vld [vmem:[%s9140_s22 + $0x1400] sm:$0xff]  ;;  %v8610_v34 = vcombine.low %v863_v21, %v867_v22 }
 0x13c   : > { %6632 = vmatprep.subr.bf16.mxu0 %v8521_v41  ;;  %6960 = vmatprep.subr.bf16.mxu1 %v8523_v42  ;;  %v834_v41 = vld [vmem:[%s9140_s22 + $0x1420] sm:$0xff]  ;;  %v831_v42 = vld [vmem:[%s9140_s22 + $0x1408] sm:$0xff] }
 0x13d   : > { %v8577_v47 = vcombine.high %v830_v40, %v834_v41  ;;  %v8576_v56 = vcombine.low %v830_v40, %v834_v41  ;;  %v8578_v57 = vcombine.low %v831_v42, %v835_v43  ;;  %v879_v40 = vld [vmem:[%s9140_s22 + $0x1588] sm:$0xff] }
 0x13e   : > { %v883_v41 = vld [vmem:[%s9140_s22 + $0x15a8] sm:$0xff] }
 0x13f   : > { %6633 = vmatpush1.bf16.msra.mxu0 %v8520_v48  ;;  %6961 = vmatpush1.bf16.msra.mxu1 %v8522_v50  ;;  %v8579_v48 = vcombine.high %v831_v42, %v835_v43  ;;  %v838_v50 = vld [vmem:[%s9140_s22 + $0x1440] sm:$0xff]  ;;  %v8618_v43 = vcombine.low %v871_v31, %v875_v32 }
 0x140   : > { %6634 = vmatprep.subr.bf16.mxu0 %v8529_v51  ;;  %6962 = vmatprep.subr.bf16.mxu1 %v8531_v52  ;;  %v842_v51 = vld [vmem:[%s9140_s22 + $0x1460] sm:$0xff]  ;;  %v9558_v52 = vrot.slane %v9473_v9, %v9178_v54  ;;  %v847_v9 = vld [vmem:[%s9140_s22 + $0x1488] sm:$0xff] }
 0x141   : > { %v8584_v4 = vcombine.low %v838_v50, %v842_v51  ;;  %v8594_v15 = vcombine.low %v847_v9, %v851_v3 }
 0x143   : > { %6635 = vmatpush1.bf16.msra.mxu0 %v8528_v58  ;;  %6963 = vmatpush1.bf16.msra.mxu1 %v8530_v61  ;;  %v8585_v58 = vcombine.high %v838_v50, %v842_v51  ;;  %v8587_v61 = vcombine.high %v839_v53, %v843_v55  ;;  %v887_v50 = vld [vmem:[%s9140_s22 + $0x15c8] sm:$0xff]  ;;  %v8626_v55 = vcombine.low %v879_v40, %v883_v41 }
 0x144   : > { %6636 = vmatprep.subr.bf16.mxu0 %v8537_v62  ;;  %6964 = vmatprep.subr.bf16.mxu1 %v8539_v63  ;;  %v846_v62 = vld [vmem:[%s9140_s22 + $0x1480] sm:$0xff]  ;;  %v891_v51 = vld [vmem:[%s9140_s22 + $0x15e8] sm:$0xff] }
 0x145   : > { %v850_v63 = vld [vmem:[%s9140_s22 + $0x14a0] sm:$0xff] }
 0x146   : > { %v8592_v14 = vcombine.low %v846_v62, %v850_v63 }
 0x147   : > { %6637 = vmatpush1.bf16.msra.mxu0 %v8536_v30  ;;  %6965 = vmatpush1.bf16.msra.mxu1 %v8538_v7  ;;  %v8593_v30 = vcombine.high %v846_v62, %v850_v63  ;;  %v8595_v7 = vcombine.high %v847_v9, %v851_v3  ;;  %v895_v62 = vld [vmem:[%s9140_s22 + $0x1608] sm:$0xff]  ;;  %v8634_v3 = vcombine.low %v887_v50, %v891_v51 }
 0x148   : > { %6638 = vmatprep.subr.bf16.mxu0 %v8545_v8  ;;  %6966 = vmatprep.subr.bf16.mxu1 %v8547_v11  ;;  %v854_v8 = vld [vmem:[%s9140_s22 + $0x14c0] sm:$0xff]  ;;  %v899_v63 = vld [vmem:[%s9140_s22 + $0x1628] sm:$0xff] }
 0x149   : > { %v858_v11 = vld [vmem:[%s9140_s22 + $0x14e0] sm:$0xff] }
 0x14a   : > { %v8600_v23 = vcombine.low %v854_v8, %v858_v11 }
 0x14b   : > { %6639 = vmatpush1.bf16.msra.mxu0 %v8544_v16  ;;  %6967 = vmatpush1.bf16.msra.mxu1 %v8546_v17  ;;  %v8601_v16 = vcombine.high %v854_v8, %v858_v11  ;;  %v8603_v17 = vcombine.high %v855_v12, %v859_v13  ;;  %v903_v8 = vld [vmem:[%s9140_s22 + $0x1648] sm:$0xff]  ;;  %v8642_v13 = vcombine.low %v895_v62, %v899_v63 }
 0x14c   : > { %6640 = vmatprep.subr.bf16.mxu0 %v8553_v18  ;;  %6968 = vmatprep.subr.bf16.mxu1 %v8555_v19  ;;  %v862_v18 = vld [vmem:[%s9140_s22 + $0x1500] sm:$0xff]  ;;  %v907_v11 = vld [vmem:[%s9140_s22 + $0x1668] sm:$0xff] }
 0x14d   : > { %v866_v19 = vld [vmem:[%s9140_s22 + $0x1520] sm:$0xff] }
 0x14e   : > { %v8608_v0 = vcombine.low %v862_v18, %v866_v19 }
 0x14f   : > { %6641 = vmatpush1.bf16.msra.mxu0 %v8552_v26  ;;  %6969 = vmatpush1.bf16.msra.mxu1 %v8554_v27  ;;  %v8609_v26 = vcombine.high %v862_v18, %v866_v19  ;;  %v8611_v27 = vcombine.high %v863_v21, %v867_v22  ;;  %v911_v18 = vld [vmem:[%s9140_s22 + $0x1688] sm:$0xff]  ;;  %v8650_v22 = vcombine.low %v903_v8, %v907_v11 }
 0x150   : > { %6642 = vmatprep.subr.bf16.mxu0 %v8561_v28  ;;  %6970 = vmatprep.subr.bf16.mxu1 %v8563_v29  ;;  %v870_v28 = vld [vmem:[%s9140_s22 + $0x1540] sm:$0xff]  ;;  %v915_v19 = vld [vmem:[%s9140_s22 + $0x16a8] sm:$0xff] }
 0x151   : > { %v874_v29 = vld [vmem:[%s9140_s22 + $0x1560] sm:$0xff] }
 0x152   : > { %v8616_v42 = vcombine.low %v870_v28, %v874_v29 }
 0x153   : > { %6643 = vmatpush1.bf16.msra.mxu0 %v8560_v35  ;;  %6971 = vmatpush1.bf16.msra.mxu1 %v8562_v36  ;;  %v8617_v35 = vcombine.high %v870_v28, %v874_v29  ;;  %v8619_v36 = vcombine.high %v871_v31, %v875_v32  ;;  %v919_v28 = vld [vmem:[%s9140_s22 + $0x16c8] sm:$0xff]  ;;  %v8658_v32 = vcombine.low %v911_v18, %v915_v19 }
 0x154   : > { %6644 = vmatprep.subr.bf16.mxu0 %v8569_v37  ;;  %6972 = vmatprep.subr.bf16.mxu1 %v8571_v38  ;;  %v878_v37 = vld [vmem:[%s9140_s22 + $0x1580] sm:$0xff]  ;;  %v923_v29 = vld [vmem:[%s9140_s22 + $0x16e8] sm:$0xff] }
 0x155   : > { %v882_v38 = vld [vmem:[%s9140_s22 + $0x15a0] sm:$0xff] }
 0x156   : > { %v8624_v53 = vcombine.low %v878_v37, %v882_v38 }
 0x157   : > { %6645 = vmatpush1.bf16.msra.mxu0 %v8568_v44  ;;  %6973 = vmatpush1.bf16.msra.mxu1 %v8570_v46  ;;  %v8625_v44 = vcombine.high %v878_v37, %v882_v38  ;;  %v8627_v46 = vcombine.high %v879_v40, %v883_v41  ;;  %v927_v37 = vld [vmem:[%s9140_s22 + $0x1708] sm:$0xff]  ;;  %v8666_v41 = vcombine.low %v919_v28, %v923_v29 }
 0x158   : > { %6655 = vmatprep.subr.bf16.mxu0 %v8577_v47  ;;  %6983 = vmatprep.subr.bf16.mxu1 %v8579_v48  ;;  %v886_v47 = vld [vmem:[%s9140_s22 + $0x15c0] sm:$0xff]  ;;  %v931_v38 = vld [vmem:[%s9140_s22 + $0x1728] sm:$0xff] }
 0x159   : > { %v890_v48 = vld [vmem:[%s9140_s22 + $0x15e0] sm:$0xff] }
 0x15a   : > { %6647 = vmatmul.mubr.bf16.vlgmr.msra.gmra.mrb[0].mxu0 %v9558_v52  ;;  %6975 = vmatmul.mubr.bf16.vlgmr.msra.gmra.mrb[0].mxu1 %v9558_v52  ;;  %v8632_v9 = vcombine.low %v886_v47, %v890_v48 }
 0x15b   : > { %6656 = vmatpush1.bf16.msra.mxu0 %v8576_v56  ;;  %6984 = vmatpush1.bf16.msra.mxu1 %v8578_v57  ;;  %v8633_v56 = vcombine.high %v886_v47, %v890_v48  ;;  %v8635_v57 = vcombine.high %v887_v50, %v891_v51  ;;  %v935_v47 = vld [vmem:[%s9140_s22 + $0x1748] sm:$0xff]  ;;  %v8674_v51 = vcombine.low %v927_v37, %v931_v38 }
 0x15c   : > { %6657 = vmatprep.subr.bf16.mxu0 %v8585_v58  ;;  %6985 = vmatprep.subr.bf16.mxu1 %v8587_v61  ;;  %v894_v58 = vld [vmem:[%s9140_s22 + $0x1600] sm:$0xff]  ;;  %v939_v48 = vld [vmem:[%s9140_s22 + $0x1768] sm:$0xff] }
 0x15d   : > { %6687 = vmatprep.mubr.bf16.mxu0 %v9566_v1  ;;  %7015 = vmatprep.mubr.bf16.mxu1 %v9566_v1  ;;  %v898_v61 = vld [vmem:[%s9140_s22 + $0x1620] sm:$0xff] }
 0x15e   : > { %v8640_v12 = vcombine.low %v894_v58, %v898_v61 }
 0x15f   : > { %6658 = vmatpush1.bf16.msra.mxu0 %v8584_v4  ;;  %6986 = vmatpush1.bf16.msra.mxu1 %v8586_v5  ;;  %v8641_v4 = vcombine.high %v894_v58, %v898_v61  ;;  %v8643_v5 = vcombine.high %v895_v62, %v899_v63  ;;  %v943_v58 = vld [vmem:[%s9140_s22 + $0x1788] sm:$0xff]  ;;  %v8682_v63 = vcombine.low %v935_v47, %v939_v48 }
 0x160   : > { %6659 = vmatprep.subr.bf16.mxu0 %v8593_v30  ;;  %6987 = vmatprep.subr.bf16.mxu1 %v8595_v7  ;;  %v902_v30 = vld [vmem:[%s9140_s22 + $0x1640] sm:$0xff]  ;;  %v947_v61 = vld [vmem:[%s9140_s22 + $0x17a8] sm:$0xff] }
 0x161   : > { %v906_v7 = vld [vmem:[%s9140_s22 + $0x1660] sm:$0xff] }
 0x162   : > { %v8648_v21 = vcombine.low %v902_v30, %v906_v7 }
 0x163   : > { %6660 = vmatpush1.bf16.msra.mxu0 %v8592_v14  ;;  %6988 = vmatpush1.bf16.msra.mxu1 %v8594_v15  ;;  %v8649_v14 = vcombine.high %v902_v30, %v906_v7  ;;  %v8651_v15 = vcombine.high %v903_v8, %v907_v11  ;;  %v1265_v30 = vcombine.high %v9467_v2, %v9467_v2  ;;  %v951_v7 = vld [vmem:[%s9140_s22 + $0x17c8] sm:$0xff] }
 0x164   : > { %6661 = vmatprep.subr.bf16.mxu0 %v8601_v16  ;;  %6989 = vmatprep.subr.bf16.mxu1 %v8603_v17  ;;  %v910_v16 = vld [vmem:[%s9140_s22 + $0x1680] sm:$0xff]  ;;  %v955_v8 = vld [vmem:[%s9140_s22 + $0x17e8] sm:$0xff] }
 0x165   : > { %v914_v17 = vld [vmem:[%s9140_s22 + $0x16a0] sm:$0xff]  ;;  %v959_v2 = vld [vmem:[%s9140_s22 + $0x1808] sm:$0xff] }
 0x166   : > { %v8656_v31 = vcombine.low %v910_v16, %v914_v17 }
 0x167   : > { %6662 = vmatpush1.bf16.msra.mxu0 %v8600_v23  ;;  %6990 = vmatpush1.bf16.msra.mxu1 %v8602_v25  ;;  %v8657_v23 = vcombine.high %v910_v16, %v914_v17  ;;  %v8659_v25 = vcombine.high %v911_v18, %v915_v19  ;;  %v962_v16 = vld [vmem:[%s9140_s22 + $0x1820] sm:$0xff]  ;;  %v9631_v17 = vrot.slane %v1265_v30, %v9178_v54  ;;  %v963_v18 = vld [vmem:[%s9140_s22 + $0x1828] sm:$0xff] }
 0x168   : > { %6663 = vmatprep.subr.bf16.mxu0 %v8609_v26  ;;  %6991 = vmatprep.subr.bf16.mxu1 %v8611_v27  ;;  %v918_v26 = vld [vmem:[%s9140_s22 + $0x16c0] sm:$0xff] }
 0x169   : > { %v922_v27 = vld [vmem:[%s9140_s22 + $0x16e0] sm:$0xff] }
 0x16a   : > { %v8664_v40 = vcombine.low %v918_v26, %v922_v27  ;;  %v998_v30 = vld [vmem:[%s9140_s22 + $0x1940] sm:$0xff] }
 0x16b   : > { %6664 = vmatpush1.bf16.msra.mxu0 %v8608_v0  ;;  %6992 = vmatpush1.bf16.msra.mxu1 %v8610_v34  ;;  %v8665_v0 = vcombine.high %v918_v26, %v922_v27  ;;  %v8667_v34 = vcombine.high %v919_v28, %v923_v29  ;;  %v970_v26 = vld [vmem:[%s9140_s22 + $0x1860] sm:$0xff]  ;;  %v1281_v27 = vcombine.high %v9631_v17, %v9631_v17  ;;  %v967_v29 = vld [vmem:[%s9140_s22 + $0x1848] sm:$0xff] }
 0x16c   : > { %6665 = vmatprep.subr.bf16.mxu0 %v8617_v35  ;;  %6993 = vmatprep.subr.bf16.mxu1 %v8619_v36  ;;  %v926_v35 = vld [vmem:[%s9140_s22 + $0x1700] sm:$0xff]  ;;  %v9641_v28 = vcombine.high %v9558_v52, %v9558_v52 }
 0x16d   : > { %v930_v36 = vld [vmem:[%s9140_s22 + $0x1720] sm:$0xff] }
 0x16e   : > { %v8672_v50 = vcombine.low %v926_v35, %v930_v36 }
 0x16f   : > { %6666 = vmatpush1.bf16.msra.mxu0 %v8616_v42  ;;  %6994 = vmatpush1.bf16.msra.mxu1 %v8618_v43  ;;  %v8673_v42 = vcombine.high %v926_v35, %v930_v36  ;;  %v8675_v43 = vcombine.high %v927_v37, %v931_v38  ;;  %v974_v36 = vld [vmem:[%s9140_s22 + $0x1880] sm:$0xff]  ;;  %v9648_v38 = vrot.slane %v1281_v27, %v9178_v54 }
 0x170   : > { %6667 = vmatprep.subr.bf16.mxu0 %v8625_v44  ;;  %6995 = vmatprep.subr.bf16.mxu1 %v8627_v46  ;;  %v934_v44 = vld [vmem:[%s9140_s22 + $0x1740] sm:$0xff] }
 0x171   : > { %v938_v46 = vld [vmem:[%s9140_s22 + $0x1760] sm:$0xff] }
 0x172   : > { %v8680_v62 = vcombine.low %v934_v44, %v938_v46  ;;  %v978_v37 = vld [vmem:[%s9140_s22 + $0x18a0] sm:$0xff] }
 0x173   : > { %6668 = vmatpush1.bf16.msra.mxu0 %v8624_v53  ;;  %6996 = vmatpush1.bf16.msra.mxu1 %v8626_v55  ;;  %v8681_v53 = vcombine.high %v934_v44, %v938_v46  ;;  %v8683_v55 = vcombine.high %v935_v47, %v939_v48  ;;  %v8721_v44 = vcombine.high %v974_v36, %v978_v37  ;;  %v982_v47 = vld [vmem:[%s9140_s22 + $0x18c0] sm:$0xff] }
 0x174   : > { %6669 = vmatprep.subr.bf16.mxu0 %v8633_v56  ;;  %6997 = vmatprep.subr.bf16.mxu1 %v8635_v57  ;;  %v942_v56 = vld [vmem:[%s9140_s22 + $0x1780] sm:$0xff] }
 0x175   : > { %v946_v57 = vld [vmem:[%s9140_s22 + $0x17a0] sm:$0xff] }
 0x176   : > { %v8688_v11 = vcombine.low %v942_v56, %v946_v57  ;;  %v986_v48 = vld [vmem:[%s9140_s22 + $0x18e0] sm:$0xff] }
 0x177   : > { %6670 = vmatpush1.bf16.msra.mxu0 %v8632_v9  ;;  %6998 = vmatpush1.bf16.msra.mxu1 %v8634_v3  ;;  %v8689_v9 = vcombine.high %v942_v56, %v946_v57  ;;  %v8691_v3 = vcombine.high %v943_v58, %v947_v61  ;;  %v8729_v56 = vcombine.high %v982_v47, %v986_v48  ;;  %v1018_v27 = vld [vmem:[%s9140_s22 + $0x19e0] sm:$0xff] }
 0x178   : > { %6671 = vmatprep.subr.bf16.mxu0 %v8641_v4  ;;  %6999 = vmatprep.subr.bf16.mxu1 %v8643_v5  ;;  %v950_v4 = vld [vmem:[%s9140_s22 + $0x17c0] sm:$0xff] }
 0x179   : > { %v954_v5 = vld [vmem:[%s9140_s22 + $0x17e0] sm:$0xff] }
 0x17a   : > { %v8696_v19 = vcombine.low %v950_v4, %v954_v5 }
 0x17b   : > { %6672 = vmatpush1.bf16.msra.mxu0 %v8640_v12  ;;  %7000 = vmatpush1.bf16.msra.mxu1 %v8642_v13  ;;  %v8690_v12 = vcombine.low %v943_v58, %v947_v61  ;;  %v8697_v13 = vcombine.high %v950_v4, %v954_v5  ;;  %v990_v58 = vld [vmem:[%s9140_s22 + $0x1900] sm:$0xff] }
 0x17c   : > { %6673 = vmatprep.subr.bf16.mxu0 %v8649_v14  ;;  %7001 = vmatprep.subr.bf16.mxu1 %v8651_v15  ;;  %v8699_v14 = vcombine.high %v951_v7, %v955_v8  ;;  %v958_v15 = vld [vmem:[%s9140_s22 + $0x1800] sm:$0xff] }
 0x17d   : > { %v994_v61 = vld [vmem:[%s9140_s22 + $0x1920] sm:$0xff] }
 0x17e   : > { %v8737_v4 = vcombine.high %v990_v58, %v994_v61 }
 0x17f   : > { %6674 = vmatpush1.bf16.msra.mxu0 %v8648_v21  ;;  %7002 = vmatpush1.bf16.msra.mxu1 %v8650_v22  ;;  %v8698_v21 = vcombine.low %v951_v7, %v955_v8  ;;  %v8705_v22 = vcombine.high %v958_v15, %v962_v16  ;;  %v1002_v7 = vld [vmem:[%s9140_s22 + $0x1960] sm:$0xff]  ;;  %v999_v8 = vld [vmem:[%s9140_s22 + $0x1948] sm:$0xff] }
 0x180   : > { %6675 = vmatprep.subr.bf16.mxu0 %v8657_v23  ;;  %7003 = vmatprep.subr.bf16.mxu1 %v8659_v25  ;;  %v8707_v23 = vcombine.high %v959_v2, %v963_v18  ;;  %v966_v25 = vld [vmem:[%s9140_s22 + $0x1840] sm:$0xff] }
 0x183   : > { %6676 = vmatpush1.bf16.msra.mxu0 %v8656_v31  ;;  %7004 = vmatpush1.bf16.msra.mxu1 %v8658_v32  ;;  %v971_v31 = vld [vmem:[%s9140_s22 + $0x1868] sm:$0xff]  ;;  %v8704_v32 = vcombine.low %v958_v15, %v962_v16  ;;  %v1006_v16 = vld [vmem:[%s9140_s22 + $0x1980] sm:$0xff] }
 0x184   : > { %6677 = vmatprep.subr.bf16.mxu0 %v8665_v0  ;;  %7005 = vmatprep.subr.bf16.mxu1 %v8667_v34  ;;  %v8706_v0 = vcombine.low %v959_v2, %v963_v18  ;;  %v8713_v34 = vcombine.high %v966_v25, %v970_v26  ;;  %v8715_v35 = vcombine.high %v967_v29, %v971_v31  ;;  %v1010_v2 = vld [vmem:[%s9140_s22 + $0x19a0] sm:$0xff]  ;;  %v1007_v18 = vld [vmem:[%s9140_s22 + $0x1988] sm:$0xff] }
 0x187   : > { %6678 = vmatpush1.bf16.msra.mxu0 %v8664_v40  ;;  %7006 = vmatpush1.bf16.msra.mxu1 %v8666_v41  ;;  %v975_v40 = vld [vmem:[%s9140_s22 + $0x1888] sm:$0xff] }
 0x188   : > { %6679 = vmatprep.subr.bf16.mxu0 %v8673_v42  ;;  %7007 = vmatprep.subr.bf16.mxu1 %v8675_v43  ;;  %v979_v41 = vld [vmem:[%s9140_s22 + $0x18a8] sm:$0xff]  ;;  %v8712_v42 = vcombine.low %v966_v25, %v970_v26  ;;  %v8714_v43 = vcombine.low %v967_v29, %v971_v31  ;;  %v1014_v26 = vld [vmem:[%s9140_s22 + $0x19c0] sm:$0xff] }
 0x189   : > { %v8723_v46 = vcombine.high %v975_v40, %v979_v41  ;;  %v1015_v29 = vld [vmem:[%s9140_s22 + $0x19c8] sm:$0xff] }
 0x18a   : > { %v1019_v31 = vld [vmem:[%s9140_s22 + $0x19e8] sm:$0xff] }
 0x18b   : > { %6680 = vmatpush1.bf16.msra.mxu0 %v8672_v50  ;;  %7008 = vmatpush1.bf16.msra.mxu1 %v8674_v51  ;;  %v983_v50 = vld [vmem:[%s9140_s22 + $0x18c8] sm:$0xff] }
 0x18c   : > { %6681 = vmatprep.subr.bf16.mxu0 %v8681_v53  ;;  %7009 = vmatprep.subr.bf16.mxu1 %v8683_v55  ;;  %v987_v51 = vld [vmem:[%s9140_s22 + $0x18e8] sm:$0xff]  ;;  %v8720_v53 = vcombine.low %v974_v36, %v978_v37  ;;  %v8722_v55 = vcombine.low %v975_v40, %v979_v41  ;;  %v1022_v36 = vld [vmem:[%s9140_s22 + $0x1a00] sm:$0xff] }
 0x18d   : > { %v8731_v57 = vcombine.high %v983_v50, %v987_v51  ;;  %v1026_v37 = vld [vmem:[%s9140_s22 + $0x1a20] sm:$0xff]  ;;  %v1023_v40 = vld [vmem:[%s9140_s22 + $0x1a08] sm:$0xff] }
 0x18e   : > { %v1027_v41 = vld [vmem:[%s9140_s22 + $0x1a28] sm:$0xff] }
 0x18f   : > { %6682 = vmatpush1.bf16.msra.mxu0 %v8680_v62  ;;  %7010 = vmatpush1.bf16.msra.mxu1 %v8682_v63  ;;  %v991_v62 = vld [vmem:[%s9140_s22 + $0x1908] sm:$0xff] }
 0x190   : > { %6683 = vmatprep.subr.bf16.mxu0 %v8689_v9  ;;  %7011 = vmatprep.subr.bf16.mxu1 %v8691_v3  ;;  %v995_v63 = vld [vmem:[%s9140_s22 + $0x1928] sm:$0xff]  ;;  %v8728_v9 = vcombine.low %v982_v47, %v986_v48  ;;  %v8730_v3 = vcombine.low %v983_v50, %v987_v51  ;;  %v1030_v47 = vld [vmem:[%s9140_s22 + $0x1a40] sm:$0xff] }
 0x191   : > { %v8739_v5 = vcombine.high %v991_v62, %v995_v63  ;;  %v1034_v48 = vld [vmem:[%s9140_s22 + $0x1a60] sm:$0xff]  ;;  %v1031_v50 = vld [vmem:[%s9140_s22 + $0x1a48] sm:$0xff] }
 0x192   : > { %v1035_v51 = vld [vmem:[%s9140_s22 + $0x1a68] sm:$0xff] }
 0x193   : > { %6684 = vmatpush1.bf16.msra.mxu0 %v8688_v11  ;;  %7012 = vmatpush1.bf16.msra.mxu1 %v8690_v12  ;;  %v1003_v11 = vld [vmem:[%s9140_s22 + $0x1968] sm:$0xff]  ;;  %v8736_v12 = vcombine.low %v990_v58, %v994_v61  ;;  %v1038_v58 = vld [vmem:[%s9140_s22 + $0x1a80] sm:$0xff] }
 0x194   : > { %6685 = vmatprep.subr.bf16.mxu0 %v8697_v13  ;;  %7013 = vmatprep.subr.bf16.mxu1 %v8699_v14  ;;  %v8738_v13 = vcombine.low %v991_v62, %v995_v63  ;;  %v8745_v14 = vcombine.high %v998_v30, %v1002_v7  ;;  %v8747_v15 = vcombine.high %v999_v8, %v1003_v11  ;;  %v1042_v61 = vld [vmem:[%s9140_s22 + $0x1aa0] sm:$0xff]  ;;  %v1039_v62 = vld [vmem:[%s9140_s22 + $0x1a88] sm:$0xff] }
 0x195   : > { %v1043_v63 = vld [vmem:[%s9140_s22 + $0x1aa8] sm:$0xff] }
 0x197   : > { %6686 = vmatpush1.bf16.msra.mxu0 %v8696_v19  ;;  %7014 = vmatpush1.bf16.msra.mxu1 %v8698_v21  ;;  %v1011_v19 = vld [vmem:[%s9140_s22 + $0x19a8] sm:$0xff]  ;;  %v8744_v21 = vcombine.low %v998_v30, %v1002_v7  ;;  %v1046_v30 = vld [vmem:[%s9140_s22 + $0x1ac0] sm:$0xff] }
 0x198   : > { %6696 = vmatprep.subr.bf16.mxu0 %v8705_v22  ;;  %7024 = vmatprep.subr.bf16.mxu1 %v8707_v23  ;;  %v8746_v22 = vcombine.low %v999_v8, %v1003_v11  ;;  %v8753_v23 = vcombine.high %v1006_v16, %v1010_v2  ;;  %v8755_v25 = vcombine.high %v1007_v18, %v1011_v19  ;;  %v1050_v7 = vld [vmem:[%s9140_s22 + $0x1ae0] sm:$0xff]  ;;  %v1047_v8 = vld [vmem:[%s9140_s22 + $0x1ac8] sm:$0xff] }
 0x199   : > { %v1051_v11 = vld [vmem:[%s9140_s22 + $0x1ae8] sm:$0xff] }
 0x19a   : > { %6688 = vmatmul.mubr.bf16.vlgmr.msra.gmra.mrb[0].mxu0 %v9641_v28  ;;  %7016 = vmatmul.mubr.bf16.vlgmr.msra.gmra.mrb[0].mxu1 %v9641_v28 }
 0x19b   : > { %6697 = vmatpush1.bf16.msra.mxu0 %v8704_v32  ;;  %7025 = vmatpush1.bf16.msra.mxu1 %v8706_v0  ;;  %v8752_v32 = vcombine.low %v1006_v16, %v1010_v2  ;;  %v8754_v0 = vcombine.low %v1007_v18, %v1011_v19  ;;  %v1054_v16 = vld [vmem:[%s9140_s22 + $0x1b00] sm:$0xff]  ;;  %v1055_v18 = vld [vmem:[%s9140_s22 + $0x1b08] sm:$0xff] }
 0x19c   : > { %6698 = vmatprep.subr.bf16.mxu0 %v8713_v34  ;;  %7026 = vmatprep.subr.bf16.mxu1 %v8715_v35  ;;  %v8761_v34 = vcombine.high %v1014_v26, %v1018_v27  ;;  %v8763_v35 = vcombine.high %v1015_v29, %v1019_v31  ;;  %v1058_v2 = vld [vmem:[%s9140_s22 + $0x1b20] sm:$0xff]  ;;  %v1059_v19 = vld [vmem:[%s9140_s22 + $0x1b28] sm:$0xff] }
 0x19d   : > { %6728 = vmatprep.mubr.bf16.mxu0 %v9648_v38  ;;  %7056 = vmatprep.mubr.bf16.mxu1 %v9648_v38 }
 0x19f   : > { %6699 = vmatpush1.bf16.msra.mxu0 %v8712_v42  ;;  %7027 = vmatpush1.bf16.msra.mxu1 %v8714_v43  ;;  %v8760_v42 = vcombine.low %v1014_v26, %v1018_v27  ;;  %v8762_v43 = vcombine.low %v1015_v29, %v1019_v31  ;;  %v1062_v26 = vld [vmem:[%s9140_s22 + $0x1b40] sm:$0xff]  ;;  %v1063_v29 = vld [vmem:[%s9140_s22 + $0x1b48] sm:$0xff] }
 0x1a0   : > { %6700 = vmatprep.subr.bf16.mxu0 %v8721_v44  ;;  %7028 = vmatprep.subr.bf16.mxu1 %v8723_v46  ;;  %v8769_v44 = vcombine.high %v1022_v36, %v1026_v37  ;;  %v8771_v46 = vcombine.high %v1023_v40, %v1027_v41  ;;  %v1066_v27 = vld [vmem:[%s9140_s22 + $0x1b60] sm:$0xff]  ;;  %v1067_v31 = vld [vmem:[%s9140_s22 + $0x1b68] sm:$0xff] }
 0x1a3   : > { %6701 = vmatpush1.bf16.msra.mxu0 %v8720_v53  ;;  %7029 = vmatpush1.bf16.msra.mxu1 %v8722_v55  ;;  %v8768_v53 = vcombine.low %v1022_v36, %v1026_v37  ;;  %v8770_v55 = vcombine.low %v1023_v40, %v1027_v41  ;;  %v1070_v36 = vld [vmem:[%s9140_s22 + $0x1b80] sm:$0xff]  ;;  %v1071_v40 = vld [vmem:[%s9140_s22 + $0x1b88] sm:$0xff] }
 0x1a4   : > { %6702 = vmatprep.subr.bf16.mxu0 %v8729_v56  ;;  %7030 = vmatprep.subr.bf16.mxu1 %v8731_v57  ;;  %v8777_v56 = vcombine.high %v1030_v47, %v1034_v48  ;;  %v8779_v57 = vcombine.high %v1031_v50, %v1035_v51  ;;  %v1074_v37 = vld [vmem:[%s9140_s22 + $0x1ba0] sm:$0xff]  ;;  %v1075_v41 = vld [vmem:[%s9140_s22 + $0x1ba8] sm:$0xff] }
 0x1a7   : > { %6703 = vmatpush1.bf16.msra.mxu0 %v8728_v9  ;;  %7031 = vmatpush1.bf16.msra.mxu1 %v8730_v3  ;;  %v8776_v9 = vcombine.low %v1030_v47, %v1034_v48  ;;  %v8778_v3 = vcombine.low %v1031_v50, %v1035_v51  ;;  %v1078_v47 = vld [vmem:[%s9140_s22 + $0x1bc0] sm:$0xff]  ;;  %v1079_v50 = vld [vmem:[%s9140_s22 + $0x1bc8] sm:$0xff] }
 0x1a8   : > { %6704 = vmatprep.subr.bf16.mxu0 %v8737_v4  ;;  %7032 = vmatprep.subr.bf16.mxu1 %v8739_v5  ;;  %v8785_v4 = vcombine.high %v1038_v58, %v1042_v61  ;;  %v8787_v5 = vcombine.high %v1039_v62, %v1043_v63  ;;  %v1082_v48 = vld [vmem:[%s9140_s22 + $0x1be0] sm:$0xff]  ;;  %v1083_v51 = vld [vmem:[%s9140_s22 + $0x1be8] sm:$0xff] }
 0x1ab   : > { %6705 = vmatpush1.bf16.msra.mxu0 %v8736_v12  ;;  %7033 = vmatpush1.bf16.msra.mxu1 %v8738_v13  ;;  %v8784_v12 = vcombine.low %v1038_v58, %v1042_v61  ;;  %v8786_v13 = vcombine.low %v1039_v62, %v1043_v63  ;;  %v1086_v58 = vld [vmem:[%s9140_s22 + $0x1c00] sm:$0xff]  ;;  %v1087_v62 = vld [vmem:[%s9140_s22 + $0x1c08] sm:$0xff] }
 0x1ac   : > { %6706 = vmatprep.subr.bf16.mxu0 %v8745_v14  ;;  %7034 = vmatprep.subr.bf16.mxu1 %v8747_v15  ;;  %v8793_v14 = vcombine.high %v1046_v30, %v1050_v7  ;;  %v8795_v15 = vcombine.high %v1047_v8, %v1051_v11  ;;  %v1090_v61 = vld [vmem:[%s9140_s22 + $0x1c20] sm:$0xff]  ;;  %v1091_v63 = vld [vmem:[%s9140_s22 + $0x1c28] sm:$0xff] }
 0x1af   : > { %6707 = vmatpush1.bf16.msra.mxu0 %v8744_v21  ;;  %7035 = vmatpush1.bf16.msra.mxu1 %v8746_v22  ;;  %v8792_v21 = vcombine.low %v1046_v30, %v1050_v7  ;;  %v8794_v22 = vcombine.low %v1047_v8, %v1051_v11  ;;  %v1094_v30 = vld [vmem:[%s9140_s22 + $0x1c40] sm:$0xff]  ;;  %v9716_v8 = vrot.slane %v9631_v17, %v9178_v54  ;;  %v1095_v11 = vld [vmem:[%s9140_s22 + $0x1c48] sm:$0xff] }
 0x1b0   : > { %6708 = vmatprep.subr.bf16.mxu0 %v8753_v23  ;;  %7036 = vmatprep.subr.bf16.mxu1 %v8755_v25  ;;  %v8801_v23 = vcombine.high %v1054_v16, %v1058_v2  ;;  %v8803_v25 = vcombine.high %v1055_v18, %v1059_v19  ;;  %v1098_v7 = vld [vmem:[%s9140_s22 + $0x1c60] sm:$0xff]  ;;  %v1103_v54 = vld [vmem:[%s9140_s22 + $0x1c88] sm:$0xff] }
 0x1b1   : > { %v1107_v17 = vld [vmem:[%s9140_s22 + $0x1ca8] sm:$0xff] }
 0x1b3   : > { %6709 = vmatpush1.bf16.msra.mxu0 %v8752_v32  ;;  %7037 = vmatpush1.bf16.msra.mxu1 %v8754_v0  ;;  %v8800_v32 = vcombine.low %v1054_v16, %v1058_v2  ;;  %v8802_v0 = vcombine.low %v1055_v18, %v1059_v19  ;;  %v1102_v2 = vld [vmem:[%s9140_s22 + $0x1c80] sm:$0xff]  ;;  %v9724_v19 = vcombine.high %v9648_v38, %v9648_v38 }
 0x1b4   : > { %6710 = vmatprep.subr.bf16.mxu0 %v8761_v34  ;;  %7038 = vmatprep.subr.bf16.mxu1 %v8763_v35  ;;  %v8809_v34 = vcombine.high %v1062_v26, %v1066_v27  ;;  %v8811_v35 = vcombine.high %v1063_v29, %v1067_v31  ;;  %v1106_v18 = vld [vmem:[%s9140_s22 + $0x1ca0] sm:$0xff] }
 0x1b7   : > { %6711 = vmatpush1.bf16.msra.mxu0 %v8760_v42  ;;  %7039 = vmatpush1.bf16.msra.mxu1 %v8762_v43  ;;  %v8808_v42 = vcombine.low %v1062_v26, %v1066_v27  ;;  %v8810_v43 = vcombine.low %v1063_v29, %v1067_v31  ;;  %v1110_v26 = vld [vmem:[%s9140_s22 + $0x1cc0] sm:$0xff]  ;;  %v1111_v29 = vld [vmem:[%s9140_s22 + $0x1cc8] sm:$0xff] }
 0x1b8   : > { %6712 = vmatprep.subr.bf16.mxu0 %v8769_v44  ;;  %7040 = vmatprep.subr.bf16.mxu1 %v8771_v46  ;;  %v8817_v44 = vcombine.high %v1070_v36, %v1074_v37  ;;  %v8819_v46 = vcombine.high %v1071_v40, %v1075_v41  ;;  %v1114_v27 = vld [vmem:[%s9140_s22 + $0x1ce0] sm:$0xff]  ;;  %v1115_v31 = vld [vmem:[%s9140_s22 + $0x1ce8] sm:$0xff] }
 0x1bb   : > { %6713 = vmatpush1.bf16.msra.mxu0 %v8768_v53  ;;  %7041 = vmatpush1.bf16.msra.mxu1 %v8770_v55  ;;  %v8816_v53 = vcombine.low %v1070_v36, %v1074_v37  ;;  %v8818_v55 = vcombine.low %v1071_v40, %v1075_v41  ;;  %v1118_v36 = vld [vmem:[%s9140_s22 + $0x1d00] sm:$0xff]  ;;  %v1119_v40 = vld [vmem:[%s9140_s22 + $0x1d08] sm:$0xff] }
 0x1bc   : > { %6714 = vmatprep.subr.bf16.mxu0 %v8777_v56  ;;  %7042 = vmatprep.subr.bf16.mxu1 %v8779_v57  ;;  %v8825_v56 = vcombine.high %v1078_v47, %v1082_v48  ;;  %v8827_v57 = vcombine.high %v1079_v50, %v1083_v51  ;;  %v1122_v37 = vld [vmem:[%s9140_s22 + $0x1d20] sm:$0xff]  ;;  %v1123_v41 = vld [vmem:[%s9140_s22 + $0x1d28] sm:$0xff] }
 0x1bf   : > { %6715 = vmatpush1.bf16.msra.mxu0 %v8776_v9  ;;  %7043 = vmatpush1.bf16.msra.mxu1 %v8778_v3  ;;  %v8824_v9 = vcombine.low %v1078_v47, %v1082_v48  ;;  %v8826_v3 = vcombine.low %v1079_v50, %v1083_v51  ;;  %v1126_v47 = vld [vmem:[%s9140_s22 + $0x1d40] sm:$0xff]  ;;  %v1127_v50 = vld [vmem:[%s9140_s22 + $0x1d48] sm:$0xff] }
 0x1c0   : > { %6716 = vmatprep.subr.bf16.mxu0 %v8785_v4  ;;  %7044 = vmatprep.subr.bf16.mxu1 %v8787_v5  ;;  %v8833_v4 = vcombine.high %v1086_v58, %v1090_v61  ;;  %v8835_v5 = vcombine.high %v1087_v62, %v1091_v63  ;;  %v1130_v48 = vld [vmem:[%s9140_s22 + $0x1d60] sm:$0xff]  ;;  %v1131_v51 = vld [vmem:[%s9140_s22 + $0x1d68] sm:$0xff] }
 0x1c3   : > { %6717 = vmatpush1.bf16.msra.mxu0 %v8784_v12  ;;  %7045 = vmatpush1.bf16.msra.mxu1 %v8786_v13  ;;  %v1099_v12 = vld [vmem:[%s9140_s22 + $0x1c68] sm:$0xff]  ;;  %v8832_v13 = vcombine.low %v1086_v58, %v1090_v61  ;;  %v1134_v58 = vld [vmem:[%s9140_s22 + $0x1d80] sm:$0xff] }
 0x1c4   : > { %6718 = vmatprep.subr.bf16.mxu0 %v8793_v14  ;;  %7046 = vmatprep.subr.bf16.mxu1 %v8795_v15  ;;  %v8834_v14 = vcombine.low %v1087_v62, %v1091_v63  ;;  %v8841_v15 = vcombine.high %v1094_v30, %v1098_v7  ;;  %v8843_v16 = vcombine.high %v1095_v11, %v1099_v12  ;;  %v1138_v61 = vld [vmem:[%s9140_s22 + $0x1da0] sm:$0xff]  ;;  %v1135_v62 = vld [vmem:[%s9140_s22 + $0x1d88] sm:$0xff] }
 0x1c5   : > { %v1139_v63 = vld [vmem:[%s9140_s22 + $0x1da8] sm:$0xff] }
 0x1c7   : > { %6719 = vmatpush1.bf16.msra.mxu0 %v8792_v21  ;;  %7047 = vmatpush1.bf16.msra.mxu1 %v8794_v22  ;;  %v8840_v21 = vcombine.low %v1094_v30, %v1098_v7  ;;  %v8842_v22 = vcombine.low %v1095_v11, %v1099_v12  ;;  %v1142_v30 = vld [vmem:[%s9140_s22 + $0x1dc0] sm:$0xff]  ;;  %v1143_v11 = vld [vmem:[%s9140_s22 + $0x1dc8] sm:$0xff] }
 0x1c8   : > { %6720 = vmatprep.subr.bf16.mxu0 %v8801_v23  ;;  %7048 = vmatprep.subr.bf16.mxu1 %v8803_v25  ;;  %v8849_v23 = vcombine.high %v1102_v2, %v1106_v18  ;;  %v8851_v25 = vcombine.high %v1103_v54, %v1107_v17  ;;  %v1146_v7 = vld [vmem:[%s9140_s22 + $0x1de0] sm:$0xff]  ;;  %v1147_v12 = vld [vmem:[%s9140_s22 + $0x1de8] sm:$0xff] }
 0x1cb   : > { %6721 = vmatpush1.bf16.msra.mxu0 %v8800_v32  ;;  %7049 = vmatpush1.bf16.msra.mxu1 %v8802_v0  ;;  %v8848_v32 = vcombine.low %v1102_v2, %v1106_v18  ;;  %v8850_v0 = vcombine.low %v1103_v54, %v1107_v17  ;;  %v1150_v2 = vld [vmem:[%s9140_s22 + $0x1e00] sm:$0xff]  ;;  %v1151_v54 = vld [vmem:[%s9140_s22 + $0x1e08] sm:$0xff] }
 0x1cc   : > { %6722 = vmatprep.subr.bf16.mxu0 %v8809_v34  ;;  %7050 = vmatprep.subr.bf16.mxu1 %v8811_v35  ;;  %v8857_v34 = vcombine.high %v1110_v26, %v1114_v27  ;;  %v8859_v35 = vcombine.high %v1111_v29, %v1115_v31  ;;  %v1154_v18 = vld [vmem:[%s9140_s22 + $0x1e20] sm:$0xff]  ;;  %v1155_v17 = vld [vmem:[%s9140_s22 + $0x1e28] sm:$0xff] }
 0x1cf   : > { %6723 = vmatpush1.bf16.msra.mxu0 %v8808_v42  ;;  %7051 = vmatpush1.bf16.msra.mxu1 %v8810_v43  ;;  %v8856_v42 = vcombine.low %v1110_v26, %v1114_v27  ;;  %v8858_v43 = vcombine.low %v1111_v29, %v1115_v31  ;;  %v1158_v26 = vld [vmem:[%s9140_s22 + $0x1e40] sm:$0xff]  ;;  %v1159_v29 = vld [vmem:[%s9140_s22 + $0x1e48] sm:$0xff] }
 0x1d0   : > { %6724 = vmatprep.subr.bf16.mxu0 %v8817_v44  ;;  %7052 = vmatprep.subr.bf16.mxu1 %v8819_v46  ;;  %v8865_v44 = vcombine.high %v1118_v36, %v1122_v37  ;;  %v8867_v46 = vcombine.high %v1119_v40, %v1123_v41  ;;  %v1162_v27 = vld [vmem:[%s9140_s22 + $0x1e60] sm:$0xff]  ;;  %v1163_v31 = vld [vmem:[%s9140_s22 + $0x1e68] sm:$0xff] }
 0x1d3   : > { %6725 = vmatpush1.bf16.msra.mxu0 %v8816_v53  ;;  %7053 = vmatpush1.bf16.msra.mxu1 %v8818_v55  ;;  %v8864_v53 = vcombine.low %v1118_v36, %v1122_v37  ;;  %v8866_v55 = vcombine.low %v1119_v40, %v1123_v41  ;;  %v1166_v36 = vld [vmem:[%s9140_s22 + $0x1e80] sm:$0xff]  ;;  %v1167_v40 = vld [vmem:[%s9140_s22 + $0x1e88] sm:$0xff] }
 0x1d4   : > { %6726 = vmatprep.subr.bf16.mxu0 %v8825_v56  ;;  %7054 = vmatprep.subr.bf16.mxu1 %v8827_v57  ;;  %v8873_v56 = vcombine.high %v1126_v47, %v1130_v48  ;;  %v8875_v57 = vcombine.high %v1127_v50, %v1131_v51  ;;  %v1170_v37 = vld [vmem:[%s9140_s22 + $0x1ea0] sm:$0xff]  ;;  %v1171_v41 = vld [vmem:[%s9140_s22 + $0x1ea8] sm:$0xff] }
 0x1d7   : > { %6727 = vmatpush1.bf16.msra.mxu0 %v8824_v9  ;;  %7055 = vmatpush1.bf16.msra.mxu1 %v8826_v3  ;;  %v8872_v9 = vcombine.low %v1126_v47, %v1130_v48  ;;  %v8874_v3 = vcombine.low %v1127_v50, %v1131_v51  ;;  %v1174_v47 = vld [vmem:[%s9140_s22 + $0x1ec0] sm:$0xff]  ;;  %v1175_v50 = vld [vmem:[%s9140_s22 + $0x1ec8] sm:$0xff] }
 0x1d8   : > { %6737 = vmatprep.subr.bf16.mxu0 %v8833_v4  ;;  %7065 = vmatprep.subr.bf16.mxu1 %v8835_v5  ;;  %v8881_v4 = vcombine.high %v1134_v58, %v1138_v61  ;;  %v8883_v5 = vcombine.high %v1135_v62, %v1139_v63  ;;  %v1178_v48 = vld [vmem:[%s9140_s22 + $0x1ee0] sm:$0xff]  ;;  %v1179_v51 = vld [vmem:[%s9140_s22 + $0x1ee8] sm:$0xff] }
 0x1da   : > { %6729 = vmatmul.mubr.bf16.vlgmr.msra.gmra.mrb[0].mxu0 %v9716_v8  ;;  %7057 = vmatmul.mubr.bf16.vlgmr.msra.gmra.mrb[0].mxu1 %v9716_v8 }
 0x1db   : > { %6738 = vmatpush1.bf16.msra.mxu0 %v8832_v13  ;;  %7066 = vmatpush1.bf16.msra.mxu1 %v8834_v14  ;;  %v8880_v13 = vcombine.low %v1134_v58, %v1138_v61  ;;  %v8882_v14 = vcombine.low %v1135_v62, %v1139_v63  ;;  %v1182_v58 = vld [vmem:[%s9140_s22 + $0x1f00] sm:$0xff]  ;;  %v1183_v62 = vld [vmem:[%s9140_s22 + $0x1f08] sm:$0xff] }
 0x1dc   : > { %6739 = vmatprep.subr.bf16.mxu0 %v8841_v15  ;;  %7067 = vmatprep.subr.bf16.mxu1 %v8843_v16  ;;  %v8889_v15 = vcombine.high %v1142_v30, %v1146_v7  ;;  %v8891_v16 = vcombine.high %v1143_v11, %v1147_v12  ;;  %v1186_v61 = vld [vmem:[%s9140_s22 + $0x1f20] sm:$0xff]  ;;  %v1187_v63 = vld [vmem:[%s9140_s22 + $0x1f28] sm:$0xff] }
 0x1dd   : > { %6769 = vmatprep.mubr.bf16.mxu0 %v9724_v19  ;;  %7097 = vmatprep.mubr.bf16.mxu1 %v9724_v19 }
 0x1df   : > { %6740 = vmatpush1.bf16.msra.mxu0 %v8840_v21  ;;  %7068 = vmatpush1.bf16.msra.mxu1 %v8842_v22  ;;  %v8888_v21 = vcombine.low %v1142_v30, %v1146_v7  ;;  %v8890_v22 = vcombine.low %v1143_v11, %v1147_v12  ;;  %v1190_v30 = vld [vmem:[%s9140_s22 + $0x1f40] sm:$0xff]  ;;  %v1191_v11 = vld [vmem:[%s9140_s22 + $0x1f48] sm:$0xff] }
 0x1e0   : > { %6741 = vmatprep.subr.bf16.mxu0 %v8849_v23  ;;  %7069 = vmatprep.subr.bf16.mxu1 %v8851_v25  ;;  %v8897_v23 = vcombine.high %v1150_v2, %v1154_v18  ;;  %v8899_v25 = vcombine.high %v1151_v54, %v1155_v17  ;;  %v1194_v7 = vld [vmem:[%s9140_s22 + $0x1f60] sm:$0xff]  ;;  %v1195_v12 = vld [vmem:[%s9140_s22 + $0x1f68] sm:$0xff] }
 0x1e3   : > { %6742 = vmatpush1.bf16.msra.mxu0 %v8848_v32  ;;  %7070 = vmatpush1.bf16.msra.mxu1 %v8850_v0  ;;  %v8896_v32 = vcombine.low %v1150_v2, %v1154_v18  ;;  %v8898_v0 = vcombine.low %v1151_v54, %v1155_v17  ;;  %v1198_v2 = vld [vmem:[%s9140_s22 + $0x1f80] sm:$0xff]  ;;  %v1199_v54 = vld [vmem:[%s9140_s22 + $0x1f88] sm:$0xff] }
 0x1e4   : > { %6743 = vmatprep.subr.bf16.mxu0 %v8857_v34  ;;  %7071 = vmatprep.subr.bf16.mxu1 %v8859_v35  ;;  %v8905_v34 = vcombine.high %v1158_v26, %v1162_v27  ;;  %v8907_v35 = vcombine.high %v1159_v29, %v1163_v31  ;;  %v1202_v18 = vld [vmem:[%s9140_s22 + $0x1fa0] sm:$0xff]  ;;  %v1203_v17 = vld [vmem:[%s9140_s22 + $0x1fa8] sm:$0xff] }
 0x1e7   : > { %6744 = vmatpush1.bf16.msra.mxu0 %v8856_v42  ;;  %7072 = vmatpush1.bf16.msra.mxu1 %v8858_v43  ;;  %v8904_v42 = vcombine.low %v1158_v26, %v1162_v27  ;;  %v8906_v43 = vcombine.low %v1159_v29, %v1163_v31  ;;  %v1206_v26 = vld [vmem:[%s9140_s22 + $0x1fc0] sm:$0xff]  ;;  %v1207_v29 = vld [vmem:[%s9140_s22 + $0x1fc8] sm:$0xff] }
 0x1e8   : > { %6745 = vmatprep.subr.bf16.mxu0 %v8865_v44  ;;  %7073 = vmatprep.subr.bf16.mxu1 %v8867_v46  ;;  %v8913_v44 = vcombine.high %v1166_v36, %v1170_v37  ;;  %v8915_v46 = vcombine.high %v1167_v40, %v1171_v41  ;;  %v1210_v27 = vld [vmem:[%s9140_s22 + $0x1fe0] sm:$0xff]  ;;  %v1211_v31 = vld [vmem:[%s9140_s22 + $0x1fe8] sm:$0xff] }
 0x1eb   : > { %6746 = vmatpush1.bf16.msra.mxu0 %v8864_v53  ;;  %7074 = vmatpush1.bf16.msra.mxu1 %v8866_v55  ;;  %v8912_v53 = vcombine.low %v1166_v36, %v1170_v37  ;;  %v8914_v55 = vcombine.low %v1167_v40, %v1171_v41  ;;  %v192_v36 = vld [vmem:[%s9140_s22 + $0x10] sm:$0xff]  ;;  %v193_v40 = vld [vmem:[%s9140_s22 + $0x18] sm:$0xff] }
 0x1ec   : > { %6747 = vmatprep.subr.bf16.mxu0 %v8873_v56  ;;  %7075 = vmatprep.subr.bf16.mxu1 %v8875_v57  ;;  %v8921_v56 = vcombine.high %v1174_v47, %v1178_v48  ;;  %v8923_v57 = vcombine.high %v1175_v50, %v1179_v51  ;;  %v196_v37 = vld [vmem:[%s9140_s22 + $0x30] sm:$0xff]  ;;  %v197_v41 = vld [vmem:[%s9140_s22 + $0x38] sm:$0xff] }
 0x1ef   : > { %6748 = vmatpush1.bf16.msra.mxu0 %v8872_v9  ;;  %7076 = vmatpush1.bf16.msra.mxu1 %v8874_v3  ;;  %v8920_v9 = vcombine.low %v1174_v47, %v1178_v48  ;;  %v8922_v3 = vcombine.low %v1175_v50, %v1179_v51  ;;  %v200_v47 = vld [vmem:[%s9140_s22 + $0x50] sm:$0xff]  ;;  %v9792_v50 = vcombine.high %v9716_v8, %v9716_v8  ;;  %v201_v51 = vld [vmem:[%s9140_s22 + $0x58] sm:$0xff] }
 0x1f0   : > { %6749 = vmatprep.subr.bf16.mxu0 %v8881_v4  ;;  %7077 = vmatprep.subr.bf16.mxu1 %v8883_v5  ;;  %v8929_v4 = vcombine.high %v1182_v58, %v1186_v61  ;;  %v8931_v5 = vcombine.high %v1183_v62, %v1187_v63  ;;  %v204_v48 = vld [vmem:[%s9140_s22 + $0x70] sm:$0xff] }
 0x1f3   : > { %6750 = vmatpush1.bf16.msra.mxu0 %v8880_v13  ;;  %7078 = vmatpush1.bf16.msra.mxu1 %v8882_v14  ;;  %v8928_v13 = vcombine.low %v1182_v58, %v1186_v61  ;;  %v8930_v14 = vcombine.low %v1183_v62, %v1187_v63  ;;  %v208_v61 = vld [vmem:[%s9140_s22 + $0x90] sm:$0xff]  ;;  %v209_v63 = vld [vmem:[%s9140_s22 + $0x98] sm:$0xff] }
 0x1f4   : > { %6751 = vmatprep.subr.bf16.mxu0 %v8889_v15  ;;  %7079 = vmatprep.subr.bf16.mxu1 %v8891_v16  ;;  %v8937_v15 = vcombine.high %v1190_v30, %v1194_v7  ;;  %v8939_v16 = vcombine.high %v1191_v11, %v1195_v12  ;;  %v212_v62 = vld [vmem:[%s9140_s22 + $0xb0] sm:$0xff] }
 0x1f7   : > { %6752 = vmatpush1.bf16.msra.mxu0 %v8888_v21  ;;  %7080 = vmatpush1.bf16.msra.mxu1 %v8890_v22  ;;  %v8936_v21 = vcombine.low %v1190_v30, %v1194_v7  ;;  %v8938_v22 = vcombine.low %v1191_v11, %v1195_v12  ;;  %v216_v7 = vld [vmem:[%s9140_s22 + $0xd0] sm:$0xff]  ;;  %v217_v12 = vld [vmem:[%s9140_s22 + $0xd8] sm:$0xff] }
 0x1f8   : > { %6753 = vmatprep.subr.bf16.mxu0 %v8897_v23  ;;  %7081 = vmatprep.subr.bf16.mxu1 %v8899_v25  ;;  %v8945_v23 = vcombine.high %v1198_v2, %v1202_v18  ;;  %v8947_v25 = vcombine.high %v1199_v54, %v1203_v17  ;;  %v220_v11 = vld [vmem:[%s9140_s22 + $0xf0] sm:$0xff] }
 0x1fb   : > { %6754 = vmatpush1.bf16.msra.mxu0 %v8896_v32  ;;  %7082 = vmatpush1.bf16.msra.mxu1 %v8898_v0  ;;  %v8944_v32 = vcombine.low %v1198_v2, %v1202_v18  ;;  %v8946_v0 = vcombine.low %v1199_v54, %v1203_v17  ;;  %v224_v18 = vld [vmem:[%s9140_s22 + $0x110] sm:$0xff]  ;;  %v225_v17 = vld [vmem:[%s9140_s22 + $0x118] sm:$0xff] }
 0x1fc   : > { %6755 = vmatprep.subr.bf16.mxu0 %v8905_v34  ;;  %7083 = vmatprep.subr.bf16.mxu1 %v8907_v35  ;;  %v8953_v34 = vcombine.high %v1206_v26, %v1210_v27  ;;  %v8955_v35 = vcombine.high %v1207_v29, %v1211_v31  ;;  %v228_v54 = vld [vmem:[%s9140_s22 + $0x130] sm:$0xff] }
 0x1ff   : > { %6756 = vmatpush1.bf16.msra.mxu0 %v8904_v42  ;;  %7084 = vmatpush1.bf16.msra.mxu1 %v8906_v43  ;;  %v8952_v42 = vcombine.low %v1206_v26, %v1210_v27  ;;  %v8954_v43 = vcombine.low %v1207_v29, %v1211_v31  ;;  %v232_v26 = vld [vmem:[%s9140_s22 + $0x150] sm:$0xff]  ;;  %v233_v29 = vld [vmem:[%s9140_s22 + $0x158] sm:$0xff] }
 0x200   : > { %6757 = vmatprep.subr.bf16.mxu0 %v8913_v44  ;;  %7085 = vmatprep.subr.bf16.mxu1 %v8915_v46  ;;  %v7941_v44 = vcombine.high %v192_v36, %v196_v37  ;;  %v7943_v46 = vcombine.high %v193_v40, %v197_v41  ;;  %v236_v27 = vld [vmem:[%s9140_s22 + $0x170] sm:$0xff]  ;;  %v237_v31 = vld [vmem:[%s9140_s22 + $0x178] sm:$0xff] }
 0x203   : > { %6758 = vmatpush1.bf16.msra.mxu0 %v8912_v53  ;;  %7086 = vmatpush1.bf16.msra.mxu1 %v8914_v55  ;;  %v205_v53 = vld [vmem:[%s9140_s22 + $0x78] sm:$0xff]  ;;  %v7940_v55 = vcombine.low %v192_v36, %v196_v37  ;;  %v240_v36 = vld [vmem:[%s9140_s22 + $0x190] sm:$0xff] }
 0x204   : > { %6759 = vmatprep.subr.bf16.mxu0 %v8921_v56  ;;  %7087 = vmatprep.subr.bf16.mxu1 %v8923_v57  ;;  %v7942_v56 = vcombine.low %v193_v40, %v197_v41  ;;  %v7949_v57 = vcombine.high %v200_v47, %v204_v48  ;;  %v7951_v58 = vcombine.high %v201_v51, %v205_v53  ;;  %v244_v37 = vld [vmem:[%s9140_s22 + $0x1b0] sm:$0xff]  ;;  %v241_v40 = vld [vmem:[%s9140_s22 + $0x198] sm:$0xff] }
 0x205   : > { %v245_v41 = vld [vmem:[%s9140_s22 + $0x1b8] sm:$0xff] }
 0x207   : > { %6760 = vmatpush1.bf16.msra.mxu0 %v8920_v9  ;;  %7088 = vmatpush1.bf16.msra.mxu1 %v8922_v3  ;;  %v213_v9 = vld [vmem:[%s9140_s22 + $0xb8] sm:$0xff]  ;;  %v7948_v3 = vcombine.low %v200_v47, %v204_v48  ;;  %v248_v47 = vld [vmem:[%s9140_s22 + $0x1d0] sm:$0xff] }
 0x208   : > { %6761 = vmatprep.subr.bf16.mxu0 %v8929_v4  ;;  %7089 = vmatprep.subr.bf16.mxu1 %v8931_v5  ;;  %v7950_v4 = vcombine.low %v201_v51, %v205_v53  ;;  %v7957_v5 = vcombine.high %v208_v61, %v212_v62  ;;  %v7959_v30 = vcombine.high %v209_v63, %v213_v9  ;;  %v252_v48 = vld [vmem:[%s9140_s22 + $0x1f0] sm:$0xff]  ;;  %v249_v51 = vld [vmem:[%s9140_s22 + $0x1d8] sm:$0xff] }
 0x209   : > { %v253_v53 = vld [vmem:[%s9140_s22 + $0x1f8] sm:$0xff] }
 0x20b   : > { %6762 = vmatpush1.bf16.msra.mxu0 %v8928_v13  ;;  %7090 = vmatpush1.bf16.msra.mxu1 %v8930_v14  ;;  %v221_v13 = vld [vmem:[%s9140_s22 + $0xf8] sm:$0xff]  ;;  %v7956_v14 = vcombine.low %v208_v61, %v212_v62  ;;  %v256_v61 = vld [vmem:[%s9140_s22 + $0x210] sm:$0xff] }
 0x20c   : > { %6763 = vmatprep.subr.bf16.mxu0 %v8937_v15  ;;  %7091 = vmatprep.subr.bf16.mxu1 %v8939_v16  ;;  %v7958_v15 = vcombine.low %v209_v63, %v213_v9  ;;  %v7965_v16 = vcombine.high %v216_v7, %v220_v11  ;;  %v7967_v2 = vcombine.high %v217_v12, %v221_v13  ;;  %v260_v62 = vld [vmem:[%s9140_s22 + $0x230] sm:$0xff]  ;;  %v257_v63 = vld [vmem:[%s9140_s22 + $0x218] sm:$0xff] }
 0x20d   : > { %v261_v9 = vld [vmem:[%s9140_s22 + $0x238] sm:$0xff] }
 0x20f   : > { %6764 = vmatpush1.bf16.msra.mxu0 %v8936_v21  ;;  %7092 = vmatpush1.bf16.msra.mxu1 %v8938_v22  ;;  %v229_v21 = vld [vmem:[%s9140_s22 + $0x138] sm:$0xff]  ;;  %v7964_v22 = vcombine.low %v216_v7, %v220_v11  ;;  %v264_v7 = vld [vmem:[%s9140_s22 + $0x250] sm:$0xff] }
 0x210   : > { %6765 = vmatprep.subr.bf16.mxu0 %v8945_v23  ;;  %7093 = vmatprep.subr.bf16.mxu1 %v8947_v25  ;;  %v7973_v23 = vcombine.high %v224_v18, %v228_v54  ;;  %v7975_v25 = vcombine.high %v225_v17, %v229_v21  ;;  %v268_v11 = vld [vmem:[%s9140_s22 + $0x270] sm:$0xff] }
 0x213   : > { %6766 = vmatpush1.bf16.msra.mxu0 %v8944_v32  ;;  %7094 = vmatpush1.bf16.msra.mxu1 %v8946_v0  ;;  %v7972_v32 = vcombine.low %v224_v18, %v228_v54  ;;  %v7974_v0 = vcombine.low %v225_v17, %v229_v21  ;;  %v272_v18 = vld [vmem:[%s9140_s22 + $0x290] sm:$0xff]  ;;  %v273_v17 = vld [vmem:[%s9140_s22 + $0x298] sm:$0xff] }
 0x214   : > { %6767 = vmatprep.subr.bf16.mxu0 %v8953_v34  ;;  %7095 = vmatprep.subr.bf16.mxu1 %v8955_v35  ;;  %v7981_v34 = vcombine.high %v232_v26, %v236_v27  ;;  %v7983_v35 = vcombine.high %v233_v29, %v237_v31  ;;  %v276_v54 = vld [vmem:[%s9140_s22 + $0x2b0] sm:$0xff]  ;;  %v277_v21 = vld [vmem:[%s9140_s22 + $0x2b8] sm:$0xff] }
 0x217   : > { %6768 = vmatpush1.bf16.msra.mxu0 %v8952_v42  ;;  %7096 = vmatpush1.bf16.msra.mxu1 %v8954_v43  ;;  %v7980_v42 = vcombine.low %v232_v26, %v236_v27  ;;  %v7982_v43 = vcombine.low %v233_v29, %v237_v31  ;;  %v280_v26 = vld [vmem:[%s9140_s22 + $0x2d0] sm:$0xff]  ;;  %v281_v29 = vld [vmem:[%s9140_s22 + $0x2d8] sm:$0xff] }
 0x218   : > { %7106 = vmatprep.subr.bf16.mxu0 %v7941_v44  ;;  %7434 = vmatprep.subr.bf16.mxu1 %v7943_v46  ;;  %v7989_v44 = vcombine.high %v240_v36, %v244_v37  ;;  %v7991_v46 = vcombine.high %v241_v40, %v245_v41  ;;  %v284_v27 = vld [vmem:[%s9140_s22 + $0x2f0] sm:$0xff]  ;;  %v285_v31 = vld [vmem:[%s9140_s22 + $0x2f8] sm:$0xff] }
 0x21a   : > { %6770 = vmatmul.mubr.bf16.vlgmr.msra.gmra.mrb[0].mxu0 %v9792_v50  ;;  %7098 = vmatmul.mubr.bf16.vlgmr.msra.gmra.mrb[0].mxu1 %v9792_v50 }
 0x21b   : > { %7107 = vmatpush1.bf16.msra.mxu0 %v7940_v55  ;;  %7435 = vmatpush1.bf16.msra.mxu1 %v7942_v56  ;;  %v7988_v55 = vcombine.low %v240_v36, %v244_v37  ;;  %v7990_v56 = vcombine.low %v241_v40, %v245_v41  ;;  %v288_v36 = vld [vmem:[%s9140_s22 + $0x310] sm:$0xff]  ;;  %v289_v40 = vld [vmem:[%s9140_s22 + $0x318] sm:$0xff] }
 0x21c   : > { %7108 = vmatprep.subr.bf16.mxu0 %v7949_v57  ;;  %7436 = vmatprep.subr.bf16.mxu1 %v7951_v58  ;;  %v7997_v57 = vcombine.high %v248_v47, %v252_v48  ;;  %v7999_v58 = vcombine.high %v249_v51, %v253_v53  ;;  %v292_v37 = vld [vmem:[%s9140_s22 + $0x330] sm:$0xff]  ;;  %v293_v41 = vld [vmem:[%s9140_s22 + $0x338] sm:$0xff] }
 0x21d   : > { %7138 = vmatprep.mubr.bf16.mxu0 %v9198_v10  ;;  %7466 = vmatprep.mubr.bf16.mxu1 %v9198_v10  ;;  %v7966_v10 = vcombine.low %v217_v12, %v221_v13  ;;  %v265_v12 = vld [vmem:[%s9140_s22 + $0x258] sm:$0xff] }
 0x21e   : > { %v269_v13 = vld [vmem:[%s9140_s22 + $0x278] sm:$0xff] }
 0x21f   : > { %7109 = vmatpush1.bf16.msra.mxu0 %v7948_v3  ;;  %7437 = vmatpush1.bf16.msra.mxu1 %v7950_v4  ;;  %v7996_v3 = vcombine.low %v248_v47, %v252_v48  ;;  %v7998_v4 = vcombine.low %v249_v51, %v253_v53  ;;  %v296_v47 = vld [vmem:[%s9140_s22 + $0x350] sm:$0xff]  ;;  %v297_v51 = vld [vmem:[%s9140_s22 + $0x358] sm:$0xff] }
 0x220   : > { %7110 = vmatprep.subr.bf16.mxu0 %v7957_v5  ;;  %7438 = vmatprep.subr.bf16.mxu1 %v7959_v30  ;;  %v8005_v5 = vcombine.high %v256_v61, %v260_v62  ;;  %v8007_v30 = vcombine.high %v257_v63, %v261_v9  ;;  %v300_v48 = vld [vmem:[%s9140_s22 + $0x370] sm:$0xff]  ;;  %v301_v53 = vld [vmem:[%s9140_s22 + $0x378] sm:$0xff] }
 0x223   : > { %7111 = vmatpush1.bf16.msra.mxu0 %v7956_v14  ;;  %7439 = vmatpush1.bf16.msra.mxu1 %v7958_v15  ;;  %v8004_v14 = vcombine.low %v256_v61, %v260_v62  ;;  %v8006_v15 = vcombine.low %v257_v63, %v261_v9  ;;  %v304_v61 = vld [vmem:[%s9140_s22 + $0x390] sm:$0xff]  ;;  %v305_v63 = vld [vmem:[%s9140_s22 + $0x398] sm:$0xff] }
 0x224   : > { %7112 = vmatprep.subr.bf16.mxu0 %v7965_v16  ;;  %7440 = vmatprep.subr.bf16.mxu1 %v7967_v2  ;;  %v8013_v16 = vcombine.high %v264_v7, %v268_v11  ;;  %v8015_v2 = vcombine.high %v265_v12, %v269_v13  ;;  %v308_v62 = vld [vmem:[%s9140_s22 + $0x3b0] sm:$0xff]  ;;  %v309_v9 = vld [vmem:[%s9140_s22 + $0x3b8] sm:$0xff] }
 0x227   : > { %7113 = vmatpush1.bf16.msra.mxu0 %v7964_v22  ;;  %7441 = vmatpush1.bf16.msra.mxu1 %v7966_v10  ;;  %v8012_v22 = vcombine.low %v264_v7, %v268_v11  ;;  %v8014_v10 = vcombine.low %v265_v12, %v269_v13  ;;  %v312_v7 = vld [vmem:[%s9140_s22 + $0x3d0] sm:$0xff]  ;;  %v313_v12 = vld [vmem:[%s9140_s22 + $0x3d8] sm:$0xff] }
 0x228   : > { %7114 = vmatprep.subr.bf16.mxu0 %v7973_v23  ;;  %7442 = vmatprep.subr.bf16.mxu1 %v7975_v25  ;;  %v8021_v23 = vcombine.high %v272_v18, %v276_v54  ;;  %v8023_v25 = vcombine.high %v273_v17, %v277_v21  ;;  %v316_v11 = vld [vmem:[%s9140_s22 + $0x3f0] sm:$0xff]  ;;  %v317_v13 = vld [vmem:[%s9140_s22 + $0x3f8] sm:$0xff] }
 0x22b   : > { %7115 = vmatpush1.bf16.msra.mxu0 %v7972_v32  ;;  %7443 = vmatpush1.bf16.msra.mxu1 %v7974_v0  ;;  %v8020_v32 = vcombine.low %v272_v18, %v276_v54  ;;  %v8022_v0 = vcombine.low %v273_v17, %v277_v21  ;;  %v320_v18 = vld [vmem:[%s9140_s22 + $0x410] sm:$0xff]  ;;  %v321_v17 = vld [vmem:[%s9140_s22 + $0x418] sm:$0xff] }
 0x22c   : > { %7116 = vmatprep.subr.bf16.mxu0 %v7981_v34  ;;  %7444 = vmatprep.subr.bf16.mxu1 %v7983_v35  ;;  %v8029_v34 = vcombine.high %v280_v26, %v284_v27  ;;  %v8031_v35 = vcombine.high %v281_v29, %v285_v31  ;;  %v324_v54 = vld [vmem:[%s9140_s22 + $0x430] sm:$0xff]  ;;  %v325_v21 = vld [vmem:[%s9140_s22 + $0x438] sm:$0xff] }
 0x22f   : > { %7117 = vmatpush1.bf16.msra.mxu0 %v7980_v42  ;;  %7445 = vmatpush1.bf16.msra.mxu1 %v7982_v43  ;;  %v8028_v42 = vcombine.low %v280_v26, %v284_v27  ;;  %v8030_v43 = vcombine.low %v281_v29, %v285_v31  ;;  %v328_v26 = vld [vmem:[%s9140_s22 + $0x450] sm:$0xff]  ;;  %v329_v29 = vld [vmem:[%s9140_s22 + $0x458] sm:$0xff] }
 0x230   : > { %7118 = vmatprep.subr.bf16.mxu0 %v7989_v44  ;;  %7446 = vmatprep.subr.bf16.mxu1 %v7991_v46  ;;  %v8037_v44 = vcombine.high %v288_v36, %v292_v37  ;;  %v8039_v46 = vcombine.high %v289_v40, %v293_v41  ;;  %v332_v27 = vld [vmem:[%s9140_s22 + $0x470] sm:$0xff]  ;;  %v333_v31 = vld [vmem:[%s9140_s22 + $0x478] sm:$0xff] }
 0x233   : > { %7119 = vmatpush1.bf16.msra.mxu0 %v7988_v55  ;;  %7447 = vmatpush1.bf16.msra.mxu1 %v7990_v56  ;;  %v8036_v55 = vcombine.low %v288_v36, %v292_v37  ;;  %v8038_v56 = vcombine.low %v289_v40, %v293_v41  ;;  %v336_v36 = vld [vmem:[%s9140_s22 + $0x490] sm:$0xff]  ;;  %v337_v40 = vld [vmem:[%s9140_s22 + $0x498] sm:$0xff] }
 0x234   : > { %7120 = vmatprep.subr.bf16.mxu0 %v7997_v57  ;;  %7448 = vmatprep.subr.bf16.mxu1 %v7999_v58  ;;  %v8045_v57 = vcombine.high %v296_v47, %v300_v48  ;;  %v8047_v58 = vcombine.high %v297_v51, %v301_v53  ;;  %v340_v37 = vld [vmem:[%s9140_s22 + $0x4b0] sm:$0xff]  ;;  %v341_v41 = vld [vmem:[%s9140_s22 + $0x4b8] sm:$0xff] }
 0x237   : > { %7121 = vmatpush1.bf16.msra.mxu0 %v7996_v3  ;;  %7449 = vmatpush1.bf16.msra.mxu1 %v7998_v4  ;;  %v8044_v3 = vcombine.low %v296_v47, %v300_v48  ;;  %v8046_v4 = vcombine.low %v297_v51, %v301_v53  ;;  %v344_v47 = vld [vmem:[%s9140_s22 + $0x4d0] sm:$0xff]  ;;  %v345_v51 = vld [vmem:[%s9140_s22 + $0x4d8] sm:$0xff] }
 0x238   : > { %7122 = vmatprep.subr.bf16.mxu0 %v8005_v5  ;;  %7450 = vmatprep.subr.bf16.mxu1 %v8007_v30  ;;  %v8053_v5 = vcombine.high %v304_v61, %v308_v62  ;;  %v8055_v30 = vcombine.high %v305_v63, %v309_v9  ;;  %v348_v48 = vld [vmem:[%s9140_s22 + $0x4f0] sm:$0xff]  ;;  %v349_v53 = vld [vmem:[%s9140_s22 + $0x4f8] sm:$0xff] }
 0x23b   : > { %7123 = vmatpush1.bf16.msra.mxu0 %v8004_v14  ;;  %7451 = vmatpush1.bf16.msra.mxu1 %v8006_v15  ;;  %v8052_v14 = vcombine.low %v304_v61, %v308_v62  ;;  %v8054_v15 = vcombine.low %v305_v63, %v309_v9  ;;  %v356_v61 = vld [vmem:[%s9140_s22 + $0x530] sm:$0xff]  ;;  %v353_v62 = vld [vmem:[%s9140_s22 + $0x518] sm:$0xff]  ;;  %v8092_v9 = vcombine.low %v344_v47, %v348_v48 }
 0x23c   : > { %7124 = vmatprep.subr.bf16.mxu0 %v8013_v16  ;;  %7452 = vmatprep.subr.bf16.mxu1 %v8015_v2  ;;  %v8061_v16 = vcombine.high %v312_v7, %v316_v11  ;;  %v8063_v2 = vcombine.high %v313_v12, %v317_v13  ;;  %v357_v63 = vld [vmem:[%s9140_s22 + $0x538] sm:$0xff] }
 0x23f   : > { %7125 = vmatpush1.bf16.msra.mxu0 %v8012_v22  ;;  %7453 = vmatpush1.bf16.msra.mxu1 %v8014_v10  ;;  %v8060_v22 = vcombine.low %v312_v7, %v316_v11  ;;  %v8062_v10 = vcombine.low %v313_v12, %v317_v13  ;;  %v361_v7 = vld [vmem:[%s9140_s22 + $0x558] sm:$0xff]  ;;  %v8102_v13 = vcombine.low %v353_v62, %v357_v63 }
 0x240   : > { %7126 = vmatprep.subr.bf16.mxu0 %v8021_v23  ;;  %7454 = vmatprep.subr.bf16.mxu1 %v8023_v25  ;;  %v8069_v23 = vcombine.high %v320_v18, %v324_v54  ;;  %v8071_v25 = vcombine.high %v321_v17, %v325_v21  ;;  %v365_v11 = vld [vmem:[%s9140_s22 + $0x578] sm:$0xff] }
 0x243   : > { %7127 = vmatpush1.bf16.msra.mxu0 %v8020_v32  ;;  %7455 = vmatpush1.bf16.msra.mxu1 %v8022_v0  ;;  %v8068_v32 = vcombine.low %v320_v18, %v324_v54  ;;  %v8070_v0 = vcombine.low %v321_v17, %v325_v21  ;;  %v369_v18 = vld [vmem:[%s9140_s22 + $0x598] sm:$0xff]  ;;  %v8110_v21 = vcombine.low %v361_v7, %v365_v11 }
 0x244   : > { %7128 = vmatprep.subr.bf16.mxu0 %v8029_v34  ;;  %7456 = vmatprep.subr.bf16.mxu1 %v8031_v35  ;;  %v8077_v34 = vcombine.high %v328_v26, %v332_v27  ;;  %v8079_v35 = vcombine.high %v329_v29, %v333_v31  ;;  %v373_v54 = vld [vmem:[%s9140_s22 + $0x5b8] sm:$0xff] }
 0x247   : > { %7129 = vmatpush1.bf16.msra.mxu0 %v8028_v42  ;;  %7457 = vmatpush1.bf16.msra.mxu1 %v8030_v43  ;;  %v8076_v42 = vcombine.low %v328_v26, %v332_v27  ;;  %v8078_v43 = vcombine.low %v329_v29, %v333_v31  ;;  %v377_v26 = vld [vmem:[%s9140_s22 + $0x5d8] sm:$0xff]  ;;  %v8118_v31 = vcombine.low %v369_v18, %v373_v54 }
 0x248   : > { %7130 = vmatprep.subr.bf16.mxu0 %v8037_v44  ;;  %7458 = vmatprep.subr.bf16.mxu1 %v8039_v46  ;;  %v8085_v44 = vcombine.high %v336_v36, %v340_v37  ;;  %v8087_v46 = vcombine.high %v337_v40, %v341_v41  ;;  %v381_v27 = vld [vmem:[%s9140_s22 + $0x5f8] sm:$0xff] }
 0x24b   : > { %7131 = vmatpush1.bf16.msra.mxu0 %v8036_v55  ;;  %7459 = vmatpush1.bf16.msra.mxu1 %v8038_v56  ;;  %v8086_v55 = vcombine.low %v337_v40, %v341_v41  ;;  %v8093_v56 = vcombine.high %v344_v47, %v348_v48  ;;  %v8126_v41 = vcombine.low %v377_v26, %v381_v27  ;;  %v393_v47 = vld [vmem:[%s9140_s22 + $0x658] sm:$0xff] }
 0x24c   : > { %7132 = vmatprep.subr.bf16.mxu0 %v8045_v57  ;;  %7460 = vmatprep.subr.bf16.mxu1 %v8047_v58  ;;  %v8095_v57 = vcombine.high %v345_v51, %v349_v53  ;;  %v352_v58 = vld [vmem:[%s9140_s22 + $0x510] sm:$0xff]  ;;  %v397_v48 = vld [vmem:[%s9140_s22 + $0x678] sm:$0xff] }
 0x24d   : > { %v8100_v12 = vcombine.low %v352_v58, %v356_v61 }
 0x24f   : > { %7133 = vmatpush1.bf16.msra.mxu0 %v8044_v3  ;;  %7461 = vmatpush1.bf16.msra.mxu1 %v8046_v4  ;;  %v8101_v3 = vcombine.high %v352_v58, %v356_v61  ;;  %v8103_v4 = vcombine.high %v353_v62, %v357_v63  ;;  %v401_v58 = vld [vmem:[%s9140_s22 + $0x698] sm:$0xff]  ;;  %v8142_v63 = vcombine.low %v393_v47, %v397_v48 }
 0x250   : > { %7134 = vmatprep.subr.bf16.mxu0 %v8053_v5  ;;  %7462 = vmatprep.subr.bf16.mxu1 %v8055_v30  ;;  %v360_v5 = vld [vmem:[%s9140_s22 + $0x550] sm:$0xff]  ;;  %v405_v61 = vld [vmem:[%s9140_s22 + $0x6b8] sm:$0xff] }
 0x251   : > { %v364_v30 = vld [vmem:[%s9140_s22 + $0x570] sm:$0xff] }
 0x252   : > { %v8108_v17 = vcombine.low %v360_v5, %v364_v30 }
 0x253   : > { %7135 = vmatpush1.bf16.msra.mxu0 %v8052_v14  ;;  %7463 = vmatpush1.bf16.msra.mxu1 %v8054_v15  ;;  %v8109_v14 = vcombine.high %v360_v5, %v364_v30  ;;  %v8111_v15 = vcombine.high %v361_v7, %v365_v11  ;;  %v409_v5 = vld [vmem:[%s9140_s22 + $0x6d8] sm:$0xff]  ;;  %v8150_v11 = vcombine.low %v401_v58, %v405_v61 }
 0x254   : > { %7136 = vmatprep.subr.bf16.mxu0 %v8061_v16  ;;  %7464 = vmatprep.subr.bf16.mxu1 %v8063_v2  ;;  %v368_v16 = vld [vmem:[%s9140_s22 + $0x590] sm:$0xff]  ;;  %v413_v30 = vld [vmem:[%s9140_s22 + $0x6f8] sm:$0xff] }
 0x255   : > { %v372_v2 = vld [vmem:[%s9140_s22 + $0x5b0] sm:$0xff] }
 0x256   : > { %v8116_v29 = vcombine.low %v368_v16, %v372_v2 }
 0x257   : > { %7137 = vmatpush1.bf16.msra.mxu0 %v8060_v22  ;;  %7465 = vmatpush1.bf16.msra.mxu1 %v8062_v10  ;;  %v8117_v22 = vcombine.high %v368_v16, %v372_v2  ;;  %v8119_v10 = vcombine.high %v369_v18, %v373_v54  ;;  %v417_v16 = vld [vmem:[%s9140_s22 + $0x718] sm:$0xff]  ;;  %v8158_v54 = vcombine.low %v409_v5, %v413_v30 }
 0x258   : > { %7147 = vmatprep.subr.bf16.mxu0 %v8069_v23  ;;  %7475 = vmatprep.subr.bf16.mxu1 %v8071_v25  ;;  %v376_v23 = vld [vmem:[%s9140_s22 + $0x5d0] sm:$0xff]  ;;  %v421_v2 = vld [vmem:[%s9140_s22 + $0x738] sm:$0xff] }
 0x259   : > { %v380_v25 = vld [vmem:[%s9140_s22 + $0x5f0] sm:$0xff] }
 0x25a   : > { %7139 = vmatmul.mubr.bf16.vlgmr.msra.gmra.mrb[4].mxu0 %v9240_v24  ;;  %7467 = vmatmul.mubr.bf16.vlgmr.msra.gmra.mrb[4].mxu1 %v9240_v24  ;;  %v8084_v24 = vcombine.low %v336_v36, %v340_v37  ;;  %v385_v36 = vld [vmem:[%s9140_s22 + $0x618] sm:$0xff]  ;;  %v8124_v40 = vcombine.low %v376_v23, %v380_v25 }
 0x25b   : > { %7148 = vmatpush1.bf16.msra.mxu0 %v8068_v32  ;;  %7476 = vmatpush1.bf16.msra.mxu1 %v8070_v0  ;;  %v8125_v32 = vcombine.high %v376_v23, %v380_v25  ;;  %v8127_v0 = vcombine.high %v377_v26, %v381_v27  ;;  %v389_v37 = vld [vmem:[%s9140_s22 + $0x638] sm:$0xff]  ;;  %v8166_v27 = vcombine.low %v417_v16, %v421_v2 }
 0x25c   : > { %7149 = vmatprep.subr.bf16.mxu0 %v8077_v34  ;;  %7477 = vmatprep.subr.bf16.mxu1 %v8079_v35  ;;  %v384_v34 = vld [vmem:[%s9140_s22 + $0x610] sm:$0xff]  ;;  %v425_v23 = vld [vmem:[%s9140_s22 + $0x758] sm:$0xff] }
 0x25d   : > { %7179 = vmatprep.mubr.bf16.mxu0 %v9248_v33  ;;  %7507 = vmatprep.mubr.bf16.mxu1 %v9248_v33  ;;  %v8094_v33 = vcombine.low %v345_v51, %v349_v53  ;;  %v388_v35 = vld [vmem:[%s9140_s22 + $0x630] sm:$0xff]  ;;  %v8134_v53 = vcombine.low %v385_v36, %v389_v37  ;;  %v429_v25 = vld [vmem:[%s9140_s22 + $0x778] sm:$0xff] }
 0x25e   : > { %v8132_v51 = vcombine.low %v384_v34, %v388_v35 }
 0x25f   : > { %7150 = vmatpush1.bf16.msra.mxu0 %v8076_v42  ;;  %7478 = vmatpush1.bf16.msra.mxu1 %v8078_v43  ;;  %v8133_v42 = vcombine.high %v384_v34, %v388_v35  ;;  %v8135_v43 = vcombine.high %v385_v36, %v389_v37  ;;  %v433_v34 = vld [vmem:[%s9140_s22 + $0x798] sm:$0xff]  ;;  %v8174_v37 = vcombine.low %v425_v23, %v429_v25 }
 0x260   : > { %7151 = vmatprep.subr.bf16.mxu0 %v8085_v44  ;;  %7479 = vmatprep.subr.bf16.mxu1 %v8087_v46  ;;  %v392_v44 = vld [vmem:[%s9140_s22 + $0x650] sm:$0xff]  ;;  %v437_v35 = vld [vmem:[%s9140_s22 + $0x7b8] sm:$0xff] }
 0x261   : > { %v396_v46 = vld [vmem:[%s9140_s22 + $0x670] sm:$0xff] }
 0x262   : > { %v8140_v62 = vcombine.low %v392_v44, %v396_v46 }
 0x263   : > { %7152 = vmatpush1.bf16.msra.mxu0 %v8084_v24  ;;  %7480 = vmatpush1.bf16.msra.mxu1 %v8086_v55  ;;  %v8141_v24 = vcombine.high %v392_v44, %v396_v46  ;;  %v8143_v55 = vcombine.high %v393_v47, %v397_v48  ;;  %v441_v44 = vld [vmem:[%s9140_s22 + $0x7d8] sm:$0xff]  ;;  %v8182_v48 = vcombine.low %v433_v34, %v437_v35 }
 0x264   : > { %7153 = vmatprep.subr.bf16.mxu0 %v8093_v56  ;;  %7481 = vmatprep.subr.bf16.mxu1 %v8095_v57  ;;  %v400_v56 = vld [vmem:[%s9140_s22 + $0x690] sm:$0xff]  ;;  %v445_v46 = vld [vmem:[%s9140_s22 + $0x7f8] sm:$0xff] }
 0x265   : > { %v404_v57 = vld [vmem:[%s9140_s22 + $0x6b0] sm:$0xff] }
 0x266   : > { %v8148_v7 = vcombine.low %v400_v56, %v404_v57 }
 0x267   : > { %7154 = vmatpush1.bf16.msra.mxu0 %v8092_v9  ;;  %7482 = vmatpush1.bf16.msra.mxu1 %v8094_v33  ;;  %v8149_v9 = vcombine.high %v400_v56, %v404_v57  ;;  %v8151_v33 = vcombine.high %v401_v58, %v405_v61  ;;  %v449_v56 = vld [vmem:[%s9140_s22 + $0x818] sm:$0xff]  ;;  %v8190_v61 = vcombine.low %v441_v44, %v445_v46 }
 0x268   : > { %7155 = vmatprep.subr.bf16.mxu0 %v8101_v3  ;;  %7483 = vmatprep.subr.bf16.mxu1 %v8103_v4  ;;  %v408_v3 = vld [vmem:[%s9140_s22 + $0x6d0] sm:$0xff]  ;;  %v453_v57 = vld [vmem:[%s9140_s22 + $0x838] sm:$0xff] }
 0x269   : > { %v412_v4 = vld [vmem:[%s9140_s22 + $0x6f0] sm:$0xff] }
 0x26a   : > { %v8156_v18 = vcombine.low %v408_v3, %v412_v4 }
 0x26b   : > { %7156 = vmatpush1.bf16.msra.mxu0 %v8100_v12  ;;  %7484 = vmatpush1.bf16.msra.mxu1 %v8102_v13  ;;  %v8157_v12 = vcombine.high %v408_v3, %v412_v4  ;;  %v8159_v13 = vcombine.high %v409_v5, %v413_v30  ;;  %v457_v3 = vld [vmem:[%s9140_s22 + $0x858] sm:$0xff]  ;;  %v8198_v30 = vcombine.low %v449_v56, %v453_v57 }
 0x26c   : > { %7157 = vmatprep.subr.bf16.mxu0 %v8109_v14  ;;  %7485 = vmatprep.subr.bf16.mxu1 %v8111_v15  ;;  %v416_v14 = vld [vmem:[%s9140_s22 + $0x710] sm:$0xff]  ;;  %v461_v4 = vld [vmem:[%s9140_s22 + $0x878] sm:$0xff] }
 0x26d   : > { %v420_v15 = vld [vmem:[%s9140_s22 + $0x730] sm:$0xff] }
 0x26e   : > { %v8164_v26 = vcombine.low %v416_v14, %v420_v15 }
 0x26f   : > { %7158 = vmatpush1.bf16.msra.mxu0 %v8108_v17  ;;  %7486 = vmatpush1.bf16.msra.mxu1 %v8110_v21  ;;  %v8165_v17 = vcombine.high %v416_v14, %v420_v15  ;;  %v8167_v21 = vcombine.high %v417_v16, %v421_v2  ;;  %v465_v14 = vld [vmem:[%s9140_s22 + $0x898] sm:$0xff]  ;;  %v8206_v2 = vcombine.low %v457_v3, %v461_v4 }
 0x270   : > { %7159 = vmatprep.subr.bf16.mxu0 %v8117_v22  ;;  %7487 = vmatprep.subr.bf16.mxu1 %v8119_v10  ;;  %v424_v22 = vld [vmem:[%s9140_s22 + $0x750] sm:$0xff]  ;;  %v469_v15 = vld [vmem:[%s9140_s22 + $0x8b8] sm:$0xff] }
 0x271   : > { %v428_v10 = vld [vmem:[%s9140_s22 + $0x770] sm:$0xff] }
 0x272   : > { %v8172_v36 = vcombine.low %v424_v22, %v428_v10 }
 0x273   : > { %7160 = vmatpush1.bf16.msra.mxu0 %v8116_v29  ;;  %7488 = vmatpush1.bf16.msra.mxu1 %v8118_v31  ;;  %v8173_v29 = vcombine.high %v424_v22, %v428_v10  ;;  %v8175_v31 = vcombine.high %v425_v23, %v429_v25  ;;  %v473_v22 = vld [vmem:[%s9140_s22 + $0x8d8] sm:$0xff]  ;;  %v8214_v23 = vcombine.low %v465_v14, %v469_v15 }
 0x274   : > { %7161 = vmatprep.subr.bf16.mxu0 %v8125_v32  ;;  %7489 = vmatprep.subr.bf16.mxu1 %v8127_v0  ;;  %v432_v32 = vld [vmem:[%s9140_s22 + $0x790] sm:$0xff]  ;;  %v477_v10 = vld [vmem:[%s9140_s22 + $0x8f8] sm:$0xff] }
 0x275   : > { %v436_v0 = vld [vmem:[%s9140_s22 + $0x7b0] sm:$0xff] }
 0x276   : > { %v8180_v47 = vcombine.low %v432_v32, %v436_v0 }
 0x277   : > { %7162 = vmatpush1.bf16.msra.mxu0 %v8124_v40  ;;  %7490 = vmatpush1.bf16.msra.mxu1 %v8126_v41  ;;  %v8181_v40 = vcombine.high %v432_v32, %v436_v0  ;;  %v8183_v41 = vcombine.high %v433_v34, %v437_v35  ;;  %v485_v32 = vld [vmem:[%s9140_s22 + $0x938] sm:$0xff] }
 0x278   : > { %7163 = vmatprep.subr.bf16.mxu0 %v8133_v42  ;;  %7491 = vmatprep.subr.bf16.mxu1 %v8135_v43  ;;  %v440_v42 = vld [vmem:[%s9140_s22 + $0x7d0] sm:$0xff] }
 0x279   : > { %v444_v43 = vld [vmem:[%s9140_s22 + $0x7f0] sm:$0xff] }
 0x27a   : > { %v8188_v58 = vcombine.low %v440_v42, %v444_v43 }
 0x27b   : > { %7164 = vmatpush1.bf16.msra.mxu0 %v8132_v51  ;;  %7492 = vmatpush1.bf16.msra.mxu1 %v8134_v53  ;;  %v8189_v51 = vcombine.high %v440_v42, %v444_v43  ;;  %v8191_v53 = vcombine.high %v441_v44, %v445_v46 }
 0x27c   : > { %7165 = vmatprep.subr.bf16.mxu0 %v8141_v24  ;;  %7493 = vmatprep.subr.bf16.mxu1 %v8143_v55  ;;  %v448_v24 = vld [vmem:[%s9140_s22 + $0x810] sm:$0xff] }
 0x27d   : > { %v452_v55 = vld [vmem:[%s9140_s22 + $0x830] sm:$0xff] }
 0x27e   : > { %v8196_v5 = vcombine.low %v448_v24, %v452_v55 }
 0x27f   : > { %7166 = vmatpush1.bf16.msra.mxu0 %v8140_v62  ;;  %7494 = vmatpush1.bf16.msra.mxu1 %v8142_v63  ;;  %v8197_v62 = vcombine.high %v448_v24, %v452_v55  ;;  %v8199_v63 = vcombine.high %v449_v56, %v453_v57 }
 0x280   : > { %7167 = vmatprep.subr.bf16.mxu0 %v8149_v9  ;;  %7495 = vmatprep.subr.bf16.mxu1 %v8151_v33  ;;  %v456_v9 = vld [vmem:[%s9140_s22 + $0x850] sm:$0xff] }
 0x281   : > { %v460_v33 = vld [vmem:[%s9140_s22 + $0x870] sm:$0xff] }
 0x282   : > { %v8204_v16 = vcombine.low %v456_v9, %v460_v33 }
 0x283   : > { %7168 = vmatpush1.bf16.msra.mxu0 %v8148_v7  ;;  %7496 = vmatpush1.bf16.msra.mxu1 %v8150_v11  ;;  %v8205_v7 = vcombine.high %v456_v9, %v460_v33  ;;  %v8207_v11 = vcombine.high %v457_v3, %v461_v4 }
 0x284   : > { %7169 = vmatprep.subr.bf16.mxu0 %v8157_v12  ;;  %7497 = vmatprep.subr.bf16.mxu1 %v8159_v13  ;;  %v464_v12 = vld [vmem:[%s9140_s22 + $0x890] sm:$0xff] }
 0x285   : > { %v468_v13 = vld [vmem:[%s9140_s22 + $0x8b0] sm:$0xff] }
 0x287   : > { %7170 = vmatpush1.bf16.msra.mxu0 %v8156_v18  ;;  %7498 = vmatpush1.bf16.msra.mxu1 %v8158_v54  ;;  %v8213_v18 = vcombine.high %v464_v12, %v468_v13  ;;  %v8215_v54 = vcombine.high %v465_v14, %v469_v15 }
 0x288   : > { %7171 = vmatprep.subr.bf16.mxu0 %v8165_v17  ;;  %7499 = vmatprep.subr.bf16.mxu1 %v8167_v21  ;;  %v472_v17 = vld [vmem:[%s9140_s22 + $0x8d0] sm:$0xff] }
 0x289   : > { %v476_v21 = vld [vmem:[%s9140_s22 + $0x8f0] sm:$0xff] }
 0x28a   : > { %v8221_v25 = vcombine.high %v472_v17, %v476_v21  ;;  %v8220_v0 = vcombine.low %v472_v17, %v476_v21 }
 0x28b   : > { %7172 = vmatpush1.bf16.msra.mxu0 %v8164_v26  ;;  %7500 = vmatpush1.bf16.msra.mxu1 %v8166_v27  ;;  %v8223_v26 = vcombine.high %v473_v22, %v477_v10  ;;  %v480_v27 = vld [vmem:[%s9140_s22 + $0x910] sm:$0xff] }
 0x28c   : > { %7173 = vmatprep.subr.bf16.mxu0 %v8173_v29  ;;  %7501 = vmatprep.subr.bf16.mxu1 %v8175_v31  ;;  %v484_v29 = vld [vmem:[%s9140_s22 + $0x930] sm:$0xff]  ;;  %v481_v31 = vld [vmem:[%s9140_s22 + $0x918] sm:$0xff] }
 0x28d   : > { %v8229_v34 = vcombine.high %v480_v27, %v484_v29  ;;  %v8231_v35 = vcombine.high %v481_v31, %v485_v32  ;;  %v8228_v42 = vcombine.low %v480_v27, %v484_v29  ;;  %v8230_v43 = vcombine.low %v481_v31, %v485_v32 }
 0x28f   : > { %7174 = vmatpush1.bf16.msra.mxu0 %v8172_v36  ;;  %7502 = vmatpush1.bf16.msra.mxu1 %v8174_v37  ;;  %v488_v36 = vld [vmem:[%s9140_s22 + $0x950] sm:$0xff] }
 0x290   : > { %7175 = vmatprep.subr.bf16.mxu0 %v8181_v40  ;;  %7503 = vmatprep.subr.bf16.mxu1 %v8183_v41  ;;  %v492_v37 = vld [vmem:[%s9140_s22 + $0x970] sm:$0xff]  ;;  %v489_v40 = vld [vmem:[%s9140_s22 + $0x958] sm:$0xff] }
 0x291   : > { %v493_v41 = vld [vmem:[%s9140_s22 + $0x978] sm:$0xff]  ;;  %v8237_v44 = vcombine.high %v488_v36, %v492_v37  ;;  %v8236_v24 = vcombine.low %v488_v36, %v492_v37 }
 0x292   : > { %v8239_v46 = vcombine.high %v489_v40, %v493_v41  ;;  %v8238_v55 = vcombine.low %v489_v40, %v493_v41 }
 0x293   : > { %7176 = vmatpush1.bf16.msra.mxu0 %v8180_v47  ;;  %7504 = vmatpush1.bf16.msra.mxu1 %v8182_v48  ;;  %v496_v47 = vld [vmem:[%s9140_s22 + $0x990] sm:$0xff] }
 0x294   : > { %7177 = vmatprep.subr.bf16.mxu0 %v8189_v51  ;;  %7505 = vmatprep.subr.bf16.mxu1 %v8191_v53  ;;  %v500_v48 = vld [vmem:[%s9140_s22 + $0x9b0] sm:$0xff]  ;;  %v497_v51 = vld [vmem:[%s9140_s22 + $0x998] sm:$0xff] }
 0x295   : > { %v501_v53 = vld [vmem:[%s9140_s22 + $0x9b8] sm:$0xff]  ;;  %v8245_v56 = vcombine.high %v496_v47, %v500_v48  ;;  %v8244_v9 = vcombine.low %v496_v47, %v500_v48 }
 0x296   : > { %v8247_v57 = vcombine.high %v497_v51, %v501_v53  ;;  %v8246_v33 = vcombine.low %v497_v51, %v501_v53 }
 0x297   : > { %7178 = vmatpush1.bf16.msra.mxu0 %v8188_v58  ;;  %7506 = vmatpush1.bf16.msra.mxu1 %v8190_v61  ;;  %v504_v58 = vld [vmem:[%s9140_s22 + $0x9d0] sm:$0xff] }
 0x298   : > { %7188 = vmatprep.subr.bf16.mxu0 %v8197_v62  ;;  %7516 = vmatprep.subr.bf16.mxu1 %v8199_v63  ;;  %v508_v61 = vld [vmem:[%s9140_s22 + $0x9f0] sm:$0xff]  ;;  %v505_v62 = vld [vmem:[%s9140_s22 + $0x9d8] sm:$0xff] }
 0x299   : > { %v509_v63 = vld [vmem:[%s9140_s22 + $0x9f8] sm:$0xff]  ;;  %v8253_v3 = vcombine.high %v504_v58, %v508_v61 }
 0x29a   : > { %7180 = vmatmul.mubr.bf16.vlgmr.msra.gmra.mrb[4].mxu0 %v9323_v39  ;;  %7508 = vmatmul.mubr.bf16.vlgmr.msra.gmra.mrb[4].mxu1 %v9323_v39  ;;  %v8212_v39 = vcombine.low %v464_v12, %v468_v13  ;;  %v8255_v4 = vcombine.high %v505_v62, %v509_v63  ;;  %v8252_v12 = vcombine.low %v504_v58, %v508_v61 }
 0x29b   : > { %7189 = vmatpush1.bf16.msra.mxu0 %v8196_v5  ;;  %7517 = vmatpush1.bf16.msra.mxu1 %v8198_v30  ;;  %v512_v5 = vld [vmem:[%s9140_s22 + $0xa10] sm:$0xff]  ;;  %v8254_v13 = vcombine.low %v505_v62, %v509_v63 }
 0x29c   : > { %7190 = vmatprep.subr.bf16.mxu0 %v8205_v7  ;;  %7518 = vmatprep.subr.bf16.mxu1 %v8207_v11  ;;  %v516_v30 = vld [vmem:[%s9140_s22 + $0xa30] sm:$0xff]  ;;  %v513_v7 = vld [vmem:[%s9140_s22 + $0xa18] sm:$0xff] }
 0x29d   : > { %7220 = vmatprep.mubr.bf16.mxu0 %v9330_v49  ;;  %7548 = vmatprep.mubr.bf16.mxu1 %v9330_v49  ;;  %v8222_v49 = vcombine.low %v473_v22, %v477_v10  ;;  %v517_v11 = vld [vmem:[%s9140_s22 + $0xa38] sm:$0xff]  ;;  %v8261_v14 = vcombine.high %v512_v5, %v516_v30  ;;  %v8260_v17 = vcombine.low %v512_v5, %v516_v30 }
 0x29e   : > { %v8263_v15 = vcombine.high %v513_v7, %v517_v11  ;;  %v8262_v21 = vcombine.low %v513_v7, %v517_v11 }
 0x29f   : > { %7191 = vmatpush1.bf16.msra.mxu0 %v8204_v16  ;;  %7519 = vmatpush1.bf16.msra.mxu1 %v8206_v2  ;;  %v520_v16 = vld [vmem:[%s9140_s22 + $0xa50] sm:$0xff] }
 0x2a0   : > { %7192 = vmatprep.subr.bf16.mxu0 %v8213_v18  ;;  %7520 = vmatprep.subr.bf16.mxu1 %v8215_v54  ;;  %v524_v2 = vld [vmem:[%s9140_s22 + $0xa70] sm:$0xff]  ;;  %v521_v18 = vld [vmem:[%s9140_s22 + $0xa58] sm:$0xff] }
 0x2a1   : > { %v525_v54 = vld [vmem:[%s9140_s22 + $0xa78] sm:$0xff]  ;;  %v8269_v22 = vcombine.high %v520_v16, %v524_v2  ;;  %v8268_v27 = vcombine.low %v520_v16, %v524_v2 }
 0x2a2   : > { %v8271_v10 = vcombine.high %v521_v18, %v525_v54  ;;  %v8270_v29 = vcombine.low %v521_v18, %v525_v54 }
 0x2a3   : > { %7193 = vmatpush1.bf16.msra.mxu0 %v8212_v39  ;;  %7521 = vmatpush1.bf16.msra.mxu1 %v8214_v23  ;;  %v528_v39 = vld [vmem:[%s9140_s22 + $0xa90] sm:$0xff] }
 0x2a4   : > { %7194 = vmatprep.subr.bf16.mxu0 %v8221_v25  ;;  %7522 = vmatprep.subr.bf16.mxu1 %v8223_v26  ;;  %v532_v23 = vld [vmem:[%s9140_s22 + $0xab0] sm:$0xff]  ;;  %v529_v25 = vld [vmem:[%s9140_s22 + $0xa98] sm:$0xff] }
 0x2a5   : > { %v533_v26 = vld [vmem:[%s9140_s22 + $0xab8] sm:$0xff]  ;;  %v8277_v31 = vcombine.high %v528_v39, %v532_v23  ;;  %v8276_v36 = vcombine.low %v528_v39, %v532_v23 }
 0x2a6   : > { %v8279_v32 = vcombine.high %v529_v25, %v533_v26  ;;  %v8278_v37 = vcombine.low %v529_v25, %v533_v26 }
 0x2a7   : > { %7195 = vmatpush1.bf16.msra.mxu0 %v8220_v0  ;;  %7523 = vmatpush1.bf16.msra.mxu1 %v8222_v49  ;;  %v536_v0 = vld [vmem:[%s9140_s22 + $0xad0] sm:$0xff] }
 0x2a8   : > { %7196 = vmatprep.subr.bf16.mxu0 %v8229_v34  ;;  %7524 = vmatprep.subr.bf16.mxu1 %v8231_v35  ;;  %v540_v49 = vld [vmem:[%s9140_s22 + $0xaf0] sm:$0xff]  ;;  %v537_v34 = vld [vmem:[%s9140_s22 + $0xad8] sm:$0xff] }
 0x2a9   : > { %v541_v35 = vld [vmem:[%s9140_s22 + $0xaf8] sm:$0xff]  ;;  %v8285_v40 = vcombine.high %v536_v0, %v540_v49  ;;  %v8284_v47 = vcombine.low %v536_v0, %v540_v49 }
 0x2aa   : > { %v8287_v41 = vcombine.high %v537_v34, %v541_v35  ;;  %v8286_v48 = vcombine.low %v537_v34, %v541_v35 }
 0x2ab   : > { %7197 = vmatpush1.bf16.msra.mxu0 %v8228_v42  ;;  %7525 = vmatpush1.bf16.msra.mxu1 %v8230_v43  ;;  %v544_v42 = vld [vmem:[%s9140_s22 + $0xb10] sm:$0xff] }
 0x2ac   : > { %7198 = vmatprep.subr.bf16.mxu0 %v8237_v44  ;;  %7526 = vmatprep.subr.bf16.mxu1 %v8239_v46  ;;  %v548_v43 = vld [vmem:[%s9140_s22 + $0xb30] sm:$0xff]  ;;  %v545_v44 = vld [vmem:[%s9140_s22 + $0xb18] sm:$0xff] }
 0x2ad   : > { %v549_v46 = vld [vmem:[%s9140_s22 + $0xb38] sm:$0xff]  ;;  %v8293_v51 = vcombine.high %v544_v42, %v548_v43  ;;  %v8292_v58 = vcombine.low %v544_v42, %v548_v43 }
 0x2ae   : > { %v8295_v53 = vcombine.high %v545_v44, %v549_v46  ;;  %v8294_v61 = vcombine.low %v545_v44, %v549_v46 }
 0x2af   : > { %7199 = vmatpush1.bf16.msra.mxu0 %v8236_v24  ;;  %7527 = vmatpush1.bf16.msra.mxu1 %v8238_v55  ;;  %v552_v24 = vld [vmem:[%s9140_s22 + $0xb50] sm:$0xff] }
 0x2b0   : > { %7200 = vmatprep.subr.bf16.mxu0 %v8245_v56  ;;  %7528 = vmatprep.subr.bf16.mxu1 %v8247_v57  ;;  %v556_v55 = vld [vmem:[%s9140_s22 + $0xb70] sm:$0xff]  ;;  %v553_v56 = vld [vmem:[%s9140_s22 + $0xb58] sm:$0xff] }
 0x2b1   : > { %v557_v57 = vld [vmem:[%s9140_s22 + $0xb78] sm:$0xff]  ;;  %v8301_v62 = vcombine.high %v552_v24, %v556_v55  ;;  %v8300_v5 = vcombine.low %v552_v24, %v556_v55 }
 0x2b2   : > { %v8303_v63 = vcombine.high %v553_v56, %v557_v57  ;;  %v8302_v30 = vcombine.low %v553_v56, %v557_v57  ;;  %v608_v57 = vld [vmem:[%s9140_s22 + $0xd10] sm:$0xff] }
 0x2b3   : > { %7201 = vmatpush1.bf16.msra.mxu0 %v8244_v9  ;;  %7529 = vmatpush1.bf16.msra.mxu1 %v8246_v33  ;;  %v560_v9 = vld [vmem:[%s9140_s22 + $0xb90] sm:$0xff] }
 0x2b4   : > { %7202 = vmatprep.subr.bf16.mxu0 %v8253_v3  ;;  %7530 = vmatprep.subr.bf16.mxu1 %v8255_v4  ;;  %v564_v33 = vld [vmem:[%s9140_s22 + $0xbb0] sm:$0xff]  ;;  %v561_v3 = vld [vmem:[%s9140_s22 + $0xb98] sm:$0xff] }
 0x2b5   : > { %v565_v4 = vld [vmem:[%s9140_s22 + $0xbb8] sm:$0xff]  ;;  %v8309_v7 = vcombine.high %v560_v9, %v564_v33  ;;  %v8308_v16 = vcombine.low %v560_v9, %v564_v33 }
 0x2b6   : > { %v8311_v11 = vcombine.high %v561_v3, %v565_v4  ;;  %v8310_v2 = vcombine.low %v561_v3, %v565_v4  ;;  %v9099_v3 = vmov 1983009808  }
 0x2b7   : > { %7203 = vmatpush1.bf16.msra.mxu0 %v8252_v12  ;;  %7531 = vmatpush1.bf16.msra.mxu1 %v8254_v13  ;;  %v568_v12 = vld [vmem:[%s9140_s22 + $0xbd0] sm:$0xff]  ;;  %v7773_v4 = vunpack.c.l.s4 %v9099_v3  ;;  %v653_v3 = vld [vmem:[%s9140_s22 + $0xe78] sm:$0xff] }
 0x2b8   : > { %7204 = vmatprep.subr.bf16.mxu0 %v8261_v14  ;;  %7532 = vmatprep.subr.bf16.mxu1 %v8263_v15  ;;  %v572_v13 = vld [vmem:[%s9140_s22 + $0xbf0] sm:$0xff]  ;;  %v569_v14 = vld [vmem:[%s9140_s22 + $0xbd8] sm:$0xff] }
 0x2b9   : > { %v573_v15 = vld [vmem:[%s9140_s22 + $0xbf8] sm:$0xff]  ;;  %v8317_v18 = vcombine.high %v568_v12, %v572_v13  ;;  %v8316_v39 = vcombine.low %v568_v12, %v572_v13 }
 0x2ba   : > { %v8319_v54 = vcombine.high %v569_v14, %v573_v15  ;;  %v8318_v23 = vcombine.low %v569_v14, %v573_v15  ;;  %v7774_v15 = vunpack.c.0.s8 %v7773_v4 }
 0x2bb   : > { %7205 = vmatpush1.bf16.msra.mxu0 %v8260_v17  ;;  %7533 = vmatpush1.bf16.msra.mxu1 %v8262_v21  ;;  %v576_v17 = vld [vmem:[%s9140_s22 + $0xc10] sm:$0xff] }
 0x2bc   : > { %7206 = vmatprep.subr.bf16.mxu0 %v8269_v22  ;;  %7534 = vmatprep.subr.bf16.mxu1 %v8271_v10  ;;  %v580_v21 = vld [vmem:[%s9140_s22 + $0xc30] sm:$0xff]  ;;  %v577_v22 = vld [vmem:[%s9140_s22 + $0xc18] sm:$0xff] }
 0x2bd   : > { %v581_v10 = vld [vmem:[%s9140_s22 + $0xc38] sm:$0xff]  ;;  %v8325_v25 = vcombine.high %v576_v17, %v580_v21  ;;  %v8324_v0 = vcombine.low %v576_v17, %v580_v21 }
 0x2be   : > { %v8327_v26 = vcombine.high %v577_v22, %v581_v10  ;;  %v8326_v49 = vcombine.low %v577_v22, %v581_v10  ;;  %v629_v17 = vld [vmem:[%s9140_s22 + $0xdb8] sm:$0xff] }
 0x2bf   : > { %7207 = vmatpush1.bf16.msra.mxu0 %v8268_v27  ;;  %7535 = vmatpush1.bf16.msra.mxu1 %v8270_v29  ;;  %v584_v27 = vld [vmem:[%s9140_s22 + $0xc50] sm:$0xff] }
 0x2c0   : > { %7208 = vmatprep.subr.bf16.mxu0 %v8277_v31  ;;  %7536 = vmatprep.subr.bf16.mxu1 %v8279_v32  ;;  %v588_v29 = vld [vmem:[%s9140_s22 + $0xc70] sm:$0xff]  ;;  %v585_v31 = vld [vmem:[%s9140_s22 + $0xc58] sm:$0xff] }
 0x2c1   : > { %v589_v32 = vld [vmem:[%s9140_s22 + $0xc78] sm:$0xff]  ;;  %v8333_v34 = vcombine.high %v584_v27, %v588_v29  ;;  %v8332_v42 = vcombine.low %v584_v27, %v588_v29  ;;  %v636_v27 = vld [vmem:[%s9140_s22 + $0xdf0] sm:$0xff] }
 0x2c2   : > { %v8335_v35 = vcombine.high %v585_v31, %v589_v32  ;;  %v8334_v43 = vcombine.low %v585_v31, %v589_v32  ;;  %v633_v32 = vld [vmem:[%s9140_s22 + $0xdd8] sm:$0xff] }
 0x2c3   : > { %7209 = vmatpush1.bf16.msra.mxu0 %v8276_v36  ;;  %7537 = vmatpush1.bf16.msra.mxu1 %v8278_v37  ;;  %v592_v36 = vld [vmem:[%s9140_s22 + $0xc90] sm:$0xff] }
 0x2c4   : > { %7210 = vmatprep.subr.bf16.mxu0 %v8285_v40  ;;  %7538 = vmatprep.subr.bf16.mxu1 %v8287_v41  ;;  %v596_v37 = vld [vmem:[%s9140_s22 + $0xcb0] sm:$0xff]  ;;  %v593_v40 = vld [vmem:[%s9140_s22 + $0xc98] sm:$0xff] }
 0x2c5   : > { %v597_v41 = vld [vmem:[%s9140_s22 + $0xcb8] sm:$0xff]  ;;  %v8341_v44 = vcombine.high %v592_v36, %v596_v37 }
 0x2c6   : > { %v8343_v46 = vcombine.high %v593_v40, %v597_v41  ;;  %v8342_v24 = vcombine.low %v593_v40, %v597_v41 }
 0x2c7   : > { %7211 = vmatpush1.bf16.msra.mxu0 %v8284_v47  ;;  %7539 = vmatpush1.bf16.msra.mxu1 %v8286_v48  ;;  %v600_v47 = vld [vmem:[%s9140_s22 + $0xcd0] sm:$0xff] }
 0x2c8   : > { %7212 = vmatprep.subr.bf16.mxu0 %v8293_v51  ;;  %7540 = vmatprep.subr.bf16.mxu1 %v8295_v53  ;;  %v604_v48 = vld [vmem:[%s9140_s22 + $0xcf0] sm:$0xff]  ;;  %v601_v51 = vld [vmem:[%s9140_s22 + $0xcd8] sm:$0xff] }
 0x2c9   : > { %v605_v53 = vld [vmem:[%s9140_s22 + $0xcf8] sm:$0xff]  ;;  %v8349_v55 = vcombine.high %v600_v47, %v604_v48 }
 0x2ca   : > { %v8351_v56 = vcombine.high %v601_v51, %v605_v53 }
 0x2cb   : > { %7213 = vmatpush1.bf16.msra.mxu0 %v8292_v58  ;;  %7541 = vmatpush1.bf16.msra.mxu1 %v8294_v61  ;;  %v612_v58 = vld [vmem:[%s9140_s22 + $0xd30] sm:$0xff]  ;;  %v609_v61 = vld [vmem:[%s9140_s22 + $0xd18] sm:$0xff] }
 0x2cc   : > { %7214 = vmatprep.subr.bf16.mxu0 %v8301_v62  ;;  %7542 = vmatprep.subr.bf16.mxu1 %v8303_v63  ;;  %v613_v62 = vld [vmem:[%s9140_s22 + $0xd38] sm:$0xff]  ;;  %v8348_v63 = vcombine.low %v600_v47, %v604_v48  ;;  %v8357_v9 = vcombine.high %v608_v57, %v612_v58  ;;  %v8356_v12 = vcombine.low %v608_v57, %v612_v58  ;;  %v640_v48 = vld [vmem:[%s9140_s22 + $0xe10] sm:$0xff] }
 0x2cd   : > { %v8359_v33 = vcombine.high %v609_v61, %v613_v62  ;;  %v8358_v13 = vcombine.low %v609_v61, %v613_v62 }
 0x2cf   : > { %7215 = vmatpush1.bf16.msra.mxu0 %v8300_v5  ;;  %7543 = vmatpush1.bf16.msra.mxu1 %v8302_v30  ;;  %v616_v5 = vld [vmem:[%s9140_s22 + $0xd50] sm:$0xff] }
 0x2d0   : > { %7216 = vmatprep.subr.bf16.mxu0 %v8309_v7  ;;  %7544 = vmatprep.subr.bf16.mxu1 %v8311_v11  ;;  %v620_v30 = vld [vmem:[%s9140_s22 + $0xd70] sm:$0xff]  ;;  %v617_v7 = vld [vmem:[%s9140_s22 + $0xd58] sm:$0xff] }
 0x2d1   : > { %v621_v11 = vld [vmem:[%s9140_s22 + $0xd78] sm:$0xff]  ;;  %v8365_v14 = vcombine.high %v616_v5, %v620_v30  ;;  %v8364_v21 = vcombine.low %v616_v5, %v620_v30 }
 0x2d2   : > { %v8366_v22 = vcombine.low %v617_v7, %v621_v11 }
 0x2d3   : > { %7217 = vmatpush1.bf16.msra.mxu0 %v8308_v16  ;;  %7545 = vmatpush1.bf16.msra.mxu1 %v8310_v2  ;;  %v8367_v16 = vcombine.high %v617_v7, %v621_v11  ;;  %v624_v2 = vld [vmem:[%s9140_s22 + $0xd90] sm:$0xff] }
 0x2d4   : > { %7218 = vmatprep.subr.bf16.mxu0 %v8317_v18  ;;  %7546 = vmatprep.subr.bf16.mxu1 %v8319_v54  ;;  %v628_v18 = vld [vmem:[%s9140_s22 + $0xdb0] sm:$0xff]  ;;  %v625_v54 = vld [vmem:[%s9140_s22 + $0xd98] sm:$0xff] }
 0x2d5   : > { %v8373_v10 = vcombine.high %v624_v2, %v628_v18  ;;  %v656_v11 = vld [vmem:[%s9140_s22 + $0xe90] sm:$0xff] }
 0x2d7   : > { %7219 = vmatpush1.bf16.msra.mxu0 %v8316_v39  ;;  %7547 = vmatpush1.bf16.msra.mxu1 %v8318_v23  ;;  %v10025_v23 = vsub.s32 %v7774_v15, %v9171_v45 }
 0x2d8   : > { %7229 = vmatprep.subr.bf16.mxu0 %v8325_v25  ;;  %7557 = vmatprep.subr.bf16.mxu1 %v8327_v26  ;;  %v8375_v25 = vcombine.high %v625_v54, %v629_v17  ;;  %v632_v26 = vld [vmem:[%s9140_s22 + $0xdd0] sm:$0xff] }
 0x2da   : > { %7221 = vmatmul.mubr.bf16.vlgmr.msra.gmra.mrb[4].mxu0 %v9398_v59  ;;  %7549 = vmatmul.mubr.bf16.vlgmr.msra.gmra.mrb[4].mxu1 %v9398_v59  ;;  %v8340_v59 = vcombine.low %v592_v36, %v596_v37  ;;  %v8372_v36 = vcombine.low %v624_v2, %v628_v18 }
 0x2db   : > { %7230 = vmatpush1.bf16.msra.mxu0 %v8324_v0  ;;  %7558 = vmatpush1.bf16.msra.mxu1 %v8326_v49  ;;  %v637_v0 = vld [vmem:[%s9140_s22 + $0xdf8] sm:$0xff] }
 0x2dc   : > { %7231 = vmatprep.subr.bf16.mxu0 %v8333_v34  ;;  %7559 = vmatprep.subr.bf16.mxu1 %v8335_v35  ;;  %v8383_v47 = vcombine.high %v633_v32, %v637_v0  ;;  %v8382_v58 = vcombine.low %v633_v32, %v637_v0  ;;  %v677_v32 = vld [vmem:[%s9140_s22 + $0xf38] sm:$0xff] }
 0x2dd   : > { %7261 = vmatprep.mubr.bf16.mxu0 %v9406_v6  ;;  %7589 = vmatprep.mubr.bf16.mxu1 %v9406_v6  ;;  %v8350_v6 = vcombine.low %v601_v51, %v605_v53  ;;  %v644_v51 = vld [vmem:[%s9140_s22 + $0xe30] sm:$0xff] }
 0x2de   : > { %v8389_v61 = vcombine.high %v640_v48, %v644_v51  ;;  %v8388_v4 = vcombine.low %v640_v48, %v644_v51  ;;  %v692_v48 = vld [vmem:[%s9140_s22 + $0xfb0] sm:$0xff]  ;;  %v689_v51 = vld [vmem:[%s9140_s22 + $0xf98] sm:$0xff] }
 0x2df   : > { %7232 = vmatpush1.bf16.msra.mxu0 %v8332_v42  ;;  %7560 = vmatpush1.bf16.msra.mxu1 %v8334_v43  ;;  %v8374_v42 = vcombine.low %v625_v54, %v629_v17  ;;  %v8381_v43 = vcombine.high %v632_v26, %v636_v27  ;;  %v664_v54 = vld [vmem:[%s9140_s22 + $0xed0] sm:$0xff] }
 0x2e0   : > { %7233 = vmatprep.subr.bf16.mxu0 %v8341_v44  ;;  %7561 = vmatprep.subr.bf16.mxu1 %v8343_v46  ;;  %v668_v17 = vld [vmem:[%s9140_s22 + $0xef0] sm:$0xff] }
 0x2e1   : > { %v8412_v0 = vcombine.low %v664_v54, %v668_v17 }
 0x2e3   : > { %7234 = vmatpush1.bf16.msra.mxu0 %v8340_v59  ;;  %7562 = vmatpush1.bf16.msra.mxu1 %v8342_v24  ;;  %v641_v59 = vld [vmem:[%s9140_s22 + $0xe18] sm:$0xff] }
 0x2e4   : > { %7235 = vmatprep.subr.bf16.mxu0 %v8349_v55  ;;  %7563 = vmatprep.subr.bf16.mxu1 %v8351_v56  ;;  %v645_v24 = vld [vmem:[%s9140_s22 + $0xe38] sm:$0xff]  ;;  %v186_v55 = vld [vmem:[%s10387_s3] sm:$0xff]  ;;  %v8380_v56 = vcombine.low %v632_v26, %v636_v27  ;;  %v672_v27 = vld [vmem:[%s9140_s22 + $0xf10] sm:$0xff] }
 0x2e5   : > { %v8391_v62 = vcombine.high %v641_v59, %v645_v24  ;;  %v8390_v5 = vcombine.low %v641_v59, %v645_v24 }
 0x2e7   : > { %7236 = vmatpush1.bf16.msra.mxu0 %v8348_v63  ;;  %7564 = vmatpush1.bf16.msra.mxu1 %v8350_v6  ;;  %v648_v63 = vld [vmem:[%s9140_s22 + $0xe50] sm:$0xff] }
 0x2e8   : > { %7237 = vmatprep.subr.bf16.mxu0 %v8357_v9  ;;  %7565 = vmatprep.subr.bf16.mxu1 %v8359_v33  ;;  %v652_v6 = vld [vmem:[%s9140_s22 + $0xe70] sm:$0xff]  ;;  %v649_v33 = vld [vmem:[%s9140_s22 + $0xe58] sm:$0xff] }
 0x2e9   : > { %v8397_v30 = vcombine.high %v648_v63, %v652_v6  ;;  %v8399_v7 = vcombine.high %v649_v33, %v653_v3  ;;  %v8396_v15 = vcombine.low %v648_v63, %v652_v6 }
 0x2eb   : > { %7238 = vmatpush1.bf16.msra.mxu0 %v8356_v12  ;;  %7566 = vmatpush1.bf16.msra.mxu1 %v8358_v13  ;;  %v660_v12 = vld [vmem:[%s9140_s22 + $0xeb0] sm:$0xff]  ;;  %v657_v13 = vld [vmem:[%s9140_s22 + $0xe98] sm:$0xff] }
 0x2ec   : > { %7239 = vmatprep.subr.bf16.mxu0 %v8365_v14  ;;  %7567 = vmatprep.subr.bf16.mxu1 %v8367_v16  ;;  %v661_v14 = vld [vmem:[%s9140_s22 + $0xeb8] sm:$0xff]  ;;  %v8398_v16 = vcombine.low %v649_v33, %v653_v3  ;;  %v8405_v2 = vcombine.high %v656_v11, %v660_v12  ;;  %v704_v3 = vld [vmem:[%s9140_s22 + $0x1010] sm:$0xff] }
 0x2ed   : > { %v6771_v39 = vpop.f32.mrb[0].mxu0  ;;  %v7099_v29 = vpop.f32.mrb[0].mxu1  ;;  %v8407_v18 = vcombine.high %v657_v13, %v661_v14 }
 0x2ee   : > { %v6773_v31 = vpop.f32.mrb[1].mxu0  ;;  %v7101_v34 = vpop.f32.mrb[1].mxu1 }
 0x2ef   : > { %v7770_v49 = vcombine.low %v6771_v39, %v6773_v31  ;;  %v6775_v35 = vpop.f32.mrb[2].mxu0  ;;  %7240 = vmatpush1.bf16.msra.mxu0 %v8364_v21  ;;  %v7771_v37 = vcombine.low %v7099_v29, %v7101_v34  ;;  %v7103_v40 = vpop.f32.mrb[2].mxu1  ;;  %7568 = vmatpush1.bf16.msra.mxu1 %v8366_v22  ;;  %v665_v21 = vld [vmem:[%s9140_s22 + $0xed8] sm:$0xff]  ;;  %v8406_v39 = vcombine.low %v657_v13, %v661_v14  ;;  %v676_v29 = vld [vmem:[%s9140_s22 + $0xf30] sm:$0xff] }
 0x2f0   : > { %v6776_v41 = vpop.f32.mrb[3].mxu0  ;;  %7241 = vmatprep.subr.bf16.mxu0 %v8373_v10  ;;  %v7104_v46 = vpop.f32.mrb[3].mxu1  ;;  %7569 = vmatprep.subr.bf16.mxu1 %v8375_v25  ;;  %v669_v22 = vld [vmem:[%s9140_s22 + $0xef8] sm:$0xff]  ;;  %v8404_v10 = vcombine.low %v656_v11, %v660_v12  ;;  %v8413_v25 = vcombine.high %v664_v54, %v668_v17  ;;  %v8421_v34 = vcombine.high %v672_v27, %v676_v29  ;;  %v712_v14 = vld [vmem:[%s9140_s22 + $0x1050] sm:$0xff] }
 0x2f1   : > { %v7778_v44 = vrot.slane %v7770_v49, %v10025_v23  ;;  %v7785_v53 = vrot.slane %v7771_v37, %v10025_v23  ;;  %v8415_v26 = vcombine.high %v665_v21, %v669_v22  ;;  %v673_v31 = vld [vmem:[%s9140_s22 + $0xf18] sm:$0xff]  ;;  %v8414_v49 = vcombine.low %v665_v21, %v669_v22  ;;  %v684_v37 = vld [vmem:[%s9140_s22 + $0xf70] sm:$0xff] }
 0x2f2   : > { %v8423_v35 = vcombine.high %v673_v31, %v677_v32  ;;  %v681_v40 = vld [vmem:[%s9140_s22 + $0xf58] sm:$0xff]  ;;  %v720_v22 = vld [vmem:[%s9140_s22 + $0x1090] sm:$0xff] }
 0x2f3   : > { %7242 = vmatpush1.bf16.msra.mxu0 %v8372_v36  ;;  %v7786_v57 = vcombine.low %v7778_v44, %v7785_v53  ;;  %7570 = vmatpush1.bf16.msra.mxu1 %v8374_v42  ;;  %v680_v36 = vld [vmem:[%s9140_s22 + $0xf50] sm:$0xff]  ;;  %v685_v41 = vld [vmem:[%s9140_s22 + $0xf78] sm:$0xff]  ;;  %v8420_v42 = vcombine.low %v672_v27, %v676_v29 }
 0x2f4   : > { %7243 = vmatprep.subr.bf16.mxu0 %v8381_v43  ;;  %7571 = vmatprep.subr.bf16.mxu1 %v8383_v47  ;;  %v8422_v43 = vcombine.low %v673_v31, %v677_v32  ;;  %v8429_v44 = vcombine.high %v680_v36, %v684_v37  ;;  %v8431_v46 = vcombine.high %v681_v40, %v685_v41  ;;  %v688_v47 = vld [vmem:[%s9140_s22 + $0xf90] sm:$0xff]  ;;  %v693_v53 = vld [vmem:[%s9140_s22 + $0xfb8] sm:$0xff] }
 0x2f5   : > { %v7806_v9 = vadd.f32 %v7786_v57, %v186_v55  ;;  %v8428_v59 = vcombine.low %v680_v36, %v684_v37  ;;  %v8430_v24 = vcombine.low %v681_v40, %v685_v41  ;;  %v8437_v55 = vcombine.high %v688_v47, %v692_v48  ;;  %v696_v57 = vld [vmem:[%s9140_s22 + $0xfd0] sm:$0xff] }
 0x2f6   : > { %v8436_v63 = vcombine.low %v688_v47, %v692_v48  ;;  %v8438_v6 = vcombine.low %v689_v51, %v693_v53  ;;  %v728_v32 = vld [vmem:[%s9140_s22 + $0x10d0] sm:$0xff] }
 0x2f7   : > { %7244 = vmatpush1.bf16.msra.mxu0 %v8380_v56  ;;  %7808 = vst [vmem:[%s10387_s3] sm:$0xff] %v7806_v9  ;;  %7572 = vmatpush1.bf16.msra.mxu1 %v8382_v58  ;;  %v8439_v56 = vcombine.high %v689_v51, %v693_v53  ;;  %v700_v58 = vld [vmem:[%s9140_s22 + $0xff0] sm:$0xff]  ;;  %v745_v53 = vld [vmem:[%s9140_s22 + $0x1158] sm:$0xff] }
 0x2f8   : > { %7245 = vmatprep.subr.bf16.mxu0 %v8389_v61  ;;  %7573 = vmatprep.subr.bf16.mxu1 %v8391_v62  ;;  %v697_v61 = vld [vmem:[%s9140_s22 + $0xfd8] sm:$0xff]  ;;  %v8445_v9 = vcombine.high %v696_v57, %v700_v58  ;;  %v736_v40 = vld [vmem:[%s9140_s22 + $0x1110] sm:$0xff] }
 0x2f9   : > { %v701_v62 = vld [vmem:[%s9140_s22 + $0xff8] sm:$0xff]  ;;  %v740_v41 = vld [vmem:[%s9140_s22 + $0x1130] sm:$0xff] }
 0x2fa   : > { %v8447_v33 = vcombine.high %v697_v61, %v701_v62  ;;  %v8446_v11 = vcombine.low %v697_v61, %v701_v62  ;;  %v744_v48 = vld [vmem:[%s9140_s22 + $0x1150] sm:$0xff]  ;;  %v753_v62 = vld [vmem:[%s9140_s22 + $0x1198] sm:$0xff] }
 0x2fb   : > { %7246 = vmatpush1.bf16.msra.mxu0 %v8388_v4  ;;  %7574 = vmatpush1.bf16.msra.mxu1 %v8390_v5  ;;  %v708_v4 = vld [vmem:[%s9140_s22 + $0x1030] sm:$0xff]  ;;  %v705_v5 = vld [vmem:[%s9140_s22 + $0x1018] sm:$0xff] }
 0x2fc   : > { %7247 = vmatprep.subr.bf16.mxu0 %v8397_v30  ;;  %7575 = vmatprep.subr.bf16.mxu1 %v8399_v7  ;;  %v709_v30 = vld [vmem:[%s9140_s22 + $0x1038] sm:$0xff]  ;;  %v8444_v7 = vcombine.low %v696_v57, %v700_v58  ;;  %v8453_v12 = vcombine.high %v704_v3, %v708_v4  ;;  %v748_v51 = vld [vmem:[%s9140_s22 + $0x1170] sm:$0xff] }
 0x2fd   : > { %v8455_v13 = vcombine.high %v705_v5, %v709_v30  ;;  %v8454_v54 = vcombine.low %v705_v5, %v709_v30  ;;  %v752_v58 = vld [vmem:[%s9140_s22 + $0x1190] sm:$0xff]  ;;  %v761_v30 = vld [vmem:[%s9140_s22 + $0x11d8] sm:$0xff] }
 0x2fe   : > { %v756_v61 = vld [vmem:[%s9140_s22 + $0x11b0] sm:$0xff] }
 0x2ff   : > { %7248 = vmatpush1.bf16.msra.mxu0 %v8396_v15  ;;  %7576 = vmatpush1.bf16.msra.mxu1 %v8398_v16  ;;  %v716_v15 = vld [vmem:[%s9140_s22 + $0x1070] sm:$0xff]  ;;  %v713_v16 = vld [vmem:[%s9140_s22 + $0x1058] sm:$0xff] }
 0x300   : > { %7249 = vmatprep.subr.bf16.mxu0 %v8405_v2  ;;  %7577 = vmatprep.subr.bf16.mxu1 %v8407_v18  ;;  %v717_v2 = vld [vmem:[%s9140_s22 + $0x1078] sm:$0xff]  ;;  %v8452_v18 = vcombine.low %v704_v3, %v708_v4  ;;  %v8461_v17 = vcombine.high %v712_v14, %v716_v15  ;;  %v760_v4 = vld [vmem:[%s9140_s22 + $0x11d0] sm:$0xff] }
 0x301   : > { %v8463_v21 = vcombine.high %v713_v16, %v717_v2  ;;  %v8462_v27 = vcombine.low %v713_v16, %v717_v2  ;;  %v764_v5 = vld [vmem:[%s9140_s22 + $0x11f0] sm:$0xff]  ;;  %v769_v2 = vld [vmem:[%s9140_s22 + $0x1218] sm:$0xff] }
 0x302   : > { %v772_v16 = vld [vmem:[%s9140_s22 + $0x1230] sm:$0xff] }
 0x303   : > { %7250 = vmatpush1.bf16.msra.mxu0 %v8404_v10  ;;  %7578 = vmatpush1.bf16.msra.mxu1 %v8406_v39  ;;  %v724_v10 = vld [vmem:[%s9140_s22 + $0x10b0] sm:$0xff]  ;;  %v721_v39 = vld [vmem:[%s9140_s22 + $0x1098] sm:$0xff] }
 0x304   : > { %7251 = vmatprep.subr.bf16.mxu0 %v8413_v25  ;;  %7579 = vmatprep.subr.bf16.mxu1 %v8415_v26  ;;  %v725_v25 = vld [vmem:[%s9140_s22 + $0x10b8] sm:$0xff]  ;;  %v8460_v26 = vcombine.low %v712_v14, %v716_v15  ;;  %v8469_v29 = vcombine.high %v720_v22, %v724_v10  ;;  %v768_v15 = vld [vmem:[%s9140_s22 + $0x1210] sm:$0xff] }
 0x305   : > { %v8471_v31 = vcombine.high %v721_v39, %v725_v25 }
 0x307   : > { %7252 = vmatpush1.bf16.msra.mxu0 %v8412_v0  ;;  %7580 = vmatpush1.bf16.msra.mxu1 %v8414_v49  ;;  %v732_v0 = vld [vmem:[%s9140_s22 + $0x10f0] sm:$0xff]  ;;  %v729_v49 = vld [vmem:[%s9140_s22 + $0x10d8] sm:$0xff] }
 0x308   : > { %7253 = vmatprep.subr.bf16.mxu0 %v8421_v34  ;;  %7581 = vmatprep.subr.bf16.mxu1 %v8423_v35  ;;  %v733_v34 = vld [vmem:[%s9140_s22 + $0x10f8] sm:$0xff]  ;;  %v8470_v35 = vcombine.low %v721_v39, %v725_v25  ;;  %v8477_v36 = vcombine.high %v728_v32, %v732_v0  ;;  %v780_v39 = vld [vmem:[%s9140_s22 + $0x1270] sm:$0xff] }
 0x309   : > { %v8479_v37 = vcombine.high %v729_v49, %v733_v34  ;;  %v777_v25 = vld [vmem:[%s9140_s22 + $0x1258] sm:$0xff] }
 0x30b   : > { %7254 = vmatpush1.bf16.msra.mxu0 %v8420_v42  ;;  %7582 = vmatpush1.bf16.msra.mxu1 %v8422_v43  ;;  %v737_v42 = vld [vmem:[%s9140_s22 + $0x1118] sm:$0xff] }
 0x30c   : > { %7255 = vmatprep.subr.bf16.mxu0 %v8429_v44  ;;  %7583 = vmatprep.subr.bf16.mxu1 %v8431_v46  ;;  %v741_v43 = vld [vmem:[%s9140_s22 + $0x1138] sm:$0xff]  ;;  %v8476_v44 = vcombine.low %v728_v32, %v732_v0  ;;  %v8485_v46 = vcombine.high %v736_v40, %v740_v41  ;;  %v784_v0 = vld [vmem:[%s9140_s22 + $0x1290] sm:$0xff] }
 0x30d   : > { %v8487_v47 = vcombine.high %v737_v42, %v741_v43 }
 0x30f   : > { %7256 = vmatpush1.bf16.msra.mxu0 %v8428_v59  ;;  %7584 = vmatpush1.bf16.msra.mxu1 %v8430_v24  ;;  %v749_v59 = vld [vmem:[%s9140_s22 + $0x1178] sm:$0xff]  ;;  %v8484_v24 = vcombine.low %v736_v40, %v740_v41  ;;  %v792_v41 = vld [vmem:[%s9140_s22 + $0x12d0] sm:$0xff] }
 0x310   : > { %7257 = vmatprep.subr.bf16.mxu0 %v8437_v55  ;;  %7585 = vmatprep.subr.bf16.mxu1 %v8439_v56  ;;  %v8486_v55 = vcombine.low %v737_v42, %v741_v43  ;;  %v8493_v56 = vcombine.high %v744_v48, %v748_v51  ;;  %v8495_v57 = vcombine.high %v745_v53, %v749_v59  ;;  %v796_v42 = vld [vmem:[%s9140_s22 + $0x12f0] sm:$0xff]  ;;  %v793_v43 = vld [vmem:[%s9140_s22 + $0x12d8] sm:$0xff] }
 0x313   : > { %7258 = vmatpush1.bf16.msra.mxu0 %v8436_v63  ;;  %7586 = vmatpush1.bf16.msra.mxu1 %v8438_v6  ;;  %v757_v63 = vld [vmem:[%s9140_s22 + $0x11b8] sm:$0xff]  ;;  %v8492_v6 = vcombine.low %v744_v48, %v748_v51  ;;  %v800_v51 = vld [vmem:[%s9140_s22 + $0x1310] sm:$0xff] }
 0x314   : > { %7259 = vmatprep.subr.bf16.mxu0 %v8445_v9  ;;  %7587 = vmatprep.subr.bf16.mxu1 %v8447_v33  ;;  %v8494_v9 = vcombine.low %v745_v53, %v749_v59  ;;  %v8501_v33 = vcombine.high %v752_v58, %v756_v61  ;;  %v8503_v3 = vcombine.high %v753_v62, %v757_v63  ;;  %v804_v53 = vld [vmem:[%s9140_s22 + $0x1330] sm:$0xff]  ;;  %v801_v59 = vld [vmem:[%s9140_s22 + $0x1318] sm:$0xff] }
 0x317   : > { %7260 = vmatpush1.bf16.msra.mxu0 %v8444_v7  ;;  %7588 = vmatpush1.bf16.msra.mxu1 %v8446_v11  ;;  %v765_v7 = vld [vmem:[%s9140_s22 + $0x11f8] sm:$0xff]  ;;  %v8500_v11 = vcombine.low %v752_v58, %v756_v61  ;;  %v808_v61 = vld [vmem:[%s9140_s22 + $0x1350] sm:$0xff] }
 0x318   : > { %7270 = vmatprep.subr.bf16.mxu0 %v8453_v12  ;;  %7598 = vmatprep.subr.bf16.mxu1 %v8455_v13  ;;  %v8502_v12 = vcombine.low %v753_v62, %v757_v63  ;;  %v8509_v13 = vcombine.high %v760_v4, %v764_v5  ;;  %v8511_v14 = vcombine.high %v761_v30, %v765_v7  ;;  %v812_v62 = vld [vmem:[%s9140_s22 + $0x1370] sm:$0xff]  ;;  %v809_v63 = vld [vmem:[%s9140_s22 + $0x1358] sm:$0xff] }
 0x31a   : > { %7262 = vmatmul.mubr.bf16.vlgmr.msra.gmra.mrb[4].mxu0 %v9483_v20  ;;  %7590 = vmatmul.mubr.bf16.vlgmr.msra.gmra.mrb[4].mxu1 %v9483_v20  ;;  %v8468_v20 = vcombine.low %v720_v22, %v724_v10  ;;  %v776_v10 = vld [vmem:[%s9140_s22 + $0x1250] sm:$0xff] }
 0x31b   : > { %7271 = vmatpush1.bf16.msra.mxu0 %v8452_v18  ;;  %7599 = vmatpush1.bf16.msra.mxu1 %v8454_v54  ;;  %v773_v18 = vld [vmem:[%s9140_s22 + $0x1238] sm:$0xff]  ;;  %v8508_v54 = vcombine.low %v760_v4, %v764_v5  ;;  %v816_v5 = vld [vmem:[%s9140_s22 + $0x1390] sm:$0xff] }
 0x31c   : > { %7272 = vmatprep.subr.bf16.mxu0 %v8461_v17  ;;  %7600 = vmatprep.subr.bf16.mxu1 %v8463_v21  ;;  %v8510_v17 = vcombine.low %v761_v30, %v765_v7  ;;  %v8517_v21 = vcombine.high %v768_v15, %v772_v16  ;;  %v8519_v22 = vcombine.high %v769_v2, %v773_v18  ;;  %v820_v30 = vld [vmem:[%s9140_s22 + $0x13b0] sm:$0xff]  ;;  %v817_v7 = vld [vmem:[%s9140_s22 + $0x1398] sm:$0xff] }
 0x31d   : > { %7302 = vmatprep.mubr.bf16.mxu0 %v9490_v60  ;;  %7630 = vmatprep.mubr.bf16.mxu1 %v9490_v60  ;;  %v8478_v60 = vcombine.low %v729_v49, %v733_v34  ;;  %v788_v49 = vld [vmem:[%s9140_s22 + $0x12b0] sm:$0xff]  ;;  %v785_v34 = vld [vmem:[%s9140_s22 + $0x1298] sm:$0xff] }
 0x31f   : > { %7273 = vmatpush1.bf16.msra.mxu0 %v8460_v26  ;;  %7601 = vmatpush1.bf16.msra.mxu1 %v8462_v27  ;;  %v781_v26 = vld [vmem:[%s9140_s22 + $0x1278] sm:$0xff]  ;;  %v8516_v27 = vcombine.low %v768_v15, %v772_v16  ;;  %v824_v16 = vld [vmem:[%s9140_s22 + $0x13d0] sm:$0xff] }
 0x320   : > { %7274 = vmatprep.subr.bf16.mxu0 %v8469_v29  ;;  %7602 = vmatprep.subr.bf16.mxu1 %v8471_v31  ;;  %v8518_v29 = vcombine.low %v769_v2, %v773_v18  ;;  %v8525_v31 = vcombine.high %v776_v10, %v780_v39  ;;  %v8527_v32 = vcombine.high %v777_v25, %v781_v26  ;;  %v828_v2 = vld [vmem:[%s9140_s22 + $0x13f0] sm:$0xff]  ;;  %v825_v18 = vld [vmem:[%s9140_s22 + $0x13d8] sm:$0xff] }
 0x323   : > { %7275 = vmatpush1.bf16.msra.mxu0 %v8468_v20  ;;  %7603 = vmatpush1.bf16.msra.mxu1 %v8470_v35  ;;  %v789_v20 = vld [vmem:[%s9140_s22 + $0x12b8] sm:$0xff]  ;;  %v8524_v35 = vcombine.low %v776_v10, %v780_v39  ;;  %v832_v39 = vld [vmem:[%s9140_s22 + $0x1410] sm:$0xff] }
 0x324   : > { %7276 = vmatprep.subr.bf16.mxu0 %v8477_v36  ;;  %7604 = vmatprep.subr.bf16.mxu1 %v8479_v37  ;;  %v8526_v36 = vcombine.low %v777_v25, %v781_v26  ;;  %v8533_v37 = vcombine.high %v784_v0, %v788_v49  ;;  %v8535_v40 = vcombine.high %v785_v34, %v789_v20  ;;  %v836_v25 = vld [vmem:[%s9140_s22 + $0x1430] sm:$0xff]  ;;  %v833_v26 = vld [vmem:[%s9140_s22 + $0x1418] sm:$0xff] }
 0x327   : > { %7277 = vmatpush1.bf16.msra.mxu0 %v8476_v44  ;;  %7605 = vmatpush1.bf16.msra.mxu1 %v8478_v60  ;;  %v797_v44 = vld [vmem:[%s9140_s22 + $0x12f8] sm:$0xff]  ;;  %v8532_v60 = vcombine.low %v784_v0, %v788_v49  ;;  %v840_v49 = vld [vmem:[%s9140_s22 + $0x1450] sm:$0xff] }
 0x328   : > { %7278 = vmatprep.subr.bf16.mxu0 %v8485_v46  ;;  %7606 = vmatprep.subr.bf16.mxu1 %v8487_v47  ;;  %v8534_v46 = vcombine.low %v785_v34, %v789_v20  ;;  %v8541_v47 = vcombine.high %v792_v41, %v796_v42  ;;  %v8543_v48 = vcombine.high %v793_v43, %v797_v44  ;;  %v844_v34 = vld [vmem:[%s9140_s22 + $0x1470] sm:$0xff]  ;;  %v841_v20 = vld [vmem:[%s9140_s22 + $0x1458] sm:$0xff] }
 0x32b   : > { %7279 = vmatpush1.bf16.msra.mxu0 %v8484_v24  ;;  %7607 = vmatpush1.bf16.msra.mxu1 %v8486_v55  ;;  %v805_v24 = vld [vmem:[%s9140_s22 + $0x1338] sm:$0xff]  ;;  %v8540_v55 = vcombine.low %v792_v41, %v796_v42  ;;  %v848_v42 = vld [vmem:[%s9140_s22 + $0x1490] sm:$0xff] }
 0x32c   : > { %7280 = vmatprep.subr.bf16.mxu0 %v8493_v56  ;;  %7608 = vmatprep.subr.bf16.mxu1 %v8495_v57  ;;  %v8542_v56 = vcombine.low %v793_v43, %v797_v44  ;;  %v8549_v57 = vcombine.high %v800_v51, %v804_v53  ;;  %v8551_v58 = vcombine.high %v801_v59, %v805_v24  ;;  %v852_v43 = vld [vmem:[%s9140_s22 + $0x14b0] sm:$0xff]  ;;  %v849_v44 = vld [vmem:[%s9140_s22 + $0x1498] sm:$0xff] }
 0x32f   : > { %7281 = vmatpush1.bf16.msra.mxu0 %v8492_v6  ;;  %7609 = vmatpush1.bf16.msra.mxu1 %v8494_v9  ;;  %v813_v6 = vld [vmem:[%s9140_s22 + $0x1378] sm:$0xff]  ;;  %v8548_v9 = vcombine.low %v800_v51, %v804_v53  ;;  %v856_v53 = vld [vmem:[%s9140_s22 + $0x14d0] sm:$0xff] }
 0x330   : > { %7282 = vmatprep.subr.bf16.mxu0 %v8501_v33  ;;  %7610 = vmatprep.subr.bf16.mxu1 %v8503_v3  ;;  %v8550_v33 = vcombine.low %v801_v59, %v805_v24  ;;  %v8557_v3 = vcombine.high %v808_v61, %v812_v62  ;;  %v8559_v4 = vcombine.high %v809_v63, %v813_v6  ;;  %v860_v59 = vld [vmem:[%s9140_s22 + $0x14f0] sm:$0xff]  ;;  %v857_v24 = vld [vmem:[%s9140_s22 + $0x14d8] sm:$0xff] }
 0x333   : > { %7283 = vmatpush1.bf16.msra.mxu0 %v8500_v11  ;;  %7611 = vmatpush1.bf16.msra.mxu1 %v8502_v12  ;;  %v821_v11 = vld [vmem:[%s9140_s22 + $0x13b8] sm:$0xff]  ;;  %v8556_v12 = vcombine.low %v808_v61, %v812_v62  ;;  %v864_v61 = vld [vmem:[%s9140_s22 + $0x1510] sm:$0xff] }
 0x334   : > { %7284 = vmatprep.subr.bf16.mxu0 %v8509_v13  ;;  %7612 = vmatprep.subr.bf16.mxu1 %v8511_v14  ;;  %v8558_v13 = vcombine.low %v809_v63, %v813_v6  ;;  %v8565_v14 = vcombine.high %v816_v5, %v820_v30  ;;  %v8567_v15 = vcombine.high %v817_v7, %v821_v11  ;;  %v868_v62 = vld [vmem:[%s9140_s22 + $0x1530] sm:$0xff]  ;;  %v865_v63 = vld [vmem:[%s9140_s22 + $0x1518] sm:$0xff] }
 0x335   : > { %v869_v6 = vld [vmem:[%s9140_s22 + $0x1538] sm:$0xff] }
 0x337   : > { %7285 = vmatpush1.bf16.msra.mxu0 %v8508_v54  ;;  %7613 = vmatpush1.bf16.msra.mxu1 %v8510_v17  ;;  %v829_v54 = vld [vmem:[%s9140_s22 + $0x13f8] sm:$0xff]  ;;  %v8564_v17 = vcombine.low %v816_v5, %v820_v30  ;;  %v876_v5 = vld [vmem:[%s9140_s22 + $0x1570] sm:$0xff] }
 0x338   : > { %7286 = vmatprep.subr.bf16.mxu0 %v8517_v21  ;;  %7614 = vmatprep.subr.bf16.mxu1 %v8519_v22  ;;  %v8566_v21 = vcombine.low %v817_v7, %v821_v11  ;;  %v8573_v22 = vcombine.high %v824_v16, %v828_v2  ;;  %v8575_v10 = vcombine.high %v825_v18, %v829_v54  ;;  %v873_v30 = vld [vmem:[%s9140_s22 + $0x1558] sm:$0xff] }
 0x339   : > { %v877_v7 = vld [vmem:[%s9140_s22 + $0x1578] sm:$0xff]  ;;  %v8612_v11 = vcombine.low %v864_v61, %v868_v62 }
 0x33b   : > { %7287 = vmatpush1.bf16.msra.mxu0 %v8516_v27  ;;  %7615 = vmatpush1.bf16.msra.mxu1 %v8518_v29  ;;  %v837_v27 = vld [vmem:[%s9140_s22 + $0x1438] sm:$0xff]  ;;  %v8572_v29 = vcombine.low %v824_v16, %v828_v2  ;;  %v884_v16 = vld [vmem:[%s9140_s22 + $0x15b0] sm:$0xff] }
 0x33c   : > { %7288 = vmatprep.subr.bf16.mxu0 %v8525_v31  ;;  %7616 = vmatprep.subr.bf16.mxu1 %v8527_v32  ;;  %v8574_v31 = vcombine.low %v825_v18, %v829_v54  ;;  %v8581_v32 = vcombine.high %v832_v39, %v836_v25  ;;  %v8583_v0 = vcombine.high %v833_v26, %v837_v27  ;;  %v881_v2 = vld [vmem:[%s9140_s22 + $0x1598] sm:$0xff] }
 0x33d   : > { %v885_v18 = vld [vmem:[%s9140_s22 + $0x15b8] sm:$0xff] }
 0x33f   : > { %7289 = vmatpush1.bf16.msra.mxu0 %v8524_v35  ;;  %7617 = vmatpush1.bf16.msra.mxu1 %v8526_v36  ;;  %v845_v35 = vld [vmem:[%s9140_s22 + $0x1478] sm:$0xff]  ;;  %v8580_v36 = vcombine.low %v832_v39, %v836_v25  ;;  %v892_v39 = vld [vmem:[%s9140_s22 + $0x15f0] sm:$0xff] }
 0x340   : > { %7290 = vmatprep.subr.bf16.mxu0 %v8533_v37  ;;  %7618 = vmatprep.subr.bf16.mxu1 %v8535_v40  ;;  %v8582_v37 = vcombine.low %v833_v26, %v837_v27  ;;  %v8589_v40 = vcombine.high %v840_v49, %v844_v34  ;;  %v8591_v41 = vcombine.high %v841_v20, %v845_v35  ;;  %v889_v25 = vld [vmem:[%s9140_s22 + $0x15d8] sm:$0xff] }
 0x341   : > { %v893_v26 = vld [vmem:[%s9140_s22 + $0x15f8] sm:$0xff] }
 0x343   : > { %7291 = vmatpush1.bf16.msra.mxu0 %v8532_v60  ;;  %7619 = vmatpush1.bf16.msra.mxu1 %v8534_v46  ;;  %v853_v60 = vld [vmem:[%s9140_s22 + $0x14b8] sm:$0xff]  ;;  %v8588_v46 = vcombine.low %v840_v49, %v844_v34  ;;  %v900_v49 = vld [vmem:[%s9140_s22 + $0x1630] sm:$0xff] }
 0x344   : > { %7292 = vmatprep.subr.bf16.mxu0 %v8541_v47  ;;  %7620 = vmatprep.subr.bf16.mxu1 %v8543_v48  ;;  %v8590_v47 = vcombine.low %v841_v20, %v845_v35  ;;  %v8597_v48 = vcombine.high %v848_v42, %v852_v43  ;;  %v8599_v51 = vcombine.high %v849_v44, %v853_v60  ;;  %v897_v34 = vld [vmem:[%s9140_s22 + $0x1618] sm:$0xff] }
 0x345   : > { %v901_v20 = vld [vmem:[%s9140_s22 + $0x1638] sm:$0xff] }
 0x347   : > { %7293 = vmatpush1.bf16.msra.mxu0 %v8540_v55  ;;  %7621 = vmatpush1.bf16.msra.mxu1 %v8542_v56  ;;  %v861_v55 = vld [vmem:[%s9140_s22 + $0x14f8] sm:$0xff]  ;;  %v8598_v56 = vcombine.low %v849_v44, %v853_v60 }
 0x348   : > { %7294 = vmatprep.subr.bf16.mxu0 %v8549_v57  ;;  %7622 = vmatprep.subr.bf16.mxu1 %v8551_v58  ;;  %v8605_v57 = vcombine.high %v856_v53, %v860_v59  ;;  %v8607_v58 = vcombine.high %v857_v24, %v861_v55  ;;  %v909_v44 = vld [vmem:[%s9140_s22 + $0x1678] sm:$0xff] }
 0x34b   : > { %7295 = vmatpush1.bf16.msra.mxu0 %v8548_v9  ;;  %7623 = vmatpush1.bf16.msra.mxu1 %v8550_v33  ;;  %v8604_v9 = vcombine.low %v856_v53, %v860_v59  ;;  %v8613_v33 = vcombine.high %v864_v61, %v868_v62  ;;  %v916_v53 = vld [vmem:[%s9140_s22 + $0x16b0] sm:$0xff]  ;;  %v913_v59 = vld [vmem:[%s9140_s22 + $0x1698] sm:$0xff] }
 0x34c   : > { %7296 = vmatprep.subr.bf16.mxu0 %v8557_v3  ;;  %7624 = vmatprep.subr.bf16.mxu1 %v8559_v4  ;;  %v8615_v3 = vcombine.high %v865_v63, %v869_v6  ;;  %v872_v4 = vld [vmem:[%s9140_s22 + $0x1550] sm:$0xff]  ;;  %v921_v62 = vld [vmem:[%s9140_s22 + $0x16d8] sm:$0xff] }
 0x34d   : > { %v8620_v54 = vcombine.low %v872_v4, %v876_v5  ;;  %v924_v61 = vld [vmem:[%s9140_s22 + $0x16f0] sm:$0xff] }
 0x34f   : > { %7297 = vmatpush1.bf16.msra.mxu0 %v8556_v12  ;;  %7625 = vmatpush1.bf16.msra.mxu1 %v8558_v13  ;;  %v8614_v12 = vcombine.low %v865_v63, %v869_v6  ;;  %v8621_v13 = vcombine.high %v872_v4, %v876_v5  ;;  %v925_v63 = vld [vmem:[%s9140_s22 + $0x16f8] sm:$0xff]  ;;  %v932_v4 = vld [vmem:[%s9140_s22 + $0x1730] sm:$0xff] }
 0x350   : > { %7298 = vmatprep.subr.bf16.mxu0 %v8565_v14  ;;  %7626 = vmatprep.subr.bf16.mxu1 %v8567_v15  ;;  %v8623_v14 = vcombine.high %v873_v30, %v877_v7  ;;  %v880_v15 = vld [vmem:[%s9140_s22 + $0x1590] sm:$0xff]  ;;  %v929_v5 = vld [vmem:[%s9140_s22 + $0x1718] sm:$0xff] }
 0x351   : > { %v8628_v27 = vcombine.low %v880_v15, %v884_v16 }
 0x353   : > { %7299 = vmatpush1.bf16.msra.mxu0 %v8564_v17  ;;  %7627 = vmatpush1.bf16.msra.mxu1 %v8566_v21  ;;  %v8622_v17 = vcombine.low %v873_v30, %v877_v7  ;;  %v8629_v21 = vcombine.high %v880_v15, %v884_v16  ;;  %v933_v30 = vld [vmem:[%s9140_s22 + $0x1738] sm:$0xff]  ;;  %v940_v15 = vld [vmem:[%s9140_s22 + $0x1770] sm:$0xff] }
 0x354   : > { %7300 = vmatprep.subr.bf16.mxu0 %v8573_v22  ;;  %7628 = vmatprep.subr.bf16.mxu1 %v8575_v10  ;;  %v8631_v22 = vcombine.high %v881_v2, %v885_v18  ;;  %v888_v10 = vld [vmem:[%s9140_s22 + $0x15d0] sm:$0xff]  ;;  %v937_v16 = vld [vmem:[%s9140_s22 + $0x1758] sm:$0xff] }
 0x355   : > { %v8636_v35 = vcombine.low %v888_v10, %v892_v39 }
 0x357   : > { %7301 = vmatpush1.bf16.msra.mxu0 %v8572_v29  ;;  %7629 = vmatpush1.bf16.msra.mxu1 %v8574_v31  ;;  %v8630_v29 = vcombine.low %v881_v2, %v885_v18  ;;  %v8637_v31 = vcombine.high %v888_v10, %v892_v39  ;;  %v941_v2 = vld [vmem:[%s9140_s22 + $0x1778] sm:$0xff]  ;;  %v948_v10 = vld [vmem:[%s9140_s22 + $0x17b0] sm:$0xff] }
 0x358   : > { %7311 = vmatprep.subr.bf16.mxu0 %v8581_v32  ;;  %7639 = vmatprep.subr.bf16.mxu1 %v8583_v0  ;;  %v8639_v32 = vcombine.high %v889_v25, %v893_v26  ;;  %v896_v0 = vld [vmem:[%s9140_s22 + $0x1610] sm:$0xff]  ;;  %v945_v39 = vld [vmem:[%s9140_s22 + $0x1798] sm:$0xff] }
 0x359   : > { %v8644_v60 = vcombine.low %v896_v0, %v900_v49 }
 0x35a   : > { %7303 = vmatmul.mubr.bf16.vlgmr.msra.gmra.mrb[4].mxu0 %v9558_v52  ;;  %7631 = vmatmul.mubr.bf16.vlgmr.msra.gmra.mrb[4].mxu1 %v9558_v52  ;;  %v8596_v52 = vcombine.low %v848_v42, %v852_v43  ;;  %v908_v42 = vld [vmem:[%s9140_s22 + $0x1670] sm:$0xff]  ;;  %v905_v43 = vld [vmem:[%s9140_s22 + $0x1658] sm:$0xff] }
 0x35b   : > { %7312 = vmatpush1.bf16.msra.mxu0 %v8580_v36  ;;  %7640 = vmatpush1.bf16.msra.mxu1 %v8582_v37  ;;  %v8638_v36 = vcombine.low %v889_v25, %v893_v26  ;;  %v8645_v37 = vcombine.high %v896_v0, %v900_v49  ;;  %v949_v25 = vld [vmem:[%s9140_s22 + $0x17b8] sm:$0xff]  ;;  %v956_v0 = vld [vmem:[%s9140_s22 + $0x17f0] sm:$0xff] }
 0x35c   : > { %7313 = vmatprep.subr.bf16.mxu0 %v8589_v40  ;;  %7641 = vmatprep.subr.bf16.mxu1 %v8591_v41  ;;  %v8647_v40 = vcombine.high %v897_v34, %v901_v20  ;;  %v904_v41 = vld [vmem:[%s9140_s22 + $0x1650] sm:$0xff]  ;;  %v953_v49 = vld [vmem:[%s9140_s22 + $0x17d8] sm:$0xff] }
 0x35d   : > { %7343 = vmatprep.mubr.bf16.mxu0 %v9566_v1  ;;  %7671 = vmatprep.mubr.bf16.mxu1 %v9566_v1  ;;  %v8606_v1 = vcombine.low %v857_v24, %v861_v55  ;;  %v917_v24 = vld [vmem:[%s9140_s22 + $0x16b8] sm:$0xff]  ;;  %v8652_v55 = vcombine.low %v904_v41, %v908_v42 }
 0x35f   : > { %7314 = vmatpush1.bf16.msra.mxu0 %v8588_v46  ;;  %7642 = vmatpush1.bf16.msra.mxu1 %v8590_v47  ;;  %v8646_v46 = vcombine.low %v897_v34, %v901_v20  ;;  %v8653_v47 = vcombine.high %v904_v41, %v908_v42  ;;  %v957_v34 = vld [vmem:[%s9140_s22 + $0x17f8] sm:$0xff]  ;;  %v964_v41 = vld [vmem:[%s9140_s22 + $0x1830] sm:$0xff] }
 0x360   : > { %7315 = vmatprep.subr.bf16.mxu0 %v8597_v48  ;;  %7643 = vmatprep.subr.bf16.mxu1 %v8599_v51  ;;  %v8655_v48 = vcombine.high %v905_v43, %v909_v44  ;;  %v912_v51 = vld [vmem:[%s9140_s22 + $0x1690] sm:$0xff]  ;;  %v961_v42 = vld [vmem:[%s9140_s22 + $0x1818] sm:$0xff] }
 0x361   : > { %v8660_v6 = vcombine.low %v912_v51, %v916_v53 }
 0x363   : > { %7316 = vmatpush1.bf16.msra.mxu0 %v8596_v52  ;;  %7644 = vmatpush1.bf16.msra.mxu1 %v8598_v56  ;;  %v8654_v52 = vcombine.low %v905_v43, %v909_v44  ;;  %v8661_v56 = vcombine.high %v912_v51, %v916_v53  ;;  %v965_v43 = vld [vmem:[%s9140_s22 + $0x1838] sm:$0xff]  ;;  %v972_v51 = vld [vmem:[%s9140_s22 + $0x1870] sm:$0xff] }
 0x364   : > { %7317 = vmatprep.subr.bf16.mxu0 %v8605_v57  ;;  %7645 = vmatprep.subr.bf16.mxu1 %v8607_v58  ;;  %v8663_v57 = vcombine.high %v913_v59, %v917_v24  ;;  %v920_v58 = vld [vmem:[%s9140_s22 + $0x16d0] sm:$0xff]  ;;  %v969_v53 = vld [vmem:[%s9140_s22 + $0x1858] sm:$0xff] }
 0x365   : > { %v8668_v7 = vcombine.low %v920_v58, %v924_v61 }
 0x367   : > { %7318 = vmatpush1.bf16.msra.mxu0 %v8604_v9  ;;  %7646 = vmatpush1.bf16.msra.mxu1 %v8606_v1  ;;  %v8662_v9 = vcombine.low %v913_v59, %v917_v24  ;;  %v8669_v1 = vcombine.high %v920_v58, %v924_v61  ;;  %v973_v59 = vld [vmem:[%s9140_s22 + $0x1878] sm:$0xff]  ;;  %v980_v58 = vld [vmem:[%s9140_s22 + $0x18b0] sm:$0xff] }
 0x368   : > { %7319 = vmatprep.subr.bf16.mxu0 %v8613_v33  ;;  %7647 = vmatprep.subr.bf16.mxu1 %v8615_v3  ;;  %v8671_v33 = vcombine.high %v921_v62, %v925_v63  ;;  %v928_v3 = vld [vmem:[%s9140_s22 + $0x1710] sm:$0xff]  ;;  %v977_v61 = vld [vmem:[%s9140_s22 + $0x1898] sm:$0xff] }
 0x369   : > { %v8676_v18 = vcombine.low %v928_v3, %v932_v4 }
 0x36b   : > { %7320 = vmatpush1.bf16.msra.mxu0 %v8612_v11  ;;  %7648 = vmatpush1.bf16.msra.mxu1 %v8614_v12  ;;  %v8670_v11 = vcombine.low %v921_v62, %v925_v63  ;;  %v8677_v12 = vcombine.high %v928_v3, %v932_v4  ;;  %v981_v62 = vld [vmem:[%s9140_s22 + $0x18b8] sm:$0xff]  ;;  %v988_v3 = vld [vmem:[%s9140_s22 + $0x18f0] sm:$0xff] }
 0x36c   : > { %7321 = vmatprep.subr.bf16.mxu0 %v8621_v13  ;;  %7649 = vmatprep.subr.bf16.mxu1 %v8623_v14  ;;  %v8679_v13 = vcombine.high %v929_v5, %v933_v30  ;;  %v936_v14 = vld [vmem:[%s9140_s22 + $0x1750] sm:$0xff]  ;;  %v985_v4 = vld [vmem:[%s9140_s22 + $0x18d8] sm:$0xff] }
 0x36d   : > { %v8684_v26 = vcombine.low %v936_v14, %v940_v15 }
 0x36f   : > { %7322 = vmatpush1.bf16.msra.mxu0 %v8620_v54  ;;  %7650 = vmatpush1.bf16.msra.mxu1 %v8622_v17  ;;  %v8678_v54 = vcombine.low %v929_v5, %v933_v30  ;;  %v8685_v17 = vcombine.high %v936_v14, %v940_v15  ;;  %v989_v5 = vld [vmem:[%s9140_s22 + $0x18f8] sm:$0xff]  ;;  %v8726_v30 = vcombine.low %v977_v61, %v981_v62 }
 0x370   : > { %7323 = vmatprep.subr.bf16.mxu0 %v8629_v21  ;;  %7651 = vmatprep.subr.bf16.mxu1 %v8631_v22  ;;  %v8687_v21 = vcombine.high %v937_v16, %v941_v2  ;;  %v944_v22 = vld [vmem:[%s9140_s22 + $0x1790] sm:$0xff]  ;;  %v993_v14 = vld [vmem:[%s9140_s22 + $0x1918] sm:$0xff] }
 0x371   : > { %v8692_v20 = vcombine.low %v944_v22, %v948_v10  ;;  %v997_v15 = vld [vmem:[%s9140_s22 + $0x1938] sm:$0xff] }
 0x373   : > { %7324 = vmatpush1.bf16.msra.mxu0 %v8628_v27  ;;  %7652 = vmatpush1.bf16.msra.mxu1 %v8630_v29  ;;  %v8686_v27 = vcombine.low %v937_v16, %v941_v2  ;;  %v8693_v29 = vcombine.high %v944_v22, %v948_v10  ;;  %v1005_v22 = vld [vmem:[%s9140_s22 + $0x1978] sm:$0xff] }
 0x374   : > { %7325 = vmatprep.subr.bf16.mxu0 %v8637_v31  ;;  %7653 = vmatprep.subr.bf16.mxu1 %v8639_v32  ;;  %v8695_v31 = vcombine.high %v945_v39, %v949_v25  ;;  %v952_v32 = vld [vmem:[%s9140_s22 + $0x17d0] sm:$0xff] }
 0x375   : > { %v8700_v44 = vcombine.low %v952_v32, %v956_v0 }
 0x377   : > { %7326 = vmatpush1.bf16.msra.mxu0 %v8636_v35  ;;  %7654 = vmatpush1.bf16.msra.mxu1 %v8638_v36  ;;  %v8694_v35 = vcombine.low %v945_v39, %v949_v25  ;;  %v8701_v36 = vcombine.high %v952_v32, %v956_v0  ;;  %v8742_v39 = vcombine.low %v993_v14, %v997_v15  ;;  %v1013_v32 = vld [vmem:[%s9140_s22 + $0x19b8] sm:$0xff] }
 0x378   : > { %7327 = vmatprep.subr.bf16.mxu0 %v8645_v37  ;;  %7655 = vmatprep.subr.bf16.mxu1 %v8647_v40  ;;  %v8703_v37 = vcombine.high %v953_v49, %v957_v34  ;;  %v960_v40 = vld [vmem:[%s9140_s22 + $0x1810] sm:$0xff] }
 0x379   : > { %v8708_v24 = vcombine.low %v960_v40, %v964_v41 }
 0x37b   : > { %7328 = vmatpush1.bf16.msra.mxu0 %v8644_v60  ;;  %7656 = vmatpush1.bf16.msra.mxu1 %v8646_v46  ;;  %v8702_v60 = vcombine.low %v953_v49, %v957_v34  ;;  %v8709_v46 = vcombine.high %v960_v40, %v964_v41  ;;  %v1021_v40 = vld [vmem:[%s9140_s22 + $0x19f8] sm:$0xff] }
 0x37c   : > { %7329 = vmatprep.subr.bf16.mxu0 %v8653_v47  ;;  %7657 = vmatprep.subr.bf16.mxu1 %v8655_v48  ;;  %v8711_v47 = vcombine.high %v961_v42, %v965_v43  ;;  %v968_v48 = vld [vmem:[%s9140_s22 + $0x1850] sm:$0xff] }
 0x37d   : > { %v8716_v63 = vcombine.low %v968_v48, %v972_v51 }
 0x37f   : > { %7330 = vmatpush1.bf16.msra.mxu0 %v8652_v55  ;;  %7658 = vmatpush1.bf16.msra.mxu1 %v8654_v52  ;;  %v8710_v55 = vcombine.low %v961_v42, %v965_v43  ;;  %v8717_v52 = vcombine.high %v968_v48, %v972_v51  ;;  %v1029_v48 = vld [vmem:[%s9140_s22 + $0x1a38] sm:$0xff] }
 0x380   : > { %7331 = vmatprep.subr.bf16.mxu0 %v8661_v56  ;;  %7659 = vmatprep.subr.bf16.mxu1 %v8663_v57  ;;  %v8719_v56 = vcombine.high %v969_v53, %v973_v59  ;;  %v976_v57 = vld [vmem:[%s9140_s22 + $0x1890] sm:$0xff] }
 0x383   : > { %7332 = vmatpush1.bf16.msra.mxu0 %v8660_v6  ;;  %7660 = vmatpush1.bf16.msra.mxu1 %v8662_v9  ;;  %v8718_v6 = vcombine.low %v969_v53, %v973_v59  ;;  %v8725_v9 = vcombine.high %v976_v57, %v980_v58 }
 0x384   : > { %7333 = vmatprep.subr.bf16.mxu0 %v8669_v1  ;;  %7661 = vmatprep.subr.bf16.mxu1 %v8671_v33  ;;  %v8727_v1 = vcombine.high %v977_v61, %v981_v62  ;;  %v984_v33 = vld [vmem:[%s9140_s22 + $0x18d0] sm:$0xff] }
 0x385   : > { %v8732_v16 = vcombine.low %v984_v33, %v988_v3 }
 0x387   : > { %7334 = vmatpush1.bf16.msra.mxu0 %v8668_v7  ;;  %7662 = vmatpush1.bf16.msra.mxu1 %v8670_v11  ;;  %v8733_v7 = vcombine.high %v984_v33, %v988_v3  ;;  %v8735_v11 = vcombine.high %v985_v4, %v989_v5  ;;  %v1045_v33 = vld [vmem:[%s9140_s22 + $0x1ab8] sm:$0xff] }
 0x388   : > { %7335 = vmatprep.subr.bf16.mxu0 %v8677_v12  ;;  %7663 = vmatprep.subr.bf16.mxu1 %v8679_v13  ;;  %v992_v12 = vld [vmem:[%s9140_s22 + $0x1910] sm:$0xff] }
 0x389   : > { %v996_v13 = vld [vmem:[%s9140_s22 + $0x1930] sm:$0xff] }
 0x38a   : > { %v8741_v2 = vcombine.high %v992_v12, %v996_v13  ;;  %v8740_v10 = vcombine.low %v992_v12, %v996_v13  ;;  %v1053_v12 = vld [vmem:[%s9140_s22 + $0x1af8] sm:$0xff] }
 0x38b   : > { %7336 = vmatpush1.bf16.msra.mxu0 %v8676_v18  ;;  %7664 = vmatpush1.bf16.msra.mxu1 %v8678_v54  ;;  %v8743_v18 = vcombine.high %v993_v14, %v997_v15  ;;  %v1000_v54 = vld [vmem:[%s9140_s22 + $0x1950] sm:$0xff] }
 0x38c   : > { %7337 = vmatprep.subr.bf16.mxu0 %v8685_v17  ;;  %7665 = vmatprep.subr.bf16.mxu1 %v8687_v21  ;;  %v1004_v17 = vld [vmem:[%s9140_s22 + $0x1970] sm:$0xff]  ;;  %v1001_v21 = vld [vmem:[%s9140_s22 + $0x1958] sm:$0xff] }
 0x38d   : > { %v8749_v25 = vcombine.high %v1000_v54, %v1004_v17  ;;  %v8748_v0 = vcombine.low %v1000_v54, %v1004_v17  ;;  %v8750_v49 = vcombine.low %v1001_v21, %v1005_v22  ;;  %v1061_v54 = vld [vmem:[%s9140_s22 + $0x1b38] sm:$0xff] }
 0x38f   : > { %7338 = vmatpush1.bf16.msra.mxu0 %v8684_v26  ;;  %7666 = vmatpush1.bf16.msra.mxu1 %v8686_v27  ;;  %v8751_v26 = vcombine.high %v1001_v21, %v1005_v22  ;;  %v1008_v27 = vld [vmem:[%s9140_s22 + $0x1990] sm:$0xff] }
 0x390   : > { %7339 = vmatprep.subr.bf16.mxu0 %v8693_v29  ;;  %7667 = vmatprep.subr.bf16.mxu1 %v8695_v31  ;;  %v1012_v29 = vld [vmem:[%s9140_s22 + $0x19b0] sm:$0xff]  ;;  %v1009_v31 = vld [vmem:[%s9140_s22 + $0x1998] sm:$0xff] }
 0x391   : > { %v8757_v34 = vcombine.high %v1008_v27, %v1012_v29  ;;  %v8756_v41 = vcombine.low %v1008_v27, %v1012_v29  ;;  %v8758_v42 = vcombine.low %v1009_v31, %v1013_v32  ;;  %v1069_v27 = vld [vmem:[%s9140_s22 + $0x1b78] sm:$0xff] }
 0x393   : > { %7340 = vmatpush1.bf16.msra.mxu0 %v8692_v20  ;;  %7668 = vmatpush1.bf16.msra.mxu1 %v8694_v35  ;;  %v8759_v20 = vcombine.high %v1009_v31, %v1013_v32  ;;  %v1016_v35 = vld [vmem:[%s9140_s22 + $0x19d0] sm:$0xff] }
 0x394   : > { %7341 = vmatprep.subr.bf16.mxu0 %v8701_v36  ;;  %7669 = vmatprep.subr.bf16.mxu1 %v8703_v37  ;;  %v1020_v36 = vld [vmem:[%s9140_s22 + $0x19f0] sm:$0xff]  ;;  %v1017_v37 = vld [vmem:[%s9140_s22 + $0x19d8] sm:$0xff] }
 0x395   : > { %v8765_v43 = vcombine.high %v1016_v35, %v1020_v36  ;;  %v8764_v51 = vcombine.low %v1016_v35, %v1020_v36  ;;  %v8766_v53 = vcombine.low %v1017_v37, %v1021_v40  ;;  %v1077_v35 = vld [vmem:[%s9140_s22 + $0x1bb8] sm:$0xff] }
 0x397   : > { %7342 = vmatpush1.bf16.msra.mxu0 %v8700_v44  ;;  %7670 = vmatpush1.bf16.msra.mxu1 %v8702_v60  ;;  %v8767_v44 = vcombine.high %v1017_v37, %v1021_v40  ;;  %v1024_v60 = vld [vmem:[%s9140_s22 + $0x1a10] sm:$0xff] }
 0x398   : > { %7352 = vmatprep.subr.bf16.mxu0 %v8709_v46  ;;  %7680 = vmatprep.subr.bf16.mxu1 %v8711_v47  ;;  %v1028_v46 = vld [vmem:[%s9140_s22 + $0x1a30] sm:$0xff]  ;;  %v1025_v47 = vld [vmem:[%s9140_s22 + $0x1a18] sm:$0xff] }
 0x399   : > { %v8773_v59 = vcombine.high %v1024_v60, %v1028_v46  ;;  %v8774_v61 = vcombine.low %v1025_v47, %v1029_v48 }
 0x39a   : > { %7344 = vmatmul.mubr.bf16.vlgmr.msra.gmra.mrb[4].mxu0 %v9641_v28  ;;  %7672 = vmatmul.mubr.bf16.vlgmr.msra.gmra.mrb[4].mxu1 %v9641_v28  ;;  %v8724_v28 = vcombine.low %v976_v57, %v980_v58  ;;  %v1037_v57 = vld [vmem:[%s9140_s22 + $0x1a78] sm:$0xff]  ;;  %v8772_v58 = vcombine.low %v1024_v60, %v1028_v46 }
 0x39b   : > { %7353 = vmatpush1.bf16.msra.mxu0 %v8708_v24  ;;  %7681 = vmatpush1.bf16.msra.mxu1 %v8710_v55  ;;  %v8775_v24 = vcombine.high %v1025_v47, %v1029_v48  ;;  %v1032_v55 = vld [vmem:[%s9140_s22 + $0x1a50] sm:$0xff]  ;;  %v1085_v60 = vld [vmem:[%s9140_s22 + $0x1bf8] sm:$0xff] }
 0x39c   : > { %7354 = vmatprep.subr.bf16.mxu0 %v8717_v52  ;;  %7682 = vmatprep.subr.bf16.mxu1 %v8719_v56  ;;  %v1036_v52 = vld [vmem:[%s9140_s22 + $0x1a70] sm:$0xff]  ;;  %v1033_v56 = vld [vmem:[%s9140_s22 + $0x1a58] sm:$0xff] }
 0x39d   : > { %7384 = vmatprep.mubr.bf16.mxu0 %v9648_v38  ;;  %7712 = vmatprep.mubr.bf16.mxu1 %v9648_v38  ;;  %v8734_v38 = vcombine.low %v985_v4, %v989_v5  ;;  %v8781_v62 = vcombine.high %v1032_v55, %v1036_v52  ;;  %v8780_v3 = vcombine.low %v1032_v55, %v1036_v52  ;;  %v1093_v55 = vld [vmem:[%s9140_s22 + $0x1c38] sm:$0xff] }
 0x39e   : > { %v8782_v4 = vcombine.low %v1033_v56, %v1037_v57 }
 0x39f   : > { %7355 = vmatpush1.bf16.msra.mxu0 %v8716_v63  ;;  %7683 = vmatpush1.bf16.msra.mxu1 %v8718_v6  ;;  %v8783_v63 = vcombine.high %v1033_v56, %v1037_v57  ;;  %v1040_v6 = vld [vmem:[%s9140_s22 + $0x1a90] sm:$0xff] }
 0x3a0   : > { %7356 = vmatprep.subr.bf16.mxu0 %v8725_v9  ;;  %7684 = vmatprep.subr.bf16.mxu1 %v8727_v1  ;;  %v1044_v9 = vld [vmem:[%s9140_s22 + $0x1ab0] sm:$0xff]  ;;  %v1041_v1 = vld [vmem:[%s9140_s22 + $0x1a98] sm:$0xff] }
 0x3a1   : > { %v8789_v5 = vcombine.high %v1040_v6, %v1044_v9  ;;  %v8788_v13 = vcombine.low %v1040_v6, %v1044_v9  ;;  %v8790_v14 = vcombine.low %v1041_v1, %v1045_v33  ;;  %v1101_v6 = vld [vmem:[%s9140_s22 + $0x1c78] sm:$0xff] }
 0x3a3   : > { %7357 = vmatpush1.bf16.msra.mxu0 %v8724_v28  ;;  %7685 = vmatpush1.bf16.msra.mxu1 %v8726_v30  ;;  %v8791_v28 = vcombine.high %v1041_v1, %v1045_v33  ;;  %v1048_v30 = vld [vmem:[%s9140_s22 + $0x1ad0] sm:$0xff] }
 0x3a4   : > { %7358 = vmatprep.subr.bf16.mxu0 %v8733_v7  ;;  %7686 = vmatprep.subr.bf16.mxu1 %v8735_v11  ;;  %v1052_v7 = vld [vmem:[%s9140_s22 + $0x1af0] sm:$0xff]  ;;  %v1049_v11 = vld [vmem:[%s9140_s22 + $0x1ad8] sm:$0xff] }
 0x3a5   : > { %v8797_v15 = vcombine.high %v1048_v30, %v1052_v7  ;;  %v8796_v17 = vcombine.low %v1048_v30, %v1052_v7  ;;  %v8798_v21 = vcombine.low %v1049_v11, %v1053_v12  ;;  %v1109_v30 = vld [vmem:[%s9140_s22 + $0x1cb8] sm:$0xff] }
 0x3a7   : > { %7359 = vmatpush1.bf16.msra.mxu0 %v8732_v16  ;;  %7687 = vmatpush1.bf16.msra.mxu1 %v8734_v38  ;;  %v8799_v16 = vcombine.high %v1049_v11, %v1053_v12  ;;  %v1056_v38 = vld [vmem:[%s9140_s22 + $0x1b10] sm:$0xff] }
 0x3a8   : > { %7360 = vmatprep.subr.bf16.mxu0 %v8741_v2  ;;  %7688 = vmatprep.subr.bf16.mxu1 %v8743_v18  ;;  %v1060_v2 = vld [vmem:[%s9140_s22 + $0x1b30] sm:$0xff]  ;;  %v1057_v18 = vld [vmem:[%s9140_s22 + $0x1b18] sm:$0xff] }
 0x3a9   : > { %v8805_v22 = vcombine.high %v1056_v38, %v1060_v2  ;;  %v8804_v29 = vcombine.low %v1056_v38, %v1060_v2  ;;  %v8806_v31 = vcombine.low %v1057_v18, %v1061_v54  ;;  %v1117_v38 = vld [vmem:[%s9140_s22 + $0x1cf8] sm:$0xff] }
 0x3ab   : > { %7361 = vmatpush1.bf16.msra.mxu0 %v8740_v10  ;;  %7689 = vmatpush1.bf16.msra.mxu1 %v8742_v39  ;;  %v8807_v10 = vcombine.high %v1057_v18, %v1061_v54  ;;  %v1064_v39 = vld [vmem:[%s9140_s22 + $0x1b50] sm:$0xff] }
 0x3ac   : > { %7362 = vmatprep.subr.bf16.mxu0 %v8749_v25  ;;  %7690 = vmatprep.subr.bf16.mxu1 %v8751_v26  ;;  %v1068_v25 = vld [vmem:[%s9140_s22 + $0x1b70] sm:$0xff]  ;;  %v1065_v26 = vld [vmem:[%s9140_s22 + $0x1b58] sm:$0xff] }
 0x3ad   : > { %v8813_v32 = vcombine.high %v1064_v39, %v1068_v25  ;;  %v8812_v36 = vcombine.low %v1064_v39, %v1068_v25  ;;  %v8814_v37 = vcombine.low %v1065_v26, %v1069_v27 }
 0x3af   : > { %7363 = vmatpush1.bf16.msra.mxu0 %v8748_v0  ;;  %7691 = vmatpush1.bf16.msra.mxu1 %v8750_v49  ;;  %v8815_v0 = vcombine.high %v1065_v26, %v1069_v27  ;;  %v1072_v49 = vld [vmem:[%s9140_s22 + $0x1b90] sm:$0xff] }
 0x3b0   : > { %7364 = vmatprep.subr.bf16.mxu0 %v8757_v34  ;;  %7692 = vmatprep.subr.bf16.mxu1 %v8759_v20  ;;  %v1076_v34 = vld [vmem:[%s9140_s22 + $0x1bb0] sm:$0xff]  ;;  %v1073_v20 = vld [vmem:[%s9140_s22 + $0x1b98] sm:$0xff] }
 0x3b1   : > { %v8821_v40 = vcombine.high %v1072_v49, %v1076_v34  ;;  %v8820_v46 = vcombine.low %v1072_v49, %v1076_v34  ;;  %v8822_v47 = vcombine.low %v1073_v20, %v1077_v35  ;;  %v1128_v27 = vld [vmem:[%s9140_s22 + $0x1d50] sm:$0xff] }
 0x3b3   : > { %7365 = vmatpush1.bf16.msra.mxu0 %v8756_v41  ;;  %7693 = vmatpush1.bf16.msra.mxu1 %v8758_v42  ;;  %v8823_v41 = vcombine.high %v1073_v20, %v1077_v35  ;;  %v1080_v42 = vld [vmem:[%s9140_s22 + $0x1bd0] sm:$0xff] }
 0x3b4   : > { %7366 = vmatprep.subr.bf16.mxu0 %v8765_v43  ;;  %7694 = vmatprep.subr.bf16.mxu1 %v8767_v44  ;;  %v1084_v43 = vld [vmem:[%s9140_s22 + $0x1bf0] sm:$0xff]  ;;  %v1081_v44 = vld [vmem:[%s9140_s22 + $0x1bd8] sm:$0xff] }
 0x3b5   : > { %v8829_v48 = vcombine.high %v1080_v42, %v1084_v43  ;;  %v8828_v52 = vcombine.low %v1080_v42, %v1084_v43  ;;  %v8830_v56 = vcombine.low %v1081_v44, %v1085_v60  ;;  %v1136_v35 = vld [vmem:[%s9140_s22 + $0x1d90] sm:$0xff] }
 0x3b7   : > { %7367 = vmatpush1.bf16.msra.mxu0 %v8764_v51  ;;  %7695 = vmatpush1.bf16.msra.mxu1 %v8766_v53  ;;  %v8831_v51 = vcombine.high %v1081_v44, %v1085_v60  ;;  %v1088_v53 = vld [vmem:[%s9140_s22 + $0x1c10] sm:$0xff] }
 0x3b8   : > { %7368 = vmatprep.subr.bf16.mxu0 %v8773_v59  ;;  %7696 = vmatprep.subr.bf16.mxu1 %v8775_v24  ;;  %v1092_v59 = vld [vmem:[%s9140_s22 + $0x1c30] sm:$0xff]  ;;  %v1089_v24 = vld [vmem:[%s9140_s22 + $0x1c18] sm:$0xff] }
 0x3b9   : > { %v8837_v57 = vcombine.high %v1088_v53, %v1092_v59  ;;  %v8836_v9 = vcombine.low %v1088_v53, %v1092_v59  ;;  %v8838_v1 = vcombine.low %v1089_v24, %v1093_v55  ;;  %v1144_v60 = vld [vmem:[%s9140_s22 + $0x1dd0] sm:$0xff] }
 0x3bb   : > { %7369 = vmatpush1.bf16.msra.mxu0 %v8772_v58  ;;  %7697 = vmatpush1.bf16.msra.mxu1 %v8774_v61  ;;  %v8839_v58 = vcombine.high %v1089_v24, %v1093_v55  ;;  %v1096_v61 = vld [vmem:[%s9140_s22 + $0x1c50] sm:$0xff] }
 0x3bc   : > { %7370 = vmatprep.subr.bf16.mxu0 %v8781_v62  ;;  %7698 = vmatprep.subr.bf16.mxu1 %v8783_v63  ;;  %v1100_v62 = vld [vmem:[%s9140_s22 + $0x1c70] sm:$0xff]  ;;  %v1097_v63 = vld [vmem:[%s9140_s22 + $0x1c58] sm:$0xff] }
 0x3bd   : > { %v8845_v33 = vcombine.high %v1096_v61, %v1100_v62  ;;  %v8844_v7 = vcombine.low %v1096_v61, %v1100_v62  ;;  %v8846_v11 = vcombine.low %v1097_v63, %v1101_v6  ;;  %v1152_v55 = vld [vmem:[%s9140_s22 + $0x1e10] sm:$0xff] }
 0x3bf   : > { %7371 = vmatpush1.bf16.msra.mxu0 %v8780_v3  ;;  %7699 = vmatpush1.bf16.msra.mxu1 %v8782_v4  ;;  %v8847_v3 = vcombine.high %v1097_v63, %v1101_v6  ;;  %v1104_v4 = vld [vmem:[%s9140_s22 + $0x1c90] sm:$0xff] }
 0x3c0   : > { %7372 = vmatprep.subr.bf16.mxu0 %v8789_v5  ;;  %7700 = vmatprep.subr.bf16.mxu1 %v8791_v28  ;;  %v1108_v5 = vld [vmem:[%s9140_s22 + $0x1cb0] sm:$0xff]  ;;  %v1105_v28 = vld [vmem:[%s9140_s22 + $0x1c98] sm:$0xff] }
 0x3c1   : > { %v8853_v12 = vcombine.high %v1104_v4, %v1108_v5  ;;  %v8854_v2 = vcombine.low %v1105_v28, %v1109_v30  ;;  %v1160_v6 = vld [vmem:[%s9140_s22 + $0x1e50] sm:$0xff] }
 0x3c3   : > { %7373 = vmatpush1.bf16.msra.mxu0 %v8788_v13  ;;  %7701 = vmatpush1.bf16.msra.mxu1 %v8790_v14  ;;  %v8855_v13 = vcombine.high %v1105_v28, %v1109_v30  ;;  %v1112_v14 = vld [vmem:[%s9140_s22 + $0x1cd0] sm:$0xff] }
 0x3c4   : > { %7374 = vmatprep.subr.bf16.mxu0 %v8797_v15  ;;  %7702 = vmatprep.subr.bf16.mxu1 %v8799_v16  ;;  %v1116_v15 = vld [vmem:[%s9140_s22 + $0x1cf0] sm:$0xff]  ;;  %v1113_v16 = vld [vmem:[%s9140_s22 + $0x1cd8] sm:$0xff] }
 0x3c5   : > { %v8861_v18 = vcombine.high %v1112_v14, %v1116_v15  ;;  %v8863_v54 = vcombine.high %v1113_v16, %v1117_v38  ;;  %v8860_v39 = vcombine.low %v1112_v14, %v1116_v15  ;;  %v1168_v30 = vld [vmem:[%s9140_s22 + $0x1e90] sm:$0xff] }
 0x3c7   : > { %7375 = vmatpush1.bf16.msra.mxu0 %v8796_v17  ;;  %7703 = vmatpush1.bf16.msra.mxu1 %v8798_v21  ;;  %v1120_v17 = vld [vmem:[%s9140_s22 + $0x1d10] sm:$0xff] }
 0x3c8   : > { %7376 = vmatprep.subr.bf16.mxu0 %v8805_v22  ;;  %7704 = vmatprep.subr.bf16.mxu1 %v8807_v10  ;;  %v1124_v21 = vld [vmem:[%s9140_s22 + $0x1d30] sm:$0xff]  ;;  %v1121_v22 = vld [vmem:[%s9140_s22 + $0x1d18] sm:$0xff] }
 0x3c9   : > { %v1125_v10 = vld [vmem:[%s9140_s22 + $0x1d38] sm:$0xff]  ;;  %v8869_v25 = vcombine.high %v1120_v17, %v1124_v21 }
 0x3ca   : > { %v8871_v26 = vcombine.high %v1121_v22, %v1125_v10  ;;  %v8870_v49 = vcombine.low %v1121_v22, %v1125_v10  ;;  %v1184_v10 = vld [vmem:[%s9140_s22 + $0x1f10] sm:$0xff] }
 0x3cb   : > { %7377 = vmatpush1.bf16.msra.mxu0 %v8804_v29  ;;  %7705 = vmatpush1.bf16.msra.mxu1 %v8806_v31  ;;  %v1132_v29 = vld [vmem:[%s9140_s22 + $0x1d70] sm:$0xff]  ;;  %v1129_v31 = vld [vmem:[%s9140_s22 + $0x1d58] sm:$0xff] }
 0x3cc   : > { %7378 = vmatprep.subr.bf16.mxu0 %v8813_v32  ;;  %7706 = vmatprep.subr.bf16.mxu1 %v8815_v0  ;;  %v1133_v32 = vld [vmem:[%s9140_s22 + $0x1d78] sm:$0xff]  ;;  %v8868_v0 = vcombine.low %v1120_v17, %v1124_v21  ;;  %v8877_v34 = vcombine.high %v1128_v27, %v1132_v29 }
 0x3cd   : > { %v8879_v20 = vcombine.high %v1129_v31, %v1133_v32  ;;  %v8878_v42 = vcombine.low %v1129_v31, %v1133_v32  ;;  %v1192_v32 = vld [vmem:[%s9140_s22 + $0x1f50] sm:$0xff] }
 0x3cf   : > { %7379 = vmatpush1.bf16.msra.mxu0 %v8812_v36  ;;  %7707 = vmatpush1.bf16.msra.mxu1 %v8814_v37  ;;  %v1140_v36 = vld [vmem:[%s9140_s22 + $0x1db0] sm:$0xff]  ;;  %v1137_v37 = vld [vmem:[%s9140_s22 + $0x1d98] sm:$0xff] }
 0x3d0   : > { %7380 = vmatprep.subr.bf16.mxu0 %v8821_v40  ;;  %7708 = vmatprep.subr.bf16.mxu1 %v8823_v41  ;;  %v1141_v40 = vld [vmem:[%s9140_s22 + $0x1db8] sm:$0xff]  ;;  %v8876_v41 = vcombine.low %v1128_v27, %v1132_v29  ;;  %v8885_v43 = vcombine.high %v1136_v35, %v1140_v36 }
 0x3d1   : > { %v8887_v44 = vcombine.high %v1137_v37, %v1141_v40  ;;  %v8886_v53 = vcombine.low %v1137_v37, %v1141_v40  ;;  %v1200_v40 = vld [vmem:[%s9140_s22 + $0x1f90] sm:$0xff] }
 0x3d3   : > { %7381 = vmatpush1.bf16.msra.mxu0 %v8820_v46  ;;  %7709 = vmatpush1.bf16.msra.mxu1 %v8822_v47  ;;  %v1148_v46 = vld [vmem:[%s9140_s22 + $0x1df0] sm:$0xff]  ;;  %v1145_v47 = vld [vmem:[%s9140_s22 + $0x1dd8] sm:$0xff] }
 0x3d4   : > { %7382 = vmatprep.subr.bf16.mxu0 %v8829_v48  ;;  %7710 = vmatprep.subr.bf16.mxu1 %v8831_v51  ;;  %v1149_v48 = vld [vmem:[%s9140_s22 + $0x1df8] sm:$0xff]  ;;  %v8884_v51 = vcombine.low %v1136_v35, %v1140_v36  ;;  %v8893_v59 = vcombine.high %v1144_v60, %v1148_v46 }
 0x3d5   : > { %v8895_v24 = vcombine.high %v1145_v47, %v1149_v48  ;;  %v8894_v61 = vcombine.low %v1145_v47, %v1149_v48  ;;  %v1208_v48 = vld [vmem:[%s9140_s22 + $0x1fd0] sm:$0xff] }
 0x3d7   : > { %7383 = vmatpush1.bf16.msra.mxu0 %v8828_v52  ;;  %7711 = vmatpush1.bf16.msra.mxu1 %v8830_v56  ;;  %v1156_v52 = vld [vmem:[%s9140_s22 + $0x1e30] sm:$0xff]  ;;  %v1153_v56 = vld [vmem:[%s9140_s22 + $0x1e18] sm:$0xff] }
 0x3d8   : > { %7393 = vmatprep.subr.bf16.mxu0 %v8837_v57  ;;  %7721 = vmatprep.subr.bf16.mxu1 %v8839_v58  ;;  %v1157_v57 = vld [vmem:[%s9140_s22 + $0x1e38] sm:$0xff]  ;;  %v8892_v58 = vcombine.low %v1144_v60, %v1148_v46  ;;  %v8901_v62 = vcombine.high %v1152_v55, %v1156_v52 }
 0x3d9   : > { %v8903_v63 = vcombine.high %v1153_v56, %v1157_v57 }
 0x3da   : > { %7385 = vmatmul.mubr.bf16.vlgmr.msra.gmra.mrb[4].mxu0 %v9716_v8  ;;  %7713 = vmatmul.mubr.bf16.vlgmr.msra.gmra.mrb[4].mxu1 %v9716_v8  ;;  %v8852_v8 = vcombine.low %v1104_v4, %v1108_v5  ;;  %v8902_v4 = vcombine.low %v1153_v56, %v1157_v57 }
 0x3db   : > { %7394 = vmatpush1.bf16.msra.mxu0 %v8836_v9  ;;  %7722 = vmatpush1.bf16.msra.mxu1 %v8838_v1  ;;  %v1164_v9 = vld [vmem:[%s9140_s22 + $0x1e70] sm:$0xff]  ;;  %v1161_v1 = vld [vmem:[%s9140_s22 + $0x1e58] sm:$0xff] }
 0x3dc   : > { %7395 = vmatprep.subr.bf16.mxu0 %v8845_v33  ;;  %7723 = vmatprep.subr.bf16.mxu1 %v8847_v3  ;;  %v1165_v33 = vld [vmem:[%s9140_s22 + $0x1e78] sm:$0xff]  ;;  %v8900_v3 = vcombine.low %v1152_v55, %v1156_v52  ;;  %v8909_v5 = vcombine.high %v1160_v6, %v1164_v9 }
 0x3dd   : > { %7425 = vmatprep.mubr.bf16.mxu0 %v9724_v19  ;;  %7753 = vmatprep.mubr.bf16.mxu1 %v9724_v19  ;;  %v8862_v19 = vcombine.low %v1113_v16, %v1117_v38  ;;  %v8911_v28 = vcombine.high %v1161_v1, %v1165_v33  ;;  %v8910_v14 = vcombine.low %v1161_v1, %v1165_v33  ;;  %v1176_v38 = vld [vmem:[%s9140_s22 + $0x1ed0] sm:$0xff] }
 0x3df   : > { %7396 = vmatpush1.bf16.msra.mxu0 %v8844_v7  ;;  %7724 = vmatpush1.bf16.msra.mxu1 %v8846_v11  ;;  %v1172_v7 = vld [vmem:[%s9140_s22 + $0x1eb0] sm:$0xff]  ;;  %v1169_v11 = vld [vmem:[%s9140_s22 + $0x1e98] sm:$0xff] }
 0x3e0   : > { %7397 = vmatprep.subr.bf16.mxu0 %v8853_v12  ;;  %7725 = vmatprep.subr.bf16.mxu1 %v8855_v13  ;;  %v1173_v12 = vld [vmem:[%s9140_s22 + $0x1eb8] sm:$0xff]  ;;  %v8908_v13 = vcombine.low %v1160_v6, %v1164_v9  ;;  %v8917_v15 = vcombine.high %v1168_v30, %v1172_v7 }
 0x3e1   : > { %v8919_v16 = vcombine.high %v1169_v11, %v1173_v12  ;;  %v8918_v17 = vcombine.low %v1169_v11, %v1173_v12  ;;  %v7816_v12 = vld [vmem:[%s10386_s2] sm:$0xff] (!%p8960_p6) }
 0x3e3   : > { %7398 = vmatpush1.bf16.msra.mxu0 %v8852_v8  ;;  %7726 = vmatpush1.bf16.msra.mxu1 %v8854_v2  ;;  %v1180_v8 = vld [vmem:[%s9140_s22 + $0x1ef0] sm:$0xff]  ;;  %v1177_v2 = vld [vmem:[%s9140_s22 + $0x1ed8] sm:$0xff] }
 0x3e4   : > { %7399 = vmatprep.subr.bf16.mxu0 %v8861_v18  ;;  %7727 = vmatprep.subr.bf16.mxu1 %v8863_v54  ;;  %v1181_v18 = vld [vmem:[%s9140_s22 + $0x1ef8] sm:$0xff]  ;;  %v8916_v54 = vcombine.low %v1168_v30, %v1172_v7  ;;  %v8925_v21 = vcombine.high %v1176_v38, %v1180_v8  ;;  %v187_v7 = vld [vmem:[%s10387_s3 + $0x8] sm:$0xff] }
 0x3e5   : > { %v8927_v22 = vcombine.high %v1177_v2, %v1181_v18  ;;  %v8926_v27 = vcombine.low %v1177_v2, %v1181_v18  ;;  %v7844_v2 = vsub.s32 (!%p8960_p6), 6, %v9171_v45  ;;  %v7848_v18 = vsub.s32 (!%p8960_p6), 7, %v9171_v45 }
 0x3e7   : > { %7400 = vmatpush1.bf16.msra.mxu0 %v8860_v39  ;;  %7728 = vmatpush1.bf16.msra.mxu1 %v8862_v19  ;;  %v1188_v39 = vld [vmem:[%s9140_s22 + $0x1f30] sm:$0xff]  ;;  %v1185_v19 = vld [vmem:[%s9140_s22 + $0x1f18] sm:$0xff] }
 0x3e8   : > { %7401 = vmatprep.subr.bf16.mxu0 %v8869_v25  ;;  %7729 = vmatprep.subr.bf16.mxu1 %v8871_v26  ;;  %v1189_v25 = vld [vmem:[%s9140_s22 + $0x1f38] sm:$0xff]  ;;  %v8924_v26 = vcombine.low %v1176_v38, %v1180_v8  ;;  %v8933_v29 = vcombine.high %v1184_v10, %v1188_v39  ;;  %v7836_v38 = vsub.s32 (!%p8960_p6), 4, %v9171_v45  ;;  %v7840_v8 = vsub.s32 (!%p8960_p6), 5, %v9171_v45 }
 0x3e9   : > { %v8935_v31 = vcombine.high %v1185_v19, %v1189_v25  ;;  %v8934_v35 = vcombine.low %v1185_v19, %v1189_v25  ;;  %v7845_v19 = vrot.slane (!%p8960_p6), %v7816_v12, %v7844_v2  ;;  %v7849_v25 = vrot.slane (!%p8960_p6), %v7816_v12, %v7848_v18 }
 0x3eb   : > { %7402 = vmatpush1.bf16.msra.mxu0 %v8868_v0  ;;  %7730 = vmatpush1.bf16.msra.mxu1 %v8870_v49  ;;  %v1196_v0 = vld [vmem:[%s9140_s22 + $0x1f70] sm:$0xff]  ;;  %v1193_v49 = vld [vmem:[%s9140_s22 + $0x1f58] sm:$0xff] }
 0x3ec   : > { %7403 = vmatprep.subr.bf16.mxu0 %v8877_v34  ;;  %7731 = vmatprep.subr.bf16.mxu1 %v8879_v20  ;;  %v1197_v34 = vld [vmem:[%s9140_s22 + $0x1f78] sm:$0xff]  ;;  %v8932_v20 = vcombine.low %v1184_v10, %v1188_v39  ;;  %v8941_v36 = vcombine.high %v1192_v32, %v1196_v0  ;;  %v7837_v10 = vrot.slane (!%p8960_p6), %v7816_v12, %v7836_v38 }
 0x3ed   : > { %v8943_v37 = vcombine.high %v1193_v49, %v1197_v34  ;;  %v8942_v60 = vcombine.low %v1193_v49, %v1197_v34  ;;  %v7841_v39 = vrot.slane (!%p8960_p6), %v7816_v12, %v7840_v8 }
 0x3ef   : > { %7404 = vmatpush1.bf16.msra.mxu0 %v8876_v41  ;;  %7732 = vmatpush1.bf16.msra.mxu1 %v8878_v42  ;;  %v1204_v41 = vld [vmem:[%s9140_s22 + $0x1fb0] sm:$0xff]  ;;  %v1201_v42 = vld [vmem:[%s9140_s22 + $0x1f98] sm:$0xff] }
 0x3f0   : > { %7405 = vmatprep.subr.bf16.mxu0 %v8885_v43  ;;  %7733 = vmatprep.subr.bf16.mxu1 %v8887_v44  ;;  %v1205_v43 = vld [vmem:[%s9140_s22 + $0x1fb8] sm:$0xff]  ;;  %v8940_v44 = vcombine.low %v1192_v32, %v1196_v0  ;;  %v8949_v46 = vcombine.high %v1200_v40, %v1204_v41 }
 0x3f1   : > { %v8951_v47 = vcombine.high %v1201_v42, %v1205_v43  ;;  %v8950_v55 = vcombine.low %v1201_v42, %v1205_v43 }
 0x3f3   : > { %7406 = vmatpush1.bf16.msra.mxu0 %v8884_v51  ;;  %7734 = vmatpush1.bf16.msra.mxu1 %v8886_v53  ;;  %v1212_v51 = vld [vmem:[%s9140_s22 + $0x1ff0] sm:$0xff]  ;;  %v1209_v53 = vld [vmem:[%s9140_s22 + $0x1fd8] sm:$0xff] }
 0x3f4   : > { %7407 = vmatprep.subr.bf16.mxu0 %v8893_v59  ;;  %7735 = vmatprep.subr.bf16.mxu1 %v8895_v24  ;;  %v1213_v59 = vld [vmem:[%s9140_s22 + $0x1ff8] sm:$0xff]  ;;  %v8948_v24 = vcombine.low %v1200_v40, %v1204_v41  ;;  %v8957_v52 = vcombine.high %v1208_v48, %v1212_v51  ;;  %v8956_v57 = vcombine.low %v1208_v48, %v1212_v51 }
 0x3f5   : > { %v8959_v56 = vcombine.high %v1209_v53, %v1213_v59 }
 0x3f7   : > { %7408 = vmatpush1.bf16.msra.mxu0 %v8892_v58  ;;  %7736 = vmatpush1.bf16.msra.mxu1 %v8894_v61  ;;  %v8958_v58 = vcombine.low %v1209_v53, %v1213_v59 }
 0x3f8   : > { %7409 = vmatprep.subr.bf16.mxu0 %v8901_v62  ;;  %7737 = vmatprep.subr.bf16.mxu1 %v8903_v63 }
 0x3fb   : > { %7410 = vmatpush1.bf16.msra.mxu0 %v8900_v3  ;;  %7738 = vmatpush1.bf16.msra.mxu1 %v8902_v4 }
 0x3fc   : > { %7411 = vmatprep.subr.bf16.mxu0 %v8909_v5  ;;  %7739 = vmatprep.subr.bf16.mxu1 %v8911_v28 }
 0x3ff   : > { %7412 = vmatpush1.bf16.msra.mxu0 %v8908_v13  ;;  %7740 = vmatpush1.bf16.msra.mxu1 %v8910_v14  ;;  %v7820_v13 = vsub.s32 (!%p8960_p6), 0, %v9171_v45  ;;  %v7824_v14 = vsub.s32 (!%p8960_p6), 1, %v9171_v45 }
 0x400   : > { %7413 = vmatprep.subr.bf16.mxu0 %v8917_v15  ;;  %7741 = vmatprep.subr.bf16.mxu1 %v8919_v16  ;;  %v7828_v15 = vsub.s32 (!%p8960_p6), 2, %v9171_v45  ;;  %v7832_v16 = vsub.s32 (!%p8960_p6), 3, %v9171_v45  ;;  %v7814_v45 = vld [vmem:[%s10387_s3] sm:$0xff] (!%p8960_p6) }
 0x403   : > { %7414 = vmatpush1.bf16.msra.mxu0 %v8916_v54  ;;  %7742 = vmatpush1.bf16.msra.mxu1 %v8918_v17  ;;  %v7821_v54 = vrot.slane (!%p8960_p6), %v7816_v12, %v7820_v13  ;;  %v7825_v17 = vrot.slane (!%p8960_p6), %v7816_v12, %v7824_v14 }
 0x404   : > { %7415 = vmatprep.subr.bf16.mxu0 %v8925_v21  ;;  %7743 = vmatprep.subr.bf16.mxu1 %v8927_v22  ;;  %v7829_v21 = vrot.slane (!%p8960_p6), %v7816_v12, %v7828_v15  ;;  %v7833_v22 = vrot.slane (!%p8960_p6), %v7816_v12, %v7832_v16 }
 0x407   : > { %7416 = vmatpush1.bf16.msra.mxu0 %v8924_v26  ;;  %7744 = vmatpush1.bf16.msra.mxu1 %v8926_v27  ;;  %v7850_v26 = vcombine.low (!%p8960_p6), %v7821_v54, %v7825_v17  ;;  %v7851_v27 = vcombine.low (!%p8960_p6), %v7829_v21, %v7833_v22 }
 0x408   : > { %7417 = vmatprep.subr.bf16.mxu0 %v8933_v29  ;;  %7745 = vmatprep.subr.bf16.mxu1 %v8935_v31  ;;  %v7867_v29 = vcombine.low (!%p8960_p6), %v7837_v10, %v7841_v39  ;;  %v7868_v31 = vcombine.low (!%p8960_p6), %v7845_v19, %v7849_v25 }
 0x409   : > { %v7858_v32 = vrot.slane (!%p8960_p6), %v7850_v26, %v10025_v23  ;;  %v7865_v0 = vrot.slane (!%p8960_p6), %v7851_v27, %v10025_v23 }
 0x40a   : > { %v7875_v49 = vrot.slane (!%p8960_p6), %v7867_v29, %v10025_v23  ;;  %v7882_v34 = vrot.slane (!%p8960_p6), %v7868_v31, %v10025_v23 }
 0x40b   : > { %7418 = vmatpush1.bf16.msra.mxu0 %v8932_v20  ;;  %7746 = vmatpush1.bf16.msra.mxu1 %v8934_v35  ;;  %v7866_v20 = vcombine.low (!%p8960_p6), %v7858_v32, %v7865_v0 }
 0x40c   : > { %7419 = vmatprep.subr.bf16.mxu0 %v8941_v36  ;;  %7747 = vmatprep.subr.bf16.mxu1 %v8943_v37  ;;  %v7883_v36 = vcombine.low (!%p8960_p6), %v7875_v49, %v7882_v34 }
 0x40d   : > { %v7886_v37 = vadd.f32 (!%p8960_p6), %v7866_v20, %v7814_v45 }
 0x40f   : > { %7420 = vmatpush1.bf16.msra.mxu0 %v8940_v44  ;;  %7748 = vmatpush1.bf16.msra.mxu1 %v8942_v60  ;;  %7888 = vst [vmem:[%s10387_s3] sm:$0xff] (!%p8960_p6), %v7886_v37 }
 0x410   : > { %7421 = vmatprep.subr.bf16.mxu0 %v8949_v46  ;;  %7749 = vmatprep.subr.bf16.mxu1 %v8951_v47 }
 0x413   : > { %7422 = vmatpush1.bf16.msra.mxu0 %v8948_v24  ;;  %7750 = vmatpush1.bf16.msra.mxu1 %v8950_v55 }
 0x414   : > { %7423 = vmatprep.subr.bf16.mxu0 %v8957_v52  ;;  %7751 = vmatprep.subr.bf16.mxu1 %v8959_v56 }
 0x417   : > { %7424 = vmatpush1.bf16.msra.mxu0 %v8956_v57  ;;  %7752 = vmatpush1.bf16.msra.mxu1 %v8958_v58 }
 0x41a   : > { %7426 = vmatmul.mubr.bf16.vlgmr.msra.gmra.mrb[4].mxu0 %v9792_v50  ;;  %7754 = vmatmul.mubr.bf16.vlgmr.msra.gmra.mrb[4].mxu1 %v9792_v50 }
 0x4ed   : > { %v7427_v61 = vpop.f32.mrb[4].mxu0  ;;  %v7755_v62 = vpop.f32.mrb[4].mxu1 }
 0x4ee   : > { %v7429_v63 = vpop.f32.mrb[5].mxu0  ;;  %v7757_v9 = vpop.f32.mrb[5].mxu1 }
 0x4ef   : > { %v7787_v6 = vcombine.low %v7427_v61, %v7429_v63  ;;  %v7431_v1 = vpop.f32.mrb[6].mxu0  ;;  %v7788_v33 = vcombine.low %v7755_v62, %v7757_v9  ;;  %v7759_v3 = vpop.f32.mrb[6].mxu1 }
 0x4f0   : > { %v7432_v4 = vpop.f32.mrb[7].mxu0  ;;  %v7760_v28 = vpop.f32.mrb[7].mxu1 }
 0x4f1   : > { %v7795_v5 = vrot.slane %v7787_v6, %v10025_v23  ;;  %v7802_v30 = vrot.slane %v7788_v33, %v10025_v23  ;;  %7813 = sbr.rel (%p8960_p6) target bundleno = 1282 (0x502), region = 40 }
 0x4f3   : > { %v7803_v11 = vcombine.low %v7795_v5, %v7802_v30 }
 0x4f5   : > { %v7807_v50 = vadd.f32 %v7803_v11, %v187_v7 }
 0x4f7   : > { %7809 = vst [vmem:[%s10387_s3 + $0x8] sm:$0xff] %v7807_v50 }
 0x4fe   : > { %v7815_v35 = vld [vmem:[%s10387_s3 + $0x8] sm:$0xff] }
 0x4ff   : > { %v7887_v40 = vadd.f32 %v7883_v36, %v7815_v35 }
 0x501   : > { %7889 = vst [vmem:[%s10387_s3 + $0x8] sm:$0xff] %v7887_v40 }
 0x502 PF: > { %s13_s12 = sadd.s32 1, %s9095_s12  }
 0x503   : > { %p10_p7 = scmp.ge.s32.totalorder %s13_s12, 4  }
 0x505   :  { %12 = sbr.rel (!%p10_p7) target bundleno = 1 (0x1), region = 69 }

</bundles_post_ra>
